<compile_context>
chip_gen: v6e
topology: v6e:2x2x1
jax: 0.10.0
libtpu: 0.0.40
codegen_flags: <defaults>
</compile_context>

<pallas_src>
import jax
import jax.numpy as jnp
from jax.experimental import pallas as pl
from jax.experimental.pallas import tpu as pltpu


# ----------------------------------------------------------------------------
# Kernel 1: otl conv branch (convs + ReLU + both max-pools), (L, C) layout
# ----------------------------------------------------------------------------
def _conv1d_relu_lc(x, w_ref, b_ref):
    """Valid 1-D conv + ReLU.  x:(L,Cin) value, w_ref:(K,Cin,Cout), b_ref:(1,Cout)."""
    K, Cin, Cout = w_ref.shape
    Lout = x.shape[0] - K + 1
    acc = None
    for k in range(K):
        xs = x[k:k + Lout, :]              # static sublane slice of a value
        wk = w_ref[k]                      # (Cin, Cout)
        if Cin == 1:
            term = xs * wk                 # (Lout,1)*(1,Cout) broadcast (VPU)
        else:
            term = jnp.dot(xs, wk, preferred_element_type=jnp.float32)  # MXU
        acc = term if acc is None else acc + term
    return jnp.maximum(acc + b_ref[...], 0.0)


def _conv_branch_kernel(otl_ref, w1_ref, b1_ref, w2_ref, b2_ref, w3_ref, b3_ref,
                        w4_ref, b4_ref, w5_ref, b5_ref, out_ref, s4_ref, s5_ref):
    x = otl_ref[0]                                   # (360, 1)
    x = _conv1d_relu_lc(x, w1_ref, b1_ref)           # (358, 8)
    x = _conv1d_relu_lc(x, w2_ref, b2_ref)           # (356, 16)
    x = _conv1d_relu_lc(x, w3_ref, b3_ref)           # (354, 32)
    x = _conv1d_relu_lc(x, w4_ref, b4_ref)           # (352, 32)
    # max_pool1d(kernel=2): even/odd rows via sublane-strided reads of scratch.
    s4_ref[...] = x
    h1 = s4_ref.shape[0] // 2
    x = jnp.maximum(s4_ref[pl.ds(0, h1, stride=2), :],
                    s4_ref[pl.ds(1, h1, stride=2), :])   # (176, 32)
    x = _conv1d_relu_lc(x, w5_ref, b5_ref)           # (174, 64)
    s5_ref[...] = x
    h2 = s5_ref.shape[0] // 2
    x = jnp.maximum(s5_ref[pl.ds(0, h2, stride=2), :],
                    s5_ref[pl.ds(1, h2, stride=2), :])   # (87, 64)
    out_ref[0] = x


# ----------------------------------------------------------------------------
# Kernel 2: all Linear layers fused (concat expressed as partial matmuls)
# ----------------------------------------------------------------------------
def _head_kernel(otl_ref, oto_ref, ote_ref, act_ref,
                 w_otl_ref, b_otl_ref,
                 w1o_ref, b1o_ref, w3o_ref, b3o_ref,
                 w1e_ref, b1e_ref, w2e_ref, b2e_ref,
                 wf1a_ref, wf1b_ref, wf1c_ref, wf1d_ref, bf1_ref,
                 wf2_ref, bf2_ref, wf3_ref, bf3_ref,
                 q_ref):
    def dot(a, b):
        return jnp.dot(a, b, preferred_element_type=jnp.float32)

    # otl head: fc1_otl (no ReLU in the original module); bf16 weight, f32 acc.
    otl_out = dot(otl_ref[...].astype(jnp.bfloat16), w_otl_ref[...]) + b_otl_ref[...]
    # oto head
    t = jnp.maximum(dot(oto_ref[...], w1o_ref[...]) + b1o_ref[...], 0.0)
    oto_out = jnp.maximum(dot(t, w3o_ref[...]) + b3o_ref[...], 0.0)
    # ote head
    t = jnp.maximum(dot(ote_ref[...], w1e_ref[...]) + b1e_ref[...], 0.0)
    ote_out = jnp.maximum(dot(t, w2e_ref[...]) + b2e_ref[...], 0.0)
    # trunk: cat([otl_out, oto_out, ote_out, act]) @ W_fc1.T as partial matmuls.
    h = (dot(otl_out, wf1a_ref[...]) + dot(oto_out, wf1b_ref[...])
         + dot(ote_out, wf1c_ref[...]) + dot(act_ref[...], wf1d_ref[...])
         + bf1_ref[...])
    h = jnp.maximum(h, 0.0)
    h = jnp.maximum(dot(h, wf2_ref[...]) + bf2_ref[...], 0.0)
    q_ref[...] = dot(h, wf3_ref[...]) + bf3_ref[...]


# ----------------------------------------------------------------------------
# pallas_call wrappers
# ----------------------------------------------------------------------------
def _full_block_specs(arrays):
    # Whole-array VMEM blocks, same block for every grid point.
    return [pl.BlockSpec(a.shape, lambda *_, nd=a.ndim: (0,) * nd) for a in arrays]


def _conv_branch(prep, otl_lc):
    B, L, _ = otl_lc.shape
    l4 = L - 8            # length after conv1..conv4
    p1 = l4 // 2          # after pool 1
    l5 = p1 - 2           # after conv5
    p2 = l5 // 2          # after pool 2
    w1, b1 = prep["conv1"]; w2, b2 = prep["conv2"]; w3, b3 = prep["conv3"]
    w4, b4 = prep["conv4"]; w5, b5 = prep["conv5"]
    params = [w1, b1, w2, b2, w3, b3, w4, b4, w5, b5]
    in_specs = ([pl.BlockSpec((1, L, 1), lambda b: (b, 0, 0))]
                + _full_block_specs(params))
    return pl.pallas_call(
        _conv_branch_kernel,
        out_shape=jax.ShapeDtypeStruct((B, p2, 64), jnp.float32),
        grid=(B,),
        in_specs=in_specs,
        out_specs=pl.BlockSpec((1, p2, 64), lambda b: (b, 0, 0)),
        scratch_shapes=[pltpu.VMEM((l4, 32), jnp.float32),
                        pltpu.VMEM((l5, 64), jnp.float32)],
        compiler_params=pltpu.CompilerParams(
            dimension_semantics=("parallel",)),
    )(otl_lc, *params)


def _head(prep, otl_flat, oto_flat, ote_flat, act):
    B = otl_flat.shape[0]
    w_otl, b_otl = prep["fc1_otl"]
    w1o, b1o = prep["fc1_oto"]; w3o, b3o = prep["fc3_oto"]
    w1e, b1e = prep["fc1_ote"]; w2e, b2e = prep["fc2_ote"]
    wf1a, wf1b, wf1c, wf1d, bf1 = prep["fc1"]
    wf2, bf2 = prep["fc2"]; wf3, bf3 = prep["fc3"]
    args = [otl_flat, oto_flat, ote_flat, act,
            w_otl, b_otl, w1o, b1o, w3o, b3o, w1e, b1e, w2e, b2e,
            wf1a, wf1b, wf1c, wf1d, bf1, wf2, bf2, wf3, bf3]
    return pl.pallas_call(
        _head_kernel,
        out_shape=jax.ShapeDtypeStruct((B, 1), jnp.float32),
        grid=(1,),
        in_specs=_full_block_specs(args),
        out_specs=pl.BlockSpec((B, 1), lambda i: (0, 0)),
        compiler_params=pltpu.CompilerParams(
            dimension_semantics=("arbitrary",),
            vmem_limit_bytes=32 * 1024 * 1024),
    )(*args)


# ----------------------------------------------------------------------------
# Parameters: PyTorch-layout init + one-time kernel-layout preparation
# ----------------------------------------------------------------------------
def init_critic_params(key, act_dim, hidden_dim):
    def lin_init(k, out_f, in_f):
        k1, k2 = jax.random.split(k)
        bound = 1.0 / jnp.sqrt(in_f)
        w = jax.random.uniform(k1, (out_f, in_f), jnp.float32, -bound, bound)
        b = jax.random.uniform(k2, (out_f,), jnp.float32, -bound, bound)
        return w, b

    def conv_init(k, out_c, in_c, ksz):
        k1, k2 = jax.random.split(k)
        bound = 1.0 / jnp.sqrt(in_c * ksz)
        w = jax.random.uniform(k1, (out_c, in_c, ksz), jnp.float32, -bound, bound)
        b = jax.random.uniform(k2, (out_c,), jnp.float32, -bound, bound)
        return w, b

    ks = jax.random.split(key, 13)
    p = {}
    p["conv1"] = conv_init(ks[0], 8, 1, 3)
    p["conv2"] = conv_init(ks[1], 16, 8, 3)
    p["conv3"] = conv_init(ks[2], 32, 16, 3)
    p["conv4"] = conv_init(ks[3], 32, 32, 3)
    p["conv5"] = conv_init(ks[4], 64, 32, 3)
    p["fc1_otl"] = lin_init(ks[5], 256, 5568)
    p["fc1_oto"] = lin_init(ks[6], 64, 30)
    p["fc3_oto"] = lin_init(ks[7], 256, 64)
    p["fc1_ote"] = lin_init(ks[8], 8, 10)
    p["fc2_ote"] = lin_init(ks[9], 16, 8)
    p["fc1"] = lin_init(ks[10], hidden_dim, 256 + 256 + 16 + act_dim)
    p["fc2"] = lin_init(ks[11], hidden_dim, hidden_dim)
    p["fc3"] = lin_init(ks[12], 1, hidden_dim)
    return p


def prepare_params(p):
    """One-time re-layout of PyTorch-style params into kernel-friendly layouts."""
    prep = {}
    # Conv1d weights (Cout, Cin, K) -> tap-major (K, Cin, Cout); biases -> (1, Cout).
    for name in ("conv1", "conv2", "conv3", "conv4", "conv5"):
        w, b = p[name]
        prep[name] = (jnp.transpose(w, (2, 1, 0)), b.reshape(1, -1))
    # fc1_otl: PyTorch flattens (B, 64, 87) channel-major (col = c*87+l); the conv
    # kernel emits (B, 87, 64) position-major (col = l*64+c) -> permute columns once,
    # store bf16 (f32 accumulate inside the kernel).
    w, b = p["fc1_otl"]
    wp = jnp.transpose(w.reshape(w.shape[0], 64, 87), (2, 1, 0)).reshape(64 * 87, w.shape[0])
    prep["fc1_otl"] = (wp.astype(jnp.bfloat16), b.reshape(1, -1))
    # Plain linears: (N, K) -> (K, N); bias -> (1, N).
    for name in ("fc1_oto", "fc3_oto", "fc1_ote", "fc2_ote", "fc2", "fc3"):
        w, b = p[name]
        prep[name] = (jnp.transpose(w), b.reshape(1, -1))
    # fc1: split along the input axis (otl 256 | oto 256 | ote 16 | act) so the
    # concatenation becomes a sum of partial matmuls inside the kernel.
    w, b = p["fc1"]
    wt = jnp.transpose(w)                  # (530, hidden)
    prep["fc1"] = (wt[0:256], wt[256:512], wt[512:528], wt[528:], b.reshape(1, -1))
    return prep


# ----------------------------------------------------------------------------
# Critic forward (Pallas version): 2 pallas_calls total
# ----------------------------------------------------------------------------
def critic_forward(prep, obs, act):
    ote, oto, otl = obs[0], obs[1], obs[2]
    B = otl.shape[0]
    # TODO(synk): the PyTorch branch that tiles a rank-1 `act` of shape (2,) into
    # (3, 2) is shape-dependent control flow; this implementation assumes a
    # batched `act` of shape (B, act_dim).
    otl_lc = jnp.transpose(otl, (0, 2, 1))            # (B, 360, 1): (length, channel)
    pooled = _conv_branch(prep, otl_lc)               # (B, 87, 64)
    otl_flat = pooled.reshape(B, -1)                  # col = l*64 + c (weight pre-permuted)
    oto_flat = oto.reshape(oto.shape[0], -1)
    ote_flat = ote.reshape(ote.shape[0], -1)
    return _head(prep, otl_flat, oto_flat, ote_flat, act)


# ----------------------------------------------------------------------------
# Pure-JAX reference (PyTorch semantics, original param layout)
# ----------------------------------------------------------------------------
def critic_forward_ref(params, obs, act):
    def lin(x, w, b, relu):
        y = x @ w.T + b
        return jnp.maximum(y, 0.0) if relu else y

    def conv(x, w, b):
        y = jax.lax.conv_general_dilated(
            x, w, (1,), "VALID", dimension_numbers=("NCH", "OIH", "NCH"))
        y = y + b[None, :, None]
        return jnp.maximum(y, 0.0)

    def pool(x):
        h = x.shape[-1] // 2
        return jnp.maximum(x[:, :, 0:2 * h:2], x[:, :, 1:2 * h:2])

    ote, oto, otl = obs[0], obs[1], obs[2]
    x = conv(otl, *params["conv1"])
    x = conv(x, *params["conv2"])
    x = conv(x, *params["conv3"])
    x = conv(x, *params["conv4"])
    x = pool(x)
    x = conv(x, *params["conv5"])
    x = pool(x)
    otl_out = lin(x.reshape(x.shape[0], -1), *params["fc1_otl"], relu=False)
    o = lin(oto.reshape(oto.shape[0], -1), *params["fc1_oto"], relu=True)
    oto_out = lin(o, *params["fc3_oto"], relu=True)
    e = lin(ote.reshape(ote.shape[0], -1), *params["fc1_ote"], relu=True)
    ote_out = lin(e, *params["fc2_ote"], relu=True)
    x = jnp.concatenate([otl_out, oto_out, ote_out, act], axis=1)
    x = lin(x, *params["fc1"], relu=True)
    x = lin(x, *params["fc2"], relu=True)
    return lin(x, *params["fc3"], relu=False)


# ----------------------------------------------------------------------------
if __name__ == "__main__":
    key = jax.random.PRNGKey(0)
    kp, k1, k2, k3, k4 = jax.random.split(key, 5)

    B, act_dim, hidden_dim = 2, 2, 64
    params = init_critic_params(kp, act_dim, hidden_dim)
    prep = prepare_params(params)     # one-time weight re-layout (outside hot path)

    # obs mirrors the PyTorch forward's obs[0..2].
    ote = jax.random.normal(k1, (B, 2, 5), jnp.float32)     # flattens to (B, 10)
    oto = jax.random.normal(k2, (B, 30), jnp.float32)       # flattens to (B, 30)
    otl = jax.random.normal(k3, (B, 1, 360), jnp.float32)   # conv stack -> (B, 64, 87)
    act = jax.random.normal(k4, (B, act_dim), jnp.float32)
    obs = (ote, oto, otl)

    fwd = jax.jit(critic_forward)
    q = jax.block_until_ready(fwd(prep, obs, act))

    q_ref = critic_forward_ref(params, obs, act)
    assert q.shape == (B, 1), q.shape
    assert jnp.allclose(q, q_ref, rtol=2e-2, atol=2e-2), (q, q_ref)

    print("KERNEL_OK")
</pallas_src>

<mosaic_0001>
module attributes {stable_mosaic.version = 11 : i64} {
  func.func @_conv_branch_kernel(%arg0: i32, %arg1: memref<1x360x1xf32, #tpu.memory_space<vmem>>, %arg2: memref<3x1x8xf32, #tpu.memory_space<vmem>>, %arg3: memref<1x8xf32, #tpu.memory_space<vmem>>, %arg4: memref<3x8x16xf32, #tpu.memory_space<vmem>>, %arg5: memref<1x16xf32, #tpu.memory_space<vmem>>, %arg6: memref<3x16x32xf32, #tpu.memory_space<vmem>>, %arg7: memref<1x32xf32, #tpu.memory_space<vmem>>, %arg8: memref<3x32x32xf32, #tpu.memory_space<vmem>>, %arg9: memref<1x32xf32, #tpu.memory_space<vmem>>, %arg10: memref<3x32x64xf32, #tpu.memory_space<vmem>>, %arg11: memref<1x64xf32, #tpu.memory_space<vmem>>, %arg12: memref<1x87x64xf32, #tpu.memory_space<vmem>>, %arg13: memref<352x32xf32, #tpu.memory_space<vmem>>, %arg14: memref<174x64xf32, #tpu.memory_space<vmem>>) attributes {dimension_semantics = [#tpu.dimension_semantics<parallel>], iteration_bounds = array<i64: 2>, scalar_prefetch = 0 : i64, scratch_operands = 2 : i64, tpu.core_type = #tpu.core_type<tc>, window_params = [{transform_indices = @transform_0, window_bounds = array<i64: 1, 360, 1>}, {pipeline_mode = #tpu.pipeline_mode<synchronous>, transform_indices = @transform_1, window_bounds = array<i64: 3, 1, 8>}, {pipeline_mode = #tpu.pipeline_mode<synchronous>, transform_indices = @transform_2, window_bounds = array<i64: 1, 8>}, {pipeline_mode = #tpu.pipeline_mode<synchronous>, transform_indices = @transform_3, window_bounds = array<i64: 3, 8, 16>}, {pipeline_mode = #tpu.pipeline_mode<synchronous>, transform_indices = @transform_4, window_bounds = array<i64: 1, 16>}, {pipeline_mode = #tpu.pipeline_mode<synchronous>, transform_indices = @transform_5, window_bounds = array<i64: 3, 16, 32>}, {pipeline_mode = #tpu.pipeline_mode<synchronous>, transform_indices = @transform_6, window_bounds = array<i64: 1, 32>}, {pipeline_mode = #tpu.pipeline_mode<synchronous>, transform_indices = @transform_7, window_bounds = array<i64: 3, 32, 32>}, {pipeline_mode = #tpu.pipeline_mode<synchronous>, transform_indices = @transform_8, window_bounds = array<i64: 1, 32>}, {pipeline_mode = #tpu.pipeline_mode<synchronous>, transform_indices = @transform_9, window_bounds = array<i64: 3, 32, 64>}, {pipeline_mode = #tpu.pipeline_mode<synchronous>, transform_indices = @transform_10, window_bounds = array<i64: 1, 64>}, {transform_indices = @transform_11, window_bounds = array<i64: 1, 87, 64>}]} {
    %c0 = arith.constant 0 : index
    %c0_0 = arith.constant 0 : index
    %c0_1 = arith.constant 0 : index
    %0 = vector.load %arg1[%c0, %c0_0, %c0_1] : memref<1x360x1xf32, #tpu.memory_space<vmem>>, vector<1x360x1xf32>
    %1 = vector.shape_cast %0 : vector<1x360x1xf32> to vector<360x1xf32>
    %2 = vector.extract_strided_slice %1 {offsets = [0, 0], sizes = [358, 1], strides = [1, 1]} : vector<360x1xf32> to vector<358x1xf32>
    %c0_2 = arith.constant 0 : index
    %c0_3 = arith.constant 0 : index
    %c0_4 = arith.constant 0 : index
    %3 = vector.load %arg2[%c0_2, %c0_3, %c0_4] : memref<3x1x8xf32, #tpu.memory_space<vmem>>, vector<1x1x8xf32>
    %4 = vector.shape_cast %3 : vector<1x1x8xf32> to vector<1x8xf32>
    %5 = vector.broadcast %2 : vector<358x1xf32> to vector<358x8xf32>
    %6 = vector.broadcast %4 : vector<1x8xf32> to vector<358x8xf32>
    %7 = arith.mulf %5, %6 : vector<358x8xf32>
    %8 = vector.extract_strided_slice %1 {offsets = [1, 0], sizes = [358, 1], strides = [1, 1]} : vector<360x1xf32> to vector<358x1xf32>
    %c1 = arith.constant 1 : index
    %c0_5 = arith.constant 0 : index
    %c0_6 = arith.constant 0 : index
    %9 = vector.load %arg2[%c1, %c0_5, %c0_6] : memref<3x1x8xf32, #tpu.memory_space<vmem>>, vector<1x1x8xf32>
    %10 = vector.shape_cast %9 : vector<1x1x8xf32> to vector<1x8xf32>
    %11 = vector.broadcast %8 : vector<358x1xf32> to vector<358x8xf32>
    %12 = vector.broadcast %10 : vector<1x8xf32> to vector<358x8xf32>
    %13 = arith.mulf %11, %12 : vector<358x8xf32>
    %14 = arith.addf %7, %13 : vector<358x8xf32>
    %15 = vector.extract_strided_slice %1 {offsets = [2, 0], sizes = [358, 1], strides = [1, 1]} : vector<360x1xf32> to vector<358x1xf32>
    %c2 = arith.constant 2 : index
    %c0_7 = arith.constant 0 : index
    %c0_8 = arith.constant 0 : index
    %16 = vector.load %arg2[%c2, %c0_7, %c0_8] : memref<3x1x8xf32, #tpu.memory_space<vmem>>, vector<1x1x8xf32>
    %17 = vector.shape_cast %16 : vector<1x1x8xf32> to vector<1x8xf32>
    %18 = vector.broadcast %15 : vector<358x1xf32> to vector<358x8xf32>
    %19 = vector.broadcast %17 : vector<1x8xf32> to vector<358x8xf32>
    %20 = arith.mulf %18, %19 : vector<358x8xf32>
    %21 = arith.addf %14, %20 : vector<358x8xf32>
    %c0_9 = arith.constant 0 : index
    %c0_10 = arith.constant 0 : index
    %22 = vector.load %arg3[%c0_9, %c0_10] : memref<1x8xf32, #tpu.memory_space<vmem>>, vector<1x8xf32>
    %23 = vector.broadcast %22 : vector<1x8xf32> to vector<358x8xf32>
    %24 = arith.addf %21, %23 : vector<358x8xf32>
    %cst = arith.constant 0.000000e+00 : f32
    %25 = vector.broadcast %cst : f32 to vector<358x8xf32>
    %26 = arith.maximumf %24, %25 : vector<358x8xf32>
    %27 = vector.extract_strided_slice %26 {offsets = [0, 0], sizes = [356, 8], strides = [1, 1]} : vector<358x8xf32> to vector<356x8xf32>
    %c0_11 = arith.constant 0 : index
    %c0_12 = arith.constant 0 : index
    %c0_13 = arith.constant 0 : index
    %28 = vector.load %arg4[%c0_11, %c0_12, %c0_13] : memref<3x8x16xf32, #tpu.memory_space<vmem>>, vector<1x8x16xf32>
    %29 = vector.shape_cast %28 : vector<1x8x16xf32> to vector<8x16xf32>
    %cst_14 = arith.constant dense<0.000000e+00> : vector<356x16xf32>
    %30 = tpu.matmul %27, %29, %cst_14 {dimension_numbers = #tpu.dot_dimension_numbers<[1], [0], [0], [1], [0, 0, 1, 1], [], []>} : vector<356x8xf32>, vector<8x16xf32>, vector<356x16xf32> -> vector<356x16xf32>
    %31 = vector.extract_strided_slice %26 {offsets = [1, 0], sizes = [356, 8], strides = [1, 1]} : vector<358x8xf32> to vector<356x8xf32>
    %c1_15 = arith.constant 1 : index
    %c0_16 = arith.constant 0 : index
    %c0_17 = arith.constant 0 : index
    %32 = vector.load %arg4[%c1_15, %c0_16, %c0_17] : memref<3x8x16xf32, #tpu.memory_space<vmem>>, vector<1x8x16xf32>
    %33 = vector.shape_cast %32 : vector<1x8x16xf32> to vector<8x16xf32>
    %cst_18 = arith.constant dense<0.000000e+00> : vector<356x16xf32>
    %34 = tpu.matmul %31, %33, %cst_18 {dimension_numbers = #tpu.dot_dimension_numbers<[1], [0], [0], [1], [0, 0, 1, 1], [], []>} : vector<356x8xf32>, vector<8x16xf32>, vector<356x16xf32> -> vector<356x16xf32>
    %35 = arith.addf %30, %34 : vector<356x16xf32>
    %36 = vector.extract_strided_slice %26 {offsets = [2, 0], sizes = [356, 8], strides = [1, 1]} : vector<358x8xf32> to vector<356x8xf32>
    %c2_19 = arith.constant 2 : index
    %c0_20 = arith.constant 0 : index
    %c0_21 = arith.constant 0 : index
    %37 = vector.load %arg4[%c2_19, %c0_20, %c0_21] : memref<3x8x16xf32, #tpu.memory_space<vmem>>, vector<1x8x16xf32>
    %38 = vector.shape_cast %37 : vector<1x8x16xf32> to vector<8x16xf32>
    %cst_22 = arith.constant dense<0.000000e+00> : vector<356x16xf32>
    %39 = tpu.matmul %36, %38, %cst_22 {dimension_numbers = #tpu.dot_dimension_numbers<[1], [0], [0], [1], [0, 0, 1, 1], [], []>} : vector<356x8xf32>, vector<8x16xf32>, vector<356x16xf32> -> vector<356x16xf32>
    %40 = arith.addf %35, %39 : vector<356x16xf32>
    %c0_23 = arith.constant 0 : index
    %c0_24 = arith.constant 0 : index
    %41 = vector.load %arg5[%c0_23, %c0_24] : memref<1x16xf32, #tpu.memory_space<vmem>>, vector<1x16xf32>
    %42 = vector.broadcast %41 : vector<1x16xf32> to vector<356x16xf32>
    %43 = arith.addf %40, %42 : vector<356x16xf32>
    %cst_25 = arith.constant 0.000000e+00 : f32
    %44 = vector.broadcast %cst_25 : f32 to vector<356x16xf32>
    %45 = arith.maximumf %43, %44 : vector<356x16xf32>
    %46 = vector.extract_strided_slice %45 {offsets = [0, 0], sizes = [354, 16], strides = [1, 1]} : vector<356x16xf32> to vector<354x16xf32>
    %c0_26 = arith.constant 0 : index
    %c0_27 = arith.constant 0 : index
    %c0_28 = arith.constant 0 : index
    %47 = vector.load %arg6[%c0_26, %c0_27, %c0_28] : memref<3x16x32xf32, #tpu.memory_space<vmem>>, vector<1x16x32xf32>
    %48 = vector.shape_cast %47 : vector<1x16x32xf32> to vector<16x32xf32>
    %cst_29 = arith.constant dense<0.000000e+00> : vector<354x32xf32>
    %49 = tpu.matmul %46, %48, %cst_29 {dimension_numbers = #tpu.dot_dimension_numbers<[1], [0], [0], [1], [0, 0, 1, 1], [], []>} : vector<354x16xf32>, vector<16x32xf32>, vector<354x32xf32> -> vector<354x32xf32>
    %50 = vector.extract_strided_slice %45 {offsets = [1, 0], sizes = [354, 16], strides = [1, 1]} : vector<356x16xf32> to vector<354x16xf32>
    %c1_30 = arith.constant 1 : index
    %c0_31 = arith.constant 0 : index
    %c0_32 = arith.constant 0 : index
    %51 = vector.load %arg6[%c1_30, %c0_31, %c0_32] : memref<3x16x32xf32, #tpu.memory_space<vmem>>, vector<1x16x32xf32>
    %52 = vector.shape_cast %51 : vector<1x16x32xf32> to vector<16x32xf32>
    %cst_33 = arith.constant dense<0.000000e+00> : vector<354x32xf32>
    %53 = tpu.matmul %50, %52, %cst_33 {dimension_numbers = #tpu.dot_dimension_numbers<[1], [0], [0], [1], [0, 0, 1, 1], [], []>} : vector<354x16xf32>, vector<16x32xf32>, vector<354x32xf32> -> vector<354x32xf32>
    %54 = arith.addf %49, %53 : vector<354x32xf32>
    %55 = vector.extract_strided_slice %45 {offsets = [2, 0], sizes = [354, 16], strides = [1, 1]} : vector<356x16xf32> to vector<354x16xf32>
    %c2_34 = arith.constant 2 : index
    %c0_35 = arith.constant 0 : index
    %c0_36 = arith.constant 0 : index
    %56 = vector.load %arg6[%c2_34, %c0_35, %c0_36] : memref<3x16x32xf32, #tpu.memory_space<vmem>>, vector<1x16x32xf32>
    %57 = vector.shape_cast %56 : vector<1x16x32xf32> to vector<16x32xf32>
    %cst_37 = arith.constant dense<0.000000e+00> : vector<354x32xf32>
    %58 = tpu.matmul %55, %57, %cst_37 {dimension_numbers = #tpu.dot_dimension_numbers<[1], [0], [0], [1], [0, 0, 1, 1], [], []>} : vector<354x16xf32>, vector<16x32xf32>, vector<354x32xf32> -> vector<354x32xf32>
    %59 = arith.addf %54, %58 : vector<354x32xf32>
    %c0_38 = arith.constant 0 : index
    %c0_39 = arith.constant 0 : index
    %60 = vector.load %arg7[%c0_38, %c0_39] : memref<1x32xf32, #tpu.memory_space<vmem>>, vector<1x32xf32>
    %61 = vector.broadcast %60 : vector<1x32xf32> to vector<354x32xf32>
    %62 = arith.addf %59, %61 : vector<354x32xf32>
    %cst_40 = arith.constant 0.000000e+00 : f32
    %63 = vector.broadcast %cst_40 : f32 to vector<354x32xf32>
    %64 = arith.maximumf %62, %63 : vector<354x32xf32>
    %65 = vector.extract_strided_slice %64 {offsets = [0, 0], sizes = [352, 32], strides = [1, 1]} : vector<354x32xf32> to vector<352x32xf32>
    %c0_41 = arith.constant 0 : index
    %c0_42 = arith.constant 0 : index
    %c0_43 = arith.constant 0 : index
    %66 = vector.load %arg8[%c0_41, %c0_42, %c0_43] : memref<3x32x32xf32, #tpu.memory_space<vmem>>, vector<1x32x32xf32>
    %67 = vector.shape_cast %66 : vector<1x32x32xf32> to vector<32x32xf32>
    %cst_44 = arith.constant dense<0.000000e+00> : vector<352x32xf32>
    %68 = tpu.matmul %65, %67, %cst_44 {dimension_numbers = #tpu.dot_dimension_numbers<[1], [0], [0], [1], [0, 0, 1, 1], [], []>} : vector<352x32xf32>, vector<32x32xf32>, vector<352x32xf32> -> vector<352x32xf32>
    %69 = vector.extract_strided_slice %64 {offsets = [1, 0], sizes = [352, 32], strides = [1, 1]} : vector<354x32xf32> to vector<352x32xf32>
    %c1_45 = arith.constant 1 : index
    %c0_46 = arith.constant 0 : index
    %c0_47 = arith.constant 0 : index
    %70 = vector.load %arg8[%c1_45, %c0_46, %c0_47] : memref<3x32x32xf32, #tpu.memory_space<vmem>>, vector<1x32x32xf32>
    %71 = vector.shape_cast %70 : vector<1x32x32xf32> to vector<32x32xf32>
    %cst_48 = arith.constant dense<0.000000e+00> : vector<352x32xf32>
    %72 = tpu.matmul %69, %71, %cst_48 {dimension_numbers = #tpu.dot_dimension_numbers<[1], [0], [0], [1], [0, 0, 1, 1], [], []>} : vector<352x32xf32>, vector<32x32xf32>, vector<352x32xf32> -> vector<352x32xf32>
    %73 = arith.addf %68, %72 : vector<352x32xf32>
    %74 = vector.extract_strided_slice %64 {offsets = [2, 0], sizes = [352, 32], strides = [1, 1]} : vector<354x32xf32> to vector<352x32xf32>
    %c2_49 = arith.constant 2 : index
    %c0_50 = arith.constant 0 : index
    %c0_51 = arith.constant 0 : index
    %75 = vector.load %arg8[%c2_49, %c0_50, %c0_51] : memref<3x32x32xf32, #tpu.memory_space<vmem>>, vector<1x32x32xf32>
    %76 = vector.shape_cast %75 : vector<1x32x32xf32> to vector<32x32xf32>
    %cst_52 = arith.constant dense<0.000000e+00> : vector<352x32xf32>
    %77 = tpu.matmul %74, %76, %cst_52 {dimension_numbers = #tpu.dot_dimension_numbers<[1], [0], [0], [1], [0, 0, 1, 1], [], []>} : vector<352x32xf32>, vector<32x32xf32>, vector<352x32xf32> -> vector<352x32xf32>
    %78 = arith.addf %73, %77 : vector<352x32xf32>
    %c0_53 = arith.constant 0 : index
    %c0_54 = arith.constant 0 : index
    %79 = vector.load %arg9[%c0_53, %c0_54] : memref<1x32xf32, #tpu.memory_space<vmem>>, vector<1x32xf32>
    %80 = vector.broadcast %79 : vector<1x32xf32> to vector<352x32xf32>
    %81 = arith.addf %78, %80 : vector<352x32xf32>
    %cst_55 = arith.constant 0.000000e+00 : f32
    %82 = vector.broadcast %cst_55 : f32 to vector<352x32xf32>
    %83 = arith.maximumf %81, %82 : vector<352x32xf32>
    %c0_56 = arith.constant 0 : index
    %c0_57 = arith.constant 0 : index
    %84 = vector.load %arg13[%c0_56, %c0_57] : memref<352x32xf32, #tpu.memory_space<vmem>>, vector<352x32xf32>
    tpu.vector_store %arg13[%c0_56, %c0_57], %83 {strides = array<i32>} : memref<352x32xf32, #tpu.memory_space<vmem>>, vector<352x32xf32>,
    %c0_58 = arith.constant 0 : index
    %c0_59 = arith.constant 0 : index
    %85 = tpu.strided_load %arg13[%c0_58, %c0_59] {strides = array<i32: 2, 1>} : memref<352x32xf32, #tpu.memory_space<vmem>>, vector<176x32xf32>
    %c1_60 = arith.constant 1 : index
    %c0_61 = arith.constant 0 : index
    %86 = tpu.strided_load %arg13[%c1_60, %c0_61] {strides = array<i32: 2, 1>} : memref<352x32xf32, #tpu.memory_space<vmem>>, vector<176x32xf32>
    %87 = arith.maximumf %85, %86 : vector<176x32xf32>
    %88 = vector.extract_strided_slice %87 {offsets = [0, 0], sizes = [174, 32], strides = [1, 1]} : vector<176x32xf32> to vector<174x32xf32>
    %c0_62 = arith.constant 0 : index
    %c0_63 = arith.constant 0 : index
    %c0_64 = arith.constant 0 : index
    %89 = vector.load %arg10[%c0_62, %c0_63, %c0_64] : memref<3x32x64xf32, #tpu.memory_space<vmem>>, vector<1x32x64xf32>
    %90 = vector.shape_cast %89 : vector<1x32x64xf32> to vector<32x64xf32>
    %cst_65 = arith.constant dense<0.000000e+00> : vector<174x64xf32>
    %91 = tpu.matmul %88, %90, %cst_65 {dimension_numbers = #tpu.dot_dimension_numbers<[1], [0], [0], [1], [0, 0, 1, 1], [], []>} : vector<174x32xf32>, vector<32x64xf32>, vector<174x64xf32> -> vector<174x64xf32>
    %92 = vector.extract_strided_slice %87 {offsets = [1, 0], sizes = [174, 32], strides = [1, 1]} : vector<176x32xf32> to vector<174x32xf32>
    %c1_66 = arith.constant 1 : index
    %c0_67 = arith.constant 0 : index
    %c0_68 = arith.constant 0 : index
    %93 = vector.load %arg10[%c1_66, %c0_67, %c0_68] : memref<3x32x64xf32, #tpu.memory_space<vmem>>, vector<1x32x64xf32>
    %94 = vector.shape_cast %93 : vector<1x32x64xf32> to vector<32x64xf32>
    %cst_69 = arith.constant dense<0.000000e+00> : vector<174x64xf32>
    %95 = tpu.matmul %92, %94, %cst_69 {dimension_numbers = #tpu.dot_dimension_numbers<[1], [0], [0], [1], [0, 0, 1, 1], [], []>} : vector<174x32xf32>, vector<32x64xf32>, vector<174x64xf32> -> vector<174x64xf32>
    %96 = arith.addf %91, %95 : vector<174x64xf32>
    %97 = vector.extract_strided_slice %87 {offsets = [2, 0], sizes = [174, 32], strides = [1, 1]} : vector<176x32xf32> to vector<174x32xf32>
    %c2_70 = arith.constant 2 : index
    %c0_71 = arith.constant 0 : index
    %c0_72 = arith.constant 0 : index
    %98 = vector.load %arg10[%c2_70, %c0_71, %c0_72] : memref<3x32x64xf32, #tpu.memory_space<vmem>>, vector<1x32x64xf32>
    %99 = vector.shape_cast %98 : vector<1x32x64xf32> to vector<32x64xf32>
    %cst_73 = arith.constant dense<0.000000e+00> : vector<174x64xf32>
    %100 = tpu.matmul %97, %99, %cst_73 {dimension_numbers = #tpu.dot_dimension_numbers<[1], [0], [0], [1], [0, 0, 1, 1], [], []>} : vector<174x32xf32>, vector<32x64xf32>, vector<174x64xf32> -> vector<174x64xf32>
    %101 = arith.addf %96, %100 : vector<174x64xf32>
    %c0_74 = arith.constant 0 : index
    %c0_75 = arith.constant 0 : index
    %102 = vector.load %arg11[%c0_74, %c0_75] : memref<1x64xf32, #tpu.memory_space<vmem>>, vector<1x64xf32>
    %103 = vector.broadcast %102 : vector<1x64xf32> to vector<174x64xf32>
    %104 = arith.addf %101, %103 : vector<174x64xf32>
    %cst_76 = arith.constant 0.000000e+00 : f32
    %105 = vector.broadcast %cst_76 : f32 to vector<174x64xf32>
    %106 = arith.maximumf %104, %105 : vector<174x64xf32>
    %c0_77 = arith.constant 0 : index
    %c0_78 = arith.constant 0 : index
    %107 = vector.load %arg14[%c0_77, %c0_78] : memref<174x64xf32, #tpu.memory_space<vmem>>, vector<174x64xf32>
    tpu.vector_store %arg14[%c0_77, %c0_78], %106 {strides = array<i32>} : memref<174x64xf32, #tpu.memory_space<vmem>>, vector<174x64xf32>,
    %c0_79 = arith.constant 0 : index
    %c0_80 = arith.constant 0 : index
    %108 = tpu.strided_load %arg14[%c0_79, %c0_80] {strides = array<i32: 2, 1>} : memref<174x64xf32, #tpu.memory_space<vmem>>, vector<87x64xf32>
    %c1_81 = arith.constant 1 : index
    %c0_82 = arith.constant 0 : index
    %109 = tpu.strided_load %arg14[%c1_81, %c0_82] {strides = array<i32: 2, 1>} : memref<174x64xf32, #tpu.memory_space<vmem>>, vector<87x64xf32>
    %110 = arith.maximumf %108, %109 : vector<87x64xf32>
    %c0_83 = arith.constant 0 : index
    %c0_84 = arith.constant 0 : index
    %c0_85 = arith.constant 0 : index
    %111 = vector.load %arg12[%c0_83, %c0_84, %c0_85] : memref<1x87x64xf32, #tpu.memory_space<vmem>>, vector<1x87x64xf32>
    %112 = vector.shape_cast %111 : vector<1x87x64xf32> to vector<87x64xf32>
    %113 = vector.shape_cast %110 : vector<87x64xf32> to vector<1x87x64xf32>
    tpu.vector_store %arg12[%c0_83, %c0_84, %c0_85], %113 {strides = array<i32>} : memref<1x87x64xf32, #tpu.memory_space<vmem>>, vector<1x87x64xf32>,
    return
  }
  func.func @transform_0(%arg0: i32) -> (i32, i32, i32) {
    %c0_i32 = arith.constant 0 : i32
    %c0_i32_0 = arith.constant 0 : i32
    %c0_i32_1 = arith.constant 0 : i32
    return %arg0, %c0_i32, %c0_i32_0 : i32, i32, i32
  }
  func.func @transform_1(%arg0: i32) -> (i32, i32, i32) {
    %c0_i32 = arith.constant 0 : i32
    %c0_i32_0 = arith.constant 0 : i32
    %c0_i32_1 = arith.constant 0 : i32
    %c0_i32_2 = arith.constant 0 : i32
    return %c0_i32, %c0_i32_0, %c0_i32_1 : i32, i32, i32
  }
  func.func @transform_2(%arg0: i32) -> (i32, i32) {
    %c0_i32 = arith.constant 0 : i32
    %c0_i32_0 = arith.constant 0 : i32
    %c0_i32_1 = arith.constant 0 : i32
    return %c0_i32, %c0_i32_0 : i32, i32
  }
  func.func @transform_3(%arg0: i32) -> (i32, i32, i32) {
    %c0_i32 = arith.constant 0 : i32
    %c0_i32_0 = arith.constant 0 : i32
    %c0_i32_1 = arith.constant 0 : i32
    %c0_i32_2 = arith.constant 0 : i32
    return %c0_i32, %c0_i32_0, %c0_i32_1 : i32, i32, i32
  }
  func.func @transform_4(%arg0: i32) -> (i32, i32) {
    %c0_i32 = arith.constant 0 : i32
    %c0_i32_0 = arith.constant 0 : i32
    %c0_i32_1 = arith.constant 0 : i32
    return %c0_i32, %c0_i32_0 : i32, i32
  }
  func.func @transform_5(%arg0: i32) -> (i32, i32, i32) {
    %c0_i32 = arith.constant 0 : i32
    %c0_i32_0 = arith.constant 0 : i32
    %c0_i32_1 = arith.constant 0 : i32
    %c0_i32_2 = arith.constant 0 : i32
    return %c0_i32, %c0_i32_0, %c0_i32_1 : i32, i32, i32
  }
  func.func @transform_6(%arg0: i32) -> (i32, i32) {
    %c0_i32 = arith.constant 0 : i32
    %c0_i32_0 = arith.constant 0 : i32
    %c0_i32_1 = arith.constant 0 : i32
    return %c0_i32, %c0_i32_0 : i32, i32
  }
  func.func @transform_7(%arg0: i32) -> (i32, i32, i32) {
    %c0_i32 = arith.constant 0 : i32
    %c0_i32_0 = arith.constant 0 : i32
    %c0_i32_1 = arith.constant 0 : i32
    %c0_i32_2 = arith.constant 0 : i32
    return %c0_i32, %c0_i32_0, %c0_i32_1 : i32, i32, i32
  }
  func.func @transform_8(%arg0: i32) -> (i32, i32) {
    %c0_i32 = arith.constant 0 : i32
    %c0_i32_0 = arith.constant 0 : i32
    %c0_i32_1 = arith.constant 0 : i32
    return %c0_i32, %c0_i32_0 : i32, i32
  }
  func.func @transform_9(%arg0: i32) -> (i32, i32, i32) {
    %c0_i32 = arith.constant 0 : i32
    %c0_i32_0 = arith.constant 0 : i32
    %c0_i32_1 = arith.constant 0 : i32
    %c0_i32_2 = arith.constant 0 : i32
    return %c0_i32, %c0_i32_0, %c0_i32_1 : i32, i32, i32
  }
  func.func @transform_10(%arg0: i32) -> (i32, i32) {
    %c0_i32 = arith.constant 0 : i32
    %c0_i32_0 = arith.constant 0 : i32
    %c0_i32_1 = arith.constant 0 : i32
    return %c0_i32, %c0_i32_0 : i32, i32
  }
  func.func @transform_11(%arg0: i32) -> (i32, i32, i32) {
    %c0_i32 = arith.constant 0 : i32
    %c0_i32_0 = arith.constant 0 : i32
    %c0_i32_1 = arith.constant 0 : i32
    return %arg0, %c0_i32, %c0_i32_0 : i32, i32, i32
  }
}

module attributes {stable_mosaic.version = 11 : i64} {
  func.func @_head_kernel(%arg0: i32, %arg1: memref<2x5568xf32, #tpu.memory_space<vmem>>, %arg2: memref<2x30xf32, #tpu.memory_space<vmem>>, %arg3: memref<2x10xf32, #tpu.memory_space<vmem>>, %arg4: memref<2x2xf32, #tpu.memory_space<vmem>>, %arg5: memref<5568x256xbf16, #tpu.memory_space<vmem>>, %arg6: memref<1x256xf32, #tpu.memory_space<vmem>>, %arg7: memref<30x64xf32, #tpu.memory_space<vmem>>, %arg8: memref<1x64xf32, #tpu.memory_space<vmem>>, %arg9: memref<64x256xf32, #tpu.memory_space<vmem>>, %arg10: memref<1x256xf32, #tpu.memory_space<vmem>>, %arg11: memref<10x8xf32, #tpu.memory_space<vmem>>, %arg12: memref<1x8xf32, #tpu.memory_space<vmem>>, %arg13: memref<8x16xf32, #tpu.memory_space<vmem>>, %arg14: memref<1x16xf32, #tpu.memory_space<vmem>>, %arg15: memref<256x64xf32, #tpu.memory_space<vmem>>, %arg16: memref<256x64xf32, #tpu.memory_space<vmem>>, %arg17: memref<16x64xf32, #tpu.memory_space<vmem>>, %arg18: memref<2x64xf32, #tpu.memory_space<vmem>>, %arg19: memref<1x64xf32, #tpu.memory_space<vmem>>, %arg20: memref<64x64xf32, #tpu.memory_space<vmem>>, %arg21: memref<1x64xf32, #tpu.memory_space<vmem>>, %arg22: memref<64x1xf32, #tpu.memory_space<vmem>>, %arg23: memref<1x1xf32, #tpu.memory_space<vmem>>, %arg24: memref<2x1xf32, #tpu.memory_space<vmem>>) attributes {dimension_semantics = [#tpu.dimension_semantics<arbitrary>], iteration_bounds = array<i64: 1>, scalar_prefetch = 0 : i64, scratch_operands = 0 : i64, tpu.core_type = #tpu.core_type<tc>, window_params = [{pipeline_mode = #tpu.pipeline_mode<synchronous>, transform_indices = @transform_0, window_bounds = array<i64: 2, 5568>}, {pipeline_mode = #tpu.pipeline_mode<synchronous>, transform_indices = @transform_1, window_bounds = array<i64: 2, 30>}, {pipeline_mode = #tpu.pipeline_mode<synchronous>, transform_indices = @transform_2, window_bounds = array<i64: 2, 10>}, {pipeline_mode = #tpu.pipeline_mode<synchronous>, transform_indices = @transform_3, window_bounds = array<i64: 2, 2>}, {pipeline_mode = #tpu.pipeline_mode<synchronous>, transform_indices = @transform_4, window_bounds = array<i64: 5568, 256>}, {pipeline_mode = #tpu.pipeline_mode<synchronous>, transform_indices = @transform_5, window_bounds = array<i64: 1, 256>}, {pipeline_mode = #tpu.pipeline_mode<synchronous>, transform_indices = @transform_6, window_bounds = array<i64: 30, 64>}, {pipeline_mode = #tpu.pipeline_mode<synchronous>, transform_indices = @transform_7, window_bounds = array<i64: 1, 64>}, {pipeline_mode = #tpu.pipeline_mode<synchronous>, transform_indices = @transform_8, window_bounds = array<i64: 64, 256>}, {pipeline_mode = #tpu.pipeline_mode<synchronous>, transform_indices = @transform_9, window_bounds = array<i64: 1, 256>}, {pipeline_mode = #tpu.pipeline_mode<synchronous>, transform_indices = @transform_10, window_bounds = array<i64: 10, 8>}, {pipeline_mode = #tpu.pipeline_mode<synchronous>, transform_indices = @transform_11, window_bounds = array<i64: 1, 8>}, {pipeline_mode = #tpu.pipeline_mode<synchronous>, transform_indices = @transform_12, window_bounds = array<i64: 8, 16>}, {pipeline_mode = #tpu.pipeline_mode<synchronous>, transform_indices = @transform_13, window_bounds = array<i64: 1, 16>}, {pipeline_mode = #tpu.pipeline_mode<synchronous>, transform_indices = @transform_14, window_bounds = array<i64: 256, 64>}, {pipeline_mode = #tpu.pipeline_mode<synchronous>, transform_indices = @transform_15, window_bounds = array<i64: 256, 64>}, {pipeline_mode = #tpu.pipeline_mode<synchronous>, transform_indices = @transform_16, window_bounds = array<i64: 16, 64>}, {pipeline_mode = #tpu.pipeline_mode<synchronous>, transform_indices = @transform_17, window_bounds = array<i64: 2, 64>}, {pipeline_mode = #tpu.pipeline_mode<synchronous>, transform_indices = @transform_18, window_bounds = array<i64: 1, 64>}, {pipeline_mode = #tpu.pipeline_mode<synchronous>, transform_indices = @transform_19, window_bounds = array<i64: 64, 64>}, {pipeline_mode = #tpu.pipeline_mode<synchronous>, transform_indices = @transform_20, window_bounds = array<i64: 1, 64>}, {pipeline_mode = #tpu.pipeline_mode<synchronous>, transform_indices = @transform_21, window_bounds = array<i64: 64, 1>}, {pipeline_mode = #tpu.pipeline_mode<synchronous>, transform_indices = @transform_22, window_bounds = array<i64: 1, 1>}, {pipeline_mode = #tpu.pipeline_mode<synchronous>, transform_indices = @transform_23, window_bounds = array<i64: 2, 1>}]} {
    %c0 = arith.constant 0 : index
    %c0_0 = arith.constant 0 : index
    %0 = vector.load %arg1[%c0, %c0_0] : memref<2x5568xf32, #tpu.memory_space<vmem>>, vector<2x5568xf32>
    %1 = arith.truncf %0 : vector<2x5568xf32> to vector<2x5568xbf16>
    %c0_1 = arith.constant 0 : index
    %c0_2 = arith.constant 0 : index
    %2 = vector.load %arg5[%c0_1, %c0_2] : memref<5568x256xbf16, #tpu.memory_space<vmem>>, vector<5568x256xbf16>
    %cst = arith.constant dense<0.000000e+00> : vector<2x256xf32>
    %3 = tpu.matmul %1, %2, %cst {dimension_numbers = #tpu.dot_dimension_numbers<[1], [0], [0], [1], [0, 0, 1, 1], [], []>} : vector<2x5568xbf16>, vector<5568x256xbf16>, vector<2x256xf32> -> vector<2x256xf32>
    %c0_3 = arith.constant 0 : index
    %c0_4 = arith.constant 0 : index
    %4 = vector.load %arg6[%c0_3, %c0_4] : memref<1x256xf32, #tpu.memory_space<vmem>>, vector<1x256xf32>
    %5 = vector.broadcast %4 : vector<1x256xf32> to vector<2x256xf32>
    %6 = arith.addf %3, %5 : vector<2x256xf32>
    %c0_5 = arith.constant 0 : index
    %c0_6 = arith.constant 0 : index
    %7 = vector.load %arg2[%c0_5, %c0_6] : memref<2x30xf32, #tpu.memory_space<vmem>>, vector<2x30xf32>
    %c0_7 = arith.constant 0 : index
    %c0_8 = arith.constant 0 : index
    %8 = vector.load %arg7[%c0_7, %c0_8] : memref<30x64xf32, #tpu.memory_space<vmem>>, vector<30x64xf32>
    %cst_9 = arith.constant dense<0.000000e+00> : vector<2x64xf32>
    %9 = tpu.matmul %7, %8, %cst_9 {dimension_numbers = #tpu.dot_dimension_numbers<[1], [0], [0], [1], [0, 0, 1, 1], [], []>} : vector<2x30xf32>, vector<30x64xf32>, vector<2x64xf32> -> vector<2x64xf32>
    %c0_10 = arith.constant 0 : index
    %c0_11 = arith.constant 0 : index
    %10 = vector.load %arg8[%c0_10, %c0_11] : memref<1x64xf32, #tpu.memory_space<vmem>>, vector<1x64xf32>
    %11 = vector.broadcast %10 : vector<1x64xf32> to vector<2x64xf32>
    %12 = arith.addf %9, %11 : vector<2x64xf32>
    %cst_12 = arith.constant 0.000000e+00 : f32
    %13 = vector.broadcast %cst_12 : f32 to vector<2x64xf32>
    %14 = arith.maximumf %12, %13 : vector<2x64xf32>
    %c0_13 = arith.constant 0 : index
    %c0_14 = arith.constant 0 : index
    %15 = vector.load %arg9[%c0_13, %c0_14] : memref<64x256xf32, #tpu.memory_space<vmem>>, vector<64x256xf32>
    %cst_15 = arith.constant dense<0.000000e+00> : vector<2x256xf32>
    %16 = tpu.matmul %14, %15, %cst_15 {dimension_numbers = #tpu.dot_dimension_numbers<[1], [0], [0], [1], [0, 0, 1, 1], [], []>} : vector<2x64xf32>, vector<64x256xf32>, vector<2x256xf32> -> vector<2x256xf32>
    %c0_16 = arith.constant 0 : index
    %c0_17 = arith.constant 0 : index
    %17 = vector.load %arg10[%c0_16, %c0_17] : memref<1x256xf32, #tpu.memory_space<vmem>>, vector<1x256xf32>
    %18 = vector.broadcast %17 : vector<1x256xf32> to vector<2x256xf32>
    %19 = arith.addf %16, %18 : vector<2x256xf32>
    %cst_18 = arith.constant 0.000000e+00 : f32
    %20 = vector.broadcast %cst_18 : f32 to vector<2x256xf32>
    %21 = arith.maximumf %19, %20 : vector<2x256xf32>
    %c0_19 = arith.constant 0 : index
    %c0_20 = arith.constant 0 : index
    %22 = vector.load %arg3[%c0_19, %c0_20] : memref<2x10xf32, #tpu.memory_space<vmem>>, vector<2x10xf32>
    %c0_21 = arith.constant 0 : index
    %c0_22 = arith.constant 0 : index
    %23 = vector.load %arg11[%c0_21, %c0_22] : memref<10x8xf32, #tpu.memory_space<vmem>>, vector<10x8xf32>
    %cst_23 = arith.constant dense<0.000000e+00> : vector<2x8xf32>
    %24 = tpu.matmul %22, %23, %cst_23 {dimension_numbers = #tpu.dot_dimension_numbers<[1], [0], [0], [1], [0, 0, 1, 1], [], []>} : vector<2x10xf32>, vector<10x8xf32>, vector<2x8xf32> -> vector<2x8xf32>
    %c0_24 = arith.constant 0 : index
    %c0_25 = arith.constant 0 : index
    %25 = vector.load %arg12[%c0_24, %c0_25] : memref<1x8xf32, #tpu.memory_space<vmem>>, vector<1x8xf32>
    %26 = vector.broadcast %25 : vector<1x8xf32> to vector<2x8xf32>
    %27 = arith.addf %24, %26 : vector<2x8xf32>
    %cst_26 = arith.constant 0.000000e+00 : f32
    %28 = vector.broadcast %cst_26 : f32 to vector<2x8xf32>
    %29 = arith.maximumf %27, %28 : vector<2x8xf32>
    %c0_27 = arith.constant 0 : index
    %c0_28 = arith.constant 0 : index
    %30 = vector.load %arg13[%c0_27, %c0_28] : memref<8x16xf32, #tpu.memory_space<vmem>>, vector<8x16xf32>
    %cst_29 = arith.constant dense<0.000000e+00> : vector<2x16xf32>
    %31 = tpu.matmul %29, %30, %cst_29 {dimension_numbers = #tpu.dot_dimension_numbers<[1], [0], [0], [1], [0, 0, 1, 1], [], []>} : vector<2x8xf32>, vector<8x16xf32>, vector<2x16xf32> -> vector<2x16xf32>
    %c0_30 = arith.constant 0 : index
    %c0_31 = arith.constant 0 : index
    %32 = vector.load %arg14[%c0_30, %c0_31] : memref<1x16xf32, #tpu.memory_space<vmem>>, vector<1x16xf32>
    %33 = vector.broadcast %32 : vector<1x16xf32> to vector<2x16xf32>
    %34 = arith.addf %31, %33 : vector<2x16xf32>
    %cst_32 = arith.constant 0.000000e+00 : f32
    %35 = vector.broadcast %cst_32 : f32 to vector<2x16xf32>
    %36 = arith.maximumf %34, %35 : vector<2x16xf32>
    %c0_33 = arith.constant 0 : index
    %c0_34 = arith.constant 0 : index
    %37 = vector.load %arg15[%c0_33, %c0_34] : memref<256x64xf32, #tpu.memory_space<vmem>>, vector<256x64xf32>
    %cst_35 = arith.constant dense<0.000000e+00> : vector<2x64xf32>
    %38 = tpu.matmul %6, %37, %cst_35 {dimension_numbers = #tpu.dot_dimension_numbers<[1], [0], [0], [1], [0, 0, 1, 1], [], []>} : vector<2x256xf32>, vector<256x64xf32>, vector<2x64xf32> -> vector<2x64xf32>
    %c0_36 = arith.constant 0 : index
    %c0_37 = arith.constant 0 : index
    %39 = vector.load %arg16[%c0_36, %c0_37] : memref<256x64xf32, #tpu.memory_space<vmem>>, vector<256x64xf32>
    %cst_38 = arith.constant dense<0.000000e+00> : vector<2x64xf32>
    %40 = tpu.matmul %21, %39, %cst_38 {dimension_numbers = #tpu.dot_dimension_numbers<[1], [0], [0], [1], [0, 0, 1, 1], [], []>} : vector<2x256xf32>, vector<256x64xf32>, vector<2x64xf32> -> vector<2x64xf32>
    %41 = arith.addf %38, %40 : vector<2x64xf32>
    %c0_39 = arith.constant 0 : index
    %c0_40 = arith.constant 0 : index
    %42 = vector.load %arg17[%c0_39, %c0_40] : memref<16x64xf32, #tpu.memory_space<vmem>>, vector<16x64xf32>
    %cst_41 = arith.constant dense<0.000000e+00> : vector<2x64xf32>
    %43 = tpu.matmul %36, %42, %cst_41 {dimension_numbers = #tpu.dot_dimension_numbers<[1], [0], [0], [1], [0, 0, 1, 1], [], []>} : vector<2x16xf32>, vector<16x64xf32>, vector<2x64xf32> -> vector<2x64xf32>
    %44 = arith.addf %41, %43 : vector<2x64xf32>
    %c0_42 = arith.constant 0 : index
    %c0_43 = arith.constant 0 : index
    %45 = vector.load %arg4[%c0_42, %c0_43] : memref<2x2xf32, #tpu.memory_space<vmem>>, vector<2x2xf32>
    %c0_44 = arith.constant 0 : index
    %c0_45 = arith.constant 0 : index
    %46 = vector.load %arg18[%c0_44, %c0_45] : memref<2x64xf32, #tpu.memory_space<vmem>>, vector<2x64xf32>
    %cst_46 = arith.constant dense<0.000000e+00> : vector<2x64xf32>
    %47 = tpu.matmul %45, %46, %cst_46 {dimension_numbers = #tpu.dot_dimension_numbers<[1], [0], [0], [1], [0, 0, 1, 1], [], []>} : vector<2x2xf32>, vector<2x64xf32>, vector<2x64xf32> -> vector<2x64xf32>
    %48 = arith.addf %44, %47 : vector<2x64xf32>
    %c0_47 = arith.constant 0 : index
    %c0_48 = arith.constant 0 : index
    %49 = vector.load %arg19[%c0_47, %c0_48] : memref<1x64xf32, #tpu.memory_space<vmem>>, vector<1x64xf32>
    %50 = vector.broadcast %49 : vector<1x64xf32> to vector<2x64xf32>
    %51 = arith.addf %48, %50 : vector<2x64xf32>
    %cst_49 = arith.constant 0.000000e+00 : f32
    %52 = vector.broadcast %cst_49 : f32 to vector<2x64xf32>
    %53 = arith.maximumf %51, %52 : vector<2x64xf32>
    %c0_50 = arith.constant 0 : index
    %c0_51 = arith.constant 0 : index
    %54 = vector.load %arg20[%c0_50, %c0_51] : memref<64x64xf32, #tpu.memory_space<vmem>>, vector<64x64xf32>
    %cst_52 = arith.constant dense<0.000000e+00> : vector<2x64xf32>
    %55 = tpu.matmul %53, %54, %cst_52 {dimension_numbers = #tpu.dot_dimension_numbers<[1], [0], [0], [1], [0, 0, 1, 1], [], []>} : vector<2x64xf32>, vector<64x64xf32>, vector<2x64xf32> -> vector<2x64xf32>
    %c0_53 = arith.constant 0 : index
    %c0_54 = arith.constant 0 : index
    %56 = vector.load %arg21[%c0_53, %c0_54] : memref<1x64xf32, #tpu.memory_space<vmem>>, vector<1x64xf32>
    %57 = vector.broadcast %56 : vector<1x64xf32> to vector<2x64xf32>
    %58 = arith.addf %55, %57 : vector<2x64xf32>
    %cst_55 = arith.constant 0.000000e+00 : f32
    %59 = vector.broadcast %cst_55 : f32 to vector<2x64xf32>
    %60 = arith.maximumf %58, %59 : vector<2x64xf32>
    %c0_56 = arith.constant 0 : index
    %c0_57 = arith.constant 0 : index
    %61 = vector.load %arg22[%c0_56, %c0_57] : memref<64x1xf32, #tpu.memory_space<vmem>>, vector<64x1xf32>
    %cst_58 = arith.constant dense<0.000000e+00> : vector<2x1xf32>
    %62 = tpu.matmul %60, %61, %cst_58 {dimension_numbers = #tpu.dot_dimension_numbers<[1], [0], [0], [1], [0, 0, 1, 1], [], []>} : vector<2x64xf32>, vector<64x1xf32>, vector<2x1xf32> -> vector<2x1xf32>
    %c0_59 = arith.constant 0 : index
    %c0_60 = arith.constant 0 : index
    %63 = vector.load %arg23[%c0_59, %c0_60] : memref<1x1xf32, #tpu.memory_space<vmem>>, vector<1x1xf32>
    %64 = vector.broadcast %63 : vector<1x1xf32> to vector<2x1xf32>
    %65 = arith.addf %62, %64 : vector<2x1xf32>
    %c0_61 = arith.constant 0 : index
    %c0_62 = arith.constant 0 : index
    %66 = vector.load %arg24[%c0_61, %c0_62] : memref<2x1xf32, #tpu.memory_space<vmem>>, vector<2x1xf32>
    tpu.vector_store %arg24[%c0_61, %c0_62], %65 {strides = array<i32>} : memref<2x1xf32, #tpu.memory_space<vmem>>, vector<2x1xf32>,
    return
  }
  func.func @transform_0(%arg0: i32) -> (i32, i32) {
    %c0_i32 = arith.constant 0 : i32
    %c0_i32_0 = arith.constant 0 : i32
    %c0_i32_1 = arith.constant 0 : i32
    return %c0_i32, %c0_i32_0 : i32, i32
  }
  func.func @transform_1(%arg0: i32) -> (i32, i32) {
    %c0_i32 = arith.constant 0 : i32
    %c0_i32_0 = arith.constant 0 : i32
    %c0_i32_1 = arith.constant 0 : i32
    return %c0_i32, %c0_i32_0 : i32, i32
  }
  func.func @transform_2(%arg0: i32) -> (i32, i32) {
    %c0_i32 = arith.constant 0 : i32
    %c0_i32_0 = arith.constant 0 : i32
    %c0_i32_1 = arith.constant 0 : i32
    return %c0_i32, %c0_i32_0 : i32, i32
  }
  func.func @transform_3(%arg0: i32) -> (i32, i32) {
    %c0_i32 = arith.constant 0 : i32
    %c0_i32_0 = arith.constant 0 : i32
    %c0_i32_1 = arith.constant 0 : i32
    return %c0_i32, %c0_i32_0 : i32, i32
  }
  func.func @transform_4(%arg0: i32) -> (i32, i32) {
    %c0_i32 = arith.constant 0 : i32
    %c0_i32_0 = arith.constant 0 : i32
    %c0_i32_1 = arith.constant 0 : i32
    return %c0_i32, %c0_i32_0 : i32, i32
  }
  func.func @transform_5(%arg0: i32) -> (i32, i32) {
    %c0_i32 = arith.constant 0 : i32
    %c0_i32_0 = arith.constant 0 : i32
    %c0_i32_1 = arith.constant 0 : i32
    return %c0_i32, %c0_i32_0 : i32, i32
  }
  func.func @transform_6(%arg0: i32) -> (i32, i32) {
    %c0_i32 = arith.constant 0 : i32
    %c0_i32_0 = arith.constant 0 : i32
    %c0_i32_1 = arith.constant 0 : i32
    return %c0_i32, %c0_i32_0 : i32, i32
  }
  func.func @transform_7(%arg0: i32) -> (i32, i32) {
    %c0_i32 = arith.constant 0 : i32
    %c0_i32_0 = arith.constant 0 : i32
    %c0_i32_1 = arith.constant 0 : i32
    return %c0_i32, %c0_i32_0 : i32, i32
  }
  func.func @transform_8(%arg0: i32) -> (i32, i32) {
    %c0_i32 = arith.constant 0 : i32
    %c0_i32_0 = arith.constant 0 : i32
    %c0_i32_1 = arith.constant 0 : i32
    return %c0_i32, %c0_i32_0 : i32, i32
  }
  func.func @transform_9(%arg0: i32) -> (i32, i32) {
    %c0_i32 = arith.constant 0 : i32
    %c0_i32_0 = arith.constant 0 : i32
    %c0_i32_1 = arith.constant 0 : i32
    return %c0_i32, %c0_i32_0 : i32, i32
  }
  func.func @transform_10(%arg0: i32) -> (i32, i32) {
    %c0_i32 = arith.constant 0 : i32
    %c0_i32_0 = arith.constant 0 : i32
    %c0_i32_1 = arith.constant 0 : i32
    return %c0_i32, %c0_i32_0 : i32, i32
  }
  func.func @transform_11(%arg0: i32) -> (i32, i32) {
    %c0_i32 = arith.constant 0 : i32
    %c0_i32_0 = arith.constant 0 : i32
    %c0_i32_1 = arith.constant 0 : i32
    return %c0_i32, %c0_i32_0 : i32, i32
  }
  func.func @transform_12(%arg0: i32) -> (i32, i32) {
    %c0_i32 = arith.constant 0 : i32
    %c0_i32_0 = arith.constant 0 : i32
    %c0_i32_1 = arith.constant 0 : i32
    return %c0_i32, %c0_i32_0 : i32, i32
  }
  func.func @transform_13(%arg0: i32) -> (i32, i32) {
    %c0_i32 = arith.constant 0 : i32
    %c0_i32_0 = arith.constant 0 : i32
    %c0_i32_1 = arith.constant 0 : i32
    return %c0_i32, %c0_i32_0 : i32, i32
  }
  func.func @transform_14(%arg0: i32) -> (i32, i32) {
    %c0_i32 = arith.constant 0 : i32
    %c0_i32_0 = arith.constant 0 : i32
    %c0_i32_1 = arith.constant 0 : i32
    return %c0_i32, %c0_i32_0 : i32, i32
  }
  func.func @transform_15(%arg0: i32) -> (i32, i32) {
    %c0_i32 = arith.constant 0 : i32
    %c0_i32_0 = arith.constant 0 : i32
    %c0_i32_1 = arith.constant 0 : i32
    return %c0_i32, %c0_i32_0 : i32, i32
  }
  func.func @transform_16(%arg0: i32) -> (i32, i32) {
    %c0_i32 = arith.constant 0 : i32
    %c0_i32_0 = arith.constant 0 : i32
    %c0_i32_1 = arith.constant 0 : i32
    return %c0_i32, %c0_i32_0 : i32, i32
  }
  func.func @transform_17(%arg0: i32) -> (i32, i32) {
    %c0_i32 = arith.constant 0 : i32
    %c0_i32_0 = arith.constant 0 : i32
    %c0_i32_1 = arith.constant 0 : i32
    return %c0_i32, %c0_i32_0 : i32, i32
  }
  func.func @transform_18(%arg0: i32) -> (i32, i32) {
    %c0_i32 = arith.constant 0 : i32
    %c0_i32_0 = arith.constant 0 : i32
    %c0_i32_1 = arith.constant 0 : i32
    return %c0_i32, %c0_i32_0 : i32, i32
  }
  func.func @transform_19(%arg0: i32) -> (i32, i32) {
    %c0_i32 = arith.constant 0 : i32
    %c0_i32_0 = arith.constant 0 : i32
    %c0_i32_1 = arith.constant 0 : i32
    return %c0_i32, %c0_i32_0 : i32, i32
  }
  func.func @transform_20(%arg0: i32) -> (i32, i32) {
    %c0_i32 = arith.constant 0 : i32
    %c0_i32_0 = arith.constant 0 : i32
    %c0_i32_1 = arith.constant 0 : i32
    return %c0_i32, %c0_i32_0 : i32, i32
  }
  func.func @transform_21(%arg0: i32) -> (i32, i32) {
    %c0_i32 = arith.constant 0 : i32
    %c0_i32_0 = arith.constant 0 : i32
    %c0_i32_1 = arith.constant 0 : i32
    return %c0_i32, %c0_i32_0 : i32, i32
  }
  func.func @transform_22(%arg0: i32) -> (i32, i32) {
    %c0_i32 = arith.constant 0 : i32
    %c0_i32_0 = arith.constant 0 : i32
    %c0_i32_1 = arith.constant 0 : i32
    return %c0_i32, %c0_i32_0 : i32, i32
  }
  func.func @transform_23(%arg0: i32) -> (i32, i32) {
    %c0_i32 = arith.constant 0 : i32
    %c0_i32_0 = arith.constant 0 : i32
    %c0_i32_1 = arith.constant 0 : i32
    return %c0_i32, %c0_i32_0 : i32, i32
  }
}

</mosaic_0001>

<bundles_post_ra>
// kernel: critic_forward.3
= control target key start
LH: loop header
LB: loop body
LE: loop exit
PB: predicated region body
PF: predicated region fallthrough
CT: control target
= control target key end

     0   :  { %s9620_s0 = inlined_call_operand.vmem [shape: f32[2,5568], index: 0, kind: input, shape index: {}]   ;;  %s9621_s1 = inlined_call_operand.hbm [shape: f32[2,30], index: 1, kind: input, shape index: {}]   ;;  %s9622_s2 = inlined_call_operand.vmem [shape: f32[2,10], index: 2, kind: input, shape index: {}]   ;;  %s9623_s3 = inlined_call_operand.hbm [shape: f32[2,2], index: 3, kind: input, shape index: {}]   ;;  %s9624_s4 = inlined_call_operand.hbm [shape: bf16[5568,256], index: 4, kind: input, shape index: {}]   ;;  %s9625_s5 = inlined_call_operand.hbm [shape: f32[1,256], index: 5, kind: input, shape index: {}]   ;;  %s9626_s6 = inlined_call_operand.hbm [shape: f32[30,64], index: 6, kind: input, shape index: {}]   ;;  %s9627_s7 = inlined_call_operand.hbm [shape: f32[1,64], index: 7, kind: input, shape index: {}]   ;;  %s9628_s8 = inlined_call_operand.hbm [shape: f32[64,256], index: 8, kind: input, shape index: {}]   ;;  %s9629_s9 = inlined_call_operand.hbm [shape: f32[1,256], index: 9, kind: input, shape index: {}]   ;;  %s9630_s10 = inlined_call_operand.vmem [shape: f32[10,8], index: 10, kind: input, shape index: {}]   ;;  %s9631_s11 = inlined_call_operand.hbm [shape: f32[1,8], index: 11, kind: input, shape index: {}]   ;;  %s9632_s12 = inlined_call_operand.hbm [shape: f32[8,16], index: 12, kind: input, shape index: {}]   ;;  %s9633_s13 = inlined_call_operand.hbm [shape: f32[1,16], index: 13, kind: input, shape index: {}]   ;;  %s9634_s14 = inlined_call_operand.vmem [shape: f32[256,64], index: 14, kind: input, shape index: {}]   ;;  %s9635_s15 = inlined_call_operand.vmem [shape: f32[256,64], index: 15, kind: input, shape index: {}]   ;;  %s9636_s16 = inlined_call_operand.hbm [shape: f32[16,64], index: 16, kind: input, shape index: {}]   ;;  %s9637_s17 = inlined_call_operand.hbm [shape: f32[2,64], index: 17, kind: input, shape index: {}]   ;;  %s9638_s18 = inlined_call_operand.hbm [shape: f32[1,64], index: 18, kind: input, shape index: {}]   ;;  %s9639_s19 = inlined_call_operand.hbm [shape: f32[64,64], index: 19, kind: input, shape index: {}]   ;;  %s9640_s20 = inlined_call_operand.hbm [shape: f32[1,64], index: 20, kind: input, shape index: {}]   ;;  %s9641_s21 = inlined_call_operand.vmem [shape: f32[64,1], index: 21, kind: input, shape index: {}]   ;;  %s9642_s22 = inlined_call_operand.<no memory space> [shape: f32[1,1], index: 22, kind: input, shape index: {}]   ;;  %s9643_s23 = inlined_call_operand.vmem [shape: f32[2,1], index: 23, kind: output, shape index: {}]  }
   0x1   :  { %9645 = sst [smem:[#allocation37_spill]] %s9620_s0  ;;  %v28_v0 = vstv %s9642_s22 }
   0x2   :  { %9646 = sst [smem:[#allocation38_spill]] %s9621_s1  ;;  %29 = vst [vmem:[#allocation2] sm:$0x1] %v28_v0 }
   0x3   :  { %9647 = sst [smem:[#allocation39_spill]] %s9622_s2 }
   0x4   :  { %9648 = sst [smem:[#allocation40_spill]] %s9623_s3 }
   0x5   :  { %9649 = sst [smem:[#allocation41_spill]] %s9624_s4 }
   0x6   :  { %9650 = sst [smem:[#allocation42_spill]] %s9625_s5 }
   0x7   :  { %9651 = sst [smem:[#allocation43_spill]] %s9626_s6 }
   0x8   :  { %9652 = sst [smem:[#allocation44_spill]] %s9627_s7 }
   0x9   :  { %30 = vsyncpa [#allocation4], 0 }
   0xa   :  { %31 = vsyncpa [#allocation6], 0 }
   0xb   :  { %32 = vsyncpa [#allocation9], 0 }
   0xc   :  { %33 = vsyncpa [#allocation12], 0 }
   0xd   :  { %34 = vsyncpa [#allocation15], 0 }
   0xe   :  { %35 = vsyncpa [#allocation18], 0 }
   0xf   :  { %36 = vsyncpa [#allocation21], 0 }
  0x10   :  { %37 = vsyncpa [#allocation24], 0 }
  0x11   :  { %38 = vsyncpa [#allocation27], 0  ;;  %s8898_s24 = smov [#allocation5]   ;;  %s8899_s5 = smov [#allocation8]  }
  0x12   :  { %s59_s25 = sshll.u32 %s8898_s24, 4  ;;  %s81_s1 = sshll.u32 %s8899_s5, 4  ;;  %s60_s25 = int_to_ptr.vmem [resolvable:$true] %s59_s25  ;;  %s82_s1 = int_to_ptr.vmem [resolvable:$true] %s81_s1 }
  0x13   :  { %s8568_s26 = scalar_lea.vmem %s60_s25, 32  ;;  %p8573_p1 = scmp.lt.s32.totalorder %s60_s25, %s60_s25 }
  0x14   :  { %p8569_p0 = scmp.ne.s32.totalorder %s60_s25, %s8568_s26  ;;  %p8574_p2 = scmp.lt.s32.totalorder %s8568_s26, %s8568_s26 }
  0x16   :  { %p8575_p3 = por %p8574_p2, %p8573_p1 }
  0x18   :  { %p8576_p4 = pnand %p8575_p3, %p8569_p0 }
  0x1a   :  { %8579 = shalt.err (!%p8576_p4)
}
  0x1b   :  { %s9653_s6 = sld [smem:[#allocation40_spill]]  ;;  %s8588_s27 = scalar_lea.vmem %s82_s1, 32 }
  0x1c   :  { %p8589_p5 = scmp.ne.s32.totalorder %s82_s1, %s8588_s27  ;;  %p8593_p6 = scmp.lt.s32.totalorder %s82_s1, %s82_s1 }
  0x1d   :  { %p8594_p7 = scmp.lt.s32.totalorder %s8588_s27, %s8588_s27 }
  0x1f   :  { %p8595_p8 = por %p8594_p7, %p8593_p6 }
  0x21   :  { %62 = dma.hbm_to_vmem [thread:$0]  %s9653_s6, 32, %s60_s25, [#allocation6]  }
  0x22   :  { %p8596_p9 = pnand %p8595_p8, %p8589_p5 }
  0x24   :  { %8599 = shalt.err (!%p8596_p9)
}
  0x25   :  { %s9654_s29 = sld [smem:[#allocation42_spill]]  ;;  %s8900_s3 = smov [#allocation11]  }
  0x26   :  { %s103_s0 = sshll.u32 %s8900_s3, 4  ;;  %s8901_s4 = smov [#allocation14]   ;;  %s104_s0 = int_to_ptr.vmem [resolvable:$true] %s103_s0 }
  0x27   :  { %s125_s30 = sshll.u32 %s8901_s4, 4  ;;  %s8608_s24 = scalar_lea.vmem %s104_s0, 16  ;;  %s126_s30 = int_to_ptr.vmem [resolvable:$true] %s125_s30 }
  0x28   :  { %p8609_p10 = scmp.ne.s32.totalorder %s104_s0, %s8608_s24  ;;  %s8612_s25 = scalar_lea.vmem %s104_s0, 32 }
  0x29   :  { %p8613_p11 = scmp.lt.s32.totalorder %s104_s0, %s104_s0  ;;  %p8614_p12 = scmp.lt.s32.totalorder %s8612_s25, %s8608_s24 }
  0x2b   :  { %84 = dma.hbm_to_vmem [thread:$0]  %s9654_s29, 32, %s82_s1, [#allocation9]  }
  0x2c   :  { %p8615_p13 = por %p8614_p12, %p8613_p11 }
  0x2e   :  { %p8616_p0 = pnand %p8615_p13, %p8609_p10 }
  0x30   :  { %8619 = shalt.err (!%p8616_p0)
}
  0x31   :  { %s9655_s22 = sld [smem:[#allocation44_spill]]  ;;  %s8628_s2 = scalar_lea.vmem %s126_s30, 32 }
  0x32   :  { %p8629_p1 = scmp.ne.s32.totalorder %s126_s30, %s8628_s2  ;;  %p8633_p2 = scmp.lt.s32.totalorder %s126_s30, %s126_s30 }
  0x33   :  { %p8634_p3 = scmp.lt.s32.totalorder %s8628_s2, %s8628_s2 }
  0x35   :  { %p8635_p4 = por %p8634_p3, %p8633_p2 }
  0x37   :  { %106 = dma.hbm_to_vmem [thread:$0]  %s9655_s22, 16, %s104_s0, [#allocation12]  }
  0x38   :  { %p8636_p5 = pnand %p8635_p4, %p8629_p1 }
  0x3a   :  { %8639 = shalt.err (!%p8636_p5)
}
  0x3b   :  { %128 = dma.hbm_to_vmem [thread:$0]  %s9629_s9, 32, %s126_s30, [#allocation15]  }
  0x3c   :  { %s8902_s27 = smov [#allocation17]  }
  0x3d   :  { %s147_s7 = sshll.u32 %s8902_s27, 4  ;;  %s148_s7 = int_to_ptr.vmem [resolvable:$true] %s147_s7 }
  0x3e   :  { %s8648_s28 = scalar_lea.vmem %s148_s7, 128  ;;  %p8653_p7 = scmp.lt.s32.totalorder %s148_s7, %s148_s7 }
  0x3f   :  { %p8649_p6 = scmp.ne.s32.totalorder %s148_s7, %s8648_s28  ;;  %p8654_p8 = scmp.lt.s32.totalorder %s8648_s28, %s8648_s28 }
  0x41   :  { %p8655_p9 = por %p8654_p8, %p8653_p7 }
  0x43   :  { %p8656_p10 = pnand %p8655_p9, %p8649_p6 }
  0x45   :  { %8659 = shalt.err (!%p8656_p10)
}
  0x46   :  { %150 = dma.hbm_to_vmem [thread:$0]  %s9632_s12, 128, %s148_s7, [#allocation18]  }
  0x47   :  { %s8903_s0 = smov [#allocation20]   ;;  %s8904_s24 = smov [#allocation23]  }
  0x48   :  { %s170_s4 = sshll.u32 %s8903_s0, 4  ;;  %s193_s25 = sshll.u32 %s8904_s24, 4  ;;  %s171_s4 = int_to_ptr.vmem [resolvable:$true] %s170_s4  ;;  %s194_s25 = int_to_ptr.vmem [resolvable:$true] %s193_s25 }
  0x49   :  { %s8668_s9 = scalar_lea.vmem %s171_s4, 256  ;;  %p8673_p12 = scmp.lt.s32.totalorder %s171_s4, %s171_s4 }
  0x4a   :  { %p8669_p11 = scmp.ne.s32.totalorder %s171_s4, %s8668_s9  ;;  %p8674_p13 = scmp.lt.s32.totalorder %s8668_s9, %s8668_s9 }
  0x4c   :  { %p8675_p0 = por %p8674_p13, %p8673_p12 }
  0x4e   :  { %p8676_p1 = pnand %p8675_p0, %p8669_p11 }
  0x50   :  { %8679 = shalt.err (!%p8676_p1)
}
  0x51   :  { %s8905_s30 = smov 128   ;;  %s8906_s5 = smov 8  }
  0x52   :  { %176 = dma.hbm_to_vmem [thread:$0]  %s9636_s16, 256, %s171_s4, [#allocation21], %s8905_s30, %s8905_s30, %s8906_s5  }
  0x53   :  { %s8688_s12 = scalar_lea.vmem %s194_s25, 16  ;;  %s8692_s2 = scalar_lea.vmem %s194_s25, 32 }
  0x54   :  { %p8689_p2 = scmp.ne.s32.totalorder %s194_s25, %s8688_s12  ;;  %p8693_p3 = scmp.lt.s32.totalorder %s194_s25, %s194_s25 }
  0x55   :  { %p8694_p4 = scmp.lt.s32.totalorder %s8692_s2, %s8688_s12 }
  0x57   :  { %p8695_p5 = por %p8694_p4, %p8693_p3 }
  0x59   :  { %p8696_p6 = pnand %p8695_p5, %p8689_p2 }
  0x5b   :  { %8699 = shalt.err (!%p8696_p6)
}
  0x5c   :  { %196 = dma.hbm_to_vmem [thread:$0]  %s9638_s18, 16, %s194_s25, [#allocation24]  }
  0x5d   :  { %s8907_s27 = smov [#allocation3]   ;;  %s8908_s28 = smov [#allocation7]  }
  0x5e   :  { %s47_s7 = sshll.u32 %s8907_s27, 4  ;;  %s68_s29 = sshll.u32 %s8908_s28, 4  ;;  %s48_s7 = int_to_ptr.vmem [resolvable:$true] %s47_s7  ;;  %s69_s29 = int_to_ptr.vmem [resolvable:$true] %s68_s29 }
  0x5f   :  { %s8708_s3 = scalar_lea.vmem %s48_s7, 32  ;;  %p8713_p8 = scmp.lt.s32.totalorder %s48_s7, %s48_s7 }
  0x60   :  { %p8709_p7 = scmp.ne.s32.totalorder %s48_s7, %s8708_s3  ;;  %p8714_p9 = scmp.lt.s32.totalorder %s8708_s3, %s8708_s3 }
  0x62   :  { %p8715_p10 = por %p8714_p9, %p8713_p8 }
  0x64   :  { %p8716_p11 = pnand %p8715_p10, %p8709_p7 }
  0x66   :  { %8719 = shalt.err (!%p8716_p11)
}
  0x67   :  { %s9656_s4 = sld [smem:[#allocation38_spill]]  ;;  %s8728_s24 = scalar_lea.vmem %s69_s29, 89088 }
  0x68   :  { %p8729_p12 = scmp.ne.s32.totalorder %s69_s29, %s8728_s24  ;;  %p8733_p13 = scmp.lt.s32.totalorder %s69_s29, %s69_s29 }
  0x69   :  { %p8734_p0 = scmp.lt.s32.totalorder %s8728_s24, %s8728_s24 }
  0x6b   :  { %p8735_p1 = por %p8734_p0, %p8733_p13 }
  0x6d   :  { %50 = dma.hbm_to_vmem [thread:$0]  %s9656_s4, 32, %s48_s7, [#allocation4]  }
  0x6e   :  { %p8736_p2 = pnand %p8735_p1, %p8729_p12 }
  0x70   :  { %8739 = shalt.err (!%p8736_p2)
}
  0x71   :  { %s9657_s9 = sld [smem:[#allocation41_spill]]  ;;  %s8909_s26 = smov [#allocation10]  }
  0x72   :  { %s90_s22 = sshll.u32 %s8909_s26, 4  ;;  %s8910_s12 = smov [#allocation13]   ;;  %s91_s22 = int_to_ptr.vmem [resolvable:$true] %s90_s22 }
  0x73   :  { %s112_s2 = sshll.u32 %s8910_s12, 4  ;;  %s8748_s1 = scalar_lea.vmem %s91_s22, 512  ;;  %s113_s2 = int_to_ptr.vmem [resolvable:$true] %s112_s2 }
  0x74   :  { %p8749_p3 = scmp.ne.s32.totalorder %s91_s22, %s8748_s1  ;;  %p8753_p4 = scmp.lt.s32.totalorder %s91_s22, %s91_s22 }
  0x75   :  { %p8754_p5 = scmp.lt.s32.totalorder %s8748_s1, %s8748_s1 }
  0x77   :  { %74 = dma.hbm_to_vmem [thread:$0]  %s9657_s9, 89088, %s69_s29, [#allocation6], %s8905_s30, %s8905_s30, %s8906_s5  }
  0x78   :  { %p8755_p6 = por %p8754_p5, %p8753_p4 }
  0x7a   :  { %p8756_p7 = pnand %p8755_p6, %p8749_p3 }
  0x7c   :  { %8759 = shalt.err (!%p8756_p7)
}
  0x7d   :  { %s9658_s7 = sld [smem:[#allocation43_spill]]  ;;  %s8768_s28 = scalar_lea.vmem %s113_s2, 2048 }
  0x7e   :  { %p8769_p8 = scmp.ne.s32.totalorder %s113_s2, %s8768_s28  ;;  %p8773_p9 = scmp.lt.s32.totalorder %s113_s2, %s113_s2 }
  0x7f   :  { %p8774_p10 = scmp.lt.s32.totalorder %s8768_s28, %s8768_s28 }
  0x81   :  { %p8775_p11 = por %p8774_p10, %p8773_p9 }
  0x83   :  { %96 = dma.hbm_to_vmem [thread:$0]  %s9658_s7, 512, %s91_s22, [#allocation9], %s8905_s30, %s8905_s30, %s8906_s5  }
  0x84   :  { %p8776_p12 = pnand %p8775_p11, %p8769_p8 }
  0x86   :  { %8779 = shalt.err (!%p8776_p12)
}
  0x87   :  { %s8911_s29 = smov 256   ;;  %s8912_s3 = smov 16  }
  0x88   :  { %118 = dma.hbm_to_vmem [thread:$0]  %s9628_s8, 2048, %s113_s2, [#allocation12], %s8911_s29, %s8911_s29, %s8912_s3  }
  0x89   :  { %s8913_s4 = smov [#allocation16]   ;;  %s8914_s18 = smov [#allocation19]  }
  0x8a   :  { %s137_s24 = sshll.u32 %s8913_s4, 4  ;;  %s157_s25 = sshll.u32 %s8914_s18, 4  ;;  %s138_s24 = int_to_ptr.vmem [resolvable:$true] %s137_s24  ;;  %s158_s25 = int_to_ptr.vmem [resolvable:$true] %s157_s25 }
  0x8b   :  { %s8788_s9 = scalar_lea.vmem %s138_s24, 16  ;;  %s8792_s26 = scalar_lea.vmem %s138_s24, 32 }
  0x8c   :  { %p8789_p13 = scmp.ne.s32.totalorder %s138_s24, %s8788_s9  ;;  %p8793_p0 = scmp.lt.s32.totalorder %s138_s24, %s138_s24 }
  0x8d   :  { %p8794_p1 = scmp.lt.s32.totalorder %s8792_s26, %s8788_s9 }
  0x8f   :  { %p8795_p2 = por %p8794_p1, %p8793_p0 }
  0x91   :  { %p8796_p3 = pnand %p8795_p2, %p8789_p13 }
  0x93   :  { %8799 = shalt.err (!%p8796_p3)
}
  0x94   :  { %140 = dma.hbm_to_vmem [thread:$0]  %s9631_s11, 16, %s138_s24, [#allocation15]  }
  0x95   :  { %s8808_s1 = scalar_lea.vmem %s158_s25, 16  ;;  %s8812_s8 = scalar_lea.vmem %s158_s25, 32 }
  0x96   :  { %p8809_p4 = scmp.ne.s32.totalorder %s158_s25, %s8808_s1  ;;  %p8813_p5 = scmp.lt.s32.totalorder %s158_s25, %s158_s25 }
  0x97   :  { %p8814_p6 = scmp.lt.s32.totalorder %s8812_s8, %s8808_s1 }
  0x99   :  { %p8815_p7 = por %p8814_p6, %p8813_p5 }
  0x9b   :  { %p8816_p8 = pnand %p8815_p7, %p8809_p4 }
  0x9d   :  { %8819 = shalt.err (!%p8816_p8)
}
  0x9e   :  { %160 = dma.hbm_to_vmem [thread:$0]  %s9633_s13, 16, %s158_s25, [#allocation18]  }
  0x9f   :  { %s8915_s27 = smov [#allocation22]   ;;  %s8916_s28 = smov [#allocation25]  }
  0xa0   :  { %s183_s7 = sshll.u32 %s8915_s27, 4  ;;  %s202_s29 = sshll.u32 %s8916_s28, 4  ;;  %s184_s7 = int_to_ptr.vmem [resolvable:$true] %s183_s7  ;;  %s203_s29 = int_to_ptr.vmem [resolvable:$true] %s202_s29 }
  0xa1   :  { %s8828_s3 = scalar_lea.vmem %s184_s7, 32  ;;  %p8833_p10 = scmp.lt.s32.totalorder %s184_s7, %s184_s7 }
  0xa2   :  { %p8829_p9 = scmp.ne.s32.totalorder %s184_s7, %s8828_s3  ;;  %p8834_p11 = scmp.lt.s32.totalorder %s8828_s3, %s8828_s3 }
  0xa4   :  { %p8835_p12 = por %p8834_p11, %p8833_p10 }
  0xa6   :  { %p8836_p13 = pnand %p8835_p12, %p8829_p9 }
  0xa8   :  { %8839 = shalt.err (!%p8836_p13)
}
  0xa9   :  { %186 = dma.hbm_to_vmem [thread:$0]  %s9637_s17, 32, %s184_s7, [#allocation21]  }
  0xaa   :  { %s8848_s0 = scalar_lea.vmem %s203_s29, 1024  ;;  %p8853_p1 = scmp.lt.s32.totalorder %s203_s29, %s203_s29 }
  0xab   :  { %p8849_p0 = scmp.ne.s32.totalorder %s203_s29, %s8848_s0  ;;  %p8854_p2 = scmp.lt.s32.totalorder %s8848_s0, %s8848_s0 }
  0xad   :  { %p8855_p3 = por %p8854_p2, %p8853_p1 }
  0xaf   :  { %p8856_p4 = pnand %p8855_p3, %p8849_p0 }
  0xb1   :  { %8859 = shalt.err (!%p8856_p4)
}
  0xb2   :  { %208 = dma.hbm_to_vmem [thread:$0]  %s9639_s19, 1024, %s203_s29, [#allocation24], %s8905_s30, %s8905_s30, %s8906_s5  }
  0xb3   :  { %s8917_s24 = smov [#allocation26]  }
  0xb4   :  { %s215_s18 = sshll.u32 %s8917_s24, 4  ;;  %s216_s18 = int_to_ptr.vmem [resolvable:$true] %s215_s18 }
  0xb5   :  { %s8868_s25 = scalar_lea.vmem %s216_s18, 16  ;;  %s8872_s17 = scalar_lea.vmem %s216_s18, 32 }
  0xb6   :  { %p8869_p5 = scmp.ne.s32.totalorder %s216_s18, %s8868_s25  ;;  %p8873_p6 = scmp.lt.s32.totalorder %s216_s18, %s216_s18 }
  0xb7   :  { %p8874_p7 = scmp.lt.s32.totalorder %s8872_s17, %s8868_s25 }
  0xb9   :  { %p8875_p8 = por %p8874_p7, %p8873_p6 }
  0xbb   :  { %p8876_p9 = pnand %p8875_p8, %p8869_p5 }
  0xbd   :  { %8879 = shalt.err (!%p8876_p9)
}
  0xbe   :  { %218 = dma.hbm_to_vmem [thread:$0]  %s9640_s20, 16, %s216_s18, [#allocation27]  }
  0xbf   :  { %8880 = dma.done.wait [#allocation4], 32  }
  0xc0   :  { %8881 = vsyncadd [#allocation4], 4294967264 }
  0xc1   :  { %8882 = dma.done.wait [#allocation6], 89120  }
  0xc2   :  { %8883 = vsyncadd [#allocation6], 4294878176 }
  0xc3   :  { %8884 = dma.done.wait [#allocation9], 544  }
  0xc4   :  { %8885 = vsyncadd [#allocation9], 4294966752 }
  0xc5   :  { %8886 = dma.done.wait [#allocation12], 2064  }
  0xc6   :  { %8887 = vsyncadd [#allocation12], 4294965232 }
  0xc7   :  { %8888 = dma.done.wait [#allocation15], 48  }
  0xc8   :  { %8889 = vsyncadd [#allocation15], 4294967248 }
  0xc9   :  { %8890 = dma.done.wait [#allocation18], 144  }
  0xca   :  { %8891 = vsyncadd [#allocation18], 4294967152 }
  0xcb   :  { %8892 = dma.done.wait [#allocation21], 288  }
  0xcc   :  { %8893 = vsyncadd [#allocation21], 4294967008 }
  0xcd   :  { %8894 = dma.done.wait [#allocation24], 1040  }
  0xce   :  { %8895 = vsyncadd [#allocation24], 4294966256 }
  0xcf   :  { %8896 = dma.done.wait [#allocation27], 16  }
  0xd0   :  { %8897 = vsyncadd [#allocation27], 4294967280  ;;  %v7505_v1 = vld [vmem:[#allocation7 + $0x74] ss:$8 sps:$4 sm:$0xff]   ;;  %v7509_v3 = vld [vmem:[#allocation7 + $0x70] ss:$8 sps:$4 sm:$0xff]   ;;  %v298_v39 = vlaneseq }
  0xd1   :  { %v7507_v2 = vld [vmem:[#allocation7 + $0x174] ss:$8 sps:$4 sm:$0xff]   ;;  %4761 = vmatprep.subr.bf16.mxu0 %v7505_v1  ;;  %v7510_v4 = vld [vmem:[#allocation7 + $0x170] ss:$8 sps:$4 sm:$0xff]   ;;  %v7511_v5 = vld [vmem:[#allocation7 + $0x64] ss:$8 sps:$4 sm:$0xff]  }
  0xd2   :  { %4802 = vmatprep.subr.bf16.mxu1 %v7507_v2  ;;  %4762 = vmatpush1.bf16.msra.mxu0 %v7509_v3  ;;  %v7513_v6 = vld [vmem:[#allocation7 + $0x164] ss:$8 sps:$4 sm:$0xff]   ;;  %v7515_v7 = vld [vmem:[#allocation7 + $0x60] ss:$8 sps:$4 sm:$0xff]   ;;  %v7517_v9 = vld [vmem:[#allocation7 + $0x54] ss:$8 sps:$4 sm:$0xff]  }
  0xd3   :  { %4803 = vmatpush1.bf16.msra.mxu1 %v7510_v4  ;;  %4763 = vmatprep.subr.bf16.mxu0 %v7511_v5  ;;  %v7516_v8 = vld [vmem:[#allocation7 + $0x160] ss:$8 sps:$4 sm:$0xff]   ;;  %v7519_v10 = vld [vmem:[#allocation7 + $0x154] ss:$8 sps:$4 sm:$0xff]   ;;  %v7521_v11 = vld [vmem:[#allocation7 + $0x50] ss:$8 sps:$4 sm:$0xff]  }
  0xd4   :  { %4804 = vmatprep.subr.bf16.mxu1 %v7513_v6  ;;  %v7522_v12 = vld [vmem:[#allocation7 + $0x150] ss:$8 sps:$4 sm:$0xff]   ;;  %v7523_v13 = vld [vmem:[#allocation7 + $0x44] ss:$8 sps:$4 sm:$0xff]   ;;  %v7527_v15 = vld [vmem:[#allocation7 + $0x40] ss:$8 sps:$4 sm:$0xff]  }
  0xd5   :  { %v7525_v14 = vld [vmem:[#allocation7 + $0x144] ss:$8 sps:$4 sm:$0xff]   ;;  %v7528_v16 = vld [vmem:[#allocation7 + $0x140] ss:$8 sps:$4 sm:$0xff]   ;;  %v7529_v17 = vld [vmem:[#allocation7 + $0x34] ss:$8 sps:$4 sm:$0xff]  }
  0xd6   :  { %4764 = vmatpush1.bf16.msra.mxu0 %v7515_v7  ;;  %v7531_v18 = vld [vmem:[#allocation7 + $0x134] ss:$8 sps:$4 sm:$0xff]   ;;  %v7533_v19 = vld [vmem:[#allocation7 + $0x30] ss:$8 sps:$4 sm:$0xff]   ;;  %v7535_v21 = vld [vmem:[#allocation7 + $0x24] ss:$8 sps:$4 sm:$0xff]  }
  0xd7   :  { %4805 = vmatpush1.bf16.msra.mxu1 %v7516_v8  ;;  %4765 = vmatprep.subr.bf16.mxu0 %v7517_v9  ;;  %v7534_v20 = vld [vmem:[#allocation7 + $0x130] ss:$8 sps:$4 sm:$0xff]   ;;  %v7537_v22 = vld [vmem:[#allocation7 + $0x124] ss:$8 sps:$4 sm:$0xff]   ;;  %v7539_v23 = vld [vmem:[#allocation7 + $0x20] ss:$8 sps:$4 sm:$0xff]  }
  0xd8   :  { %4806 = vmatprep.subr.bf16.mxu1 %v7519_v10  ;;  %v7540_v24 = vld [vmem:[#allocation7 + $0x120] ss:$8 sps:$4 sm:$0xff]   ;;  %v7541_v25 = vld [vmem:[#allocation7 + $0x14] ss:$8 sps:$4 sm:$0xff]   ;;  %v7545_v27 = vld [vmem:[#allocation7 + $0x10] ss:$8 sps:$4 sm:$0xff]  }
  0xd9   :  { %v7543_v26 = vld [vmem:[#allocation7 + $0x114] ss:$8 sps:$4 sm:$0xff]   ;;  %v7546_v28 = vld [vmem:[#allocation7 + $0x110] ss:$8 sps:$4 sm:$0xff]   ;;  %v7547_v29 = vld [vmem:[#allocation7 + $0x4] ss:$8 sps:$4 sm:$0xff]  }
  0xda   :  { %4766 = vmatpush1.bf16.msra.mxu0 %v7521_v11  ;;  %v7549_v30 = vld [vmem:[#allocation7 + $0x104] ss:$8 sps:$4 sm:$0xff]   ;;  %v7551_v31 = vld [vmem:[#allocation7] ss:$8 sps:$4 sm:$0xff]   ;;  %v7553_v33 = vld [vmem:[#allocation7 + $0xf4] ss:$8 sps:$4 sm:$0xff]  }
  0xdb   :  { %4807 = vmatpush1.bf16.msra.mxu1 %v7522_v12  ;;  %4767 = vmatprep.subr.bf16.mxu0 %v7523_v13  ;;  %v7552_v32 = vld [vmem:[#allocation7 + $0x100] ss:$8 sps:$4 sm:$0xff]   ;;  %v7555_v34 = vld [vmem:[#allocation7 + $0x1f4] ss:$8 sps:$4 sm:$0xff]   ;;  %v7557_v35 = vld [vmem:[#allocation7 + $0xf0] ss:$8 sps:$4 sm:$0xff]  }
  0xdc   :  { %4808 = vmatprep.subr.bf16.mxu1 %v7525_v14  ;;  %v7558_v36 = vld [vmem:[#allocation7 + $0x1f0] ss:$8 sps:$4 sm:$0xff]   ;;  %v8918_v37 = vmov 1983009808   ;;  %v7559_v40 = vld [vmem:[#allocation7 + $0xe4] ss:$8 sps:$4 sm:$0xff]  }
  0xdd   :  { %v296_v38 = vunpack.c.l.s4 %v8918_v37  ;;  %v7561_v41 = vld [vmem:[#allocation7 + $0x1e4] ss:$8 sps:$4 sm:$0xff]   ;;  %v7563_v42 = vld [vmem:[#allocation7 + $0xe0] ss:$8 sps:$4 sm:$0xff]   ;;  %v9104_v44 = vshrl.u32 %v298_v39, 7  ;;  %s9659_s30 = sld [smem:[#allocation37_spill]] }
  0xde   :  { %4768 = vmatpush1.bf16.msra.mxu0 %v7527_v15  ;;  %v7564_v45 = vld [vmem:[#allocation7 + $0x1e0] ss:$8 sps:$4 sm:$0xff]   ;;  %v7565_v46 = vld [vmem:[#allocation7 + $0xd4] ss:$8 sps:$4 sm:$0xff]   ;;  %v7569_v48 = vld [vmem:[#allocation7 + $0xd0] ss:$8 sps:$4 sm:$0xff]  }
  0xdf   :  { %4809 = vmatpush1.bf16.msra.mxu1 %v7528_v16  ;;  %4769 = vmatprep.subr.bf16.mxu0 %v7529_v17  ;;  %v297_v43 = vunpack.c.0.s8 %v296_v38  ;;  %v7567_v47 = vld [vmem:[#allocation7 + $0x1d4] ss:$8 sps:$4 sm:$0xff]   ;;  %v7570_v49 = vld [vmem:[#allocation7 + $0x1d0] ss:$8 sps:$4 sm:$0xff]   ;;  %v7571_v51 = vld [vmem:[#allocation7 + $0xc4] ss:$8 sps:$4 sm:$0xff]  }
  0xe0   :  { %4810 = vmatprep.subr.bf16.mxu1 %v7531_v18  ;;  %v7573_v52 = vld [vmem:[#allocation7 + $0x1c4] ss:$8 sps:$4 sm:$0xff]   ;;  %v7575_v54 = vld [vmem:[#allocation7 + $0xc0] ss:$8 sps:$4 sm:$0xff]   ;;  %v7577_v58 = vld [vmem:[#allocation7 + $0xb4] ss:$8 sps:$4 sm:$0xff]  }
  0xe1   :  { %v9107_v50 = vsub.s32 %v297_v43, %v9104_v44  ;;  %v7576_v57 = vld [vmem:[#allocation7 + $0x1c0] ss:$8 sps:$4 sm:$0xff]   ;;  %v7579_v59 = vld [vmem:[#allocation7 + $0x1b4] ss:$8 sps:$4 sm:$0xff]   ;;  %v7581_v62 = vld [vmem:[#allocation7 + $0xb0] ss:$8 sps:$4 sm:$0xff]  }
  0xe2   :  { %4770 = vmatpush1.bf16.msra.mxu0 %v7533_v19  ;;  %v7582_v1 = vld [vmem:[#allocation7 + $0x1b0] ss:$8 sps:$4 sm:$0xff]   ;;  %v7583_v2 = vld [vmem:[#allocation7 + $0xa4] ss:$8 sps:$4 sm:$0xff]   ;;  %v7587_v5 = vld [vmem:[#allocation7 + $0xa0] ss:$8 sps:$4 sm:$0xff]  }
  0xe3   :  { %4811 = vmatpush1.bf16.msra.mxu1 %v7534_v20  ;;  %4771 = vmatprep.subr.bf16.mxu0 %v7535_v21  ;;  %v272_v53 = vld [vmem:[%s9659_s30] sm:$0xff]  ;;  %v7585_v3 = vld [vmem:[#allocation7 + $0x1a4] ss:$8 sps:$4 sm:$0xff]   ;;  %vm4757_vm0 = vcmask 523264   ;;  %vm5679_vm1 = vcmask 1045504   ;;  %vm8920_vm2 = vmmov 0  }
  0xe4   :  { %4812 = vmatprep.subr.bf16.mxu1 %v7537_v22  ;;  %v301_v55 = vrot.slane %v272_v53, %v9107_v50  ;;  %v294_v56 = vcombine.high %v272_v53, %v272_v53  ;;  %v7588_v6 = vld [vmem:[#allocation7 + $0x1a0] ss:$8 sps:$4 sm:$0xff]   ;;  %v7589_v7 = vld [vmem:[#allocation7 + $0x94] ss:$8 sps:$4 sm:$0xff]   ;;  %v7593_v9 = vld [vmem:[#allocation7 + $0x90] ss:$8 sps:$4 sm:$0xff]  }
  0xe5   :  { %v7591_v8 = vld [vmem:[#allocation7 + $0x194] ss:$8 sps:$4 sm:$0xff]   ;;  %v7594_v10 = vld [vmem:[#allocation7 + $0x190] ss:$8 sps:$4 sm:$0xff]   ;;  %v7595_v11 = vld [vmem:[#allocation7 + $0x84] ss:$8 sps:$4 sm:$0xff]  }
  0xe6   :  { %4772 = vmatpush1.bf16.msra.mxu0 %v7539_v23  ;;  %v309_v60 = vcombine.high %v301_v55, %v301_v55  ;;  %v308_v61 = vrot.slane %v294_v56, %v9107_v50  ;;  %v7597_v12 = vld [vmem:[#allocation7 + $0x184] ss:$8 sps:$4 sm:$0xff]   ;;  %v7599_v13 = vld [vmem:[#allocation7 + $0x80] ss:$8 sps:$4 sm:$0xff]   ;;  %v7604_v15 = vld [vmem:[#allocation7 + $0x274] ss:$8 sps:$4 sm:$0xff]   ;;  %v525_v17 = vpack.c.bf16 %v301_v55, %v301_v55 }
  0xe7   :  { %4813 = vmatpush1.bf16.msra.mxu1 %v7540_v24  ;;  %4773 = vmatprep.subr.bf16.mxu0 %v7541_v25  ;;  %v7600_v14 = vld [vmem:[#allocation7 + $0x180] ss:$8 sps:$4 sm:$0xff]   ;;  %v7607_v16 = vld [vmem:[#allocation7 + $0x374] ss:$8 sps:$4 sm:$0xff]   ;;  %v7602_v18 = vld [vmem:[#allocation7 + $0x270] ss:$8 sps:$4 sm:$0xff]  }
  0xe8   :  { %4814 = vmatprep.subr.bf16.mxu1 %v7543_v26  ;;  %v526_v63 = vpack.c.bf16 %v309_v60, %v309_v60  ;;  %v310_v0 = vcombine.high %v308_v61, %v308_v61  ;;  %v527_v19 = vpack.c.bf16 %v308_v61, %v308_v61  ;;  %v7605_v20 = vld [vmem:[#allocation7 + $0x370] ss:$8 sps:$4 sm:$0xff]   ;;  %v7610_v21 = vld [vmem:[#allocation7 + $0x264] ss:$8 sps:$4 sm:$0xff]   ;;  %v7608_v23 = vld [vmem:[#allocation7 + $0x260] ss:$8 sps:$4 sm:$0xff]  }
  0xe9   :  { %v7613_v22 = vld [vmem:[#allocation7 + $0x364] ss:$8 sps:$4 sm:$0xff]   ;;  %v7611_v24 = vld [vmem:[#allocation7 + $0x360] ss:$8 sps:$4 sm:$0xff]   ;;  %v7616_v25 = vld [vmem:[#allocation7 + $0x254] ss:$8 sps:$4 sm:$0xff]  }
  0xea   :  { %4774 = vmatpush1.bf16.msra.mxu0 %v7545_v27  ;;  %v528_v4 = vpack.c.bf16 %v310_v0, %v310_v0  ;;  %4793 = vmatprep.mubr.bf16.mxu0 %v526_v63  ;;  %v7619_v26 = vld [vmem:[#allocation7 + $0x354] ss:$8 sps:$4 sm:$0xff]   ;;  %v7614_v27 = vld [vmem:[#allocation7 + $0x250] ss:$8 sps:$4 sm:$0xff]   ;;  %v7634_v37 = vld [vmem:[#allocation7 + $0x224] ss:$8 sps:$4 sm:$0xff]  }
  0xeb   :  { %4815 = vmatpush1.bf16.msra.mxu1 %v7546_v28  ;;  %4775 = vmatprep.subr.bf16.mxu0 %v7547_v29  ;;  %v7617_v28 = vld [vmem:[#allocation7 + $0x350] ss:$8 sps:$4 sm:$0xff]   ;;  %v7622_v29 = vld [vmem:[#allocation7 + $0x244] ss:$8 sps:$4 sm:$0xff]   ;;  %v7632_v39 = vld [vmem:[#allocation7 + $0x220] ss:$8 sps:$4 sm:$0xff]  }
  0xec   :  { %4816 = vmatprep.subr.bf16.mxu1 %v7549_v30  ;;  %4834 = vmatprep.mubr.bf16.mxu1 %v528_v4  ;;  %v7625_v30 = vld [vmem:[#allocation7 + $0x344] ss:$8 sps:$4 sm:$0xff]   ;;  %v7644_v56 = vld [vmem:[#allocation7 + $0x200] ss:$8 sps:$4 sm:$0xff]   ;;  %v7655_v60 = vld [vmem:[#allocation7 + $0x3f4] ss:$8 sps:$4 sm:$0xff]  }
  0xed   :  { %v7637_v38 = vld [vmem:[#allocation7 + $0x324] ss:$8 sps:$4 sm:$0xff]   ;;  %v7650_v61 = vld [vmem:[#allocation7 + $0x2f0] ss:$8 sps:$4 sm:$0xff]   ;;  %v7667_v4 = vld [vmem:[#allocation7 + $0x3d4] ss:$8 sps:$4 sm:$0xff]  }
  0xee   :  { %4776 = vmatpush1.bf16.msra.mxu0 %v7551_v31  ;;  %v7620_v31 = vld [vmem:[#allocation7 + $0x240] ss:$8 sps:$4 sm:$0xff]   ;;  %v7649_v53 = vld [vmem:[#allocation7 + $0x304] ss:$8 sps:$4 sm:$0xff]   ;;  %vm5675_vm3 = vcmask 244736   ;;  %vm5872_vm4 = vcmask 1041408  }
  0xef   :  { %4817 = vmatpush1.bf16.msra.mxu1 %v7552_v32  ;;  %4777 = vmatprep.subr.bf16.mxu0 %v7553_v33  ;;  %v7623_v32 = vld [vmem:[#allocation7 + $0x340] ss:$8 sps:$4 sm:$0xff]   ;;  %v7628_v33 = vld [vmem:[#allocation7 + $0x234] ss:$8 sps:$4 sm:$0xff]   ;;  %v7658_v63 = vld [vmem:[#allocation7 + $0x2e4] ss:$8 sps:$4 sm:$0xff]  }
  0xf0   :  { %4818 = vmatprep.subr.bf16.mxu1 %v7555_v34  ;;  %v7631_v34 = vld [vmem:[#allocation7 + $0x334] ss:$8 sps:$4 sm:$0xff]   ;;  %v273_v43 = vld [vmem:[%s9659_s30 + $0x8] sm:$0xff]  ;;  %vm5868_vm5 = vcmask 80896   ;;  %vm5955_vm6 = vcmask 64512   ;;  %vm6313_vm7 = vcmask 15360  }
  0xf1   :  { %v7661_v0 = vld [vmem:[#allocation7 + $0x3e4] ss:$8 sps:$4 sm:$0xff]   ;;  %vm6236_vm8 = vcmask 130048   ;;  %vm6577_vm9 = vcmask 1024  }
  0xf2   :  { %4778 = vmatpush2.bf16.msra.mxu0 %v7557_v35  ;;  %v7626_v35 = vld [vmem:[#allocation7 + $0x230] ss:$8 sps:$4 sm:$0xff]  }
  0xf3   :  { %4819 = vmatpush2.bf16.msra.mxu1 %v7558_v36  ;;  %4779 = vmatprep.subr.bf16.mxu0 %v7559_v40  ;;  %v7629_v36 = vld [vmem:[#allocation7 + $0x330] ss:$8 sps:$4 sm:$0xff]   ;;  %v7635_v40 = vld [vmem:[#allocation7 + $0x320] ss:$8 sps:$4 sm:$0xff]  }
  0xf4   :  { %4820 = vmatprep.subr.bf16.mxu1 %v7561_v41  ;;  %v7640_v41 = vld [vmem:[#allocation7 + $0x214] ss:$8 sps:$4 sm:$0xff]  }
  0xf6   :  { %4780 = vmatpush2.bf16.msra.mxu0 %v7563_v42  ;;  %v7643_v42 = vld [vmem:[#allocation7 + $0x314] ss:$8 sps:$4 sm:$0xff]  }
  0xf7   :  { %4821 = vmatpush2.bf16.msra.mxu1 %v7564_v45  ;;  %4781 = vmatprep.subr.bf16.mxu0 %v7565_v46  ;;  %v9118_v45 = vrot.slane %v273_v43, %v9107_v50  ;;  %v311_v46 = vcombine.high %v273_v43, %v273_v43  ;;  %v7716_v43 = vld [vmem:[#allocation7 + $0x554] ss:$8 sps:$4 sm:$0xff]  }
  0xf8   :  { %4822 = vmatprep.subr.bf16.mxu1 %v7567_v47  ;;  %v7638_v47 = vld [vmem:[#allocation7 + $0x210] ss:$8 sps:$4 sm:$0xff]  }
  0xfa   :  { %4782 = vmatpush2.bf16.msra.mxu0 %v7569_v48  ;;  %v7641_v48 = vld [vmem:[#allocation7 + $0x310] ss:$8 sps:$4 sm:$0xff]  }
  0xfb   :  { %4823 = vmatpush2.bf16.msra.mxu1 %v7570_v49  ;;  %4783 = vmatprep.subr.bf16.mxu0 %v7571_v51  ;;  %v326_v49 = vcombine.high %v9118_v45, %v9118_v45  ;;  %v9123_v51 = vrot.slane %v311_v46, %v9107_v50 }
  0xfc   :  { %4824 = vmatprep.subr.bf16.mxu1 %v7573_v52  ;;  %v7646_v52 = vld [vmem:[#allocation7 + $0x204] ss:$8 sps:$4 sm:$0xff]  }
  0xfd   :  { %v327_v55 = vcombine.high %v9123_v51, %v9123_v51 }
  0xfe   :  { %4784 = vmatpush2.bf16.msra.mxu0 %v7575_v54  ;;  %v530_v54 = vpack.c.bf16 %v326_v49, %v326_v49  ;;  %v7714_v49 = vld [vmem:[#allocation7 + $0x550] ss:$8 sps:$4 sm:$0xff]  }
  0xff   :  { %4825 = vmatpush2.bf16.msra.mxu1 %v7576_v57  ;;  %4785 = vmatprep.subr.bf16.mxu0 %v7577_v58  ;;  %v7647_v57 = vld [vmem:[#allocation7 + $0x300] ss:$8 sps:$4 sm:$0xff]   ;;  %v532_v58 = vpack.c.bf16 %v327_v55, %v327_v55  ;;  %v7725_v55 = vld [vmem:[#allocation7 + $0x434] ss:$8 sps:$4 sm:$0xff]  }
 0x100   :  { %4826 = vmatprep.subr.bf16.mxu1 %v7579_v59  ;;  %v7652_v59 = vld [vmem:[#allocation7 + $0x2f4] ss:$8 sps:$4 sm:$0xff]  }
 0x102   :  { %4786 = vmatpush2.bf16.msra.mxu0 %v7581_v62  ;;  %v7653_v62 = vld [vmem:[#allocation7 + $0x3f0] ss:$8 sps:$4 sm:$0xff]  }
 0x103   :  { %4827 = vmatpush2.bf16.msra.mxu1 %v7582_v1  ;;  %4787 = vmatprep.subr.bf16.mxu0 %v7583_v2  ;;  %v7656_v1 = vld [vmem:[#allocation7 + $0x2e0] ss:$8 sps:$4 sm:$0xff]  }
 0x104   :  { %4828 = vmatprep.subr.bf16.mxu1 %v7585_v3  ;;  %v7659_v2 = vld [vmem:[#allocation7 + $0x3e0] ss:$8 sps:$4 sm:$0xff]   ;;  %v7664_v3 = vld [vmem:[#allocation7 + $0x2d4] ss:$8 sps:$4 sm:$0xff]  }
 0x106   :  { %4788 = vmatpush2.bf16.msra.mxu0 %v7587_v5  ;;  %v7662_v5 = vld [vmem:[#allocation7 + $0x2d0] ss:$8 sps:$4 sm:$0xff]  }
 0x107   :  { %4829 = vmatpush2.bf16.msra.mxu1 %v7588_v6  ;;  %4789 = vmatprep.subr.bf16.mxu0 %v7589_v7  ;;  %v7665_v6 = vld [vmem:[#allocation7 + $0x3d0] ss:$8 sps:$4 sm:$0xff]   ;;  %v7670_v7 = vld [vmem:[#allocation7 + $0x2c4] ss:$8 sps:$4 sm:$0xff]  }
 0x108   :  { %4830 = vmatprep.subr.bf16.mxu1 %v7591_v8  ;;  %v7673_v8 = vld [vmem:[#allocation7 + $0x3c4] ss:$8 sps:$4 sm:$0xff]  }
 0x10a   :  { %4790 = vmatpush2.bf16.msra.mxu0 %v7593_v9  ;;  %v7668_v9 = vld [vmem:[#allocation7 + $0x2c0] ss:$8 sps:$4 sm:$0xff]  }
 0x10b   :  { %4831 = vmatpush2.bf16.msra.mxu1 %v7594_v10  ;;  %4791 = vmatprep.subr.bf16.mxu0 %v7595_v11  ;;  %v7671_v10 = vld [vmem:[#allocation7 + $0x3c0] ss:$8 sps:$4 sm:$0xff]   ;;  %v7676_v11 = vld [vmem:[#allocation7 + $0x2b4] ss:$8 sps:$4 sm:$0xff]  }
 0x10c   :  { %4832 = vmatprep.subr.bf16.mxu1 %v7597_v12  ;;  %v7679_v12 = vld [vmem:[#allocation7 + $0x3b4] ss:$8 sps:$4 sm:$0xff]  }
 0x10e   :  { %4792 = vmatpush2.bf16.msra.mxu0 %v7599_v13  ;;  %v7674_v13 = vld [vmem:[#allocation7 + $0x2b0] ss:$8 sps:$4 sm:$0xff]  }
 0x10f   :  { %4833 = vmatpush2.bf16.msra.mxu1 %v7600_v14  ;;  %4843 = vmatprep.subr.bf16.mxu0 %v7604_v15  ;;  %v7677_v14 = vld [vmem:[#allocation7 + $0x3b0] ss:$8 sps:$4 sm:$0xff]   ;;  %v7682_v15 = vld [vmem:[#allocation7 + $0x2a4] ss:$8 sps:$4 sm:$0xff]  }
 0x110   :  { %4884 = vmatprep.subr.bf16.mxu1 %v7607_v16  ;;  %v7685_v16 = vld [vmem:[#allocation7 + $0x3a4] ss:$8 sps:$4 sm:$0xff]  }
 0x111   :  { %4794 = vmatmul.mubr.bf16.vlgmr.msra.gmra.mxu0 %v525_v17  ;;  %v7680_v17 = vld [vmem:[#allocation7 + $0x2a0] ss:$8 sps:$4 sm:$0xff]  }
 0x112   :  { %4835 = vmatmul.mubr.bf16.vlgmr.msra.gmra.mxu1 %v527_v19  ;;  %4844 = vmatpush1.bf16.msra.mxu0 %v7602_v18  ;;  %v7683_v18 = vld [vmem:[#allocation7 + $0x3a0] ss:$8 sps:$4 sm:$0xff]   ;;  %v7688_v19 = vld [vmem:[#allocation7 + $0x294] ss:$8 sps:$4 sm:$0xff]  }
 0x113   :  { %4885 = vmatpush1.bf16.msra.mxu1 %v7605_v20  ;;  %4845 = vmatprep.subr.bf16.mxu0 %v7610_v21  ;;  %v7691_v20 = vld [vmem:[#allocation7 + $0x394] ss:$8 sps:$4 sm:$0xff]   ;;  %v7686_v21 = vld [vmem:[#allocation7 + $0x290] ss:$8 sps:$4 sm:$0xff]  }
 0x114   :  { %4886 = vmatprep.subr.bf16.mxu1 %v7613_v22  ;;  %4875 = vmatprep.mubr.bf16.mxu0 %v530_v54  ;;  %v7689_v22 = vld [vmem:[#allocation7 + $0x390] ss:$8 sps:$4 sm:$0xff]   ;;  %v7720_v54 = vld [vmem:[#allocation7 + $0x540] ss:$8 sps:$4 sm:$0xff]  }
 0x115   :  { %4916 = vmatprep.mubr.bf16.mxu1 %v532_v58  ;;  %v7726_v58 = vld [vmem:[#allocation7 + $0x530] ss:$8 sps:$4 sm:$0xff]  }
 0x116   :  { %4846 = vmatpush1.bf16.msra.mxu0 %v7608_v23  ;;  %v7694_v23 = vld [vmem:[#allocation7 + $0x284] ss:$8 sps:$4 sm:$0xff]  }
 0x117   :  { %4887 = vmatpush1.bf16.msra.mxu1 %v7611_v24  ;;  %4847 = vmatprep.subr.bf16.mxu0 %v7616_v25  ;;  %v7697_v24 = vld [vmem:[#allocation7 + $0x384] ss:$8 sps:$4 sm:$0xff]   ;;  %v7692_v25 = vld [vmem:[#allocation7 + $0x280] ss:$8 sps:$4 sm:$0xff]  }
 0x118   :  { %4888 = vmatprep.subr.bf16.mxu1 %v7619_v26  ;;  %v7695_v26 = vld [vmem:[#allocation7 + $0x380] ss:$8 sps:$4 sm:$0xff]  }
 0x11a   :  { %4848 = vmatpush1.bf16.msra.mxu0 %v7614_v27  ;;  %v7701_v27 = vld [vmem:[#allocation7 + $0x474] ss:$8 sps:$4 sm:$0xff]  }
 0x11b   :  { %4889 = vmatpush1.bf16.msra.mxu1 %v7617_v28  ;;  %4849 = vmatprep.subr.bf16.mxu0 %v7622_v29  ;;  %v7704_v28 = vld [vmem:[#allocation7 + $0x574] ss:$8 sps:$4 sm:$0xff]   ;;  %v529_v29 = vpack.c.bf16 %v9118_v45, %v9118_v45 }
 0x11c   :  { %4890 = vmatprep.subr.bf16.mxu1 %v7625_v30  ;;  %v7699_v30 = vld [vmem:[#allocation7 + $0x470] ss:$8 sps:$4 sm:$0xff]  }
 0x11e   :  { %4850 = vmatpush1.bf16.msra.mxu0 %v7620_v31  ;;  %v531_v31 = vpack.c.bf16 %v9123_v51, %v9123_v51  ;;  %v7719_v51 = vld [vmem:[#allocation7 + $0x444] ss:$8 sps:$4 sm:$0xff]  }
 0x11f   :  { %4891 = vmatpush1.bf16.msra.mxu1 %v7623_v32  ;;  %4851 = vmatprep.subr.bf16.mxu0 %v7628_v33  ;;  %v7702_v32 = vld [vmem:[#allocation7 + $0x570] ss:$8 sps:$4 sm:$0xff]   ;;  %v7707_v33 = vld [vmem:[#allocation7 + $0x464] ss:$8 sps:$4 sm:$0xff]  }
 0x120   :  { %4892 = vmatprep.subr.bf16.mxu1 %v7631_v34  ;;  %v274_v34 = vld [vmem:[%s9659_s30 + $0x10] sm:$0xff] }
 0x122   :  { %4852 = vmatpush1.bf16.msra.mxu0 %v7626_v35  ;;  %v7710_v35 = vld [vmem:[#allocation7 + $0x564] ss:$8 sps:$4 sm:$0xff]  }
 0x123   :  { %4893 = vmatpush1.bf16.msra.mxu1 %v7629_v36  ;;  %4853 = vmatprep.subr.bf16.mxu0 %v7634_v37  ;;  %v9135_v36 = vrot.slane %v274_v34, %v9107_v50  ;;  %v328_v37 = vcombine.high %v274_v34, %v274_v34 }
 0x124   :  { %4894 = vmatprep.subr.bf16.mxu1 %v7637_v38  ;;  %v7705_v38 = vld [vmem:[#allocation7 + $0x460] ss:$8 sps:$4 sm:$0xff]  }
 0x126   :  { %4854 = vmatpush1.bf16.msra.mxu0 %v7632_v39  ;;  %v343_v39 = vcombine.high %v9135_v36, %v9135_v36 }
 0x127   :  { %4895 = vmatpush1.bf16.msra.mxu1 %v7635_v40  ;;  %4855 = vmatprep.subr.bf16.mxu0 %v7640_v41  ;;  %v9140_v40 = vrot.slane %v328_v37, %v9107_v50  ;;  %v7708_v41 = vld [vmem:[#allocation7 + $0x560] ss:$8 sps:$4 sm:$0xff]   ;;  %v7786_v37 = vld [vmem:[#allocation7 + $0x590] ss:$8 sps:$4 sm:$0xff]  }
 0x128   :  { %4896 = vmatprep.subr.bf16.mxu1 %v7643_v42  ;;  %v7713_v42 = vld [vmem:[#allocation7 + $0x454] ss:$8 sps:$4 sm:$0xff]   ;;  %v534_v45 = vpack.c.bf16 %v343_v39, %v343_v39  ;;  %v7794_v39 = vld [vmem:[#allocation7 + $0x584] ss:$8 sps:$4 sm:$0xff]  }
 0x129   :  { %v344_v46 = vcombine.high %v9140_v40, %v9140_v40 }
 0x12a   :  { %4856 = vmatpush1.bf16.msra.mxu0 %v7638_v47  ;;  %v7711_v47 = vld [vmem:[#allocation7 + $0x450] ss:$8 sps:$4 sm:$0xff]  }
 0x12b   :  { %4897 = vmatpush1.bf16.msra.mxu1 %v7641_v48  ;;  %4857 = vmatprep.subr.bf16.mxu0 %v7646_v52  ;;  %v536_v48 = vpack.c.bf16 %v344_v46, %v344_v46  ;;  %v7722_v52 = vld [vmem:[#allocation7 + $0x544] ss:$8 sps:$4 sm:$0xff]   ;;  %v7798_v46 = vld [vmem:[#allocation7 + $0x674] ss:$8 sps:$4 sm:$0xff]  }
 0x12c   :  { %4898 = vmatprep.subr.bf16.mxu1 %v7649_v53  ;;  %v7717_v53 = vld [vmem:[#allocation7 + $0x440] ss:$8 sps:$4 sm:$0xff]  }
 0x12e   :  { %4858 = vmatpush1.bf16.msra.mxu0 %v7644_v56  ;;  %v7728_v56 = vld [vmem:[#allocation7 + $0x534] ss:$8 sps:$4 sm:$0xff]  }
 0x12f   :  { %4899 = vmatpush1.bf16.msra.mxu1 %v7647_v57  ;;  %4859 = vmatprep.subr.bf16.mxu0 %v7652_v59  ;;  %v7723_v57 = vld [vmem:[#allocation7 + $0x430] ss:$8 sps:$4 sm:$0xff]   ;;  %v7731_v59 = vld [vmem:[#allocation7 + $0x424] ss:$8 sps:$4 sm:$0xff]  }
 0x130   :  { %4900 = vmatprep.subr.bf16.mxu1 %v7655_v60  ;;  %v7734_v60 = vld [vmem:[#allocation7 + $0x524] ss:$8 sps:$4 sm:$0xff]  }
 0x132   :  { %4860 = vmatpush2.bf16.msra.mxu0 %v7650_v61  ;;  %v7729_v61 = vld [vmem:[#allocation7 + $0x420] ss:$8 sps:$4 sm:$0xff]  }
 0x133   :  { %4901 = vmatpush2.bf16.msra.mxu1 %v7653_v62  ;;  %4861 = vmatprep.subr.bf16.mxu0 %v7658_v63  ;;  %v7732_v62 = vld [vmem:[#allocation7 + $0x520] ss:$8 sps:$4 sm:$0xff]   ;;  %v7737_v63 = vld [vmem:[#allocation7 + $0x414] ss:$8 sps:$4 sm:$0xff]  }
 0x134   :  { %4902 = vmatprep.subr.bf16.mxu1 %v7661_v0  ;;  %v7740_v0 = vld [vmem:[#allocation7 + $0x514] ss:$8 sps:$4 sm:$0xff]  }
 0x136   :  { %4862 = vmatpush2.bf16.msra.mxu0 %v7656_v1  ;;  %v7735_v1 = vld [vmem:[#allocation7 + $0x410] ss:$8 sps:$4 sm:$0xff]  }
 0x137   :  { %4903 = vmatpush2.bf16.msra.mxu1 %v7659_v2  ;;  %4863 = vmatprep.subr.bf16.mxu0 %v7664_v3  ;;  %v7738_v2 = vld [vmem:[#allocation7 + $0x510] ss:$8 sps:$4 sm:$0xff]   ;;  %v7743_v3 = vld [vmem:[#allocation7 + $0x404] ss:$8 sps:$4 sm:$0xff]  }
 0x138   :  { %4904 = vmatprep.subr.bf16.mxu1 %v7667_v4  ;;  %v7746_v4 = vld [vmem:[#allocation7 + $0x504] ss:$8 sps:$4 sm:$0xff]  }
 0x13a   :  { %4864 = vmatpush2.bf16.msra.mxu0 %v7662_v5  ;;  %v7741_v5 = vld [vmem:[#allocation7 + $0x400] ss:$8 sps:$4 sm:$0xff]  }
 0x13b   :  { %4905 = vmatpush2.bf16.msra.mxu1 %v7665_v6  ;;  %4865 = vmatprep.subr.bf16.mxu0 %v7670_v7  ;;  %v7744_v6 = vld [vmem:[#allocation7 + $0x500] ss:$8 sps:$4 sm:$0xff]   ;;  %v7749_v7 = vld [vmem:[#allocation7 + $0x4f4] ss:$8 sps:$4 sm:$0xff]  }
 0x13c   :  { %4906 = vmatprep.subr.bf16.mxu1 %v7673_v8  ;;  %v7752_v8 = vld [vmem:[#allocation7 + $0x5f4] ss:$8 sps:$4 sm:$0xff]  }
 0x13e   :  { %4866 = vmatpush2.bf16.msra.mxu0 %v7668_v9  ;;  %v7747_v9 = vld [vmem:[#allocation7 + $0x4f0] ss:$8 sps:$4 sm:$0xff]  }
 0x13f   :  { %4907 = vmatpush2.bf16.msra.mxu1 %v7671_v10  ;;  %4867 = vmatprep.subr.bf16.mxu0 %v7676_v11  ;;  %v7750_v10 = vld [vmem:[#allocation7 + $0x5f0] ss:$8 sps:$4 sm:$0xff]   ;;  %v7755_v11 = vld [vmem:[#allocation7 + $0x4e4] ss:$8 sps:$4 sm:$0xff]  }
 0x140   :  { %4908 = vmatprep.subr.bf16.mxu1 %v7679_v12  ;;  %v7758_v12 = vld [vmem:[#allocation7 + $0x5e4] ss:$8 sps:$4 sm:$0xff]  }
 0x142   :  { %4868 = vmatpush2.bf16.msra.mxu0 %v7674_v13  ;;  %v7753_v13 = vld [vmem:[#allocation7 + $0x4e0] ss:$8 sps:$4 sm:$0xff]  }
 0x143   :  { %4909 = vmatpush2.bf16.msra.mxu1 %v7677_v14  ;;  %4869 = vmatprep.subr.bf16.mxu0 %v7682_v15  ;;  %v7756_v14 = vld [vmem:[#allocation7 + $0x5e0] ss:$8 sps:$4 sm:$0xff]   ;;  %v7761_v15 = vld [vmem:[#allocation7 + $0x4d4] ss:$8 sps:$4 sm:$0xff]  }
 0x144   :  { %4910 = vmatprep.subr.bf16.mxu1 %v7685_v16  ;;  %v7764_v16 = vld [vmem:[#allocation7 + $0x5d4] ss:$8 sps:$4 sm:$0xff]  }
 0x146   :  { %4870 = vmatpush2.bf16.msra.mxu0 %v7680_v17  ;;  %v7759_v17 = vld [vmem:[#allocation7 + $0x4d0] ss:$8 sps:$4 sm:$0xff]  }
 0x147   :  { %4911 = vmatpush2.bf16.msra.mxu1 %v7683_v18  ;;  %4871 = vmatprep.subr.bf16.mxu0 %v7688_v19  ;;  %v7762_v18 = vld [vmem:[#allocation7 + $0x5d0] ss:$8 sps:$4 sm:$0xff]   ;;  %v7767_v19 = vld [vmem:[#allocation7 + $0x4c4] ss:$8 sps:$4 sm:$0xff]  }
 0x148   :  { %4912 = vmatprep.subr.bf16.mxu1 %v7691_v20  ;;  %v7770_v20 = vld [vmem:[#allocation7 + $0x5c4] ss:$8 sps:$4 sm:$0xff]  }
 0x14a   :  { %4872 = vmatpush2.bf16.msra.mxu0 %v7686_v21  ;;  %v7765_v21 = vld [vmem:[#allocation7 + $0x4c0] ss:$8 sps:$4 sm:$0xff]  }
 0x14b   :  { %4913 = vmatpush2.bf16.msra.mxu1 %v7689_v22  ;;  %4873 = vmatprep.subr.bf16.mxu0 %v7694_v23  ;;  %v7768_v22 = vld [vmem:[#allocation7 + $0x5c0] ss:$8 sps:$4 sm:$0xff]   ;;  %v7773_v23 = vld [vmem:[#allocation7 + $0x4b4] ss:$8 sps:$4 sm:$0xff]  }
 0x14c   :  { %4914 = vmatprep.subr.bf16.mxu1 %v7697_v24  ;;  %v7776_v24 = vld [vmem:[#allocation7 + $0x5b4] ss:$8 sps:$4 sm:$0xff]  }
 0x14e   :  { %4874 = vmatpush2.bf16.msra.mxu0 %v7692_v25  ;;  %v7771_v25 = vld [vmem:[#allocation7 + $0x4b0] ss:$8 sps:$4 sm:$0xff]  }
 0x14f   :  { %4915 = vmatpush2.bf16.msra.mxu1 %v7695_v26  ;;  %4925 = vmatprep.subr.bf16.mxu0 %v7701_v27  ;;  %v7774_v26 = vld [vmem:[#allocation7 + $0x5b0] ss:$8 sps:$4 sm:$0xff]   ;;  %v7779_v27 = vld [vmem:[#allocation7 + $0x4a4] ss:$8 sps:$4 sm:$0xff]  }
 0x150   :  { %4966 = vmatprep.subr.bf16.mxu1 %v7704_v28  ;;  %v7782_v28 = vld [vmem:[#allocation7 + $0x5a4] ss:$8 sps:$4 sm:$0xff]  }
 0x151   :  { %4876 = vmatmul.mubr.bf16.vlgmr.msra.gmra.mxu0 %v529_v29  ;;  %v7777_v29 = vld [vmem:[#allocation7 + $0x4a0] ss:$8 sps:$4 sm:$0xff]  }
 0x152   :  { %4917 = vmatmul.mubr.bf16.vlgmr.msra.gmra.mxu1 %v531_v31  ;;  %4926 = vmatpush1.bf16.msra.mxu0 %v7699_v30  ;;  %v275_v30 = vld [vmem:[%s9659_s30 + $0x18] sm:$0xff]  ;;  %v7780_v31 = vld [vmem:[#allocation7 + $0x5a0] ss:$8 sps:$4 sm:$0xff]  }
 0x153   :  { %4967 = vmatpush1.bf16.msra.mxu1 %v7702_v32  ;;  %4927 = vmatprep.subr.bf16.mxu0 %v7707_v33  ;;  %v7785_v32 = vld [vmem:[#allocation7 + $0x494] ss:$8 sps:$4 sm:$0xff]   ;;  %v345_v34 = vcombine.high %v275_v30, %v275_v30 }
 0x154   :  { %4968 = vmatprep.subr.bf16.mxu1 %v7710_v35  ;;  %4957 = vmatprep.mubr.bf16.mxu0 %v534_v45  ;;  %v7788_v33 = vld [vmem:[#allocation7 + $0x594] ss:$8 sps:$4 sm:$0xff]   ;;  %v7783_v35 = vld [vmem:[#allocation7 + $0x490] ss:$8 sps:$4 sm:$0xff]   ;;  %v7792_v45 = vld [vmem:[#allocation7 + $0x580] ss:$8 sps:$4 sm:$0xff]  }
 0x155   :  { %4998 = vmatprep.mubr.bf16.mxu1 %v536_v48 }
 0x156   :  { %4928 = vmatpush1.bf16.msra.mxu0 %v7705_v38  ;;  %v7791_v38 = vld [vmem:[#allocation7 + $0x484] ss:$8 sps:$4 sm:$0xff]  }
 0x157   :  { %4969 = vmatpush1.bf16.msra.mxu1 %v7708_v41  ;;  %4929 = vmatprep.subr.bf16.mxu0 %v7713_v42  ;;  %v9148_v41 = vrot.slane %v275_v30, %v9107_v50  ;;  %v9151_v42 = vrot.slane %v345_v34, %v9107_v50  ;;  %v7859_v30 = vld [vmem:[#allocation7 + $0x7d0] ss:$8 sps:$4 sm:$0xff]   ;;  %v7865_v34 = vld [vmem:[#allocation7 + $0x7c0] ss:$8 sps:$4 sm:$0xff]  }
 0x158   :  { %4970 = vmatprep.subr.bf16.mxu1 %v7716_v43  ;;  %v7789_v43 = vld [vmem:[#allocation7 + $0x480] ss:$8 sps:$4 sm:$0xff]  }
 0x159   :  { %v360_v48 = vcombine.high %v9148_v41, %v9148_v41 }
 0x15a   :  { %4930 = vmatpush1.bf16.msra.mxu0 %v7711_v47  ;;  %v7801_v47 = vld [vmem:[#allocation7 + $0x774] ss:$8 sps:$4 sm:$0xff]  }
 0x15b   :  { %4971 = vmatpush1.bf16.msra.mxu1 %v7714_v49  ;;  %4931 = vmatprep.subr.bf16.mxu0 %v7719_v51  ;;  %v361_v49 = vcombine.high %v9151_v42, %v9151_v42  ;;  %v533_v51 = vpack.c.bf16 %v9135_v36, %v9135_v36  ;;  %v7810_v36 = vld [vmem:[#allocation7 + $0x654] ss:$8 sps:$4 sm:$0xff]  }
 0x15c   :  { %4972 = vmatprep.subr.bf16.mxu1 %v7722_v52  ;;  %v7796_v52 = vld [vmem:[#allocation7 + $0x670] ss:$8 sps:$4 sm:$0xff]  }
 0x15e   :  { %4932 = vmatpush1.bf16.msra.mxu0 %v7717_v53  ;;  %v535_v53 = vpack.c.bf16 %v9140_v40, %v9140_v40  ;;  %v7808_v40 = vld [vmem:[#allocation7 + $0x650] ss:$8 sps:$4 sm:$0xff]  }
 0x15f   :  { %4973 = vmatpush1.bf16.msra.mxu1 %v7720_v54  ;;  %4933 = vmatprep.subr.bf16.mxu0 %v7725_v55  ;;  %v7799_v54 = vld [vmem:[#allocation7 + $0x770] ss:$8 sps:$4 sm:$0xff]   ;;  %v7804_v55 = vld [vmem:[#allocation7 + $0x664] ss:$8 sps:$4 sm:$0xff]  }
 0x160   :  { %4974 = vmatprep.subr.bf16.mxu1 %v7728_v56  ;;  %v7807_v56 = vld [vmem:[#allocation7 + $0x764] ss:$8 sps:$4 sm:$0xff]  }
 0x162   :  { %4934 = vmatpush1.bf16.msra.mxu0 %v7723_v57  ;;  %v538_v57 = vpack.c.bf16 %v360_v48, %v360_v48  ;;  %v7877_v48 = vld [vmem:[#allocation7 + $0x7a0] ss:$8 sps:$4 sm:$0xff]  }
 0x163   :  { %4975 = vmatpush1.bf16.msra.mxu1 %v7726_v58  ;;  %4935 = vmatprep.subr.bf16.mxu0 %v7731_v59  ;;  %v540_v58 = vpack.c.bf16 %v361_v49, %v361_v49  ;;  %v7802_v59 = vld [vmem:[#allocation7 + $0x660] ss:$8 sps:$4 sm:$0xff]   ;;  %v7882_v49 = vld [vmem:[#allocation7 + $0x694] ss:$8 sps:$4 sm:$0xff]  }
 0x164   :  { %4976 = vmatprep.subr.bf16.mxu1 %v7734_v60  ;;  %v7805_v60 = vld [vmem:[#allocation7 + $0x760] ss:$8 sps:$4 sm:$0xff]  }
 0x166   :  { %4936 = vmatpush1.bf16.msra.mxu0 %v7729_v61  ;;  %v7813_v61 = vld [vmem:[#allocation7 + $0x754] ss:$8 sps:$4 sm:$0xff]  }
 0x167   :  { %4977 = vmatpush1.bf16.msra.mxu1 %v7732_v62  ;;  %4937 = vmatprep.subr.bf16.mxu0 %v7737_v63  ;;  %v7811_v62 = vld [vmem:[#allocation7 + $0x750] ss:$8 sps:$4 sm:$0xff]   ;;  %v7816_v63 = vld [vmem:[#allocation7 + $0x644] ss:$8 sps:$4 sm:$0xff]  }
 0x168   :  { %4978 = vmatprep.subr.bf16.mxu1 %v7740_v0  ;;  %v7819_v0 = vld [vmem:[#allocation7 + $0x744] ss:$8 sps:$4 sm:$0xff]  }
 0x16a   :  { %4938 = vmatpush1.bf16.msra.mxu0 %v7735_v1  ;;  %v7814_v1 = vld [vmem:[#allocation7 + $0x640] ss:$8 sps:$4 sm:$0xff]  }
 0x16b   :  { %4979 = vmatpush1.bf16.msra.mxu1 %v7738_v2  ;;  %4939 = vmatprep.subr.bf16.mxu0 %v7743_v3  ;;  %v7817_v2 = vld [vmem:[#allocation7 + $0x740] ss:$8 sps:$4 sm:$0xff]   ;;  %v7822_v3 = vld [vmem:[#allocation7 + $0x634] ss:$8 sps:$4 sm:$0xff]  }
 0x16c   :  { %4980 = vmatprep.subr.bf16.mxu1 %v7746_v4  ;;  %v7825_v4 = vld [vmem:[#allocation7 + $0x734] ss:$8 sps:$4 sm:$0xff]  }
 0x16e   :  { %4940 = vmatpush1.bf16.msra.mxu0 %v7741_v5  ;;  %v7820_v5 = vld [vmem:[#allocation7 + $0x630] ss:$8 sps:$4 sm:$0xff]  }
 0x16f   :  { %4981 = vmatpush1.bf16.msra.mxu1 %v7744_v6  ;;  %4941 = vmatprep.subr.bf16.mxu0 %v7749_v7  ;;  %v7823_v6 = vld [vmem:[#allocation7 + $0x730] ss:$8 sps:$4 sm:$0xff]   ;;  %v7828_v7 = vld [vmem:[#allocation7 + $0x624] ss:$8 sps:$4 sm:$0xff]  }
 0x170   :  { %4982 = vmatprep.subr.bf16.mxu1 %v7752_v8  ;;  %v7831_v8 = vld [vmem:[#allocation7 + $0x724] ss:$8 sps:$4 sm:$0xff]  }
 0x172   :  { %4942 = vmatpush2.bf16.msra.mxu0 %v7747_v9  ;;  %v7826_v9 = vld [vmem:[#allocation7 + $0x620] ss:$8 sps:$4 sm:$0xff]  }
 0x173   :  { %4983 = vmatpush2.bf16.msra.mxu1 %v7750_v10  ;;  %4943 = vmatprep.subr.bf16.mxu0 %v7755_v11  ;;  %v7829_v10 = vld [vmem:[#allocation7 + $0x720] ss:$8 sps:$4 sm:$0xff]   ;;  %v7834_v11 = vld [vmem:[#allocation7 + $0x614] ss:$8 sps:$4 sm:$0xff]  }
 0x174   :  { %4984 = vmatprep.subr.bf16.mxu1 %v7758_v12  ;;  %v7837_v12 = vld [vmem:[#allocation7 + $0x714] ss:$8 sps:$4 sm:$0xff]  }
 0x176   :  { %4944 = vmatpush2.bf16.msra.mxu0 %v7753_v13  ;;  %v7832_v13 = vld [vmem:[#allocation7 + $0x610] ss:$8 sps:$4 sm:$0xff]  }
 0x177   :  { %4985 = vmatpush2.bf16.msra.mxu1 %v7756_v14  ;;  %4945 = vmatprep.subr.bf16.mxu0 %v7761_v15  ;;  %v7835_v14 = vld [vmem:[#allocation7 + $0x710] ss:$8 sps:$4 sm:$0xff]   ;;  %v7840_v15 = vld [vmem:[#allocation7 + $0x604] ss:$8 sps:$4 sm:$0xff]  }
 0x178   :  { %4986 = vmatprep.subr.bf16.mxu1 %v7764_v16  ;;  %v7843_v16 = vld [vmem:[#allocation7 + $0x704] ss:$8 sps:$4 sm:$0xff]  }
 0x17a   :  { %4946 = vmatpush2.bf16.msra.mxu0 %v7759_v17  ;;  %v7838_v17 = vld [vmem:[#allocation7 + $0x600] ss:$8 sps:$4 sm:$0xff]  }
 0x17b   :  { %4987 = vmatpush2.bf16.msra.mxu1 %v7762_v18  ;;  %4947 = vmatprep.subr.bf16.mxu0 %v7767_v19  ;;  %v7841_v18 = vld [vmem:[#allocation7 + $0x700] ss:$8 sps:$4 sm:$0xff]   ;;  %v7846_v19 = vld [vmem:[#allocation7 + $0x6f4] ss:$8 sps:$4 sm:$0xff]  }
 0x17c   :  { %4988 = vmatprep.subr.bf16.mxu1 %v7770_v20  ;;  %v7849_v20 = vld [vmem:[#allocation7 + $0x7f4] ss:$8 sps:$4 sm:$0xff]  }
 0x17e   :  { %4948 = vmatpush2.bf16.msra.mxu0 %v7765_v21  ;;  %v7844_v21 = vld [vmem:[#allocation7 + $0x6f0] ss:$8 sps:$4 sm:$0xff]  }
 0x17f   :  { %4989 = vmatpush2.bf16.msra.mxu1 %v7768_v22  ;;  %4949 = vmatprep.subr.bf16.mxu0 %v7773_v23  ;;  %v7847_v22 = vld [vmem:[#allocation7 + $0x7f0] ss:$8 sps:$4 sm:$0xff]   ;;  %v7852_v23 = vld [vmem:[#allocation7 + $0x6e4] ss:$8 sps:$4 sm:$0xff]  }
 0x180   :  { %4990 = vmatprep.subr.bf16.mxu1 %v7776_v24  ;;  %v7855_v24 = vld [vmem:[#allocation7 + $0x7e4] ss:$8 sps:$4 sm:$0xff]  }
 0x182   :  { %4950 = vmatpush2.bf16.msra.mxu0 %v7771_v25  ;;  %v7850_v25 = vld [vmem:[#allocation7 + $0x6e0] ss:$8 sps:$4 sm:$0xff]  }
 0x183   :  { %4991 = vmatpush2.bf16.msra.mxu1 %v7774_v26  ;;  %4951 = vmatprep.subr.bf16.mxu0 %v7779_v27  ;;  %v7853_v26 = vld [vmem:[#allocation7 + $0x7e0] ss:$8 sps:$4 sm:$0xff]   ;;  %v7858_v27 = vld [vmem:[#allocation7 + $0x6d4] ss:$8 sps:$4 sm:$0xff]  }
 0x184   :  { %4992 = vmatprep.subr.bf16.mxu1 %v7782_v28  ;;  %v7861_v28 = vld [vmem:[#allocation7 + $0x7d4] ss:$8 sps:$4 sm:$0xff]  }
 0x186   :  { %4952 = vmatpush2.bf16.msra.mxu0 %v7777_v29  ;;  %v7856_v29 = vld [vmem:[#allocation7 + $0x6d0] ss:$8 sps:$4 sm:$0xff]  }
 0x187   :  { %4993 = vmatpush2.bf16.msra.mxu1 %v7780_v31  ;;  %4953 = vmatprep.subr.bf16.mxu0 %v7785_v32  ;;  %v7864_v31 = vld [vmem:[#allocation7 + $0x6c4] ss:$8 sps:$4 sm:$0xff]  }
 0x188   :  { %4994 = vmatprep.subr.bf16.mxu1 %v7788_v33  ;;  %v7867_v32 = vld [vmem:[#allocation7 + $0x7c4] ss:$8 sps:$4 sm:$0xff]   ;;  %v7862_v33 = vld [vmem:[#allocation7 + $0x6c0] ss:$8 sps:$4 sm:$0xff]  }
 0x18a   :  { %4954 = vmatpush2.bf16.msra.mxu0 %v7783_v35  ;;  %v7870_v35 = vld [vmem:[#allocation7 + $0x6b4] ss:$8 sps:$4 sm:$0xff]  }
 0x18b   :  { %4995 = vmatpush2.bf16.msra.mxu1 %v7786_v37  ;;  %4955 = vmatprep.subr.bf16.mxu0 %v7791_v38  ;;  %v7873_v37 = vld [vmem:[#allocation7 + $0x7b4] ss:$8 sps:$4 sm:$0xff]   ;;  %v7868_v38 = vld [vmem:[#allocation7 + $0x6b0] ss:$8 sps:$4 sm:$0xff]  }
 0x18c   :  { %4996 = vmatprep.subr.bf16.mxu1 %v7794_v39  ;;  %v7871_v39 = vld [vmem:[#allocation7 + $0x7b0] ss:$8 sps:$4 sm:$0xff]  }
 0x18e   :  { %4956 = vmatpush2.bf16.msra.mxu0 %v7789_v43  ;;  %v7876_v43 = vld [vmem:[#allocation7 + $0x6a4] ss:$8 sps:$4 sm:$0xff]  }
 0x18f   :  { %4997 = vmatpush2.bf16.msra.mxu1 %v7792_v45  ;;  %5007 = vmatprep.subr.bf16.mxu0 %v7798_v46  ;;  %v7879_v45 = vld [vmem:[#allocation7 + $0x7a4] ss:$8 sps:$4 sm:$0xff]   ;;  %v276_v46 = vld [vmem:[%s9659_s30 + $0x20] sm:$0xff] }
 0x190   :  { %5048 = vmatprep.subr.bf16.mxu1 %v7801_v47  ;;  %v7874_v47 = vld [vmem:[#allocation7 + $0x6a0] ss:$8 sps:$4 sm:$0xff]  }
 0x191   :  { %4958 = vmatmul.mubr.bf16.vlgmr.msra.gmra.mxu0 %v533_v51  ;;  %v7885_v51 = vld [vmem:[#allocation7 + $0x794] ss:$8 sps:$4 sm:$0xff]  }
 0x192   :  { %4999 = vmatmul.mubr.bf16.vlgmr.msra.gmra.mxu1 %v535_v53  ;;  %5008 = vmatpush1.bf16.msra.mxu0 %v7796_v52  ;;  %v362_v52 = vcombine.high %v276_v46, %v276_v46  ;;  %v7880_v53 = vld [vmem:[#allocation7 + $0x690] ss:$8 sps:$4 sm:$0xff]  }
 0x193   :  { %5049 = vmatpush1.bf16.msra.mxu1 %v7799_v54  ;;  %5009 = vmatprep.subr.bf16.mxu0 %v7804_v55  ;;  %v7883_v54 = vld [vmem:[#allocation7 + $0x790] ss:$8 sps:$4 sm:$0xff]   ;;  %v7888_v55 = vld [vmem:[#allocation7 + $0x684] ss:$8 sps:$4 sm:$0xff]  }
 0x194   :  { %5050 = vmatprep.subr.bf16.mxu1 %v7807_v56  ;;  %5039 = vmatprep.mubr.bf16.mxu0 %v538_v57  ;;  %v7891_v56 = vld [vmem:[#allocation7 + $0x784] ss:$8 sps:$4 sm:$0xff]   ;;  %v9165_v57 = vrot.slane %v276_v46, %v9107_v50  ;;  %v7934_v46 = vld [vmem:[#allocation7 + $0x914] ss:$8 sps:$4 sm:$0xff]  }
 0x195   :  { %5080 = vmatprep.mubr.bf16.mxu1 %v540_v58  ;;  %v9168_v58 = vrot.slane %v362_v52, %v9107_v50  ;;  %v7935_v52 = vld [vmem:[#allocation7 + $0x800] ss:$8 sps:$4 sm:$0xff]  }
 0x196   :  { %5010 = vmatpush1.bf16.msra.mxu0 %v7802_v59  ;;  %v7886_v59 = vld [vmem:[#allocation7 + $0x680] ss:$8 sps:$4 sm:$0xff]  }
 0x197   :  { %5051 = vmatpush1.bf16.msra.mxu1 %v7805_v60  ;;  %5011 = vmatprep.subr.bf16.mxu0 %v7810_v36  ;;  %v7889_v60 = vld [vmem:[#allocation7 + $0x780] ss:$8 sps:$4 sm:$0xff]  }
 0x198   :  { %5052 = vmatprep.subr.bf16.mxu1 %v7813_v61  ;;  %v1265_v36 = vld [vmem:[#allocation8] sm:$0x3]  ;;  %v1269_v61 = vsub.s32 0, %v9104_v44 }
 0x19a   :  { %5012 = vmatpush1.bf16.msra.mxu0 %v7808_v40  ;;  %v7895_v40 = vld [vmem:[#allocation7 + $0x874] ss:$8 sps:$4 sm:$0xff]  }
 0x19b   :  { %5053 = vmatpush1.bf16.msra.mxu1 %v7811_v62  ;;  %5013 = vmatprep.subr.bf16.mxu0 %v7816_v63  ;;  %v7898_v62 = vld [vmem:[#allocation7 + $0x974] ss:$8 sps:$4 sm:$0xff]   ;;  %v1273_v63 = vsub.s32 1, %v9104_v44  ;;  %v7296_v44 = vld [vmem:[#allocation19] ss:$0 sm:$0xff] }
 0x19c   :  { %5054 = vmatprep.subr.bf16.mxu1 %v7819_v0  ;;  %v377_v0 = vcombine.high %v9165_v57, %v9165_v57 }
 0x19e   :  { %5014 = vmatpush1.bf16.msra.mxu0 %v7814_v1  ;;  %v378_v1 = vcombine.high %v9168_v58, %v9168_v58 }
 0x19f   :  { %5055 = vmatpush1.bf16.msra.mxu1 %v7817_v2  ;;  %5015 = vmatprep.subr.bf16.mxu0 %v7822_v3  ;;  %v537_v2 = vpack.c.bf16 %v9148_v41, %v9148_v41  ;;  %v539_v3 = vpack.c.bf16 %v9151_v42, %v9151_v42 }
 0x1a0   :  { %5056 = vmatprep.subr.bf16.mxu1 %v7825_v4  ;;  %v1270_v4 = vrot.slane %v1265_v36, %v1269_v61 }
 0x1a2   :  { %5016 = vmatpush1.bf16.msra.mxu0 %v7820_v5  ;;  %v7893_v5 = vld [vmem:[#allocation7 + $0x870] ss:$8 sps:$4 sm:$0xff]  }
 0x1a3   :  { %5057 = vmatpush1.bf16.msra.mxu1 %v7823_v6  ;;  %5017 = vmatprep.subr.bf16.mxu0 %v7828_v7  ;;  %v7896_v6 = vld [vmem:[#allocation7 + $0x970] ss:$8 sps:$4 sm:$0xff]   ;;  %v7901_v7 = vld [vmem:[#allocation7 + $0x864] ss:$8 sps:$4 sm:$0xff]  }
 0x1a4   :  { %5058 = vmatprep.subr.bf16.mxu1 %v7831_v8  ;;  %v7904_v8 = vld [vmem:[#allocation7 + $0x964] ss:$8 sps:$4 sm:$0xff]  }
 0x1a6   :  { %5018 = vmatpush1.bf16.msra.mxu0 %v7826_v9  ;;  %v1274_v9 = vrot.slane %v1265_v36, %v1273_v63  ;;  %v7952_v36 = vld [vmem:[#allocation7 + $0x9e4] ss:$8 sps:$4 sm:$0xff]  }
 0x1a7   :  { %5059 = vmatpush1.bf16.msra.mxu1 %v7829_v10  ;;  %5019 = vmatprep.subr.bf16.mxu0 %v7834_v11  ;;  %v542_v10 = vpack.c.bf16 %v377_v0, %v377_v0  ;;  %v544_v11 = vpack.c.bf16 %v378_v1, %v378_v1  ;;  %v7955_v0 = vld [vmem:[#allocation7 + $0x8d4] ss:$8 sps:$4 sm:$0xff]  }
 0x1a8   :  { %5060 = vmatprep.subr.bf16.mxu1 %v7837_v12  ;;  %v7899_v12 = vld [vmem:[#allocation7 + $0x860] ss:$8 sps:$4 sm:$0xff]   ;;  %v7958_v1 = vld [vmem:[#allocation7 + $0x9d4] ss:$8 sps:$4 sm:$0xff]  }
 0x1aa   :  { %5020 = vmatpush1.bf16.msra.mxu0 %v7832_v13 }
 0x1ab   :  { %5061 = vmatpush1.bf16.msra.mxu1 %v7835_v14  ;;  %5021 = vmatprep.subr.bf16.mxu0 %v7840_v15  ;;  %v7902_v14 = vld [vmem:[#allocation7 + $0x960] ss:$8 sps:$4 sm:$0xff]   ;;  %v7907_v15 = vld [vmem:[#allocation7 + $0x854] ss:$8 sps:$4 sm:$0xff]  }
 0x1ac   :  { %5062 = vmatprep.subr.bf16.mxu1 %v7843_v16 }
 0x1ae   :  { %5022 = vmatpush1.bf16.msra.mxu0 %v7838_v17 }
 0x1af   :  { %5063 = vmatpush1.bf16.msra.mxu1 %v7841_v18  ;;  %5023 = vmatprep.subr.bf16.mxu0 %v7846_v19  ;;  %v7910_v18 = vld [vmem:[#allocation7 + $0x954] ss:$8 sps:$4 sm:$0xff]  }
 0x1b0   :  { %5064 = vmatprep.subr.bf16.mxu1 %v7849_v20 }
 0x1b2   :  { %5024 = vmatpush2.bf16.msra.mxu0 %v7844_v21 }
 0x1b3   :  { %5065 = vmatpush2.bf16.msra.mxu1 %v7847_v22  ;;  %5025 = vmatprep.subr.bf16.mxu0 %v7852_v23  ;;  %v7905_v23 = vld [vmem:[#allocation7 + $0x850] ss:$8 sps:$4 sm:$0xff]  }
 0x1b4   :  { %5066 = vmatprep.subr.bf16.mxu1 %v7855_v24  ;;  %v7908_v24 = vld [vmem:[#allocation7 + $0x950] ss:$8 sps:$4 sm:$0xff]  }
 0x1b6   :  { %5026 = vmatpush2.bf16.msra.mxu0 %v7850_v25 }
 0x1b7   :  { %5067 = vmatpush2.bf16.msra.mxu1 %v7853_v26  ;;  %5027 = vmatprep.subr.bf16.mxu0 %v7858_v27 }
 0x1b8   :  { %5068 = vmatprep.subr.bf16.mxu1 %v7861_v28  ;;  %v7913_v28 = vld [vmem:[#allocation7 + $0x844] ss:$8 sps:$4 sm:$0xff]  }
 0x1ba   :  { %5028 = vmatpush2.bf16.msra.mxu0 %v7856_v29  ;;  %v7916_v29 = vld [vmem:[#allocation7 + $0x944] ss:$8 sps:$4 sm:$0xff]  }
 0x1bb   :  { %5069 = vmatpush2.bf16.msra.mxu1 %v7859_v30  ;;  %5029 = vmatprep.subr.bf16.mxu0 %v7864_v31  ;;  %v7911_v30 = vld [vmem:[#allocation7 + $0x840] ss:$8 sps:$4 sm:$0xff]  }
 0x1bc   :  { %5070 = vmatprep.subr.bf16.mxu1 %v7867_v32  ;;  %v7914_v31 = vld [vmem:[#allocation7 + $0x940] ss:$8 sps:$4 sm:$0xff]   ;;  %v7919_v32 = vld [vmem:[#allocation7 + $0x834] ss:$8 sps:$4 sm:$0xff]  }
 0x1be   :  { %5030 = vmatpush2.bf16.msra.mxu0 %v7862_v33  ;;  %v7922_v33 = vld [vmem:[#allocation7 + $0x934] ss:$8 sps:$4 sm:$0xff]  }
 0x1bf   :  { %5071 = vmatpush2.bf16.msra.mxu1 %v7865_v34  ;;  %5031 = vmatprep.subr.bf16.mxu0 %v7870_v35  ;;  %v7917_v34 = vld [vmem:[#allocation7 + $0x830] ss:$8 sps:$4 sm:$0xff]  }
 0x1c0   :  { %5072 = vmatprep.subr.bf16.mxu1 %v7873_v37  ;;  %v7920_v35 = vld [vmem:[#allocation7 + $0x930] ss:$8 sps:$4 sm:$0xff]   ;;  %v7925_v37 = vld [vmem:[#allocation7 + $0x824] ss:$8 sps:$4 sm:$0xff]  }
 0x1c2   :  { %5032 = vmatpush2.bf16.msra.mxu0 %v7868_v38  ;;  %v7928_v38 = vld [vmem:[#allocation7 + $0x924] ss:$8 sps:$4 sm:$0xff]  }
 0x1c3   :  { %5073 = vmatpush2.bf16.msra.mxu1 %v7871_v39  ;;  %5033 = vmatprep.subr.bf16.mxu0 %v7876_v43  ;;  %v7923_v39 = vld [vmem:[#allocation7 + $0x820] ss:$8 sps:$4 sm:$0xff]  }
 0x1c4   :  { %5074 = vmatprep.subr.bf16.mxu1 %v7879_v45  ;;  %v7926_v43 = vld [vmem:[#allocation7 + $0x920] ss:$8 sps:$4 sm:$0xff]   ;;  %v7931_v45 = vld [vmem:[#allocation7 + $0x814] ss:$8 sps:$4 sm:$0xff]  }
 0x1c6   :  { %5034 = vmatpush2.bf16.msra.mxu0 %v7874_v47  ;;  %v7929_v47 = vld [vmem:[#allocation7 + $0x810] ss:$8 sps:$4 sm:$0xff]  }
 0x1c7   :  { %5075 = vmatpush2.bf16.msra.mxu1 %v7877_v48  ;;  %5035 = vmatprep.subr.bf16.mxu0 %v7882_v49  ;;  %v7932_v48 = vld [vmem:[#allocation7 + $0x910] ss:$8 sps:$4 sm:$0xff]   ;;  %v7937_v49 = vld [vmem:[#allocation7 + $0x804] ss:$8 sps:$4 sm:$0xff]  }
 0x1c8   :  { %5076 = vmatprep.subr.bf16.mxu1 %v7885_v51  ;;  %v7940_v51 = vld [vmem:[#allocation7 + $0x904] ss:$8 sps:$4 sm:$0xff]  }
 0x1ca   :  { %5036 = vmatpush2.bf16.msra.mxu0 %v7880_v53  ;;  %v7938_v53 = vld [vmem:[#allocation7 + $0x900] ss:$8 sps:$4 sm:$0xff]  }
 0x1cb   :  { %5077 = vmatpush2.bf16.msra.mxu1 %v7883_v54  ;;  %5037 = vmatprep.subr.bf16.mxu0 %v7888_v55  ;;  %v7943_v54 = vld [vmem:[#allocation7 + $0x8f4] ss:$8 sps:$4 sm:$0xff]  }
 0x1cc   :  { %5078 = vmatprep.subr.bf16.mxu1 %v7891_v56  ;;  %v7946_v55 = vld [vmem:[#allocation7 + $0x9f4] ss:$8 sps:$4 sm:$0xff]   ;;  %v7941_v56 = vld [vmem:[#allocation7 + $0x8f0] ss:$8 sps:$4 sm:$0xff]  }
 0x1ce   :  { %5038 = vmatpush2.bf16.msra.mxu0 %v7886_v59  ;;  %v7944_v59 = vld [vmem:[#allocation7 + $0x9f0] ss:$8 sps:$4 sm:$0xff]  }
 0x1cf   :  { %5079 = vmatpush2.bf16.msra.mxu1 %v7889_v60  ;;  %5089 = vmatprep.subr.bf16.mxu0 %v7895_v40  ;;  %v7949_v60 = vld [vmem:[#allocation7 + $0x8e4] ss:$8 sps:$4 sm:$0xff]   ;;  %v7947_v40 = vld [vmem:[#allocation7 + $0x8e0] ss:$8 sps:$4 sm:$0xff]  }
 0x1d0   :  { %5130 = vmatprep.subr.bf16.mxu1 %v7898_v62  ;;  %v7950_v62 = vld [vmem:[#allocation7 + $0x9e0] ss:$8 sps:$4 sm:$0xff]  }
 0x1d1   :  { %v4795_v41 = vpop.f32.mrf.mxu0  ;;  %5040 = vmatmul.mubr.bf16.vlgmr.msra.gmra.mxu0 %v537_v2  ;;  %v7953_v2 = vld [vmem:[#allocation7 + $0x8d0] ss:$8 sps:$4 sm:$0xff]  }
 0x1d2   :  { %5081 = vmatmul.mubr.bf16.vlgmr.msra.gmra.mxu1 %v539_v3  ;;  %v4836_v42 = vpop.f32.mrf.mxu1  ;;  %v4796_v13 = vadd.f32 %v4795_v41, %v1270_v4  ;;  %5090 = vmatpush1.bf16.msra.mxu0 %v7893_v5  ;;  %v7956_v3 = vld [vmem:[#allocation7 + $0x9d0] ss:$8 sps:$4 sm:$0xff]   ;;  %v7961_v4 = vld [vmem:[#allocation7 + $0x8c4] ss:$8 sps:$4 sm:$0xff]  }
 0x1d3   :  { %5131 = vmatpush1.bf16.msra.mxu1 %v7896_v6  ;;  %v4797_v16 = vpop.f32.mrf.mxu0  ;;  %5091 = vmatprep.subr.bf16.mxu0 %v7901_v7  ;;  %v7964_v5 = vld [vmem:[#allocation7 + $0x9c4] ss:$8 sps:$4 sm:$0xff]   ;;  %v7959_v6 = vld [vmem:[#allocation7 + $0x8c0] ss:$8 sps:$4 sm:$0xff]  }
 0x1d4   :  { %v4838_v17 = vpop.f32.mrf.mxu1  ;;  %5132 = vmatprep.subr.bf16.mxu1 %v7904_v8  ;;  %v4798_v19 = vadd.f32 %v4797_v16, %v1274_v9  ;;  %v9184_v20 = vadd.f32 %v4836_v42, %v4796_v13  ;;  %5121 = vmatprep.mubr.bf16.mxu0 %v542_v10  ;;  %v7962_v7 = vld [vmem:[#allocation7 + $0x9c0] ss:$8 sps:$4 sm:$0xff]   ;;  %v7967_v8 = vld [vmem:[#allocation7 + $0x8b4] ss:$8 sps:$4 sm:$0xff]   ;;  %v7965_v10 = vld [vmem:[#allocation7 + $0x8b0] ss:$8 sps:$4 sm:$0xff]  }
 0x1d5   :  { %5162 = vmatprep.mubr.bf16.mxu1 %v544_v11  ;;  %v4799_v21 = vpop.f32.mrf.mxu0  ;;  %v7970_v9 = vld [vmem:[#allocation7 + $0x9b4] ss:$8 sps:$4 sm:$0xff]   ;;  %v7968_v11 = vld [vmem:[#allocation7 + $0x9b0] ss:$8 sps:$4 sm:$0xff]   ;;  %v7973_v41 = vld [vmem:[#allocation7 + $0x8a4] ss:$8 sps:$4 sm:$0xff]  }
 0x1d6   :  { %v4840_v22 = vpop.f32.mrf.mxu1  ;;  %v9186_v25 = vadd.f32 %v4838_v17, %v4798_v19  ;;  %5092 = vmatpush1.bf16.msra.mxu0 %v7899_v12  ;;  %v7976_v42 = vld [vmem:[#allocation7 + $0x9a4] ss:$8 sps:$4 sm:$0xff]   ;;  %v7971_v13 = vld [vmem:[#allocation7 + $0x8a0] ss:$8 sps:$4 sm:$0xff]   ;;  %v7982_v16 = vld [vmem:[#allocation7 + $0x994] ss:$8 sps:$4 sm:$0xff]  }
 0x1d7   :  { %5133 = vmatpush1.bf16.msra.mxu1 %v7902_v14  ;;  %v4800_v26 = vpop.f32.mrf.mxu0  ;;  %5093 = vmatprep.subr.bf16.mxu0 %v7907_v15  ;;  %v277_v12 = vld [vmem:[%s9659_s30 + $0x28] sm:$0xff]  ;;  %v7979_v15 = vld [vmem:[#allocation7 + $0x894] ss:$8 sps:$4 sm:$0xff]   ;;  %v7980_v19 = vld [vmem:[#allocation7 + $0x990] ss:$8 sps:$4 sm:$0xff]  }
 0x1d8   :  { %v4841_v27 = vpop.f32.mrf.mxu1  ;;  %5134 = vmatprep.subr.bf16.mxu1 %v7910_v18  ;;  %v7974_v14 = vld [vmem:[#allocation7 + $0x9a0] ss:$8 sps:$4 sm:$0xff]   ;;  %v379_v17 = vcombine.high %v277_v12, %v277_v12  ;;  %v7977_v18 = vld [vmem:[#allocation7 + $0x890] ss:$8 sps:$4 sm:$0xff]   ;;  %v7985_v21 = vld [vmem:[#allocation7 + $0x884] ss:$8 sps:$4 sm:$0xff]  }
 0x1d9   :  { %v7988_v22 = vld [vmem:[#allocation7 + $0x984] ss:$8 sps:$4 sm:$0xff]   ;;  %v7983_v26 = vld [vmem:[#allocation7 + $0x880] ss:$8 sps:$4 sm:$0xff]  }
 0x1da   :  { %5094 = vmatpush1.bf16.msra.mxu0 %v7905_v23  ;;  %v9192_v23 = vrot.slane %v277_v12, %v9107_v50  ;;  %v7986_v27 = vld [vmem:[#allocation7 + $0x980] ss:$8 sps:$4 sm:$0xff]   ;;  %v8034_v12 = vld [vmem:[#allocation7 + $0xa04] ss:$8 sps:$4 sm:$0xff]  }
 0x1db   :  { %5135 = vmatpush1.bf16.msra.mxu1 %v7908_v24  ;;  %5095 = vmatprep.subr.bf16.mxu0 %v7913_v28  ;;  %v9195_v24 = vrot.slane %v379_v17, %v9107_v50  ;;  %v7992_v28 = vld [vmem:[#allocation7 + $0xa74] ss:$8 sps:$4 sm:$0xff]  }
 0x1dc   :  { %5136 = vmatprep.subr.bf16.mxu1 %v7916_v29  ;;  %v7995_v29 = vld [vmem:[#allocation7 + $0xb74] ss:$8 sps:$4 sm:$0xff]  }
 0x1dd   :  { %v8043_v17 = vld [vmem:[#allocation7 + $0xbf4] ss:$8 sps:$4 sm:$0xff]  }
 0x1de   :  { %5096 = vmatpush1.bf16.msra.mxu0 %v7911_v30  ;;  %v7990_v30 = vld [vmem:[#allocation7 + $0xa70] ss:$8 sps:$4 sm:$0xff]  }
 0x1df   :  { %5137 = vmatpush1.bf16.msra.mxu1 %v7914_v31  ;;  %5097 = vmatprep.subr.bf16.mxu0 %v7919_v32  ;;  %v7993_v31 = vld [vmem:[#allocation7 + $0xb70] ss:$8 sps:$4 sm:$0xff]   ;;  %v394_v32 = vcombine.high %v9192_v23, %v9192_v23 }
 0x1e0   :  { %5138 = vmatprep.subr.bf16.mxu1 %v7922_v33  ;;  %v395_v33 = vcombine.high %v9195_v24, %v9195_v24 }
 0x1e2   :  { %5098 = vmatpush1.bf16.msra.mxu0 %v7917_v34  ;;  %v541_v34 = vpack.c.bf16 %v9165_v57, %v9165_v57 }
 0x1e3   :  { %5139 = vmatpush1.bf16.msra.mxu1 %v7920_v35  ;;  %5099 = vmatprep.subr.bf16.mxu0 %v7925_v37  ;;  %v543_v35 = vpack.c.bf16 %v9168_v58, %v9168_v58  ;;  %v7998_v37 = vld [vmem:[#allocation7 + $0xa64] ss:$8 sps:$4 sm:$0xff]  }
 0x1e4   :  { %5140 = vmatprep.subr.bf16.mxu1 %v7928_v38  ;;  %v8001_v38 = vld [vmem:[#allocation7 + $0xb64] ss:$8 sps:$4 sm:$0xff]  }
 0x1e6   :  { %5100 = vmatpush1.bf16.msra.mxu0 %v7923_v39  ;;  %v7996_v39 = vld [vmem:[#allocation7 + $0xa60] ss:$8 sps:$4 sm:$0xff]  }
 0x1e7   :  { %5141 = vmatpush1.bf16.msra.mxu1 %v7926_v43  ;;  %5101 = vmatprep.subr.bf16.mxu0 %v7931_v45  ;;  %v7999_v43 = vld [vmem:[#allocation7 + $0xb60] ss:$8 sps:$4 sm:$0xff]   ;;  %v546_v45 = vpack.c.bf16 %v394_v32, %v394_v32  ;;  %v8058_v32 = vld [vmem:[#allocation7 + $0xac4] ss:$8 sps:$4 sm:$0xff]  }
 0x1e8   :  { %5142 = vmatprep.subr.bf16.mxu1 %v7934_v46  ;;  %v548_v46 = vpack.c.bf16 %v395_v33, %v395_v33  ;;  %v8061_v33 = vld [vmem:[#allocation7 + $0xbc4] ss:$8 sps:$4 sm:$0xff]  }
 0x1ea   :  { %5102 = vmatpush1.bf16.msra.mxu0 %v7929_v47 }
 0x1eb   :  { %5143 = vmatpush1.bf16.msra.mxu1 %v7932_v48  ;;  %5103 = vmatprep.subr.bf16.mxu0 %v7937_v49 }
 0x1ec   :  { %5144 = vmatprep.subr.bf16.mxu1 %v7940_v51  ;;  %v8004_v51 = vld [vmem:[#allocation7 + $0xa54] ss:$8 sps:$4 sm:$0xff]  }
 0x1ee   :  { %5104 = vmatpush1.bf16.msra.mxu0 %v7935_v52  ;;  %v8007_v52 = vld [vmem:[#allocation7 + $0xb54] ss:$8 sps:$4 sm:$0xff]  }
 0x1ef   :  { %5145 = vmatpush1.bf16.msra.mxu1 %v7938_v53  ;;  %5105 = vmatprep.subr.bf16.mxu0 %v7943_v54 }
 0x1f0   :  { %5146 = vmatprep.subr.bf16.mxu1 %v7946_v55  ;;  %v8002_v55 = vld [vmem:[#allocation7 + $0xa50] ss:$8 sps:$4 sm:$0xff]  }
 0x1f2   :  { %5106 = vmatpush2.bf16.msra.mxu0 %v7941_v56  ;;  %v8005_v56 = vld [vmem:[#allocation7 + $0xb50] ss:$8 sps:$4 sm:$0xff]  }
 0x1f3   :  { %5147 = vmatpush2.bf16.msra.mxu1 %v7944_v59  ;;  %5107 = vmatprep.subr.bf16.mxu0 %v7949_v60 }
 0x1f4   :  { %5148 = vmatprep.subr.bf16.mxu1 %v7952_v36 }
 0x1f6   :  { %5108 = vmatpush2.bf16.msra.mxu0 %v7947_v40 }
 0x1f7   :  { %5149 = vmatpush2.bf16.msra.mxu1 %v7950_v62  ;;  %5109 = vmatprep.subr.bf16.mxu0 %v7955_v0  ;;  %v8010_v62 = vld [vmem:[#allocation7 + $0xa44] ss:$8 sps:$4 sm:$0xff]  }
 0x1f8   :  { %5150 = vmatprep.subr.bf16.mxu1 %v7958_v1  ;;  %v8013_v0 = vld [vmem:[#allocation7 + $0xb44] ss:$8 sps:$4 sm:$0xff]   ;;  %v8011_v1 = vld [vmem:[#allocation7 + $0xb40] ss:$8 sps:$4 sm:$0xff]  }
 0x1fa   :  { %5110 = vmatpush2.bf16.msra.mxu0 %v7953_v2  ;;  %v8016_v2 = vld [vmem:[#allocation7 + $0xa34] ss:$8 sps:$4 sm:$0xff]  }
 0x1fb   :  { %5151 = vmatpush2.bf16.msra.mxu1 %v7956_v3  ;;  %5111 = vmatprep.subr.bf16.mxu0 %v7961_v4  ;;  %v8019_v3 = vld [vmem:[#allocation7 + $0xb34] ss:$8 sps:$4 sm:$0xff]   ;;  %v8014_v4 = vld [vmem:[#allocation7 + $0xa30] ss:$8 sps:$4 sm:$0xff]  }
 0x1fc   :  { %5152 = vmatprep.subr.bf16.mxu1 %v7964_v5  ;;  %v8017_v5 = vld [vmem:[#allocation7 + $0xb30] ss:$8 sps:$4 sm:$0xff]  }
 0x1fe   :  { %5112 = vmatpush2.bf16.msra.mxu0 %v7959_v6  ;;  %v8022_v6 = vld [vmem:[#allocation7 + $0xa24] ss:$8 sps:$4 sm:$0xff]  }
 0x1ff   :  { %5153 = vmatpush2.bf16.msra.mxu1 %v7962_v7  ;;  %5113 = vmatprep.subr.bf16.mxu0 %v7967_v8  ;;  %v8025_v7 = vld [vmem:[#allocation7 + $0xb24] ss:$8 sps:$4 sm:$0xff]   ;;  %v8020_v8 = vld [vmem:[#allocation7 + $0xa20] ss:$8 sps:$4 sm:$0xff]  }
 0x200   :  { %5154 = vmatprep.subr.bf16.mxu1 %v7970_v9  ;;  %v8023_v9 = vld [vmem:[#allocation7 + $0xb20] ss:$8 sps:$4 sm:$0xff]  }
 0x202   :  { %5114 = vmatpush2.bf16.msra.mxu0 %v7965_v10  ;;  %v8028_v10 = vld [vmem:[#allocation7 + $0xa14] ss:$8 sps:$4 sm:$0xff]  }
 0x203   :  { %5155 = vmatpush2.bf16.msra.mxu1 %v7968_v11  ;;  %5115 = vmatprep.subr.bf16.mxu0 %v7973_v41  ;;  %v8031_v11 = vld [vmem:[#allocation7 + $0xb14] ss:$8 sps:$4 sm:$0xff]   ;;  %v8026_v41 = vld [vmem:[#allocation7 + $0xa10] ss:$8 sps:$4 sm:$0xff]  }
 0x204   :  { %5156 = vmatprep.subr.bf16.mxu1 %v7976_v42  ;;  %v8029_v42 = vld [vmem:[#allocation7 + $0xb10] ss:$8 sps:$4 sm:$0xff]  }
 0x206   :  { %5116 = vmatpush2.bf16.msra.mxu0 %v7971_v13  ;;  %v8037_v13 = vld [vmem:[#allocation7 + $0xb04] ss:$8 sps:$4 sm:$0xff]  }
 0x207   :  { %5157 = vmatpush2.bf16.msra.mxu1 %v7974_v14  ;;  %5117 = vmatprep.subr.bf16.mxu0 %v7979_v15  ;;  %v8032_v14 = vld [vmem:[#allocation7 + $0xa00] ss:$8 sps:$4 sm:$0xff]  }
 0x208   :  { %5158 = vmatprep.subr.bf16.mxu1 %v7982_v16  ;;  %v8035_v15 = vld [vmem:[#allocation7 + $0xb00] ss:$8 sps:$4 sm:$0xff]   ;;  %v8040_v16 = vld [vmem:[#allocation7 + $0xaf4] ss:$8 sps:$4 sm:$0xff]  }
 0x20a   :  { %5118 = vmatpush2.bf16.msra.mxu0 %v7977_v18  ;;  %v8038_v18 = vld [vmem:[#allocation7 + $0xaf0] ss:$8 sps:$4 sm:$0xff]  }
 0x20b   :  { %5159 = vmatpush2.bf16.msra.mxu1 %v7980_v19  ;;  %5119 = vmatprep.subr.bf16.mxu0 %v7985_v21  ;;  %v8041_v19 = vld [vmem:[#allocation7 + $0xbf0] ss:$8 sps:$4 sm:$0xff]   ;;  %v8046_v21 = vld [vmem:[#allocation7 + $0xae4] ss:$8 sps:$4 sm:$0xff]  }
 0x20c   :  { %5160 = vmatprep.subr.bf16.mxu1 %v7988_v22  ;;  %v8049_v22 = vld [vmem:[#allocation7 + $0xbe4] ss:$8 sps:$4 sm:$0xff]  }
 0x20e   :  { %5120 = vmatpush2.bf16.msra.mxu0 %v7983_v26  ;;  %v8044_v26 = vld [vmem:[#allocation7 + $0xae0] ss:$8 sps:$4 sm:$0xff]  }
 0x20f   :  { %5161 = vmatpush2.bf16.msra.mxu1 %v7986_v27  ;;  %5171 = vmatprep.subr.bf16.mxu0 %v7992_v28  ;;  %v8047_v27 = vld [vmem:[#allocation7 + $0xbe0] ss:$8 sps:$4 sm:$0xff]   ;;  %v8052_v28 = vld [vmem:[#allocation7 + $0xad4] ss:$8 sps:$4 sm:$0xff]  }
 0x210   :  { %5212 = vmatprep.subr.bf16.mxu1 %v7995_v29  ;;  %v8055_v29 = vld [vmem:[#allocation7 + $0xbd4] ss:$8 sps:$4 sm:$0xff]  }
 0x211   :  { %v4877_v47 = vpop.f32.mrf.mxu0  ;;  %5122 = vmatmul.mubr.bf16.vlgmr.msra.gmra.mxu0 %v541_v34  ;;  %v8056_v34 = vld [vmem:[#allocation7 + $0xac0] ss:$8 sps:$4 sm:$0xff]  }
 0x212   :  { %5163 = vmatmul.mubr.bf16.vlgmr.msra.gmra.mxu1 %v543_v35  ;;  %v4918_v48 = vpop.f32.mrf.mxu1  ;;  %v4878_v49 = vadd.f32 %v4877_v47, %v9184_v20  ;;  %5172 = vmatpush1.bf16.msra.mxu0 %v7990_v30  ;;  %v8050_v30 = vld [vmem:[#allocation7 + $0xad0] ss:$8 sps:$4 sm:$0xff]   ;;  %v8059_v35 = vld [vmem:[#allocation7 + $0xbc0] ss:$8 sps:$4 sm:$0xff]  }
 0x213   :  { %5213 = vmatpush1.bf16.msra.mxu1 %v7993_v31  ;;  %v4879_v57 = vpop.f32.mrf.mxu0  ;;  %5173 = vmatprep.subr.bf16.mxu0 %v7998_v37  ;;  %v8053_v31 = vld [vmem:[#allocation7 + $0xbd0] ss:$8 sps:$4 sm:$0xff]   ;;  %v8064_v37 = vld [vmem:[#allocation7 + $0xab4] ss:$8 sps:$4 sm:$0xff]  }
 0x214   :  { %v4920_v58 = vpop.f32.mrf.mxu1  ;;  %5214 = vmatprep.subr.bf16.mxu1 %v8001_v38  ;;  %v4880_v53 = vadd.f32 %v4879_v57, %v9186_v25  ;;  %v9207_v54 = vadd.f32 %v4918_v48, %v4878_v49  ;;  %5203 = vmatprep.mubr.bf16.mxu0 %v546_v45  ;;  %v8008_v25 = vld [vmem:[#allocation7 + $0xa40] ss:$8 sps:$4 sm:$0xff]   ;;  %v8067_v38 = vld [vmem:[#allocation7 + $0xbb4] ss:$8 sps:$4 sm:$0xff]   ;;  %v8070_v45 = vld [vmem:[#allocation7 + $0xaa4] ss:$8 sps:$4 sm:$0xff]  }
 0x215   :  { %5244 = vmatprep.mubr.bf16.mxu1 %v548_v46  ;;  %v4881_v59 = vpop.f32.mrf.mxu0  ;;  %v8073_v46 = vld [vmem:[#allocation7 + $0xba4] ss:$8 sps:$4 sm:$0xff]   ;;  %v8068_v48 = vld [vmem:[#allocation7 + $0xaa0] ss:$8 sps:$4 sm:$0xff]   ;;  %v8076_v57 = vld [vmem:[#allocation7 + $0xa94] ss:$8 sps:$4 sm:$0xff]  }
 0x216   :  { %v4922_v60 = vpop.f32.mrf.mxu1  ;;  %v9209_v36 = vadd.f32 %v4920_v58, %v4880_v53  ;;  %5174 = vmatpush1.bf16.msra.mxu0 %v7996_v39  ;;  %v8062_v39 = vld [vmem:[#allocation7 + $0xab0] ss:$8 sps:$4 sm:$0xff]   ;;  %v8071_v49 = vld [vmem:[#allocation7 + $0xba0] ss:$8 sps:$4 sm:$0xff]   ;;  %v8079_v58 = vld [vmem:[#allocation7 + $0xb94] ss:$8 sps:$4 sm:$0xff]  }
 0x217   :  { %5215 = vmatpush1.bf16.msra.mxu1 %v7999_v43  ;;  %v4882_v20 = vpop.f32.mrf.mxu0  ;;  %5175 = vmatprep.subr.bf16.mxu0 %v8004_v51  ;;  %v8065_v43 = vld [vmem:[#allocation7 + $0xbb0] ss:$8 sps:$4 sm:$0xff]  }
 0x218   :  { %v4923_v40 = vpop.f32.mrf.mxu1  ;;  %5216 = vmatprep.subr.bf16.mxu1 %v8007_v52  ;;  %v278_v47 = vld [vmem:[%s9659_s30 + $0x30] sm:$0xff] }
 0x219   :  { %v396_v51 = vcombine.high %v278_v47, %v278_v47  ;;  %v8074_v52 = vld [vmem:[#allocation7 + $0xa90] ss:$8 sps:$4 sm:$0xff]   ;;  %v9215_v59 = vrot.slane %v278_v47, %v9107_v50  ;;  %v8080_v20 = vld [vmem:[#allocation7 + $0xa80] ss:$8 sps:$4 sm:$0xff]   ;;  %v8131_v47 = vld [vmem:[#allocation7 + $0xc04] ss:$8 sps:$4 sm:$0xff]  }
 0x21a   :  { %5176 = vmatpush1.bf16.msra.mxu0 %v8002_v55  ;;  %v8077_v53 = vld [vmem:[#allocation7 + $0xb90] ss:$8 sps:$4 sm:$0xff]   ;;  %v8082_v55 = vld [vmem:[#allocation7 + $0xa84] ss:$8 sps:$4 sm:$0xff]   ;;  %v8083_v40 = vld [vmem:[#allocation7 + $0xb80] ss:$8 sps:$4 sm:$0xff]  }
 0x21b   :  { %5217 = vmatpush1.bf16.msra.mxu1 %v8005_v56  ;;  %5177 = vmatprep.subr.bf16.mxu0 %v8010_v62  ;;  %v8085_v56 = vld [vmem:[#allocation7 + $0xb84] ss:$8 sps:$4 sm:$0xff]   ;;  %v9218_v60 = vrot.slane %v396_v51, %v9107_v50  ;;  %v8089_v62 = vld [vmem:[#allocation7 + $0xc74] ss:$8 sps:$4 sm:$0xff]  }
 0x21c   :  { %5218 = vmatprep.subr.bf16.mxu1 %v8013_v0  ;;  %v8092_v0 = vld [vmem:[#allocation7 + $0xd74] ss:$8 sps:$4 sm:$0xff]  }
 0x21d   :  { %v8140_v51 = vld [vmem:[#allocation7 + $0xdf4] ss:$8 sps:$4 sm:$0xff]  }
 0x21e   :  { %5178 = vmatpush1.bf16.msra.mxu0 %v8008_v25  ;;  %v8087_v25 = vld [vmem:[#allocation7 + $0xc70] ss:$8 sps:$4 sm:$0xff]  }
 0x21f   :  { %5219 = vmatpush1.bf16.msra.mxu1 %v8011_v1  ;;  %5179 = vmatprep.subr.bf16.mxu0 %v8016_v2  ;;  %v8090_v1 = vld [vmem:[#allocation7 + $0xd70] ss:$8 sps:$4 sm:$0xff]   ;;  %v411_v2 = vcombine.high %v9215_v59, %v9215_v59 }
 0x220   :  { %5220 = vmatprep.subr.bf16.mxu1 %v8019_v3  ;;  %v412_v3 = vcombine.high %v9218_v60, %v9218_v60 }
 0x222   :  { %5180 = vmatpush1.bf16.msra.mxu0 %v8014_v4  ;;  %v545_v4 = vpack.c.bf16 %v9192_v23, %v9192_v23 }
 0x223   :  { %5221 = vmatpush1.bf16.msra.mxu1 %v8017_v5  ;;  %5181 = vmatprep.subr.bf16.mxu0 %v8022_v6  ;;  %v547_v5 = vpack.c.bf16 %v9195_v24, %v9195_v24  ;;  %v8095_v6 = vld [vmem:[#allocation7 + $0xc64] ss:$8 sps:$4 sm:$0xff]  }
 0x224   :  { %5222 = vmatprep.subr.bf16.mxu1 %v8025_v7  ;;  %v8098_v7 = vld [vmem:[#allocation7 + $0xd64] ss:$8 sps:$4 sm:$0xff]  }
 0x226   :  { %5182 = vmatpush1.bf16.msra.mxu0 %v8020_v8  ;;  %v8093_v8 = vld [vmem:[#allocation7 + $0xc60] ss:$8 sps:$4 sm:$0xff]  }
 0x227   :  { %5223 = vmatpush1.bf16.msra.mxu1 %v8023_v9  ;;  %5183 = vmatprep.subr.bf16.mxu0 %v8028_v10  ;;  %v8096_v9 = vld [vmem:[#allocation7 + $0xd60] ss:$8 sps:$4 sm:$0xff]   ;;  %v550_v10 = vpack.c.bf16 %v411_v2, %v411_v2  ;;  %v8155_v2 = vld [vmem:[#allocation7 + $0xcc4] ss:$8 sps:$4 sm:$0xff]  }
 0x228   :  { %5224 = vmatprep.subr.bf16.mxu1 %v8031_v11  ;;  %v552_v11 = vpack.c.bf16 %v412_v3, %v412_v3  ;;  %v8158_v3 = vld [vmem:[#allocation7 + $0xdc4] ss:$8 sps:$4 sm:$0xff]  }
 0x22a   :  { %5184 = vmatpush1.bf16.msra.mxu0 %v8026_v41 }
 0x22b   :  { %5225 = vmatpush1.bf16.msra.mxu1 %v8029_v42  ;;  %5185 = vmatprep.subr.bf16.mxu0 %v8034_v12 }
 0x22c   :  { %5226 = vmatprep.subr.bf16.mxu1 %v8037_v13  ;;  %v8101_v13 = vld [vmem:[#allocation7 + $0xc54] ss:$8 sps:$4 sm:$0xff]  }
 0x22e   :  { %5186 = vmatpush1.bf16.msra.mxu0 %v8032_v14  ;;  %v8104_v14 = vld [vmem:[#allocation7 + $0xd54] ss:$8 sps:$4 sm:$0xff]  }
 0x22f   :  { %5227 = vmatpush1.bf16.msra.mxu1 %v8035_v15  ;;  %5187 = vmatprep.subr.bf16.mxu0 %v8040_v16 }
 0x230   :  { %5228 = vmatprep.subr.bf16.mxu1 %v8043_v17  ;;  %v8099_v17 = vld [vmem:[#allocation7 + $0xc50] ss:$8 sps:$4 sm:$0xff]  }
 0x232   :  { %5188 = vmatpush2.bf16.msra.mxu0 %v8038_v18  ;;  %v8102_v18 = vld [vmem:[#allocation7 + $0xd50] ss:$8 sps:$4 sm:$0xff]  }
 0x233   :  { %5229 = vmatpush2.bf16.msra.mxu1 %v8041_v19  ;;  %5189 = vmatprep.subr.bf16.mxu0 %v8046_v21 }
 0x234   :  { %5230 = vmatprep.subr.bf16.mxu1 %v8049_v22 }
 0x236   :  { %5190 = vmatpush2.bf16.msra.mxu0 %v8044_v26 }
 0x237   :  { %5231 = vmatpush2.bf16.msra.mxu1 %v8047_v27  ;;  %5191 = vmatprep.subr.bf16.mxu0 %v8052_v28  ;;  %v8107_v27 = vld [vmem:[#allocation7 + $0xc44] ss:$8 sps:$4 sm:$0xff]  }
 0x238   :  { %5232 = vmatprep.subr.bf16.mxu1 %v8055_v29  ;;  %v8110_v28 = vld [vmem:[#allocation7 + $0xd44] ss:$8 sps:$4 sm:$0xff]   ;;  %v8108_v29 = vld [vmem:[#allocation7 + $0xd40] ss:$8 sps:$4 sm:$0xff]  }
 0x23a   :  { %5192 = vmatpush2.bf16.msra.mxu0 %v8050_v30  ;;  %v8113_v30 = vld [vmem:[#allocation7 + $0xc34] ss:$8 sps:$4 sm:$0xff]  }
 0x23b   :  { %5233 = vmatpush2.bf16.msra.mxu1 %v8053_v31  ;;  %5193 = vmatprep.subr.bf16.mxu0 %v8058_v32  ;;  %v8116_v31 = vld [vmem:[#allocation7 + $0xd34] ss:$8 sps:$4 sm:$0xff]   ;;  %v8111_v32 = vld [vmem:[#allocation7 + $0xc30] ss:$8 sps:$4 sm:$0xff]  }
 0x23c   :  { %5234 = vmatprep.subr.bf16.mxu1 %v8061_v33  ;;  %v8114_v33 = vld [vmem:[#allocation7 + $0xd30] ss:$8 sps:$4 sm:$0xff]  }
 0x23e   :  { %5194 = vmatpush2.bf16.msra.mxu0 %v8056_v34  ;;  %v8119_v34 = vld [vmem:[#allocation7 + $0xc24] ss:$8 sps:$4 sm:$0xff]  }
 0x23f   :  { %5235 = vmatpush2.bf16.msra.mxu1 %v8059_v35  ;;  %5195 = vmatprep.subr.bf16.mxu0 %v8064_v37  ;;  %v8122_v35 = vld [vmem:[#allocation7 + $0xd24] ss:$8 sps:$4 sm:$0xff]   ;;  %v8117_v37 = vld [vmem:[#allocation7 + $0xc20] ss:$8 sps:$4 sm:$0xff]  }
 0x240   :  { %5236 = vmatprep.subr.bf16.mxu1 %v8067_v38  ;;  %v8120_v38 = vld [vmem:[#allocation7 + $0xd20] ss:$8 sps:$4 sm:$0xff]  }
 0x242   :  { %5196 = vmatpush2.bf16.msra.mxu0 %v8062_v39  ;;  %v8125_v39 = vld [vmem:[#allocation7 + $0xc14] ss:$8 sps:$4 sm:$0xff]  }
 0x243   :  { %5237 = vmatpush2.bf16.msra.mxu1 %v8065_v43  ;;  %5197 = vmatprep.subr.bf16.mxu0 %v8070_v45  ;;  %v8128_v43 = vld [vmem:[#allocation7 + $0xd14] ss:$8 sps:$4 sm:$0xff]   ;;  %v8123_v45 = vld [vmem:[#allocation7 + $0xc10] ss:$8 sps:$4 sm:$0xff]  }
 0x244   :  { %5238 = vmatprep.subr.bf16.mxu1 %v8073_v46  ;;  %v8126_v46 = vld [vmem:[#allocation7 + $0xd10] ss:$8 sps:$4 sm:$0xff]  }
 0x246   :  { %5198 = vmatpush2.bf16.msra.mxu0 %v8068_v48  ;;  %v8134_v48 = vld [vmem:[#allocation7 + $0xd04] ss:$8 sps:$4 sm:$0xff]  }
 0x247   :  { %5239 = vmatpush2.bf16.msra.mxu1 %v8071_v49  ;;  %5199 = vmatprep.subr.bf16.mxu0 %v8076_v57  ;;  %v8129_v49 = vld [vmem:[#allocation7 + $0xc00] ss:$8 sps:$4 sm:$0xff]  }
 0x248   :  { %5240 = vmatprep.subr.bf16.mxu1 %v8079_v58  ;;  %v8132_v57 = vld [vmem:[#allocation7 + $0xd00] ss:$8 sps:$4 sm:$0xff]   ;;  %v8137_v58 = vld [vmem:[#allocation7 + $0xcf4] ss:$8 sps:$4 sm:$0xff]  }
 0x24a   :  { %5200 = vmatpush2.bf16.msra.mxu0 %v8074_v52  ;;  %v8135_v52 = vld [vmem:[#allocation7 + $0xcf0] ss:$8 sps:$4 sm:$0xff]  }
 0x24b   :  { %5241 = vmatpush2.bf16.msra.mxu1 %v8077_v53  ;;  %5201 = vmatprep.subr.bf16.mxu0 %v8082_v55  ;;  %v8138_v53 = vld [vmem:[#allocation7 + $0xdf0] ss:$8 sps:$4 sm:$0xff]   ;;  %v8143_v55 = vld [vmem:[#allocation7 + $0xce4] ss:$8 sps:$4 sm:$0xff]  }
 0x24c   :  { %5242 = vmatprep.subr.bf16.mxu1 %v8085_v56  ;;  %v8146_v56 = vld [vmem:[#allocation7 + $0xde4] ss:$8 sps:$4 sm:$0xff]  }
 0x24e   :  { %5202 = vmatpush2.bf16.msra.mxu0 %v8080_v20  ;;  %v8141_v20 = vld [vmem:[#allocation7 + $0xce0] ss:$8 sps:$4 sm:$0xff]  }
 0x24f   :  { %5243 = vmatpush2.bf16.msra.mxu1 %v8083_v40  ;;  %5253 = vmatprep.subr.bf16.mxu0 %v8089_v62  ;;  %v8144_v40 = vld [vmem:[#allocation7 + $0xde0] ss:$8 sps:$4 sm:$0xff]   ;;  %v8149_v62 = vld [vmem:[#allocation7 + $0xcd4] ss:$8 sps:$4 sm:$0xff]  }
 0x250   :  { %5294 = vmatprep.subr.bf16.mxu1 %v8092_v0  ;;  %v8152_v0 = vld [vmem:[#allocation7 + $0xdd4] ss:$8 sps:$4 sm:$0xff]  }
 0x251   :  { %v4959_v41 = vpop.f32.mrf.mxu0  ;;  %5204 = vmatmul.mubr.bf16.vlgmr.msra.gmra.mxu0 %v545_v4  ;;  %v8153_v4 = vld [vmem:[#allocation7 + $0xcc0] ss:$8 sps:$4 sm:$0xff]  }
 0x252   :  { %5245 = vmatmul.mubr.bf16.vlgmr.msra.gmra.mxu1 %v547_v5  ;;  %v5000_v42 = vpop.f32.mrf.mxu1  ;;  %v4960_v12 = vadd.f32 %v4959_v41, %v9207_v54  ;;  %5254 = vmatpush1.bf16.msra.mxu0 %v8087_v25  ;;  %v8147_v25 = vld [vmem:[#allocation7 + $0xcd0] ss:$8 sps:$4 sm:$0xff]   ;;  %v8156_v5 = vld [vmem:[#allocation7 + $0xdc0] ss:$8 sps:$4 sm:$0xff]  }
 0x253   :  { %5295 = vmatpush1.bf16.msra.mxu1 %v8090_v1  ;;  %v4961_v23 = vpop.f32.mrf.mxu0  ;;  %5255 = vmatprep.subr.bf16.mxu0 %v8095_v6  ;;  %v8150_v1 = vld [vmem:[#allocation7 + $0xdd0] ss:$8 sps:$4 sm:$0xff]   ;;  %v8161_v6 = vld [vmem:[#allocation7 + $0xcb4] ss:$8 sps:$4 sm:$0xff]  }
 0x254   :  { %v5002_v24 = vpop.f32.mrf.mxu1  ;;  %5296 = vmatprep.subr.bf16.mxu1 %v8098_v7  ;;  %v4962_v15 = vadd.f32 %v4961_v23, %v9209_v36  ;;  %v9230_v16 = vadd.f32 %v5000_v42, %v4960_v12  ;;  %5285 = vmatprep.mubr.bf16.mxu0 %v550_v10  ;;  %v8105_v36 = vld [vmem:[#allocation7 + $0xc40] ss:$8 sps:$4 sm:$0xff]   ;;  %v8164_v7 = vld [vmem:[#allocation7 + $0xdb4] ss:$8 sps:$4 sm:$0xff]   ;;  %v8167_v10 = vld [vmem:[#allocation7 + $0xca4] ss:$8 sps:$4 sm:$0xff]  }
 0x255   :  { %5326 = vmatprep.mubr.bf16.mxu1 %v552_v11  ;;  %v4963_v19 = vpop.f32.mrf.mxu0  ;;  %v8170_v11 = vld [vmem:[#allocation7 + $0xda4] ss:$8 sps:$4 sm:$0xff]   ;;  %v279_v41 = vld [vmem:[%s9659_s30 + $0x38] sm:$0xff]  ;;  %v8165_v42 = vld [vmem:[#allocation7 + $0xca0] ss:$8 sps:$4 sm:$0xff]  }
 0x256   :  { %v5004_v21 = vpop.f32.mrf.mxu1  ;;  %v9232_v22 = vadd.f32 %v5002_v24, %v4962_v15  ;;  %5256 = vmatpush1.bf16.msra.mxu0 %v8093_v8  ;;  %v8159_v8 = vld [vmem:[#allocation7 + $0xcb0] ss:$8 sps:$4 sm:$0xff]   ;;  %v8168_v12 = vld [vmem:[#allocation7 + $0xda0] ss:$8 sps:$4 sm:$0xff]   ;;  %v8173_v23 = vld [vmem:[#allocation7 + $0xc94] ss:$8 sps:$4 sm:$0xff]   ;;  %v9238_v19 = vrot.slane %v279_v41, %v9107_v50 }
 0x257   :  { %5297 = vmatpush1.bf16.msra.mxu1 %v8096_v9  ;;  %v4964_v54 = vpop.f32.mrf.mxu0  ;;  %5257 = vmatprep.subr.bf16.mxu0 %v8101_v13  ;;  %v8162_v9 = vld [vmem:[#allocation7 + $0xdb0] ss:$8 sps:$4 sm:$0xff]   ;;  %v8176_v24 = vld [vmem:[#allocation7 + $0xd94] ss:$8 sps:$4 sm:$0xff]   ;;  %v413_v13 = vcombine.high %v279_v41, %v279_v41  ;;  %v8228_v41 = vld [vmem:[#allocation7 + $0xe04] ss:$8 sps:$4 sm:$0xff]  }
 0x258   :  { %v5005_v26 = vpop.f32.mrf.mxu1  ;;  %5298 = vmatprep.subr.bf16.mxu1 %v8104_v14  ;;  %v8171_v14 = vld [vmem:[#allocation7 + $0xc90] ss:$8 sps:$4 sm:$0xff]   ;;  %v8177_v54 = vld [vmem:[#allocation7 + $0xc80] ss:$8 sps:$4 sm:$0xff]  }
 0x259   :  { %v8174_v15 = vld [vmem:[#allocation7 + $0xd90] ss:$8 sps:$4 sm:$0xff]   ;;  %v9241_v21 = vrot.slane %v413_v13, %v9107_v50  ;;  %v8180_v26 = vld [vmem:[#allocation7 + $0xd80] ss:$8 sps:$4 sm:$0xff]   ;;  %v8237_v13 = vld [vmem:[#allocation7 + $0xff4] ss:$8 sps:$4 sm:$0xff]  }
 0x25a   :  { %5258 = vmatpush1.bf16.msra.mxu0 %v8099_v17  ;;  %v8179_v17 = vld [vmem:[#allocation7 + $0xc84] ss:$8 sps:$4 sm:$0xff]  }
 0x25b   :  { %5299 = vmatpush1.bf16.msra.mxu1 %v8102_v18  ;;  %5259 = vmatprep.subr.bf16.mxu0 %v8107_v27  ;;  %v8182_v18 = vld [vmem:[#allocation7 + $0xd84] ss:$8 sps:$4 sm:$0xff]   ;;  %v8186_v27 = vld [vmem:[#allocation7 + $0xe74] ss:$8 sps:$4 sm:$0xff]  }
 0x25c   :  { %5300 = vmatprep.subr.bf16.mxu1 %v8110_v28  ;;  %v8189_v28 = vld [vmem:[#allocation7 + $0xf74] ss:$8 sps:$4 sm:$0xff]  }
 0x25e   :  { %5260 = vmatpush1.bf16.msra.mxu0 %v8105_v36  ;;  %v428_v36 = vcombine.high %v9238_v19, %v9238_v19 }
 0x25f   :  { %5301 = vmatpush1.bf16.msra.mxu1 %v8108_v29  ;;  %5261 = vmatprep.subr.bf16.mxu0 %v8113_v30  ;;  %v429_v29 = vcombine.high %v9241_v21, %v9241_v21  ;;  %v549_v30 = vpack.c.bf16 %v9215_v59, %v9215_v59  ;;  %v8190_v59 = vld [vmem:[#allocation7 + $0xe60] ss:$8 sps:$4 sm:$0xff]  }
 0x260   :  { %5302 = vmatprep.subr.bf16.mxu1 %v8116_v31  ;;  %v551_v31 = vpack.c.bf16 %v9218_v60, %v9218_v60  ;;  %v8193_v60 = vld [vmem:[#allocation7 + $0xf60] ss:$8 sps:$4 sm:$0xff]  }
 0x262   :  { %5262 = vmatpush1.bf16.msra.mxu0 %v8111_v32  ;;  %v8184_v32 = vld [vmem:[#allocation7 + $0xe70] ss:$8 sps:$4 sm:$0xff]  }
 0x263   :  { %5303 = vmatpush1.bf16.msra.mxu1 %v8114_v33  ;;  %5263 = vmatprep.subr.bf16.mxu0 %v8119_v34  ;;  %v8187_v33 = vld [vmem:[#allocation7 + $0xf70] ss:$8 sps:$4 sm:$0xff]   ;;  %v8192_v34 = vld [vmem:[#allocation7 + $0xe64] ss:$8 sps:$4 sm:$0xff]  }
 0x264   :  { %5304 = vmatprep.subr.bf16.mxu1 %v8122_v35  ;;  %v8195_v35 = vld [vmem:[#allocation7 + $0xf64] ss:$8 sps:$4 sm:$0xff]  }
 0x266   :  { %5264 = vmatpush1.bf16.msra.mxu0 %v8117_v37  ;;  %v554_v37 = vpack.c.bf16 %v428_v36, %v428_v36  ;;  %v8244_v36 = vld [vmem:[#allocation7 + $0xed0] ss:$8 sps:$4 sm:$0xff]  }
 0x267   :  { %5305 = vmatpush1.bf16.msra.mxu1 %v8120_v38  ;;  %5265 = vmatprep.subr.bf16.mxu0 %v8125_v39  ;;  %v556_v38 = vpack.c.bf16 %v429_v29, %v429_v29  ;;  %v8247_v29 = vld [vmem:[#allocation7 + $0xfd0] ss:$8 sps:$4 sm:$0xff]  }
 0x268   :  { %5306 = vmatprep.subr.bf16.mxu1 %v8128_v43 }
 0x26a   :  { %5266 = vmatpush1.bf16.msra.mxu0 %v8123_v45 }
 0x26b   :  { %5307 = vmatpush1.bf16.msra.mxu1 %v8126_v46  ;;  %5267 = vmatprep.subr.bf16.mxu0 %v8131_v47 }
 0x26c   :  { %5308 = vmatprep.subr.bf16.mxu1 %v8134_v48  ;;  %v8198_v48 = vld [vmem:[#allocation7 + $0xe54] ss:$8 sps:$4 sm:$0xff]  }
 0x26e   :  { %5268 = vmatpush1.bf16.msra.mxu0 %v8129_v49  ;;  %v8201_v49 = vld [vmem:[#allocation7 + $0xf54] ss:$8 sps:$4 sm:$0xff]  }
 0x26f   :  { %5309 = vmatpush1.bf16.msra.mxu1 %v8132_v57  ;;  %5269 = vmatprep.subr.bf16.mxu0 %v8137_v58 }
 0x270   :  { %5310 = vmatprep.subr.bf16.mxu1 %v8140_v51 }
 0x272   :  { %5270 = vmatpush2.bf16.msra.mxu0 %v8135_v52 }
 0x273   :  { %5311 = vmatpush2.bf16.msra.mxu1 %v8138_v53  ;;  %5271 = vmatprep.subr.bf16.mxu0 %v8143_v55  ;;  %v8199_v55 = vld [vmem:[#allocation7 + $0xf50] ss:$8 sps:$4 sm:$0xff]  }
 0x274   :  { %5312 = vmatprep.subr.bf16.mxu1 %v8146_v56 }
 0x276   :  { %5272 = vmatpush2.bf16.msra.mxu0 %v8141_v20 }
 0x277   :  { %5313 = vmatpush2.bf16.msra.mxu1 %v8144_v40  ;;  %5273 = vmatprep.subr.bf16.mxu0 %v8149_v62  ;;  %v8204_v40 = vld [vmem:[#allocation7 + $0xe44] ss:$8 sps:$4 sm:$0xff]  }
 0x278   :  { %5314 = vmatprep.subr.bf16.mxu1 %v8152_v0  ;;  %v8207_v62 = vld [vmem:[#allocation7 + $0xf44] ss:$8 sps:$4 sm:$0xff]   ;;  %v8205_v0 = vld [vmem:[#allocation7 + $0xf40] ss:$8 sps:$4 sm:$0xff]  }
 0x27a   :  { %5274 = vmatpush2.bf16.msra.mxu0 %v8147_v25  ;;  %v8210_v25 = vld [vmem:[#allocation7 + $0xe34] ss:$8 sps:$4 sm:$0xff]  }
 0x27b   :  { %5315 = vmatpush2.bf16.msra.mxu1 %v8150_v1  ;;  %5275 = vmatprep.subr.bf16.mxu0 %v8155_v2  ;;  %v8213_v1 = vld [vmem:[#allocation7 + $0xf34] ss:$8 sps:$4 sm:$0xff]   ;;  %v8208_v2 = vld [vmem:[#allocation7 + $0xe30] ss:$8 sps:$4 sm:$0xff]  }
 0x27c   :  { %5316 = vmatprep.subr.bf16.mxu1 %v8158_v3  ;;  %v8211_v3 = vld [vmem:[#allocation7 + $0xf30] ss:$8 sps:$4 sm:$0xff]  }
 0x27e   :  { %5276 = vmatpush2.bf16.msra.mxu0 %v8153_v4  ;;  %v8216_v4 = vld [vmem:[#allocation7 + $0xe24] ss:$8 sps:$4 sm:$0xff]  }
 0x27f   :  { %5317 = vmatpush2.bf16.msra.mxu1 %v8156_v5  ;;  %5277 = vmatprep.subr.bf16.mxu0 %v8161_v6  ;;  %v8219_v5 = vld [vmem:[#allocation7 + $0xf24] ss:$8 sps:$4 sm:$0xff]   ;;  %v8214_v6 = vld [vmem:[#allocation7 + $0xe20] ss:$8 sps:$4 sm:$0xff]  }
 0x280   :  { %5318 = vmatprep.subr.bf16.mxu1 %v8164_v7  ;;  %v8217_v7 = vld [vmem:[#allocation7 + $0xf20] ss:$8 sps:$4 sm:$0xff]  }
 0x282   :  { %5278 = vmatpush2.bf16.msra.mxu0 %v8159_v8  ;;  %v8222_v8 = vld [vmem:[#allocation7 + $0xe14] ss:$8 sps:$4 sm:$0xff]  }
 0x283   :  { %5319 = vmatpush2.bf16.msra.mxu1 %v8162_v9  ;;  %5279 = vmatprep.subr.bf16.mxu0 %v8167_v10  ;;  %v8225_v9 = vld [vmem:[#allocation7 + $0xf14] ss:$8 sps:$4 sm:$0xff]   ;;  %v8220_v10 = vld [vmem:[#allocation7 + $0xe10] ss:$8 sps:$4 sm:$0xff]  }
 0x284   :  { %5320 = vmatprep.subr.bf16.mxu1 %v8170_v11  ;;  %v8223_v11 = vld [vmem:[#allocation7 + $0xf10] ss:$8 sps:$4 sm:$0xff]  }
 0x286   :  { %5280 = vmatpush2.bf16.msra.mxu0 %v8165_v42  ;;  %v8231_v42 = vld [vmem:[#allocation7 + $0xf04] ss:$8 sps:$4 sm:$0xff]  }
 0x287   :  { %5321 = vmatpush2.bf16.msra.mxu1 %v8168_v12  ;;  %5281 = vmatprep.subr.bf16.mxu0 %v8173_v23  ;;  %v8226_v12 = vld [vmem:[#allocation7 + $0xe00] ss:$8 sps:$4 sm:$0xff]  }
 0x288   :  { %5322 = vmatprep.subr.bf16.mxu1 %v8176_v24  ;;  %v8229_v23 = vld [vmem:[#allocation7 + $0xf00] ss:$8 sps:$4 sm:$0xff]   ;;  %v8234_v24 = vld [vmem:[#allocation7 + $0xef4] ss:$8 sps:$4 sm:$0xff]  }
 0x28a   :  { %5282 = vmatpush2.bf16.msra.mxu0 %v8171_v14  ;;  %v8232_v14 = vld [vmem:[#allocation7 + $0xef0] ss:$8 sps:$4 sm:$0xff]  }
 0x28b   :  { %5323 = vmatpush2.bf16.msra.mxu1 %v8174_v15  ;;  %5283 = vmatprep.subr.bf16.mxu0 %v8179_v17  ;;  %v8235_v15 = vld [vmem:[#allocation7 + $0xff0] ss:$8 sps:$4 sm:$0xff]   ;;  %v8240_v17 = vld [vmem:[#allocation7 + $0xee4] ss:$8 sps:$4 sm:$0xff]  }
 0x28c   :  { %5324 = vmatprep.subr.bf16.mxu1 %v8182_v18  ;;  %v8243_v18 = vld [vmem:[#allocation7 + $0xfe4] ss:$8 sps:$4 sm:$0xff]  }
 0x28e   :  { %5284 = vmatpush2.bf16.msra.mxu0 %v8177_v54  ;;  %v8238_v54 = vld [vmem:[#allocation7 + $0xee0] ss:$8 sps:$4 sm:$0xff]  }
 0x28f   :  { %5325 = vmatpush2.bf16.msra.mxu1 %v8180_v26  ;;  %5335 = vmatprep.subr.bf16.mxu0 %v8186_v27  ;;  %v8241_v26 = vld [vmem:[#allocation7 + $0xfe0] ss:$8 sps:$4 sm:$0xff]   ;;  %v8246_v27 = vld [vmem:[#allocation7 + $0xed4] ss:$8 sps:$4 sm:$0xff]  }
 0x290   :  { %5376 = vmatprep.subr.bf16.mxu1 %v8189_v28  ;;  %v8249_v28 = vld [vmem:[#allocation7 + $0xfd4] ss:$8 sps:$4 sm:$0xff]  }
 0x291   :  { %v5041_v39 = vpop.f32.mrf.mxu0  ;;  %5286 = vmatmul.mubr.bf16.vlgmr.msra.gmra.mxu0 %v549_v30  ;;  %v8252_v30 = vld [vmem:[#allocation7 + $0xec4] ss:$8 sps:$4 sm:$0xff]  }
 0x292   :  { %5327 = vmatmul.mubr.bf16.vlgmr.msra.gmra.mxu1 %v551_v31  ;;  %v5082_v43 = vpop.f32.mrf.mxu1  ;;  %v5042_v45 = vadd.f32 %v5041_v39, %v9230_v16  ;;  %5336 = vmatpush1.bf16.msra.mxu0 %v8184_v32  ;;  %v8196_v16 = vld [vmem:[#allocation7 + $0xe50] ss:$8 sps:$4 sm:$0xff]   ;;  %v8255_v31 = vld [vmem:[#allocation7 + $0xfc4] ss:$8 sps:$4 sm:$0xff]   ;;  %v8250_v32 = vld [vmem:[#allocation7 + $0xec0] ss:$8 sps:$4 sm:$0xff]  }
 0x293   :  { %5377 = vmatpush1.bf16.msra.mxu1 %v8187_v33  ;;  %v5043_v46 = vpop.f32.mrf.mxu0  ;;  %5337 = vmatprep.subr.bf16.mxu0 %v8192_v34  ;;  %v8253_v33 = vld [vmem:[#allocation7 + $0xfc0] ss:$8 sps:$4 sm:$0xff]   ;;  %v8258_v34 = vld [vmem:[#allocation7 + $0xeb4] ss:$8 sps:$4 sm:$0xff]   ;;  %v8264_v39 = vld [vmem:[#allocation7 + $0xea4] ss:$8 sps:$4 sm:$0xff]  }
 0x294   :  { %v5084_v47 = vpop.f32.mrf.mxu1  ;;  %5378 = vmatprep.subr.bf16.mxu1 %v8195_v35  ;;  %v5044_v57 = vadd.f32 %v5043_v46, %v9232_v22  ;;  %v9253_v58 = vadd.f32 %v5082_v43, %v5042_v45  ;;  %5367 = vmatprep.mubr.bf16.mxu0 %v554_v37  ;;  %v8202_v22 = vld [vmem:[#allocation7 + $0xe40] ss:$8 sps:$4 sm:$0xff]   ;;  %v8261_v35 = vld [vmem:[#allocation7 + $0xfb4] ss:$8 sps:$4 sm:$0xff]   ;;  %v8256_v37 = vld [vmem:[#allocation7 + $0xeb0] ss:$8 sps:$4 sm:$0xff]  }
 0x295   :  { %5408 = vmatprep.mubr.bf16.mxu1 %v556_v38  ;;  %v5045_v51 = vpop.f32.mrf.mxu0  ;;  %v8259_v38 = vld [vmem:[#allocation7 + $0xfb0] ss:$8 sps:$4 sm:$0xff]   ;;  %v8267_v43 = vld [vmem:[#allocation7 + $0xfa4] ss:$8 sps:$4 sm:$0xff]   ;;  %v8270_v46 = vld [vmem:[#allocation7 + $0xe94] ss:$8 sps:$4 sm:$0xff]  }
 0x296   :  { %v5086_v52 = vpop.f32.mrf.mxu1  ;;  %v9255_v53 = vadd.f32 %v5084_v47, %v5044_v57  ;;  %5338 = vmatpush1.bf16.msra.mxu0 %v8190_v59  ;;  %v280_v45 = vld [vmem:[%s9659_s30 + $0x40] sm:$0xff]  ;;  %v8276_v51 = vld [vmem:[#allocation7 + $0xe84] ss:$8 sps:$4 sm:$0xff]  }
 0x297   :  { %5379 = vmatpush1.bf16.msra.mxu1 %v8193_v60  ;;  %v5046_v56 = vpop.f32.mrf.mxu0  ;;  %5339 = vmatprep.subr.bf16.mxu0 %v8198_v48  ;;  %v8262_v59 = vld [vmem:[#allocation7 + $0xea0] ss:$8 sps:$4 sm:$0xff]   ;;  %v8273_v47 = vld [vmem:[#allocation7 + $0xf94] ss:$8 sps:$4 sm:$0xff]   ;;  %v430_v48 = vcombine.high %v280_v45, %v280_v45  ;;  %v8271_v57 = vld [vmem:[#allocation7 + $0xf90] ss:$8 sps:$4 sm:$0xff]  }
 0x298   :  { %v5087_v20 = vpop.f32.mrf.mxu1  ;;  %5380 = vmatprep.subr.bf16.mxu1 %v8201_v49  ;;  %v8265_v60 = vld [vmem:[#allocation7 + $0xfa0] ss:$8 sps:$4 sm:$0xff]   ;;  %v8268_v49 = vld [vmem:[#allocation7 + $0xe90] ss:$8 sps:$4 sm:$0xff]   ;;  %v8279_v52 = vld [vmem:[#allocation7 + $0xf84] ss:$8 sps:$4 sm:$0xff]  }
 0x299   :  { %v8274_v56 = vld [vmem:[#allocation7 + $0xe80] ss:$8 sps:$4 sm:$0xff]  }
 0x29a   :  { %5340 = vmatpush1.bf16.msra.mxu0 %v8196_v16  ;;  %v9261_v16 = vrot.slane %v280_v45, %v9107_v50  ;;  %v8277_v20 = vld [vmem:[#allocation7 + $0xf80] ss:$8 sps:$4 sm:$0xff]   ;;  %v8325_v45 = vld [vmem:[#allocation7 + $0x1004] ss:$8 sps:$4 sm:$0xff]  }
 0x29b   :  { %5381 = vmatpush1.bf16.msra.mxu1 %v8199_v55  ;;  %5341 = vmatprep.subr.bf16.mxu0 %v8204_v40  ;;  %v9264_v55 = vrot.slane %v430_v48, %v9107_v50  ;;  %v8283_v40 = vld [vmem:[#allocation7 + $0x1074] ss:$8 sps:$4 sm:$0xff]  }
 0x29c   :  { %5382 = vmatprep.subr.bf16.mxu1 %v8207_v62  ;;  %v8286_v62 = vld [vmem:[#allocation7 + $0x1174] ss:$8 sps:$4 sm:$0xff]  }
 0x29d   :  { %v8334_v48 = vld [vmem:[#allocation7 + $0x11f4] ss:$8 sps:$4 sm:$0xff]  }
 0x29e   :  { %5342 = vmatpush1.bf16.msra.mxu0 %v8202_v22  ;;  %v445_v22 = vcombine.high %v9261_v16, %v9261_v16 }
 0x29f   :  { %5383 = vmatpush1.bf16.msra.mxu1 %v8205_v0  ;;  %5343 = vmatprep.subr.bf16.mxu0 %v8210_v25  ;;  %v446_v0 = vcombine.high %v9264_v55, %v9264_v55  ;;  %v553_v25 = vpack.c.bf16 %v9238_v19, %v9238_v19  ;;  %v8287_v19 = vld [vmem:[#allocation7 + $0x1060] ss:$8 sps:$4 sm:$0xff]  }
 0x2a0   :  { %5384 = vmatprep.subr.bf16.mxu1 %v8213_v1  ;;  %v555_v1 = vpack.c.bf16 %v9241_v21, %v9241_v21  ;;  %v8290_v21 = vld [vmem:[#allocation7 + $0x1160] ss:$8 sps:$4 sm:$0xff]  }
 0x2a2   :  { %5344 = vmatpush1.bf16.msra.mxu0 %v8208_v2  ;;  %v8281_v2 = vld [vmem:[#allocation7 + $0x1070] ss:$8 sps:$4 sm:$0xff]  }
 0x2a3   :  { %5385 = vmatpush1.bf16.msra.mxu1 %v8211_v3  ;;  %5345 = vmatprep.subr.bf16.mxu0 %v8216_v4  ;;  %v8284_v3 = vld [vmem:[#allocation7 + $0x1170] ss:$8 sps:$4 sm:$0xff]   ;;  %v8289_v4 = vld [vmem:[#allocation7 + $0x1064] ss:$8 sps:$4 sm:$0xff]  }
 0x2a4   :  { %5386 = vmatprep.subr.bf16.mxu1 %v8219_v5  ;;  %v8292_v5 = vld [vmem:[#allocation7 + $0x1164] ss:$8 sps:$4 sm:$0xff]  }
 0x2a6   :  { %5346 = vmatpush1.bf16.msra.mxu0 %v8214_v6  ;;  %v558_v6 = vpack.c.bf16 %v445_v22, %v445_v22  ;;  %v8341_v22 = vld [vmem:[#allocation7 + $0x10d0] ss:$8 sps:$4 sm:$0xff]  }
 0x2a7   :  { %5387 = vmatpush1.bf16.msra.mxu1 %v8217_v7  ;;  %5347 = vmatprep.subr.bf16.mxu0 %v8222_v8  ;;  %v560_v7 = vpack.c.bf16 %v446_v0, %v446_v0  ;;  %v8344_v0 = vld [vmem:[#allocation7 + $0x11d0] ss:$8 sps:$4 sm:$0xff]  }
 0x2a8   :  { %5388 = vmatprep.subr.bf16.mxu1 %v8225_v9 }
 0x2aa   :  { %5348 = vmatpush1.bf16.msra.mxu0 %v8220_v10 }
 0x2ab   :  { %5389 = vmatpush1.bf16.msra.mxu1 %v8223_v11  ;;  %5349 = vmatprep.subr.bf16.mxu0 %v8228_v41 }
 0x2ac   :  { %5390 = vmatprep.subr.bf16.mxu1 %v8231_v42  ;;  %v8295_v42 = vld [vmem:[#allocation7 + $0x1054] ss:$8 sps:$4 sm:$0xff]  }
 0x2ae   :  { %5350 = vmatpush1.bf16.msra.mxu0 %v8226_v12  ;;  %v8298_v12 = vld [vmem:[#allocation7 + $0x1154] ss:$8 sps:$4 sm:$0xff]  }
 0x2af   :  { %5391 = vmatpush1.bf16.msra.mxu1 %v8229_v23  ;;  %5351 = vmatprep.subr.bf16.mxu0 %v8234_v24 }
 0x2b0   :  { %5392 = vmatprep.subr.bf16.mxu1 %v8237_v13 }
 0x2b2   :  { %5352 = vmatpush2.bf16.msra.mxu0 %v8232_v14 }
 0x2b3   :  { %5393 = vmatpush2.bf16.msra.mxu1 %v8235_v15  ;;  %5353 = vmatprep.subr.bf16.mxu0 %v8240_v17  ;;  %v8296_v17 = vld [vmem:[#allocation7 + $0x1150] ss:$8 sps:$4 sm:$0xff]  }
 0x2b4   :  { %5394 = vmatprep.subr.bf16.mxu1 %v8243_v18 }
 0x2b6   :  { %5354 = vmatpush2.bf16.msra.mxu0 %v8238_v54 }
 0x2b7   :  { %5395 = vmatpush2.bf16.msra.mxu1 %v8241_v26  ;;  %5355 = vmatprep.subr.bf16.mxu0 %v8246_v27  ;;  %v8301_v26 = vld [vmem:[#allocation7 + $0x1044] ss:$8 sps:$4 sm:$0xff]  }
 0x2b8   :  { %5396 = vmatprep.subr.bf16.mxu1 %v8249_v28  ;;  %v8304_v27 = vld [vmem:[#allocation7 + $0x1144] ss:$8 sps:$4 sm:$0xff]   ;;  %v8302_v28 = vld [vmem:[#allocation7 + $0x1140] ss:$8 sps:$4 sm:$0xff]  }
 0x2ba   :  { %5356 = vmatpush2.bf16.msra.mxu0 %v8244_v36  ;;  %v8307_v36 = vld [vmem:[#allocation7 + $0x1034] ss:$8 sps:$4 sm:$0xff]  }
 0x2bb   :  { %5397 = vmatpush2.bf16.msra.mxu1 %v8247_v29  ;;  %5357 = vmatprep.subr.bf16.mxu0 %v8252_v30  ;;  %v8310_v29 = vld [vmem:[#allocation7 + $0x1134] ss:$8 sps:$4 sm:$0xff]   ;;  %v8305_v30 = vld [vmem:[#allocation7 + $0x1030] ss:$8 sps:$4 sm:$0xff]  }
 0x2bc   :  { %5398 = vmatprep.subr.bf16.mxu1 %v8255_v31  ;;  %v8308_v31 = vld [vmem:[#allocation7 + $0x1130] ss:$8 sps:$4 sm:$0xff]  }
 0x2be   :  { %5358 = vmatpush2.bf16.msra.mxu0 %v8250_v32  ;;  %v8313_v32 = vld [vmem:[#allocation7 + $0x1024] ss:$8 sps:$4 sm:$0xff]  }
 0x2bf   :  { %5399 = vmatpush2.bf16.msra.mxu1 %v8253_v33  ;;  %5359 = vmatprep.subr.bf16.mxu0 %v8258_v34  ;;  %v8316_v33 = vld [vmem:[#allocation7 + $0x1124] ss:$8 sps:$4 sm:$0xff]   ;;  %v8311_v34 = vld [vmem:[#allocation7 + $0x1020] ss:$8 sps:$4 sm:$0xff]  }
 0x2c0   :  { %5400 = vmatprep.subr.bf16.mxu1 %v8261_v35  ;;  %v8314_v35 = vld [vmem:[#allocation7 + $0x1120] ss:$8 sps:$4 sm:$0xff]  }
 0x2c2   :  { %5360 = vmatpush2.bf16.msra.mxu0 %v8256_v37  ;;  %v8319_v37 = vld [vmem:[#allocation7 + $0x1014] ss:$8 sps:$4 sm:$0xff]  }
 0x2c3   :  { %5401 = vmatpush2.bf16.msra.mxu1 %v8259_v38  ;;  %5361 = vmatprep.subr.bf16.mxu0 %v8264_v39  ;;  %v8322_v38 = vld [vmem:[#allocation7 + $0x1114] ss:$8 sps:$4 sm:$0xff]   ;;  %v8317_v39 = vld [vmem:[#allocation7 + $0x1010] ss:$8 sps:$4 sm:$0xff]  }
 0x2c4   :  { %5402 = vmatprep.subr.bf16.mxu1 %v8267_v43  ;;  %v8320_v43 = vld [vmem:[#allocation7 + $0x1110] ss:$8 sps:$4 sm:$0xff]  }
 0x2c6   :  { %5362 = vmatpush2.bf16.msra.mxu0 %v8262_v59  ;;  %v8328_v59 = vld [vmem:[#allocation7 + $0x1104] ss:$8 sps:$4 sm:$0xff]  }
 0x2c7   :  { %5403 = vmatpush2.bf16.msra.mxu1 %v8265_v60  ;;  %5363 = vmatprep.subr.bf16.mxu0 %v8270_v46  ;;  %v8323_v60 = vld [vmem:[#allocation7 + $0x1000] ss:$8 sps:$4 sm:$0xff]  }
 0x2c8   :  { %5404 = vmatprep.subr.bf16.mxu1 %v8273_v47  ;;  %v8326_v46 = vld [vmem:[#allocation7 + $0x1100] ss:$8 sps:$4 sm:$0xff]   ;;  %v8331_v47 = vld [vmem:[#allocation7 + $0x10f4] ss:$8 sps:$4 sm:$0xff]  }
 0x2ca   :  { %5364 = vmatpush2.bf16.msra.mxu0 %v8268_v49  ;;  %v8329_v49 = vld [vmem:[#allocation7 + $0x10f0] ss:$8 sps:$4 sm:$0xff]  }
 0x2cb   :  { %5405 = vmatpush2.bf16.msra.mxu1 %v8271_v57  ;;  %5365 = vmatprep.subr.bf16.mxu0 %v8276_v51  ;;  %v8332_v57 = vld [vmem:[#allocation7 + $0x11f0] ss:$8 sps:$4 sm:$0xff]   ;;  %v8337_v51 = vld [vmem:[#allocation7 + $0x10e4] ss:$8 sps:$4 sm:$0xff]  }
 0x2cc   :  { %5406 = vmatprep.subr.bf16.mxu1 %v8279_v52  ;;  %v8340_v52 = vld [vmem:[#allocation7 + $0x11e4] ss:$8 sps:$4 sm:$0xff]  }
 0x2ce   :  { %5366 = vmatpush2.bf16.msra.mxu0 %v8274_v56  ;;  %v8335_v56 = vld [vmem:[#allocation7 + $0x10e0] ss:$8 sps:$4 sm:$0xff]  }
 0x2cf   :  { %5407 = vmatpush2.bf16.msra.mxu1 %v8277_v20  ;;  %5417 = vmatprep.subr.bf16.mxu0 %v8283_v40  ;;  %v8338_v20 = vld [vmem:[#allocation7 + $0x11e0] ss:$8 sps:$4 sm:$0xff]   ;;  %v8343_v40 = vld [vmem:[#allocation7 + $0x10d4] ss:$8 sps:$4 sm:$0xff]  }
 0x2d0   :  { %5458 = vmatprep.subr.bf16.mxu1 %v8286_v62  ;;  %v8346_v62 = vld [vmem:[#allocation7 + $0x11d4] ss:$8 sps:$4 sm:$0xff]  }
 0x2d1   :  { %v5123_v8 = vpop.f32.mrf.mxu0  ;;  %5368 = vmatmul.mubr.bf16.vlgmr.msra.gmra.mxu0 %v553_v25  ;;  %v8349_v25 = vld [vmem:[#allocation7 + $0x10c4] ss:$8 sps:$4 sm:$0xff]  }
 0x2d2   :  { %5409 = vmatmul.mubr.bf16.vlgmr.msra.gmra.mxu1 %v555_v1  ;;  %v5164_v9 = vpop.f32.mrf.mxu1  ;;  %v5124_v10 = vadd.f32 %v5123_v8, %v9253_v58  ;;  %5418 = vmatpush1.bf16.msra.mxu0 %v8281_v2  ;;  %v8293_v58 = vld [vmem:[#allocation7 + $0x1050] ss:$8 sps:$4 sm:$0xff]   ;;  %v8352_v1 = vld [vmem:[#allocation7 + $0x11c4] ss:$8 sps:$4 sm:$0xff]   ;;  %v8347_v2 = vld [vmem:[#allocation7 + $0x10c0] ss:$8 sps:$4 sm:$0xff]  }
 0x2d3   :  { %5459 = vmatpush1.bf16.msra.mxu1 %v8284_v3  ;;  %v5125_v11 = vpop.f32.mrf.mxu0  ;;  %5419 = vmatprep.subr.bf16.mxu0 %v8289_v4  ;;  %v8350_v3 = vld [vmem:[#allocation7 + $0x11c0] ss:$8 sps:$4 sm:$0xff]   ;;  %v8355_v4 = vld [vmem:[#allocation7 + $0x10b4] ss:$8 sps:$4 sm:$0xff]   ;;  %v8361_v8 = vld [vmem:[#allocation7 + $0x10a4] ss:$8 sps:$4 sm:$0xff]  }
 0x2d4   :  { %v5166_v41 = vpop.f32.mrf.mxu1  ;;  %5460 = vmatprep.subr.bf16.mxu1 %v8292_v5  ;;  %v5126_v23 = vadd.f32 %v5125_v11, %v9255_v53  ;;  %v9276_v24 = vadd.f32 %v5164_v9, %v5124_v10  ;;  %5449 = vmatprep.mubr.bf16.mxu0 %v558_v6  ;;  %v8299_v53 = vld [vmem:[#allocation7 + $0x1040] ss:$8 sps:$4 sm:$0xff]   ;;  %v8358_v5 = vld [vmem:[#allocation7 + $0x11b4] ss:$8 sps:$4 sm:$0xff]   ;;  %v8353_v6 = vld [vmem:[#allocation7 + $0x10b0] ss:$8 sps:$4 sm:$0xff]  }
 0x2d5   :  { %5490 = vmatprep.mubr.bf16.mxu1 %v560_v7  ;;  %v5127_v13 = vpop.f32.mrf.mxu0  ;;  %v8356_v7 = vld [vmem:[#allocation7 + $0x11b0] ss:$8 sps:$4 sm:$0xff]   ;;  %v8364_v9 = vld [vmem:[#allocation7 + $0x11a4] ss:$8 sps:$4 sm:$0xff]   ;;  %v8367_v11 = vld [vmem:[#allocation7 + $0x1094] ss:$8 sps:$4 sm:$0xff]  }
 0x2d6   :  { %v5168_v14 = vpop.f32.mrf.mxu1  ;;  %v9278_v15 = vadd.f32 %v5166_v41, %v5126_v23  ;;  %5420 = vmatpush1.bf16.msra.mxu0 %v8287_v19  ;;  %v281_v10 = vld [vmem:[%s9659_s30 + $0x48] sm:$0xff]  ;;  %v8370_v41 = vld [vmem:[#allocation7 + $0x1194] ss:$8 sps:$4 sm:$0xff]   ;;  %v8368_v23 = vld [vmem:[#allocation7 + $0x1190] ss:$8 sps:$4 sm:$0xff]  }
 0x2d7   :  { %5461 = vmatpush1.bf16.msra.mxu1 %v8290_v21  ;;  %v5128_v18 = vpop.f32.mrf.mxu0  ;;  %5421 = vmatprep.subr.bf16.mxu0 %v8295_v42  ;;  %v8359_v19 = vld [vmem:[#allocation7 + $0x10a0] ss:$8 sps:$4 sm:$0xff]   ;;  %v447_v42 = vcombine.high %v281_v10, %v281_v10  ;;  %v8373_v13 = vld [vmem:[#allocation7 + $0x1084] ss:$8 sps:$4 sm:$0xff]  }
 0x2d8   :  { %v5169_v54 = vpop.f32.mrf.mxu1  ;;  %5462 = vmatprep.subr.bf16.mxu1 %v8298_v12  ;;  %v8362_v21 = vld [vmem:[#allocation7 + $0x11a0] ss:$8 sps:$4 sm:$0xff]   ;;  %v8365_v12 = vld [vmem:[#allocation7 + $0x1090] ss:$8 sps:$4 sm:$0xff]   ;;  %v8376_v14 = vld [vmem:[#allocation7 + $0x1184] ss:$8 sps:$4 sm:$0xff]  }
 0x2d9   :  { %v8371_v18 = vld [vmem:[#allocation7 + $0x1080] ss:$8 sps:$4 sm:$0xff]  }
 0x2da   :  { %5422 = vmatpush1.bf16.msra.mxu0 %v8293_v58  ;;  %v9284_v58 = vrot.slane %v281_v10, %v9107_v50  ;;  %v8374_v54 = vld [vmem:[#allocation7 + $0x1180] ss:$8 sps:$4 sm:$0xff]   ;;  %v8422_v10 = vld [vmem:[#allocation7 + $0x1204] ss:$8 sps:$4 sm:$0xff]  }
 0x2db   :  { %5463 = vmatpush1.bf16.msra.mxu1 %v8296_v17  ;;  %5423 = vmatprep.subr.bf16.mxu0 %v8301_v26  ;;  %v9287_v17 = vrot.slane %v447_v42, %v9107_v50  ;;  %v8380_v26 = vld [vmem:[#allocation7 + $0x1274] ss:$8 sps:$4 sm:$0xff]  }
 0x2dc   :  { %5464 = vmatprep.subr.bf16.mxu1 %v8304_v27  ;;  %v8383_v27 = vld [vmem:[#allocation7 + $0x1374] ss:$8 sps:$4 sm:$0xff]  }
 0x2dd   :  { %v8431_v42 = vld [vmem:[#allocation7 + $0x13f4] ss:$8 sps:$4 sm:$0xff]  }
 0x2de   :  { %5424 = vmatpush1.bf16.msra.mxu0 %v8299_v53  ;;  %v462_v53 = vcombine.high %v9284_v58, %v9284_v58 }
 0x2df   :  { %5465 = vmatpush1.bf16.msra.mxu1 %v8302_v28  ;;  %5425 = vmatprep.subr.bf16.mxu0 %v8307_v36  ;;  %v463_v28 = vcombine.high %v9287_v17, %v9287_v17  ;;  %v557_v36 = vpack.c.bf16 %v9261_v16, %v9261_v16  ;;  %v8384_v16 = vld [vmem:[#allocation7 + $0x1260] ss:$8 sps:$4 sm:$0xff]  }
 0x2e0   :  { %5466 = vmatprep.subr.bf16.mxu1 %v8310_v29  ;;  %v559_v29 = vpack.c.bf16 %v9264_v55, %v9264_v55  ;;  %v8387_v55 = vld [vmem:[#allocation7 + $0x1360] ss:$8 sps:$4 sm:$0xff]  }
 0x2e2   :  { %5426 = vmatpush1.bf16.msra.mxu0 %v8305_v30  ;;  %v8378_v30 = vld [vmem:[#allocation7 + $0x1270] ss:$8 sps:$4 sm:$0xff]  }
 0x2e3   :  { %5467 = vmatpush1.bf16.msra.mxu1 %v8308_v31  ;;  %5427 = vmatprep.subr.bf16.mxu0 %v8313_v32  ;;  %v8381_v31 = vld [vmem:[#allocation7 + $0x1370] ss:$8 sps:$4 sm:$0xff]   ;;  %v8386_v32 = vld [vmem:[#allocation7 + $0x1264] ss:$8 sps:$4 sm:$0xff]  }
 0x2e4   :  { %5468 = vmatprep.subr.bf16.mxu1 %v8316_v33  ;;  %v8389_v33 = vld [vmem:[#allocation7 + $0x1364] ss:$8 sps:$4 sm:$0xff]  }
 0x2e6   :  { %5428 = vmatpush1.bf16.msra.mxu0 %v8311_v34  ;;  %v562_v34 = vpack.c.bf16 %v462_v53, %v462_v53  ;;  %v8438_v53 = vld [vmem:[#allocation7 + $0x12d0] ss:$8 sps:$4 sm:$0xff]  }
 0x2e7   :  { %5469 = vmatpush1.bf16.msra.mxu1 %v8314_v35  ;;  %5429 = vmatprep.subr.bf16.mxu0 %v8319_v37  ;;  %v564_v35 = vpack.c.bf16 %v463_v28, %v463_v28  ;;  %v8441_v28 = vld [vmem:[#allocation7 + $0x13d0] ss:$8 sps:$4 sm:$0xff]  }
 0x2e8   :  { %5470 = vmatprep.subr.bf16.mxu1 %v8322_v38 }
 0x2ea   :  { %5430 = vmatpush1.bf16.msra.mxu0 %v8317_v39 }
 0x2eb   :  { %5471 = vmatpush1.bf16.msra.mxu1 %v8320_v43  ;;  %5431 = vmatprep.subr.bf16.mxu0 %v8325_v45 }
 0x2ec   :  { %5472 = vmatprep.subr.bf16.mxu1 %v8328_v59  ;;  %v8392_v59 = vld [vmem:[#allocation7 + $0x1254] ss:$8 sps:$4 sm:$0xff]  }
 0x2ee   :  { %5432 = vmatpush1.bf16.msra.mxu0 %v8323_v60  ;;  %v8395_v60 = vld [vmem:[#allocation7 + $0x1354] ss:$8 sps:$4 sm:$0xff]  }
 0x2ef   :  { %5473 = vmatpush1.bf16.msra.mxu1 %v8326_v46  ;;  %5433 = vmatprep.subr.bf16.mxu0 %v8331_v47 }
 0x2f0   :  { %5474 = vmatprep.subr.bf16.mxu1 %v8334_v48 }
 0x2f2   :  { %5434 = vmatpush2.bf16.msra.mxu0 %v8329_v49 }
 0x2f3   :  { %5475 = vmatpush2.bf16.msra.mxu1 %v8332_v57  ;;  %5435 = vmatprep.subr.bf16.mxu0 %v8337_v51  ;;  %v8393_v51 = vld [vmem:[#allocation7 + $0x1350] ss:$8 sps:$4 sm:$0xff]  }
 0x2f4   :  { %5476 = vmatprep.subr.bf16.mxu1 %v8340_v52 }
 0x2f6   :  { %5436 = vmatpush2.bf16.msra.mxu0 %v8335_v56 }
 0x2f7   :  { %5477 = vmatpush2.bf16.msra.mxu1 %v8338_v20  ;;  %5437 = vmatprep.subr.bf16.mxu0 %v8343_v40  ;;  %v8398_v20 = vld [vmem:[#allocation7 + $0x1244] ss:$8 sps:$4 sm:$0xff]  }
 0x2f8   :  { %5478 = vmatprep.subr.bf16.mxu1 %v8346_v62  ;;  %v8401_v40 = vld [vmem:[#allocation7 + $0x1344] ss:$8 sps:$4 sm:$0xff]   ;;  %v8399_v62 = vld [vmem:[#allocation7 + $0x1340] ss:$8 sps:$4 sm:$0xff]  }
 0x2fa   :  { %5438 = vmatpush2.bf16.msra.mxu0 %v8341_v22  ;;  %v8404_v22 = vld [vmem:[#allocation7 + $0x1234] ss:$8 sps:$4 sm:$0xff]  }
 0x2fb   :  { %5479 = vmatpush2.bf16.msra.mxu1 %v8344_v0  ;;  %5439 = vmatprep.subr.bf16.mxu0 %v8349_v25  ;;  %v8407_v0 = vld [vmem:[#allocation7 + $0x1334] ss:$8 sps:$4 sm:$0xff]   ;;  %v8402_v25 = vld [vmem:[#allocation7 + $0x1230] ss:$8 sps:$4 sm:$0xff]  }
 0x2fc   :  { %5480 = vmatprep.subr.bf16.mxu1 %v8352_v1  ;;  %v8405_v1 = vld [vmem:[#allocation7 + $0x1330] ss:$8 sps:$4 sm:$0xff]  }
 0x2fe   :  { %5440 = vmatpush2.bf16.msra.mxu0 %v8347_v2  ;;  %v8410_v2 = vld [vmem:[#allocation7 + $0x1224] ss:$8 sps:$4 sm:$0xff]  }
 0x2ff   :  { %5481 = vmatpush2.bf16.msra.mxu1 %v8350_v3  ;;  %5441 = vmatprep.subr.bf16.mxu0 %v8355_v4  ;;  %v8413_v3 = vld [vmem:[#allocation7 + $0x1324] ss:$8 sps:$4 sm:$0xff]   ;;  %v8408_v4 = vld [vmem:[#allocation7 + $0x1220] ss:$8 sps:$4 sm:$0xff]  }
 0x300   :  { %5482 = vmatprep.subr.bf16.mxu1 %v8358_v5  ;;  %v8411_v5 = vld [vmem:[#allocation7 + $0x1320] ss:$8 sps:$4 sm:$0xff]  }
 0x302   :  { %5442 = vmatpush2.bf16.msra.mxu0 %v8353_v6  ;;  %v8416_v6 = vld [vmem:[#allocation7 + $0x1214] ss:$8 sps:$4 sm:$0xff]  }
 0x303   :  { %5483 = vmatpush2.bf16.msra.mxu1 %v8356_v7  ;;  %5443 = vmatprep.subr.bf16.mxu0 %v8361_v8  ;;  %v8419_v7 = vld [vmem:[#allocation7 + $0x1314] ss:$8 sps:$4 sm:$0xff]   ;;  %v8414_v8 = vld [vmem:[#allocation7 + $0x1210] ss:$8 sps:$4 sm:$0xff]  }
 0x304   :  { %5484 = vmatprep.subr.bf16.mxu1 %v8364_v9  ;;  %v8417_v9 = vld [vmem:[#allocation7 + $0x1310] ss:$8 sps:$4 sm:$0xff]  }
 0x306   :  { %5444 = vmatpush2.bf16.msra.mxu0 %v8359_v19  ;;  %v8425_v19 = vld [vmem:[#allocation7 + $0x1304] ss:$8 sps:$4 sm:$0xff]  }
 0x307   :  { %5485 = vmatpush2.bf16.msra.mxu1 %v8362_v21  ;;  %5445 = vmatprep.subr.bf16.mxu0 %v8367_v11  ;;  %v8420_v21 = vld [vmem:[#allocation7 + $0x1200] ss:$8 sps:$4 sm:$0xff]  }
 0x308   :  { %5486 = vmatprep.subr.bf16.mxu1 %v8370_v41  ;;  %v8423_v11 = vld [vmem:[#allocation7 + $0x1300] ss:$8 sps:$4 sm:$0xff]   ;;  %v8428_v41 = vld [vmem:[#allocation7 + $0x12f4] ss:$8 sps:$4 sm:$0xff]  }
 0x30a   :  { %5446 = vmatpush2.bf16.msra.mxu0 %v8365_v12  ;;  %v8426_v12 = vld [vmem:[#allocation7 + $0x12f0] ss:$8 sps:$4 sm:$0xff]  }
 0x30b   :  { %5487 = vmatpush2.bf16.msra.mxu1 %v8368_v23  ;;  %5447 = vmatprep.subr.bf16.mxu0 %v8373_v13  ;;  %v8429_v23 = vld [vmem:[#allocation7 + $0x13f0] ss:$8 sps:$4 sm:$0xff]   ;;  %v8434_v13 = vld [vmem:[#allocation7 + $0x12e4] ss:$8 sps:$4 sm:$0xff]  }
 0x30c   :  { %5488 = vmatprep.subr.bf16.mxu1 %v8376_v14  ;;  %v8437_v14 = vld [vmem:[#allocation7 + $0x13e4] ss:$8 sps:$4 sm:$0xff]  }
 0x30e   :  { %5448 = vmatpush2.bf16.msra.mxu0 %v8371_v18  ;;  %v8432_v18 = vld [vmem:[#allocation7 + $0x12e0] ss:$8 sps:$4 sm:$0xff]  }
 0x30f   :  { %5489 = vmatpush2.bf16.msra.mxu1 %v8374_v54  ;;  %5499 = vmatprep.subr.bf16.mxu0 %v8380_v26  ;;  %v8435_v54 = vld [vmem:[#allocation7 + $0x13e0] ss:$8 sps:$4 sm:$0xff]   ;;  %v8440_v26 = vld [vmem:[#allocation7 + $0x12d4] ss:$8 sps:$4 sm:$0xff]  }
 0x310   :  { %5540 = vmatprep.subr.bf16.mxu1 %v8383_v27  ;;  %v8443_v27 = vld [vmem:[#allocation7 + $0x13d4] ss:$8 sps:$4 sm:$0xff]  }
 0x311   :  { %v5205_v37 = vpop.f32.mrf.mxu0  ;;  %5450 = vmatmul.mubr.bf16.vlgmr.msra.gmra.mxu0 %v557_v36  ;;  %v8446_v36 = vld [vmem:[#allocation7 + $0x12c4] ss:$8 sps:$4 sm:$0xff]  }
 0x312   :  { %5491 = vmatmul.mubr.bf16.vlgmr.msra.gmra.mxu1 %v559_v29  ;;  %v5246_v38 = vpop.f32.mrf.mxu1  ;;  %v5206_v39 = vadd.f32 %v5205_v37, %v9276_v24  ;;  %5500 = vmatpush1.bf16.msra.mxu0 %v8378_v30  ;;  %v8390_v24 = vld [vmem:[#allocation7 + $0x1250] ss:$8 sps:$4 sm:$0xff]   ;;  %v8449_v29 = vld [vmem:[#allocation7 + $0x13c4] ss:$8 sps:$4 sm:$0xff]   ;;  %v8444_v30 = vld [vmem:[#allocation7 + $0x12c0] ss:$8 sps:$4 sm:$0xff]  }
 0x313   :  { %5541 = vmatpush1.bf16.msra.mxu1 %v8381_v31  ;;  %v5207_v43 = vpop.f32.mrf.mxu0  ;;  %5501 = vmatprep.subr.bf16.mxu0 %v8386_v32  ;;  %v8447_v31 = vld [vmem:[#allocation7 + $0x13c0] ss:$8 sps:$4 sm:$0xff]   ;;  %v8452_v32 = vld [vmem:[#allocation7 + $0x12b4] ss:$8 sps:$4 sm:$0xff]   ;;  %v8458_v37 = vld [vmem:[#allocation7 + $0x12a4] ss:$8 sps:$4 sm:$0xff]  }
 0x314   :  { %v5248_v45 = vpop.f32.mrf.mxu1  ;;  %5542 = vmatprep.subr.bf16.mxu1 %v8389_v33  ;;  %v5208_v46 = vadd.f32 %v5207_v43, %v9278_v15  ;;  %v9299_v47 = vadd.f32 %v5246_v38, %v5206_v39  ;;  %5531 = vmatprep.mubr.bf16.mxu0 %v562_v34  ;;  %v8396_v15 = vld [vmem:[#allocation7 + $0x1240] ss:$8 sps:$4 sm:$0xff]   ;;  %v8455_v33 = vld [vmem:[#allocation7 + $0x13b4] ss:$8 sps:$4 sm:$0xff]   ;;  %v8450_v34 = vld [vmem:[#allocation7 + $0x12b0] ss:$8 sps:$4 sm:$0xff]  }
 0x315   :  { %5572 = vmatprep.mubr.bf16.mxu1 %v564_v35  ;;  %v5209_v48 = vpop.f32.mrf.mxu0  ;;  %v8453_v35 = vld [vmem:[#allocation7 + $0x13b0] ss:$8 sps:$4 sm:$0xff]   ;;  %v8461_v38 = vld [vmem:[#allocation7 + $0x13a4] ss:$8 sps:$4 sm:$0xff]   ;;  %v8464_v43 = vld [vmem:[#allocation7 + $0x1294] ss:$8 sps:$4 sm:$0xff]  }
 0x316   :  { %v5250_v49 = vpop.f32.mrf.mxu1  ;;  %v9301_v57 = vadd.f32 %v5248_v45, %v5208_v46  ;;  %5502 = vmatpush1.bf16.msra.mxu0 %v8384_v16  ;;  %v282_v39 = vld [vmem:[%s9659_s30 + $0x50] sm:$0xff]  ;;  %v8467_v45 = vld [vmem:[#allocation7 + $0x1394] ss:$8 sps:$4 sm:$0xff]   ;;  %s9660_s30 = sld [smem:[#allocation39_spill]] }
 0x317   :  { %5543 = vmatpush1.bf16.msra.mxu1 %v8387_v55  ;;  %v5210_v52 = vpop.f32.mrf.mxu0  ;;  %5503 = vmatprep.subr.bf16.mxu0 %v8392_v59  ;;  %v8456_v16 = vld [vmem:[#allocation7 + $0x12a0] ss:$8 sps:$4 sm:$0xff]   ;;  %v464_v59 = vcombine.high %v282_v39, %v282_v39  ;;  %v8465_v46 = vld [vmem:[#allocation7 + $0x1390] ss:$8 sps:$4 sm:$0xff]   ;;  %v8470_v48 = vld [vmem:[#allocation7 + $0x1284] ss:$8 sps:$4 sm:$0xff]  }
 0x318   :  { %v5251_v56 = vpop.f32.mrf.mxu1  ;;  %5544 = vmatprep.subr.bf16.mxu1 %v8395_v60  ;;  %v8459_v55 = vld [vmem:[#allocation7 + $0x13a0] ss:$8 sps:$4 sm:$0xff]   ;;  %v8462_v60 = vld [vmem:[#allocation7 + $0x1290] ss:$8 sps:$4 sm:$0xff]   ;;  %v8473_v49 = vld [vmem:[#allocation7 + $0x1384] ss:$8 sps:$4 sm:$0xff]  }
 0x319   :  { %v8468_v52 = vld [vmem:[#allocation7 + $0x1280] ss:$8 sps:$4 sm:$0xff]  }
 0x31a   :  { %5504 = vmatpush1.bf16.msra.mxu0 %v8390_v24  ;;  %v9307_v24 = vrot.slane %v464_v59, %v9107_v50  ;;  %v8471_v56 = vld [vmem:[#allocation7 + $0x1380] ss:$8 sps:$4 sm:$0xff]   ;;  %v8523_v59 = vld [vmem:[#allocation7 + $0x14f0] ss:$8 sps:$4 sm:$0xff]  }
 0x31b   :  { %5545 = vmatpush1.bf16.msra.mxu1 %v8393_v51  ;;  %5505 = vmatprep.subr.bf16.mxu0 %v8398_v20  ;;  %v9310_v51 = vrot.slane %v282_v39, %v9107_v50  ;;  %v8477_v20 = vld [vmem:[#allocation7 + $0x1474] ss:$8 sps:$4 sm:$0xff]   ;;  %v563_v50 = vpack.c.bf16 %v9287_v17, %v9287_v17  ;;  %v8481_v17 = vld [vmem:[#allocation7 + $0x1460] ss:$8 sps:$4 sm:$0xff]   ;;  %v8522_v39 = vld [vmem:[#allocation7 + $0x1504] ss:$8 sps:$4 sm:$0xff]  }
 0x31c   :  { %5546 = vmatprep.subr.bf16.mxu1 %v8401_v40  ;;  %v8480_v40 = vld [vmem:[#allocation7 + $0x1574] ss:$8 sps:$4 sm:$0xff]  }
 0x31e   :  { %5506 = vmatpush1.bf16.msra.mxu0 %v8396_v15  ;;  %v480_v15 = vcombine.high %v9307_v24, %v9307_v24 }
 0x31f   :  { %5547 = vmatpush1.bf16.msra.mxu1 %v8399_v62  ;;  %5507 = vmatprep.subr.bf16.mxu0 %v8404_v22  ;;  %v479_v62 = vcombine.high %v9310_v51, %v9310_v51  ;;  %v561_v22 = vpack.c.bf16 %v9284_v58, %v9284_v58 }
 0x320   :  { %5548 = vmatprep.subr.bf16.mxu1 %v8407_v0  ;;  %v8475_v0 = vld [vmem:[#allocation7 + $0x1470] ss:$8 sps:$4 sm:$0xff]  }
 0x322   :  { %5508 = vmatpush1.bf16.msra.mxu0 %v8402_v25  ;;  %v8478_v25 = vld [vmem:[#allocation7 + $0x1570] ss:$8 sps:$4 sm:$0xff]  }
 0x323   :  { %5549 = vmatpush1.bf16.msra.mxu1 %v8405_v1  ;;  %5509 = vmatprep.subr.bf16.mxu0 %v8410_v2  ;;  %v8483_v1 = vld [vmem:[#allocation7 + $0x1464] ss:$8 sps:$4 sm:$0xff]  }
 0x324   :  { %5550 = vmatprep.subr.bf16.mxu1 %v8413_v3  ;;  %v8486_v2 = vld [vmem:[#allocation7 + $0x1564] ss:$8 sps:$4 sm:$0xff]   ;;  %v568_v3 = vpack.c.bf16 %v480_v15, %v480_v15  ;;  %v8538_v15 = vld [vmem:[#allocation7 + $0x1590] ss:$8 sps:$4 sm:$0xff]  }
 0x326   :  { %5510 = vmatpush1.bf16.msra.mxu0 %v8408_v4  ;;  %v566_v4 = vpack.c.bf16 %v479_v62, %v479_v62  ;;  %v8543_v62 = vld [vmem:[#allocation7 + $0x14c4] ss:$8 sps:$4 sm:$0xff]  }
 0x327   :  { %5551 = vmatpush1.bf16.msra.mxu1 %v8411_v5  ;;  %5511 = vmatprep.subr.bf16.mxu0 %v8416_v6 }
 0x328   :  { %5552 = vmatprep.subr.bf16.mxu1 %v8419_v7  ;;  %v8484_v7 = vld [vmem:[#allocation7 + $0x1560] ss:$8 sps:$4 sm:$0xff]  }
 0x32a   :  { %5512 = vmatpush1.bf16.msra.mxu0 %v8414_v8 }
 0x32b   :  { %5553 = vmatpush1.bf16.msra.mxu1 %v8417_v9  ;;  %5513 = vmatprep.subr.bf16.mxu0 %v8422_v10  ;;  %v8489_v10 = vld [vmem:[#allocation7 + $0x1454] ss:$8 sps:$4 sm:$0xff]  }
 0x32c   :  { %5554 = vmatprep.subr.bf16.mxu1 %v8425_v19  ;;  %v8492_v19 = vld [vmem:[#allocation7 + $0x1554] ss:$8 sps:$4 sm:$0xff]  }
 0x32e   :  { %5514 = vmatpush1.bf16.msra.mxu0 %v8420_v21 }
 0x32f   :  { %5555 = vmatpush1.bf16.msra.mxu1 %v8423_v11  ;;  %5515 = vmatprep.subr.bf16.mxu0 %v8428_v41 }
 0x330   :  { %5556 = vmatprep.subr.bf16.mxu1 %v8431_v42 }
 0x332   :  { %5516 = vmatpush2.bf16.msra.mxu0 %v8426_v12  ;;  %v8487_v12 = vld [vmem:[#allocation7 + $0x1450] ss:$8 sps:$4 sm:$0xff]  }
 0x333   :  { %5557 = vmatpush2.bf16.msra.mxu1 %v8429_v23  ;;  %5517 = vmatprep.subr.bf16.mxu0 %v8434_v13  ;;  %v8490_v23 = vld [vmem:[#allocation7 + $0x1550] ss:$8 sps:$4 sm:$0xff]  }
 0x334   :  { %5558 = vmatprep.subr.bf16.mxu1 %v8437_v14 }
 0x336   :  { %5518 = vmatpush2.bf16.msra.mxu0 %v8432_v18  ;;  %v8495_v18 = vld [vmem:[#allocation7 + $0x1444] ss:$8 sps:$4 sm:$0xff]  }
 0x337   :  { %5559 = vmatpush2.bf16.msra.mxu1 %v8435_v54  ;;  %5519 = vmatprep.subr.bf16.mxu0 %v8440_v26  ;;  %v8498_v54 = vld [vmem:[#allocation7 + $0x1544] ss:$8 sps:$4 sm:$0xff]   ;;  %v8496_v26 = vld [vmem:[#allocation7 + $0x1540] ss:$8 sps:$4 sm:$0xff]  }
 0x338   :  { %5560 = vmatprep.subr.bf16.mxu1 %v8443_v27  ;;  %v8501_v27 = vld [vmem:[#allocation7 + $0x1434] ss:$8 sps:$4 sm:$0xff]  }
 0x33a   :  { %5520 = vmatpush2.bf16.msra.mxu0 %v8438_v53  ;;  %v8504_v53 = vld [vmem:[#allocation7 + $0x1534] ss:$8 sps:$4 sm:$0xff]  }
 0x33b   :  { %5561 = vmatpush2.bf16.msra.mxu1 %v8441_v28  ;;  %5521 = vmatprep.subr.bf16.mxu0 %v8446_v36  ;;  %v8499_v28 = vld [vmem:[#allocation7 + $0x1430] ss:$8 sps:$4 sm:$0xff]  }
 0x33c   :  { %5562 = vmatprep.subr.bf16.mxu1 %v8449_v29  ;;  %v8502_v36 = vld [vmem:[#allocation7 + $0x1530] ss:$8 sps:$4 sm:$0xff]   ;;  %v8507_v29 = vld [vmem:[#allocation7 + $0x1424] ss:$8 sps:$4 sm:$0xff]  }
 0x33e   :  { %5522 = vmatpush2.bf16.msra.mxu0 %v8444_v30  ;;  %v8510_v30 = vld [vmem:[#allocation7 + $0x1524] ss:$8 sps:$4 sm:$0xff]  }
 0x33f   :  { %5563 = vmatpush2.bf16.msra.mxu1 %v8447_v31  ;;  %5523 = vmatprep.subr.bf16.mxu0 %v8452_v32  ;;  %v8505_v31 = vld [vmem:[#allocation7 + $0x1420] ss:$8 sps:$4 sm:$0xff]  }
 0x340   :  { %5564 = vmatprep.subr.bf16.mxu1 %v8455_v33  ;;  %v8508_v32 = vld [vmem:[#allocation7 + $0x1520] ss:$8 sps:$4 sm:$0xff]   ;;  %v8513_v33 = vld [vmem:[#allocation7 + $0x1414] ss:$8 sps:$4 sm:$0xff]  }
 0x342   :  { %5524 = vmatpush2.bf16.msra.mxu0 %v8450_v34  ;;  %v8516_v34 = vld [vmem:[#allocation7 + $0x1514] ss:$8 sps:$4 sm:$0xff]  }
 0x343   :  { %5565 = vmatpush2.bf16.msra.mxu1 %v8453_v35  ;;  %5525 = vmatprep.subr.bf16.mxu0 %v8458_v37  ;;  %v8511_v35 = vld [vmem:[#allocation7 + $0x1410] ss:$8 sps:$4 sm:$0xff]  }
 0x344   :  { %5566 = vmatprep.subr.bf16.mxu1 %v8461_v38  ;;  %v8514_v37 = vld [vmem:[#allocation7 + $0x1510] ss:$8 sps:$4 sm:$0xff]   ;;  %v8519_v38 = vld [vmem:[#allocation7 + $0x1404] ss:$8 sps:$4 sm:$0xff]  }
 0x346   :  { %5526 = vmatpush2.bf16.msra.mxu0 %v8456_v16  ;;  %v8517_v16 = vld [vmem:[#allocation7 + $0x1400] ss:$8 sps:$4 sm:$0xff]  }
 0x347   :  { %5567 = vmatpush2.bf16.msra.mxu1 %v8459_v55  ;;  %5527 = vmatprep.subr.bf16.mxu0 %v8464_v43  ;;  %v8520_v55 = vld [vmem:[#allocation7 + $0x1500] ss:$8 sps:$4 sm:$0xff]   ;;  %v8525_v43 = vld [vmem:[#allocation7 + $0x14f4] ss:$8 sps:$4 sm:$0xff]  }
 0x348   :  { %5568 = vmatprep.subr.bf16.mxu1 %v8467_v45  ;;  %v8528_v45 = vld [vmem:[#allocation7 + $0x15b4] ss:$8 sps:$4 sm:$0xff]  }
 0x34a   :  { %5528 = vmatpush2.bf16.msra.mxu0 %v8462_v60  ;;  %v8526_v60 = vld [vmem:[#allocation7 + $0x15b0] ss:$8 sps:$4 sm:$0xff]  }
 0x34b   :  { %5569 = vmatpush2.bf16.msra.mxu1 %v8465_v46  ;;  %5529 = vmatprep.subr.bf16.mxu0 %v8470_v48  ;;  %v8531_v46 = vld [vmem:[#allocation7 + $0x14e4] ss:$8 sps:$4 sm:$0xff]  }
 0x34c   :  { %5570 = vmatprep.subr.bf16.mxu1 %v8473_v49  ;;  %v8534_v48 = vld [vmem:[#allocation7 + $0x15a4] ss:$8 sps:$4 sm:$0xff]   ;;  %v8529_v49 = vld [vmem:[#allocation7 + $0x14e0] ss:$8 sps:$4 sm:$0xff]  }
 0x34e   :  { %5530 = vmatpush2.bf16.msra.mxu0 %v8468_v52  ;;  %v8532_v52 = vld [vmem:[#allocation7 + $0x15a0] ss:$8 sps:$4 sm:$0xff]  }
 0x34f   :  { %5571 = vmatpush2.bf16.msra.mxu1 %v8471_v56  ;;  %5581 = vmatprep.subr.bf16.mxu0 %v8477_v20  ;;  %v8537_v56 = vld [vmem:[#allocation7 + $0x14d4] ss:$8 sps:$4 sm:$0xff]  }
 0x350   :  { %5622 = vmatprep.subr.bf16.mxu1 %v8480_v40  ;;  %v8540_v20 = vld [vmem:[#allocation7 + $0x1594] ss:$8 sps:$4 sm:$0xff]   ;;  %v8535_v40 = vld [vmem:[#allocation7 + $0x14d0] ss:$8 sps:$4 sm:$0xff]  }
 0x351   :  { %v5287_v5 = vpop.f32.mrf.mxu0  ;;  %5532 = vmatmul.mubr.bf16.vlgmr.msra.gmra.mxu0 %v561_v22  ;;  %v8546_v22 = vld [vmem:[#allocation7 + $0x1584] ss:$8 sps:$4 sm:$0xff]  }
 0x352   :  { %5573 = vmatmul.mubr.bf16.vlgmr.msra.gmra.mxu1 %v563_v50  ;;  %v5328_v6 = vpop.f32.mrf.mxu1  ;;  %v5288_v58 = vadd.f32 %v5287_v5, %v9299_v47  ;;  %5582 = vmatpush1.bf16.msra.mxu0 %v8475_v0  ;;  %v8541_v50 = vld [vmem:[#allocation7 + $0x14c0] ss:$8 sps:$4 sm:$0xff]   ;;  %v8553_v5 = vld [vmem:[#allocation7 + $0x14a4] ss:$8 sps:$4 sm:$0xff]  }
 0x353   :  { %5623 = vmatpush1.bf16.msra.mxu1 %v8478_v25  ;;  %v5289_v8 = vpop.f32.mrf.mxu0  ;;  %5583 = vmatprep.subr.bf16.mxu0 %v8483_v1  ;;  %v8544_v0 = vld [vmem:[#allocation7 + $0x1580] ss:$8 sps:$4 sm:$0xff]   ;;  %v8550_v25 = vld [vmem:[#allocation7 + $0x14b4] ss:$8 sps:$4 sm:$0xff]   ;;  %v567_v1 = vpack.c.bf16 %v9307_v24, %v9307_v24 }
 0x354   :  { %v5330_v9 = vpop.f32.mrf.mxu1  ;;  %5624 = vmatprep.subr.bf16.mxu1 %v8486_v2  ;;  %v5290_v21 = vadd.f32 %v5289_v8, %v9301_v57  ;;  %v9322_v11 = vadd.f32 %v5328_v6, %v5288_v58  ;;  %7288 = vmatprep.mubr.msk.bf16.mxu1 %vm4757_vm0, %v568_v3  ;;  %v8493_v57 = vld [vmem:[#allocation7 + $0x1440] ss:$8 sps:$4 sm:$0xff]   ;;  %v8548_v2 = vld [vmem:[#allocation7 + $0x14b0] ss:$8 sps:$4 sm:$0xff]   ;;  %v8919_v3 = vmov 0.0  }
 0x355   :  { %5613 = vmatprep.mubr.bf16.mxu0 %v566_v4  ;;  %v5291_v41 = vpop.f32.mrf.mxu0  ;;  %v5667_v4 = vld [vmem:[#allocation10 + $0x18] sm:$0x3f]  ;;  %v5666_v6 = vld [vmem:[#allocation10 + $0x10] sm:$0xff]  ;;  %v8551_v58 = vld [vmem:[#allocation7 + $0x14a0] ss:$8 sps:$4 sm:$0xff]  }
 0x356   :  { %v5332_v42 = vpop.f32.mrf.mxu1  ;;  %v9325_v47 = vadd.f32 %v5330_v9, %v5290_v21  ;;  %5584 = vmatpush1.bf16.msra.mxu0 %v8481_v17  ;;  %v5665_v17 = vld [vmem:[#allocation10 + $0x8] sm:$0xff]  ;;  %v8556_v24 = vld [vmem:[#allocation7 + $0x1494] ss:$8 sps:$4 sm:$0xff]   ;;  %v565_v21 = vpack.c.bf16 %v9310_v51, %v9310_v51  ;;  %v5860_v41 = vld [vmem:[%s9630_s10 + $0x8] sm:$0x3] }
 0x357   :  { %5625 = vmatpush1.bf16.msra.mxu1 %v8484_v7  ;;  %v5292_v13 = vpop.f32.mrf.mxu0  ;;  %5585 = vmatprep.subr.bf16.mxu0 %v8489_v10  ;;  %v5664_v7 = vld [vmem:[#allocation10] sm:$0xff]  ;;  %v8554_v8 = vld [vmem:[#allocation7 + $0x1490] ss:$8 sps:$4 sm:$0xff]   ;;  %v5663_v9 = vld [vmem:[#allocation3] sm:$0x3] }
 0x358   :  { %v5333_v14 = vpop.f32.mrf.mxu1  ;;  %5626 = vmatprep.subr.bf16.mxu1 %v8492_v19  ;;  %v8559_v10 = vld [vmem:[#allocation7 + $0x1484] ss:$8 sps:$4 sm:$0xff]   ;;  %v8557_v19 = vld [vmem:[#allocation7 + $0x1480] ss:$8 sps:$4 sm:$0xff]  }
 0x35a   :  { %5586 = vmatpush1.bf16.msra.mxu0 %v8487_v12 }
 0x35b   :  { %5627 = vmatpush1.bf16.msra.mxu1 %v8490_v23  ;;  %5587 = vmatprep.subr.bf16.mxu0 %v8495_v18  ;;  %v5859_v23 = vld [vmem:[%s9630_s10] sm:$0xff] }
 0x35c   :  { %5628 = vmatprep.subr.bf16.mxu1 %v8498_v54 }
 0x35e   :  { %5588 = vmatpush1.bf16.msra.mxu0 %v8493_v57 }
 0x35f   :  { %5629 = vmatpush1.bf16.msra.mxu1 %v8496_v26  ;;  %5589 = vmatprep.subr.bf16.mxu0 %v8501_v27 }
 0x360   :  { %5630 = vmatprep.subr.bf16.mxu1 %v8504_v53 }
 0x362   :  { %5590 = vmatpush1.bf16.msra.mxu0 %v8499_v28 }
 0x363   :  { %5631 = vmatpush1.bf16.msra.mxu1 %v8502_v36  ;;  %5591 = vmatprep.subr.bf16.mxu0 %v8507_v29  ;;  %v5769_v36 = vld [vmem:[#allocation13 + $0x78] sm:$0xff]  ;;  %v5768_v29 = vld [vmem:[#allocation13 + $0x70] sm:$0xff] }
 0x364   :  { %5632 = vmatprep.subr.bf16.mxu1 %v8510_v30  ;;  %v5767_v30 = vld [vmem:[#allocation13 + $0x68] sm:$0xff] }
 0x366   :  { %5592 = vmatpush1.bf16.msra.mxu0 %v8505_v31  ;;  %v5765_v31 = vld [vmem:[#allocation13 + $0x58] sm:$0xff] }
 0x367   :  { %5633 = vmatpush1.bf16.msra.mxu1 %v8508_v32  ;;  %5593 = vmatprep.subr.bf16.mxu0 %v8513_v33  ;;  %v5764_v32 = vld [vmem:[#allocation13 + $0x50] sm:$0xff]  ;;  %v5763_v33 = vld [vmem:[#allocation13 + $0x48] sm:$0xff] }
 0x368   :  { %5634 = vmatprep.subr.bf16.mxu1 %v8516_v34  ;;  %v5762_v34 = vld [vmem:[#allocation13 + $0x40] sm:$0xff] }
 0x36a   :  { %5594 = vmatpush1.bf16.msra.mxu0 %v8511_v35  ;;  %v5761_v35 = vld [vmem:[#allocation13 + $0x38] sm:$0xff] }
 0x36b   :  { %5635 = vmatpush1.bf16.msra.mxu1 %v8514_v37  ;;  %5595 = vmatprep.subr.bf16.mxu0 %v8519_v38  ;;  %v5760_v37 = vld [vmem:[#allocation13 + $0x30] sm:$0xff]  ;;  %v5759_v38 = vld [vmem:[#allocation13 + $0x28] sm:$0xff] }
 0x36c   :  { %5636 = vmatprep.subr.bf16.mxu1 %v8522_v39  ;;  %v5758_v39 = vld [vmem:[#allocation13 + $0x20] sm:$0xff] }
 0x36e   :  { %5596 = vmatpush1.bf16.msra.mxu0 %v8517_v16  ;;  %v5757_v16 = vld [vmem:[#allocation13 + $0x18] sm:$0xff] }
 0x36f   :  { %5637 = vmatpush1.bf16.msra.mxu1 %v8520_v55  ;;  %5597 = vmatprep.subr.bf16.mxu0 %v8525_v43  ;;  %v5756_v55 = vld [vmem:[#allocation13 + $0x10] sm:$0xff]  ;;  %v5755_v43 = vld [vmem:[#allocation13 + $0x8] sm:$0xff] }
 0x370   :  { %5646 = vmatprep.subr.bf16.mxu1 %v8528_v45  ;;  %v5754_v45 = vld [vmem:[#allocation13] sm:$0xff] }
 0x372   :  { %5598 = vmatpush2.bf16.msra.mxu0 %v8523_v59 }
 0x373   :  { %5647 = vmatpush2.bf16.msra.mxu1 %v8526_v60  ;;  %5599 = vmatprep.subr.bf16.mxu0 %v8531_v46 }
 0x374   :  { %5648 = vmatprep.subr.bf16.mxu1 %v8534_v48 }
 0x376   :  { %5600 = vmatpush2.bf16.msra.mxu0 %v8529_v49 }
 0x377   :  { %5649 = vmatpush2.bf16.msra.mxu1 %v8532_v52  ;;  %5601 = vmatprep.subr.bf16.mxu0 %v8537_v56 }
 0x378   :  { %5650 = vmatprep.subr.bf16.mxu1 %v8540_v20 }
 0x37a   :  { %5602 = vmatpush2.bf16.msra.mxu0 %v8535_v40 }
 0x37b   :  { %5651 = vmatpush2.bf16.msra.mxu1 %v8538_v15  ;;  %5603 = vmatprep.subr.bf16.mxu0 %v8543_v62 }
 0x37c   :  { %5652 = vmatprep.subr.bf16.mxu1 %v8546_v22 }
 0x37e   :  { %5604 = vmatpush2.bf16.msra.mxu0 %v8541_v50  ;;  %v5947_v50 = vld [vmem:[#allocation17] sm:$0xff] }
 0x37f   :  { %5653 = vmatpush2.bf16.msra.mxu1 %v8544_v0  ;;  %5605 = vmatprep.subr.bf16.mxu0 %v8550_v25  ;;  %v6061_v0 = vld [vmem:[%s9634_s14 + $0xf8] sm:$0xff] }
 0x380   :  { %7409 = vmatprep.subr.mxu1 %v8919_v3  ;;  %v6093_v25 = vld [vmem:[%s9635_s15 + $0xf8] sm:$0xff] }
 0x382   :  { %5655 = vmatmul.mubr.bf16.vlgmr.msra.gmra.mxu1 %v567_v1  ;;  %5606 = vmatpush2.bf16.msra.mxu0 %v8548_v2 }
 0x383   :  { %7410 = vmatpush3.msk.msra.mxu1 %vm5679_vm1, %v5667_v4  ;;  %5607 = vmatprep.subr.bf16.mxu0 %v8553_v5 }
 0x384   :  { %7411 = vmatprep.subr.mxu1 %v8919_v3  ;;  %7417 = vmatprep.mubr.msk.f32.mxu1 %vm8920_vm2, %v8919_v3 }
 0x385   :  { %7412 = vmatpush3.msra.mxu1 %v5666_v6 }
 0x386   :  { %7413 = vmatprep.subr.mxu1 %v8919_v3  ;;  %5608 = vmatpush2.bf16.msra.mxu0 %v8551_v58 }
 0x387   :  { %7414 = vmatpush3.msra.mxu1 %v5665_v17  ;;  %5609 = vmatprep.subr.bf16.mxu0 %v8556_v24 }
 0x388   :  { %7415 = vmatprep.subr.mxu1 %v8919_v3 }
 0x389   :  { %7416 = vmatpush3.msra.mxu1 %v5664_v7 }
 0x38a   :  { %7418 = vmatmul.mubr.msk.f32.vlgmr.msra.gmra.mxu1 %vm5675_vm3, %v5663_v9  ;;  %5610 = vmatpush2.bf16.msra.mxu0 %v8554_v8 }
 0x38b   :  { %5849 = vmatprep.mubr.f32.mxu1 %v8919_v3  ;;  %5611 = vmatprep.subr.bf16.mxu0 %v8559_v10 }
 0x38c   :  { %5801 = vmatprep.subr.mxu1 %v5769_v36 }
 0x38d   :  { %5802 = vmatpush1.msra.mxu1 %v5768_v29  ;;  %v6089_v29 = vld [vmem:[%s9635_s15 + $0xd8] sm:$0xff] }
 0x38e   :  { %5612 = vmatpush2.bf16.msra.mxu0 %v8557_v19  ;;  %5803 = vmatprep.subr.mxu1 %v5767_v30  ;;  %v6073_v30 = vld [vmem:[%s9635_s15 + $0x58] sm:$0xff] }
 0x38f   :  { %7420 = vmatprep.subr.mxu0 %v8919_v3 }
 0x391   :  { %v5369_v42 = vpop.f32.mrf.mxu0  ;;  %5614 = vmatmul.mubr.bf16.vlgmr.msra.gmra.mxu0 %v565_v21 }
 0x392   :  { %v5410_v12 = vpop.f32.mrf.mxu1  ;;  %v5370_v13 = vadd.f32 %v5369_v42, %v9322_v11  ;;  %7421 = vmatpush3.msk.msra.mxu0 %vm5872_vm4, %v5860_v41  ;;  %7424 = vmatprep.mubr.msk.f32.mxu0 %vm8920_vm2, %v8919_v3  ;;  %v5858_v11 = vld [vmem:[%s9660_s30] sm:$0x3] }
 0x393   :  { %v5371_v51 = vpop.f32.mrf.mxu0  ;;  %7422 = vmatprep.subr.mxu0 %v8919_v3 }
 0x394   :  { %v5412_v14 = vpop.f32.mrf.mxu1  ;;  %v5372_v18 = vadd.f32 %v5371_v51, %v9325_v47  ;;  %v5411_v54 = vadd.f32 %v5410_v12, %v5370_v13  ;;  %7423 = vmatpush3.msra.mxu0 %v5859_v23  ;;  %v5766_v47 = vld [vmem:[#allocation13 + $0x60] sm:$0xff]  ;;  %v7289_v12 = vld [vmem:[#allocation11] ss:$0 sm:$0xff] }
 0x395   :  { %v5373_v57 = vpop.f32.mrf.mxu0  ;;  %7427 = vmatprep.subr.mxu0 %v8919_v3  ;;  %5804 = vmatpush1.msra.mxu1 %v5766_v47 }
 0x396   :  { %v5414_v26 = vpop.f32.mrf.mxu1  ;;  %v5413_v27 = vadd.f32 %v5412_v14, %v5372_v18  ;;  %5805 = vmatprep.subr.mxu1 %v5765_v31  ;;  %v6077_v18 = vld [vmem:[%s9635_s15 + $0x78] sm:$0xff]  ;;  %v6076_v57 = vld [vmem:[%s9635_s15 + $0x70] sm:$0xff] }
 0x397   :  { %v5374_v53 = vpop.f32.mrf.mxu0  ;;  %5806 = vmatpush1.msra.mxu1 %v5764_v32  ;;  %v6091_v26 = vld [vmem:[%s9635_s15 + $0xe8] sm:$0xff]  ;;  %v6088_v31 = vld [vmem:[%s9635_s15 + $0xd0] sm:$0xff] }
 0x398   :  { %v5415_v28 = vpop.f32.mrf.mxu1  ;;  %5807 = vmatprep.subr.mxu1 %v5763_v33  ;;  %v6090_v53 = vld [vmem:[%s9635_s15 + $0xe0] sm:$0xff]  ;;  %v6072_v32 = vld [vmem:[%s9635_s15 + $0x50] sm:$0xff] }
 0x399   :  { %7425 = vmatmul.mubr.msk.f32.vlgmr.msra.gmra.mxu0 %vm5868_vm5, %v5858_v11  ;;  %5808 = vmatpush1.msra.mxu1 %v5762_v34  ;;  %v6074_v28 = vld [vmem:[%s9635_s15 + $0x60] sm:$0xff]  ;;  %v7293_v34 = vld [vmem:[#allocation16] ss:$0 sm:$0xff] }
 0x39a   :  { %7429 = vmatprep.mubr.msk.f32.mxu0 %vm8920_vm2, %v8919_v3  ;;  %5809 = vmatprep.subr.mxu1 %v5761_v35  ;;  %v6087_v35 = vld [vmem:[%s9635_s15 + $0xc8] sm:$0xff] }
 0x39b   :  { %5810 = vmatpush1.msra.mxu1 %v5760_v37  ;;  %7428 = vmatpush3.msra.mxu0 %v5947_v50  ;;  %v6071_v37 = vld [vmem:[%s9635_s15 + $0x48] sm:$0xff]  ;;  %v6058_v50 = vld [vmem:[%s9634_s14 + $0xe0] sm:$0xff] }
 0x39c   :  { %5811 = vmatprep.subr.mxu1 %v5759_v38  ;;  %7351 = vmatprep.subr.mxu0 %v6061_v0  ;;  %v6067_v0 = vld [vmem:[%s9635_s15 + $0x28] sm:$0xff] }
 0x39d   :  { %5812 = vmatpush1.msra.mxu1 %v5758_v39 }
 0x39e   :  { %5813 = vmatprep.subr.mxu1 %v5757_v16  ;;  %v6086_v16 = vld [vmem:[%s9635_s15 + $0xc0] sm:$0xff] }
 0x39f   :  { %5814 = vmatpush1.msra.mxu1 %v5756_v55 }
 0x3a0   :  { %5815 = vmatprep.subr.mxu1 %v5755_v43  ;;  %v6070_v43 = vld [vmem:[%s9635_s15 + $0x40] sm:$0xff] }
 0x3a1   :  { %5816 = vmatpush1.msra.mxu1 %v5754_v45 }
 0x3a2   :  { %7316 = vmatprep.subr.mxu1 %v6093_v25  ;;  %v6042_v25 = vld [vmem:[%s9634_s14 + $0x60] sm:$0xff] }
 0x3d1   :  { %v5451_v59 = vpop.f32.mrf.mxu0 }
 0x3d2   :  { %v5492_v60 = vpop.f32.mrf.mxu1  ;;  %v5452_v46 = vadd.f32 %v5451_v59, %v5411_v54  ;;  %v6092_v54 = vld [vmem:[%s9635_s15 + $0xf0] sm:$0xff]  ;;  %v6085_v59 = vld [vmem:[%s9635_s15 + $0xb8] sm:$0xff] }
 0x3d3   :  { %v5453_v48 = vpop.f32.mrf.mxu0 }
 0x3d4   :  { %v5494_v49 = vpop.f32.mrf.mxu1  ;;  %v5454_v52 = vadd.f32 %v5453_v48, %v5413_v27  ;;  %v5493_v56 = vadd.f32 %v5492_v60, %v5452_v46  ;;  %v6075_v27 = vld [vmem:[%s9635_s15 + $0x68] sm:$0xff]  ;;  %v6045_v46 = vld [vmem:[%s9634_s14 + $0x78] sm:$0xff] }
 0x3d5   :  { %v5455_v20 = vpop.f32.mrf.mxu0 }
 0x3d6   :  { %v5496_v40 = vpop.f32.mrf.mxu1  ;;  %v5495_v15 = vadd.f32 %v5494_v49, %v5454_v52  ;;  %v6060_v49 = vld [vmem:[%s9634_s14 + $0xf0] sm:$0xff]  ;;  %v6069_v52 = vld [vmem:[%s9635_s15 + $0x38] sm:$0xff] }
 0x3d7   :  { %v5456_v62 = vpop.f32.mrf.mxu0  ;;  %v6084_v20 = vld [vmem:[%s9635_s15 + $0xb0] sm:$0xff]  ;;  %v6059_v40 = vld [vmem:[%s9634_s14 + $0xe8] sm:$0xff] }
 0x3d8   :  { %v5497_v22 = vpop.f32.mrf.mxu1  ;;  %v6043_v62 = vld [vmem:[%s9634_s14 + $0x68] sm:$0xff] }
 0x3d9   :  { %v6083_v22 = vld [vmem:[%s9635_s15 + $0xa8] sm:$0xff] }
 0x411   :  { %v5533_v1 = vpop.f32.mrf.mxu0 }
 0x412   :  { %v5574_v2 = vpop.f32.mrf.mxu1  ;;  %v5534_v4 = vadd.f32 %v5533_v1, %v5493_v56  ;;  %v6044_v56 = vld [vmem:[%s9634_s14 + $0x70] sm:$0xff]  ;;  %v6082_v1 = vld [vmem:[%s9635_s15 + $0xa0] sm:$0xff] }
 0x413   :  { %v5535_v5 = vpop.f32.mrf.mxu0 }
 0x414   :  { %v5576_v6 = vpop.f32.mrf.mxu1  ;;  %v5536_v58 = vadd.f32 %v5535_v5, %v5495_v15  ;;  %v9363_v17 = vadd.f32 %v5574_v2, %v5534_v4  ;;  %v6068_v15 = vld [vmem:[%s9635_s15 + $0x30] sm:$0xff]  ;;  %v6057_v2 = vld [vmem:[%s9634_s14 + $0xd8] sm:$0xff]  ;;  %v6066_v4 = vld [vmem:[%s9635_s15 + $0x20] sm:$0xff] }
 0x415   :  { %v5537_v24 = vpop.f32.mrf.mxu0  ;;  %v6041_v5 = vld [vmem:[%s9634_s14 + $0x58] sm:$0xff] }
 0x416   :  { %v5578_v7 = vpop.f32.mrf.mxu1  ;;  %v5577_v8 = vadd.f32 %v5576_v6, %v5536_v58  ;;  %v6056_v6 = vld [vmem:[%s9634_s14 + $0xd0] sm:$0xff]  ;;  %v6055_v24 = vld [vmem:[%s9634_s14 + $0xc8] sm:$0xff] }
 0x417   :  { %v5538_v9 = vpop.f32.mrf.mxu0  ;;  %v6040_v58 = vld [vmem:[%s9634_s14 + $0x50] sm:$0xff]  ;;  %v6039_v7 = vld [vmem:[%s9634_s14 + $0x48] sm:$0xff] }
 0x418   :  { %v5579_v10 = vpop.f32.mrf.mxu1  ;;  %v6038_v9 = vld [vmem:[%s9634_s14 + $0x40] sm:$0xff] }
 0x419   :  { %v6053_v10 = vld [vmem:[%s9634_s14 + $0xb8] sm:$0xff] }
 0x442   :  { %v9365_v19 = vpop.f32.mrf.mxu1 }
 0x444   :  { %v5658_v21 = vpop.f32.mrf.mxu1 }
 0x446   :  { %v5660_v41 = vpop.f32.mrf.mxu1 }
 0x447   :  { %v6052_v41 = vld [vmem:[%s9634_s14 + $0xb0] sm:$0xff] }
 0x448   :  { %v5661_v42 = vpop.f32.mrf.mxu1 }
 0x449   :  { %v6036_v42 = vld [vmem:[%s9634_s14 + $0x30] sm:$0xff] }
 0x44a   :  { %v5749_v23 = vpop.f32.mrf.mxu1 }
 0x44b   :  { %v5750_v13 = vadd.f32 %v7289_v12, %v5749_v23  ;;  %v6051_v12 = vld [vmem:[%s9634_s14 + $0xa8] sm:$0xff] }
 0x44c   :  { %v7419_v51 = vpop.f32.mrf.mxu1  ;;  %v6035_v23 = vld [vmem:[%s9634_s14 + $0x28] sm:$0xff] }
 0x44d   :  { %v5753_v14 = vmax.f32 %v5750_v13, 0.0  ;;  %v6050_v13 = vld [vmem:[%s9634_s14 + $0xa0] sm:$0xff] }
 0x44e   :  { %v6034_v51 = vld [vmem:[%s9634_s14 + $0x20] sm:$0xff] }
 0x44f   :  { %7292 = vmatmul.mubr.msk.f32.vlgmr.msra.gmra.mxu1 %vm4757_vm0, %v5753_v14  ;;  %v6049_v14 = vld [vmem:[%s9634_s14 + $0x98] sm:$0xff] }
 0x450   :  { %7317 = vmatpush3.msra.mxu1 %v6077_v18  ;;  %v6033_v18 = vld [vmem:[%s9634_s14 + $0x18] sm:$0xff] }
 0x451   :  { %7318 = vmatprep.subr.mxu1 %v6092_v54  ;;  %v9383_v11 = vpop.f32.mrf.mxu0  ;;  %v6048_v54 = vld [vmem:[%s9634_s14 + $0x90] sm:$0xff] }
 0x452   :  { %7319 = vmatpush3.msra.mxu1 %v6076_v57  ;;  %v6032_v57 = vld [vmem:[%s9634_s14 + $0x10] sm:$0xff] }
 0x453   :  { %7320 = vmatprep.subr.mxu1 %v6091_v26  ;;  %v5617_v36 = vpop.f32.mrf.mxu0  ;;  %v6047_v26 = vld [vmem:[%s9634_s14 + $0x88] sm:$0xff] }
 0x454   :  { %7321 = vmatpush3.msra.mxu1 %v6075_v27  ;;  %v5618_v38 = vadd.f32 %v5617_v36, %v5577_v8  ;;  %v6054_v8 = vld [vmem:[%s9634_s14 + $0xc0] sm:$0xff]  ;;  %v5616_v27 = vadd.f32 %v9383_v11, %v9363_v17  ;;  %v6081_v17 = vld [vmem:[%s9635_s15 + $0x98] sm:$0xff] }
 0x455   :  { %7322 = vmatprep.subr.mxu1 %v6090_v53  ;;  %v5619_v47 = vpop.f32.mrf.mxu0  ;;  %v6031_v53 = vld [vmem:[%s9634_s14 + $0x8] sm:$0xff]  ;;  %v6030_v36 = vld [vmem:[%s9634_s14] sm:$0xff]  ;;  %v6065_v11 = vld [vmem:[%s9635_s15 + $0x18] sm:$0xff] }
 0x456   :  { %7323 = vmatpush3.msra.mxu1 %v6074_v28  ;;  %v5659_v48 = vadd.f32 %v5658_v21, %v5618_v38  ;;  %v6037_v21 = vld [vmem:[%s9634_s14 + $0x38] sm:$0xff]  ;;  %v6046_v28 = vld [vmem:[%s9634_s14 + $0x80] sm:$0xff]  ;;  %v6079_v47 = vld [vmem:[%s9635_s15 + $0x88] sm:$0xff] }
 0x457   :  { %7324 = vmatprep.subr.mxu1 %v6089_v29  ;;  %v5620_v33 = vpop.f32.mrf.mxu0  ;;  %v5657_v29 = vadd.f32 %v9365_v19, %v5616_v27  ;;  %v6080_v19 = vld [vmem:[%s9635_s15 + $0x90] sm:$0xff]  ;;  %v7302_v27 = vld [vmem:[#allocation26] ss:$0 sm:$0xff] }
 0x458   :  { %7325 = vmatpush3.msra.mxu1 %v6073_v30  ;;  %v6064_v30 = vld [vmem:[%s9635_s15 + $0x10] sm:$0xff]  ;;  %v6062_v33 = vld [vmem:[%s9635_s15] sm:$0xff] }
 0x459   :  { %7326 = vmatprep.subr.mxu1 %v6088_v31  ;;  %v5942_v39 = vpop.f32.mrf.mxu0  ;;  %v6063_v31 = vld [vmem:[%s9635_s15 + $0x8] sm:$0xff] }
 0x45a   :  { %7327 = vmatpush3.msra.mxu1 %v6072_v32  ;;  %v5943_v55 = vadd.f32 %v7293_v34, %v5942_v39  ;;  %v6078_v32 = vld [vmem:[%s9635_s15 + $0x80] sm:$0xff] }
 0x45b   :  { %7328 = vmatprep.subr.mxu1 %v6087_v35  ;;  %v7426_v45 = vpop.f32.mrf.mxu0  ;;  %v6312_v34 = vld [vmem:[#allocation22] sm:$0x3]  ;;  %v6311_v35 = vld [vmem:[#allocation5] sm:$0x3] }
 0x45c   :  { %7329 = vmatpush3.msra.mxu1 %v6071_v37  ;;  %v5946_v60 = vmax.f32 %v5943_v55, 0.0  ;;  %v5770_v37 = vld [vmem:[#allocation14] sm:$0x3] }
 0x45d   :  { %7330 = vmatprep.subr.mxu1 %v6086_v16  ;;  %v5775_v38 = vrot.slane %v5770_v37, %v1269_v61  ;;  %v5779_v39 = vrot.slane %v5770_v37, %v1273_v63 }
 0x45e   :  { %7331 = vmatpush3.msra.mxu1 %v6070_v43  ;;  %7430 = vmatmul.mubr.msk.f32.vlgmr.msra.gmra.mxu0 %vm5955_vm6, %v5946_v60 }
 0x45f   :  { %7332 = vmatprep.subr.mxu1 %v6085_v59  ;;  %7352 = vmatpush3.msra.mxu0 %v6045_v46  ;;  %v6235_v46 = vld [vmem:[#allocation20 + $0x8] sm:$0xff] }
 0x460   :  { %6228 = vmatprep.mubr.f32.mxu0 %v5659_v48  ;;  %7353 = vmatprep.subr.mxu0 %v6060_v49  ;;  %v6234_v48 = vld [vmem:[#allocation20] sm:$0xff] }
 0x461   :  { %7333 = vmatpush3.msra.mxu1 %v6069_v52  ;;  %7354 = vmatpush3.msra.mxu0 %v6044_v56 }
 0x462   :  { %7334 = vmatprep.subr.mxu1 %v6084_v20  ;;  %7355 = vmatprep.subr.mxu0 %v6059_v40 }
 0x463   :  { %7335 = vmatpush3.msra.mxu1 %v6068_v15  ;;  %7356 = vmatpush3.msra.mxu0 %v6043_v62  ;;  %v6407_v15 = vld [vmem:[#allocation25 + $0x38] sm:$0xff]  ;;  %v6406_v62 = vld [vmem:[#allocation25 + $0x30] sm:$0xff] }
 0x464   :  { %7336 = vmatprep.subr.mxu1 %v6083_v22  ;;  %7357 = vmatprep.subr.mxu0 %v6058_v50  ;;  %v6405_v22 = vld [vmem:[#allocation25 + $0x28] sm:$0xff]  ;;  %v6404_v50 = vld [vmem:[#allocation25 + $0x20] sm:$0xff] }
 0x465   :  { %7337 = vmatpush3.msra.mxu1 %v6067_v0  ;;  %7358 = vmatpush3.msra.mxu0 %v6042_v25  ;;  %v6403_v25 = vld [vmem:[#allocation25 + $0x18] sm:$0xff] }
 0x466   :  { %7338 = vmatprep.subr.mxu1 %v6082_v1  ;;  %7359 = vmatprep.subr.mxu0 %v6057_v2  ;;  %v6402_v2 = vld [vmem:[#allocation25 + $0x10] sm:$0xff] }
 0x467   :  { %7339 = vmatpush3.msra.mxu1 %v6066_v4  ;;  %7360 = vmatpush3.msra.mxu0 %v6041_v5  ;;  %v6401_v4 = vld [vmem:[#allocation25 + $0x8] sm:$0xff]  ;;  %v6400_v5 = vld [vmem:[#allocation25] sm:$0xff] }
 0x468   :  { %7361 = vmatprep.subr.mxu0 %v6056_v6  ;;  %7340 = vmatprep.subr.mxu1 %v6081_v17  ;;  %v6496_v6 = vld [vmem:[%s9641_s21 + $0x38] sm:$0xff]  ;;  %v7304_v17 = vld [vmem:[#allocation2] ss:$0 sm:$0xff] }
 0x469   :  { %7362 = vmatpush3.msra.mxu0 %v6040_v58  ;;  %7341 = vmatpush3.msra.mxu1 %v6065_v11  ;;  %v6495_v58 = vld [vmem:[%s9641_s21 + $0x30] sm:$0xff] }
 0x46a   :  { %7363 = vmatprep.subr.mxu0 %v6055_v24  ;;  %7342 = vmatprep.subr.mxu1 %v6080_v19  ;;  %v6494_v24 = vld [vmem:[%s9641_s21 + $0x28] sm:$0xff] }
 0x46b   :  { %7364 = vmatpush3.msra.mxu0 %v6039_v7  ;;  %7343 = vmatpush3.msra.mxu1 %v6064_v30  ;;  %v6493_v7 = vld [vmem:[%s9641_s21 + $0x20] sm:$0xff] }
 0x46c   :  { %7365 = vmatprep.subr.mxu0 %v6054_v8  ;;  %7344 = vmatprep.subr.mxu1 %v6079_v47  ;;  %v6492_v8 = vld [vmem:[%s9641_s21 + $0x18] sm:$0xff] }
 0x46d   :  { %7366 = vmatpush3.msra.mxu0 %v6038_v9  ;;  %7345 = vmatpush3.msra.mxu1 %v6063_v31 }
 0x46e   :  { %7367 = vmatprep.subr.mxu0 %v6053_v10  ;;  %7346 = vmatprep.subr.mxu1 %v6078_v32 }
 0x46f   :  { %7368 = vmatpush3.msra.mxu0 %v6037_v21  ;;  %7347 = vmatpush3.msra.mxu1 %v6062_v33 }
 0x470   :  { %7369 = vmatprep.subr.mxu0 %v6052_v41  ;;  %7432 = vmatprep.subr.mxu1 %v8919_v3 }
 0x471   :  { %7370 = vmatpush3.msra.mxu0 %v6036_v42 }
 0x472   :  { %7371 = vmatprep.subr.mxu0 %v6051_v12 }
 0x473   :  { %7372 = vmatpush3.msra.mxu0 %v6035_v23  ;;  %v7301_v23 = vld [vmem:[#allocation23] ss:$0 sm:$0xff] }
 0x474   :  { %7373 = vmatprep.subr.mxu0 %v6050_v13 }
 0x475   :  { %7374 = vmatpush3.msra.mxu0 %v6034_v51 }
 0x476   :  { %7375 = vmatprep.subr.mxu0 %v6049_v14 }
 0x477   :  { %7376 = vmatpush3.msra.mxu0 %v6033_v18 }
 0x478   :  { %7377 = vmatprep.subr.mxu0 %v6048_v54  ;;  %v6491_v54 = vld [vmem:[%s9641_s21 + $0x10] sm:$0xff] }
 0x479   :  { %7378 = vmatpush3.msra.mxu0 %v6032_v57  ;;  %v6490_v57 = vld [vmem:[%s9641_s21 + $0x8] sm:$0xff] }
 0x47a   :  { %7379 = vmatprep.subr.mxu0 %v6047_v26  ;;  %v6489_v26 = vld [vmem:[%s9641_s21] sm:$0xff] }
 0x47b   :  { %7380 = vmatpush3.msra.mxu0 %v6031_v53 }
 0x47c   :  { %7381 = vmatprep.subr.mxu0 %v6046_v28 }
 0x47d   :  { %7382 = vmatpush3.msra.mxu0 %v6030_v36 }
 0x47e   :  { %6229 = vmatmul.mubr.f32.vlgmr.msra.gmra.mxu0 %v5657_v29  ;;  %7439 = vmatprep.subr.mxu0 %v8919_v3 }
 0x47f   :  { %7441 = vmatprep.mubr.msk.f32.mxu0 %vm8920_vm2, %v8919_v3  ;;  %7440 = vmatpush3.msk.msra.mxu0 %vm5872_vm4, %v6312_v34 }
 0x480   :  { %7463 = vmatprep.subr.mxu0 %v8919_v3 }
 0x482   :  { %7442 = vmatmul.mubr.msk.f32.vlgmr.msra.gmra.mxu0 %vm6313_vm7, %v6311_v35 }
 0x483   :  { %7479 = vmatprep.mubr.msk.f32.mxu0 %vm8920_vm2, %v8919_v3  ;;  %7464 = vmatpush3.msra.mxu0 %v6496_v6 }
 0x484   :  { %7465 = vmatprep.subr.mxu0 %v8919_v3 }
 0x485   :  { %7466 = vmatpush3.msra.mxu0 %v6495_v58 }
 0x486   :  { %7467 = vmatprep.subr.mxu0 %v8919_v3 }
 0x487   :  { %7468 = vmatpush3.msra.mxu0 %v6494_v24 }
 0x488   :  { %7469 = vmatprep.subr.mxu0 %v8919_v3 }
 0x489   :  { %7470 = vmatpush3.msra.mxu0 %v6493_v7 }
 0x48a   :  { %7471 = vmatprep.subr.mxu0 %v8919_v3 }
 0x48b   :  { %7472 = vmatpush3.msra.mxu0 %v6492_v8 }
 0x48c   :  { %7473 = vmatprep.subr.mxu0 %v8919_v3 }
 0x48d   :  { %7474 = vmatpush3.msra.mxu0 %v6491_v54 }
 0x48e   :  { %7475 = vmatprep.subr.mxu0 %v8919_v3 }
 0x48f   :  { %7476 = vmatpush3.msra.mxu0 %v6490_v57 }
 0x490   :  { %7477 = vmatprep.subr.mxu0 %v8919_v3 }
 0x491   :  { %7478 = vmatpush3.msra.mxu0 %v6489_v26 }
 0x50f   :  { %v5851_v16 = vpop.f32.mrf.mxu1 }
 0x510   :  { %v5852_v55 = vadd.f32 %v5851_v16, %v5775_v38 }
 0x511   :  { %v5853_v43 = vpop.f32.mrf.mxu1 }
 0x512   :  { %v5854_v45 = vadd.f32 %v5853_v43, %v5779_v39  ;;  %v5856_v59 = vmax.f32 %v5852_v55, 0.0 }
 0x514   :  { %v5857_v60 = vmax.f32 %v5854_v45, 0.0 }
 0x516   :  { %6158 = vmatprep.mubr.f32.mxu1 %v5857_v60 }
 0x517   :  { %6159 = vmatmul.mubr.f32.vlgmr.msra.gmra.mxu1 %v5856_v59 }
 0x518   :  { %7433 = vmatpush3.msra.mxu1 %v6235_v46  ;;  %7436 = vmatprep.mubr.msk.f32.mxu1 %vm8920_vm2, %v8919_v3 }
 0x519   :  { %7434 = vmatprep.subr.mxu1 %v8919_v3 }
 0x51a   :  { %7435 = vmatpush3.msra.mxu1 %v6234_v48 }
 0x51b   :  { %7444 = vmatprep.subr.mxu1 %v8919_v3 }
 0x51e   :  { %v6025_v61 = vpop.f32.mrf.mxu0 }
 0x51f   :  { %v6026_v63 = vadd.f32 %v7296_v44, %v6025_v61 }
 0x520   :  { %v7431_v49 = vpop.f32.mrf.mxu0 }
 0x521   :  { %v6029_v52 = vmax.f32 %v6026_v63, 0.0 }
 0x523   :  { %7437 = vmatmul.mubr.msk.f32.vlgmr.msra.gmra.mxu1 %vm6236_vm8, %v6029_v52 }
 0x524   :  { %7460 = vmatprep.mubr.msk.f32.mxu1 %vm8920_vm2, %v8919_v3  ;;  %7445 = vmatpush3.msra.mxu1 %v6407_v15 }
 0x525   :  { %7446 = vmatprep.subr.mxu1 %v8919_v3 }
 0x526   :  { %7447 = vmatpush3.msra.mxu1 %v6406_v62 }
 0x527   :  { %7448 = vmatprep.subr.mxu1 %v8919_v3 }
 0x528   :  { %7449 = vmatpush3.msra.mxu1 %v6405_v22 }
 0x529   :  { %7450 = vmatprep.subr.mxu1 %v8919_v3 }
 0x52a   :  { %7451 = vmatpush3.msra.mxu1 %v6404_v50 }
 0x52b   :  { %7452 = vmatprep.subr.mxu1 %v8919_v3 }
 0x52c   :  { %7453 = vmatpush3.msra.mxu1 %v6403_v25 }
 0x52d   :  { %7454 = vmatprep.subr.mxu1 %v8919_v3 }
 0x52e   :  { %7455 = vmatpush3.msra.mxu1 %v6402_v2 }
 0x52f   :  { %7456 = vmatprep.subr.mxu1 %v8919_v3 }
 0x530   :  { %7457 = vmatpush3.msra.mxu1 %v6401_v4 }
 0x531   :  { %7458 = vmatprep.subr.mxu1 %v8919_v3 }
 0x532   :  { %7459 = vmatpush3.msra.mxu1 %v6400_v5 }
 0x53e   :  { %v7383_v56 = vpop.f32.mrf.mxu0 }
 0x540   :  { %v7384_v20 = vpop.f32.mrf.mxu0 }
 0x541   :  { %v7385_v40 = vadd.f32 %v7384_v20, %v7383_v56 }
 0x542   :  { %v6386_v0 = vpop.f32.mrf.mxu0 }
 0x544   :  { %v7443_v1 = vpop.f32.mrf.mxu0 }
 0x5d7   :  { %v7348_v9 = vpop.f32.mrf.mxu1 }
 0x5d9   :  { %v7349_v10 = vpop.f32.mrf.mxu1 }
 0x5da   :  { %v7350_v21 = vadd.f32 %v7349_v10, %v7348_v9 }
 0x5dc   :  { %v6231_v41 = vadd.f32 %v7385_v40, %v7350_v21 }
 0x5e3   :  { %v6306_v42 = vpop.f32.mrf.mxu1 }
 0x5e4   :  { %v6310_v12 = vadd.f32 %v6306_v42, %v6231_v41 }
 0x5e5   :  { %v7438_v13 = vpop.f32.mrf.mxu1 }
 0x5e6   :  { %v6390_v51 = vadd.f32 %v6386_v0, %v6310_v12 }
 0x5e8   :  { %v6398_v14 = vadd.f32 %v7301_v23, %v6390_v51 }
 0x5ea   :  { %v6399_v18 = vmax.f32 %v6398_v14, 0.0 }
 0x5ec   :  { %7461 = vmatmul.mubr.msk.f32.vlgmr.msra.gmra.mxu1 %vm4757_vm0, %v6399_v18 }
 0x6ac   :  { %v6484_v53 = vpop.f32.mrf.mxu1 }
 0x6ad   :  { %v6485_v28 = vadd.f32 %v7302_v27, %v6484_v53 }
 0x6ae   :  { %v7462_v36 = vpop.f32.mrf.mxu1 }
 0x6af   :  { %v6488_v29 = vmax.f32 %v6485_v28, 0.0 }
 0x6b1   :  { %7480 = vmatmul.mubr.msk.f32.vlgmr.msra.gmra.mxu0 %vm4757_vm0, %v6488_v29 }
 0x771   :  { %v6573_v11 = vpop.f32.mrf.mxu0 }
 0x772   :  { %v6574_v19 = vadd.f32 %v7304_v17, %v6573_v11 }
 0x773   :  { %v7481_v30 = vpop.f32.mrf.mxu0 }
 0x774   :  { %6578 = vst.msk [vmem:[%s9643_s23] sm:$0x3] %vm6577_vm9, %v6574_v19 }
 0x775   :  { %6583 = vsyncpa [#allocation4], 1 }
 0x776   :  { %6584 = vsyncpa [#allocation6], 1 }
 0x777   :  { %6585 = vsyncpa [#allocation9], 1 }
 0x778   :  { %6586 = vsyncpa [#allocation12], 1 }
 0x779   :  { %6587 = vsyncpa [#allocation15], 1 }
 0x77a   :  { %6588 = vsyncpa [#allocation18], 1 }
 0x77b   :  { %6589 = vsyncpa [#allocation21], 1 }
 0x77c   :  { %6590 = vsyncpa [#allocation24], 1 }
 0x77d   :  { %6591 = vsyncpa [#allocation27], 1 }

// kernel: critic_forward.2
= control target key start
LH: loop header
LB: loop body
LE: loop exit
PB: predicated region body
PF: predicated region fallthrough
CT: control target
= control target key end

     0   :  { %16 = vsyncpa [#allocation5], 0  ;;  %s13652_s0 = inlined_call_operand.vmem [shape: f32[2,360,1], index: 0, kind: input, shape index: {}]   ;;  %s13653_s1 = inlined_call_operand.hbm [shape: f32[3,1,8], index: 1, kind: input, shape index: {}]   ;;  %s13654_s2 = inlined_call_operand.hbm [shape: f32[1,8], index: 2, kind: input, shape index: {}]   ;;  %s13655_s3 = inlined_call_operand.hbm [shape: f32[3,8,16], index: 3, kind: input, shape index: {}]   ;;  %s13656_s4 = inlined_call_operand.hbm [shape: f32[1,16], index: 4, kind: input, shape index: {}]   ;;  %s13657_s5 = inlined_call_operand.hbm [shape: f32[3,16,32], index: 5, kind: input, shape index: {}]   ;;  %s13658_s6 = inlined_call_operand.hbm [shape: f32[1,32], index: 6, kind: input, shape index: {}]   ;;  %s13659_s7 = inlined_call_operand.hbm [shape: f32[3,32,32], index: 7, kind: input, shape index: {}]   ;;  %s13660_s8 = inlined_call_operand.hbm [shape: f32[1,32], index: 8, kind: input, shape index: {}]   ;;  %s13661_s9 = inlined_call_operand.hbm [shape: f32[3,32,64], index: 9, kind: input, shape index: {}]   ;;  %s13662_s10 = inlined_call_operand.hbm [shape: f32[1,64], index: 10, kind: input, shape index: {}]   ;;  %s13663_s11 = inlined_call_operand.vmem [shape: f32[2,87,64], index: 11, kind: output, shape index: {}]  }
   0x1   :  { %17 = vsyncpa [#allocation7], 0 }
   0x2   :  { %18 = vsyncpa [#allocation10], 0 }
   0x3   :  { %19 = vsyncpa [#allocation13], 0 }
   0x4   :  { %20 = vsyncpa [#allocation16], 0 }
   0x5   :  { %21 = vsyncpa [#allocation19], 0  ;;  %s9942_s17 = smov 0  }
   0x6 LB: > { %s9865_s18 = smov [#allocation6]   ;;  %s9948_s20 = sadd.s32 4294967295, %s9863_s17   ;;  %s9863_s17 = sphi %s9942_s17, %s27_s17  }
   0x7   : > { %s320_s19 = sshll.u32 %s9865_s18, 4  ;;  %p7269_p0 = scmp.ge.s32.totalorder %s9863_s17, 1  ;;  %s321_s19 = int_to_ptr.vmem [resolvable:$true] %s320_s19 }
   0x8   : > { %p294_p1 = scmp.lt.s32.totalorder %s9863_s17, 3  ;;  %p9521_p2 = scmp.eq.s32.totalorder %s9948_s20, 0 }
   0x9   : > { %s9866_s22 = smov [#allocation9]   ;;  %s9867_s24 = smov [#allocation12]  }
   0xa   : > { %p9953_p3 = pnand %p7269_p0, %p294_p1  ;;  %s344_s23 = sshll.u32 %s9866_s22, 4  ;;  %s9959_s23 = int_to_ptr.vmem [resolvable:$true] %s344_s23 }
   0xb   : > { %s368_s25 = sshll.u32 %s9867_s24, 4  ;;  %s9868_s27 = smov [#allocation15]   ;;  %s9967_s25 = int_to_ptr.vmem [resolvable:$true] %s368_s25 }
   0xc   : > { %p9490_p4 = pneg %p9953_p3  ;;  %s392_s28 = sshll.u32 %s9868_s27, 4  ;;  %s9969_s28 = int_to_ptr.vmem [resolvable:$true] %s392_s28 }
   0xd   : > { %s9584_s30 = scalar_lea.vmem %s321_s19, 16  ;;  %s9591_s12 = scalar_lea.vmem %s321_s19, 32 }
   0xe   : > { %p9963_p5 = pnand %p9521_p2, %p9490_p4  ;;  %p9585_p7 = scmp.ne.s32.totalorder %s321_s19, %s9584_s30 }
   0xf   : > { %p9592_p10 = scmp.lt.s32.totalorder %s321_s19, %s321_s19  ;;  %p9593_p11 = scmp.lt.s32.totalorder %s9591_s12, %s9584_s30 }
  0x10   : > { %p9973_p6 = pneg %p9963_p5 }
  0x11   : > { %p9594_p12 = por %p9593_p11, %p9592_p10 }
  0x12   : > { %p9587_p8 = pnand %p9585_p7, %p9973_p6 }
  0x14   : > { %p9588_p9 = pneg %p9587_p8 }
  0x16   : > { %p9595_p13 = pnand %p9594_p12, %p9588_p9 }
  0x18   : > { %9598 = shalt.err (!%p9595_p13)
}
  0x19   : > { %9496 = dma.hbm_to_vmem [thread:$0]  (!%p9963_p5), %s13654_s2, 16, %s321_s19, [#allocation7]  }
  0x1a   : > { %s9610_s15 = scalar_lea.vmem %s9959_s23, 16  ;;  %s9617_s16 = scalar_lea.vmem %s9959_s23, 32 }
  0x1b   : > { %p9611_p0 = scmp.ne.s32.totalorder %s9959_s23, %s9610_s15  ;;  %p9618_p7 = scmp.lt.s32.totalorder %s9959_s23, %s9959_s23 }
  0x1c   : > { %p9619_p8 = scmp.lt.s32.totalorder %s9617_s16, %s9610_s15 }
  0x1d   : > { %p9613_p1 = pnand %p9611_p0, %p9973_p6 }
  0x1e   : > { %p9620_p9 = por %p9619_p8, %p9618_p7 }
  0x1f   : > { %p9614_p4 = pneg %p9613_p1 }
  0x21   : > { %p9621_p10 = pnand %p9620_p9, %p9614_p4 }
  0x23   : > { %9624 = shalt.err (!%p9621_p10)
}
  0x24   : > { %9502 = dma.hbm_to_vmem [thread:$0]  (!%p9963_p5), %s13656_s4, 16, %s9959_s23, [#allocation10]  }
  0x25   : > { %s9636_s19 = scalar_lea.vmem %s9967_s25, 16  ;;  %s9643_s24 = scalar_lea.vmem %s9967_s25, 32 }
  0x26   : > { %p9637_p11 = scmp.ne.s32.totalorder %s9967_s25, %s9636_s19  ;;  %p9644_p0 = scmp.lt.s32.totalorder %s9967_s25, %s9967_s25 }
  0x27   : > { %p9645_p1 = scmp.lt.s32.totalorder %s9643_s24, %s9636_s19 }
  0x28   : > { %p9639_p12 = pnand %p9637_p11, %p9973_p6 }
  0x29   : > { %p9646_p4 = por %p9645_p1, %p9644_p0 }
  0x2a   : > { %p9640_p13 = pneg %p9639_p12 }
  0x2c   : > { %p9647_p7 = pnand %p9646_p4, %p9640_p13 }
  0x2e   : > { %9650 = shalt.err (!%p9647_p7)
}
  0x2f   : > { %9508 = dma.hbm_to_vmem [thread:$0]  (!%p9963_p5), %s13658_s6, 16, %s9967_s25, [#allocation13]  }
  0x30   : > { %s9662_s23 = scalar_lea.vmem %s9969_s28, 16  ;;  %s9669_s12 = scalar_lea.vmem %s9969_s28, 32 }
  0x31   : > { %p9663_p8 = scmp.ne.s32.totalorder %s9969_s28, %s9662_s23  ;;  %p9670_p11 = scmp.lt.s32.totalorder %s9969_s28, %s9969_s28 }
  0x32   : > { %p9671_p12 = scmp.lt.s32.totalorder %s9669_s12, %s9662_s23 }
  0x33   : > { %p9665_p9 = pnand %p9663_p8, %p9973_p6 }
  0x34   : > { %p9672_p13 = por %p9671_p12, %p9670_p11 }
  0x35   : > { %p9666_p10 = pneg %p9665_p9 }
  0x37   : > { %p9673_p0 = pnand %p9672_p13, %p9666_p10 }
  0x39   : > { %9676 = shalt.err (!%p9673_p0)
}
  0x3a   : > { %9514 = dma.hbm_to_vmem [thread:$0]  (!%p9963_p5), %s13660_s8, 16, %s9969_s28, [#allocation16]  }
  0x3b   : > { %s9869_s25 = smov [#allocation4]  }
  0x3c   : > { %s306_s15 = sshll.u32 %s9869_s25, 4  ;;  %s307_s15 = int_to_ptr.vmem [resolvable:$true] %s306_s15 }
  0x3d   : > { %s9688_s16 = scalar_lea.vmem %s307_s15, 48  ;;  %s9695_s18 = scalar_lea.vmem %s307_s15, 64 }
  0x3e   : > { %p9689_p1 = scmp.ne.s32.totalorder %s307_s15, %s9688_s16  ;;  %p9696_p8 = scmp.lt.s32.totalorder %s307_s15, %s307_s15 }
  0x3f   : > { %p9697_p9 = scmp.lt.s32.totalorder %s9695_s18, %s9688_s16 }
  0x40   : > { %p9691_p4 = pnand %p9689_p1, %p9973_p6 }
  0x41   : > { %p9698_p10 = por %p9697_p9, %p9696_p8 }
  0x42   : > { %p9692_p7 = pneg %p9691_p4 }
  0x44   : > { %p9699_p11 = pnand %p9698_p10, %p9692_p7 }
  0x46   : > { %9702 = shalt.err (!%p9699_p11)
}
  0x47   : > { %s9870_s22 = smov 16   ;;  %s9871_s19 = smov 1  }
  0x48   : > { %9493 = dma.hbm_to_vmem [thread:$0]  (!%p9963_p5), %s13653_s1, 48, %s307_s15, [#allocation5], %s9870_s22, %s9870_s22, %s9871_s19  }
  0x49   : > { %s9872_s27 = smov [#allocation8]  }
  0x4a   : > { %s330_s30 = sshll.u32 %s9872_s27, 4  ;;  %s331_s30 = int_to_ptr.vmem [resolvable:$true] %s330_s30 }
  0x4b   : > { %s9714_s23 = scalar_lea.vmem %s331_s30, 384  ;;  %p9722_p1 = scmp.lt.s32.totalorder %s331_s30, %s331_s30 }
  0x4c   : > { %p9715_p12 = scmp.ne.s32.totalorder %s331_s30, %s9714_s23  ;;  %p9723_p4 = scmp.lt.s32.totalorder %s9714_s23, %s9714_s23 }
  0x4e   : > { %p9717_p13 = pnand %p9715_p12, %p9973_p6  ;;  %p9724_p7 = por %p9723_p4, %p9722_p1 }
  0x50   : > { %p9718_p0 = pneg %p9717_p13 }
  0x52   : > { %p9725_p8 = pnand %p9724_p7, %p9718_p0 }
  0x54   : > { %9728 = shalt.err (!%p9725_p8)
}
  0x55   : > { %s9873_s12 = smov 128   ;;  %s9874_s13 = smov 8  }
  0x56   : > { %9499 = dma.hbm_to_vmem [thread:$0]  (!%p9963_p5), %s13655_s3, 384, %s331_s30, [#allocation7], %s9873_s12, %s9873_s12, %s9874_s13  }
  0x57   : > { %s9875_s15 = smov [#allocation11]   ;;  %s9876_s18 = smov [#allocation14]  }
  0x58   : > { %s354_s16 = sshll.u32 %s9875_s15, 4  ;;  %s378_s22 = sshll.u32 %s9876_s18, 4  ;;  %s355_s16 = int_to_ptr.vmem [resolvable:$true] %s354_s16  ;;  %s379_s22 = int_to_ptr.vmem [resolvable:$true] %s378_s22 }
  0x59   : > { %s9740_s19 = scalar_lea.vmem %s355_s16, 768  ;;  %p9748_p12 = scmp.lt.s32.totalorder %s355_s16, %s355_s16 }
  0x5a   : > { %p9741_p9 = scmp.ne.s32.totalorder %s355_s16, %s9740_s19  ;;  %p9749_p13 = scmp.lt.s32.totalorder %s9740_s19, %s9740_s19 }
  0x5c   : > { %p9743_p10 = pnand %p9741_p9, %p9973_p6  ;;  %p9750_p0 = por %p9749_p13, %p9748_p12 }
  0x5e   : > { %p9744_p11 = pneg %p9743_p10 }
  0x60   : > { %p9751_p1 = pnand %p9750_p0, %p9744_p11 }
  0x62   : > { %9754 = shalt.err (!%p9751_p1)
}
  0x63   : > { %9505 = dma.hbm_to_vmem [thread:$0]  (!%p9963_p5), %s13657_s5, 768, %s355_s16, [#allocation10], %s9873_s12, %s9873_s12, %s9874_s13  }
  0x64   : > { %s9766_s27 = scalar_lea.vmem %s379_s22, 1536  ;;  %p9774_p9 = scmp.lt.s32.totalorder %s379_s22, %s379_s22 }
  0x65   : > { %p9767_p4 = scmp.ne.s32.totalorder %s379_s22, %s9766_s27  ;;  %p9775_p10 = scmp.lt.s32.totalorder %s9766_s27, %s9766_s27 }
  0x67   : > { %p9769_p7 = pnand %p9767_p4, %p9973_p6  ;;  %p9776_p11 = por %p9775_p10, %p9774_p9 }
  0x69   : > { %p9770_p8 = pneg %p9769_p7 }
  0x6b   : > { %p9777_p12 = pnand %p9776_p11, %p9770_p8 }
  0x6d   : > { %9780 = shalt.err (!%p9777_p12)
}
  0x6e   : > { %9511 = dma.hbm_to_vmem [thread:$0]  (!%p9963_p5), %s13659_s7, 1536, %s379_s22, [#allocation13], %s9873_s12, %s9873_s12, %s9874_s13  }
  0x6f   : > { %s9877_s14 = smov [#allocation17]   ;;  %s9878_s15 = smov [#allocation18]  }
  0x70   : > { %s402_s25 = sshll.u32 %s9877_s14, 4  ;;  %s416_s16 = sshll.u32 %s9878_s15, 4  ;;  %s403_s25 = int_to_ptr.vmem [resolvable:$true] %s402_s25  ;;  %s417_s16 = int_to_ptr.vmem [resolvable:$true] %s416_s16 }
  0x71   : > { %s9792_s18 = scalar_lea.vmem %s403_s25, 1536  ;;  %p9800_p4 = scmp.lt.s32.totalorder %s403_s25, %s403_s25 }
  0x72   : > { %p9793_p13 = scmp.ne.s32.totalorder %s403_s25, %s9792_s18  ;;  %p9801_p7 = scmp.lt.s32.totalorder %s9792_s18, %s9792_s18 }
  0x74   : > { %p9795_p0 = pnand %p9793_p13, %p9973_p6  ;;  %p9802_p8 = por %p9801_p7, %p9800_p4 }
  0x76   : > { %p9796_p1 = pneg %p9795_p0 }
  0x78   : > { %p9803_p9 = pnand %p9802_p8, %p9796_p1 }
  0x7a   : > { %9806 = shalt.err (!%p9803_p9)
}
  0x7b   : > { %9517 = dma.hbm_to_vmem [thread:$0]  (!%p9963_p5), %s13661_s9, 1536, %s403_s25, [#allocation16], %s9873_s12, %s9873_s12, %s9874_s13  }
  0x7c   : > { %s9818_s28 = scalar_lea.vmem %s417_s16, 16  ;;  %s9825_s24 = scalar_lea.vmem %s417_s16, 32 }
  0x7d   : > { %p9819_p10 = scmp.ne.s32.totalorder %s417_s16, %s9818_s28  ;;  %p9826_p13 = scmp.lt.s32.totalorder %s417_s16, %s417_s16 }
  0x7e   : > { %p9827_p0 = scmp.lt.s32.totalorder %s9825_s24, %s9818_s28 }
  0x7f   : > { %p9821_p11 = pnand %p9819_p10, %p9973_p6 }
  0x80   : > { %p9828_p1 = por %p9827_p0, %p9826_p13 }
  0x81   : > { %p9822_p12 = pneg %p9821_p11 }
  0x83   : > { %p9829_p4 = pnand %p9828_p1, %p9822_p12 }
  0x85   : > { %9832 = shalt.err (!%p9829_p4)
}
  0x86   : > { %9520 = dma.hbm_to_vmem [thread:$0]  (!%p9963_p5), %s13662_s10, 16, %s417_s16, [#allocation19]  }
  0x87   : > { %437 = sbr.rel (%p9953_p3) target bundleno = 1812 (0x714), region = 64 }
  0x8c   : > { %9838 = dma.done.wait (%p9521_p2), [#allocation5], 48  }
  0x8d   : > { %9840 = vsyncadd (%p9521_p2), [#allocation5], 4294967248 }
  0x8e   : > { %9842 = dma.done.wait (%p9521_p2), [#allocation7], 400  }
  0x8f   : > { %9844 = vsyncadd (%p9521_p2), [#allocation7], 4294966896 }
  0x90   : > { %9846 = dma.done.wait (%p9521_p2), [#allocation10], 784  }
  0x91   : > { %9848 = vsyncadd (%p9521_p2), [#allocation10], 4294966512 }
  0x92   : > { %9850 = dma.done.wait (%p9521_p2), [#allocation13], 1552  }
  0x93   : > { %9852 = vsyncadd (%p9521_p2), [#allocation13], 4294965744 }
  0x94   : > { %9854 = dma.done.wait (%p9521_p2), [#allocation16], 1552  }
  0x95   : > { %9856 = vsyncadd (%p9521_p2), [#allocation16], 4294965744 }
  0x96   : > { %9858 = dma.done.wait (%p9521_p2), [#allocation19], 16  }
  0x97   : > { %9860 = vsyncadd (%p9521_p2), [#allocation19], 4294967280  ;;  %p513_p3 = scmp.lt.s32.totalorder %s9948_s20, 1  ;;  %v9879_v0 = vmov 0   ;;  %v13664_v15 = vmov 0.0   ;;  %v1500_v16 = vld [vmem:[#allocation8 + $0x8] sm:$0xff] }
  0x98   : > { %9567 = vset.pattern.permute.xlu1 %v9879_v0  ;;  %9566 = vset.pattern.permute.xlu0 %v9879_v0  ;;  %vm9881_vm0 = vmmov 0   ;;  %v10166_v50 = vld [vmem:[#allocation4 + $0x1] ss:$0 sm:$0xff]  ;;  %v10173_v60 = vld [vmem:[#allocation4 + $0x2] ss:$0 sm:$0xff]  ;;  %vm943_vm1 = vcmask 1046528  }
  0x99   : > { %s13809_s20 = smov (!%p513_p3, %s9948_s20), 1  ;;  %8273 = vmatprep.subr.mxu0 %v13664_v15  ;;  %9446 = vmatprep.subr.mxu1 %v13664_v15  ;;  %v10175_v61 = vld [vmem:[#allocation4] ss:$0 sm:$0xff]  ;;  %vm1221_vm2 = vcmask 1045504   ;;  %vm1635_vm3 = vcmask 64512   ;;  %vm3148_vm4 = vcmask 130048  }
  0x9a   : > { %s9448_s21 = smul.u32 360, %s13809_s20  ;;  %8274 = vmatpush3.msra.mxu0 %v1500_v16  ;;  %8275 = vmatprep.mubr.msk.f32.mxu0 %vm9881_vm0, %v13664_v15  ;;  %vm4666_vm5 = vcmask 261120   ;;  %vm7024_vm6 = vcmask 523264   ;;  %vm7046_vm7 = vcmask 521216   ;;  %vm7112_vm8 = vcmask 522240  }
  0x9b   : > { %8547 = vmatprep.subr.mxu0 %v13664_v15  ;;  %9447 = vmatpush3.msra.mxu1 %v1500_v16  ;;  %s9449_s13 = smul.u32 88, %s13809_s20 }
  0x9c   : > { %s10111_s12 = scalar_lea.vmem %s13652_s0, %s9448_s21  ;;  %8395 = vmatprep.mubr.msk.f32.mxu1 %vm9881_vm0, %v13664_v15  ;;  %8410 = vmatprep.subr.mxu1 %v13664_v15 }
  0x9d   : > { %v525_v1 = vld [vmem:[%s10111_s12 + $0x10] sm:$0xff]  ;;  %v523_v2 = vld [vmem:[%s10111_s12] sm:$0xff]  ;;  %v526_v3 = vld [vmem:[%s10111_s12 + $0x18] sm:$0xff]  ;;  %s13582_s14 = scalar_lea.vmem %s13663_s11, %s9449_s13 }
  0x9e   : > { %581 = vperm.xlu1 %9567, %v525_v1   ;;  %571 = vperm.xlu0 %9566, %v523_v2   ;;  %v524_v4 = vld [vmem:[%s10111_s12 + $0x8] sm:$0xff]  ;;  %v527_v6 = vld [vmem:[%s10111_s12 + $0x20] sm:$0xff]  ;;  %v530_v7 = vld [vmem:[%s10111_s12 + $0x38] sm:$0xff] }
  0x9f   : > { %v528_v5 = vld [vmem:[%s10111_s12 + $0x28] sm:$0xff]  ;;  %v529_v8 = vld [vmem:[%s10111_s12 + $0x30] sm:$0xff]  ;;  %v531_v10 = vld [vmem:[%s10111_s12 + $0x40] sm:$0xff] }
  0xa0   : > { %v532_v9 = vld [vmem:[%s10111_s12 + $0x48] sm:$0xff]  ;;  %v534_v11 = vld [vmem:[%s10111_s12 + $0x58] sm:$0xff]  ;;  %v533_v12 = vld [vmem:[%s10111_s12 + $0x50] sm:$0xff] }
  0xa1   : > { %v536_v13 = vld [vmem:[%s10111_s12 + $0x68] sm:$0xff]  ;;  %v535_v14 = vld [vmem:[%s10111_s12 + $0x60] sm:$0xff]  ;;  %v538_v17 = vld [vmem:[%s10111_s12 + $0x78] sm:$0xff] }
  0xa2   : > { %586 = vperm.xlu1 %9567, %v526_v3   ;;  %576 = vperm.xlu0 %9566, %v524_v4   ;;  %v537_v18 = vld [vmem:[%s10111_s12 + $0x70] sm:$0xff]  ;;  %v540_v19 = vld [vmem:[%s10111_s12 + $0x88] sm:$0xff]  ;;  %v539_v20 = vld [vmem:[%s10111_s12 + $0x80] sm:$0xff] }
  0xa3   : > { %v542_v21 = vld [vmem:[%s10111_s12 + $0x98] sm:$0xff]  ;;  %v541_v22 = vld [vmem:[%s10111_s12 + $0x90] sm:$0xff]  ;;  %v544_v23 = vld [vmem:[%s10111_s12 + $0xa8] sm:$0xff] }
  0xa4   : > { %v543_v24 = vld [vmem:[%s10111_s12 + $0xa0] sm:$0xff]  ;;  %v546_v25 = vld [vmem:[%s10111_s12 + $0xb8] sm:$0xff]  ;;  %v545_v26 = vld [vmem:[%s10111_s12 + $0xb0] sm:$0xff] }
  0xa5   : > { %v548_v27 = vld [vmem:[%s10111_s12 + $0xc8] sm:$0xff]  ;;  %v547_v28 = vld [vmem:[%s10111_s12 + $0xc0] sm:$0xff]  ;;  %v550_v29 = vld [vmem:[%s10111_s12 + $0xd8] sm:$0xff] }
  0xa6   : > { %596 = vperm.xlu1 %9567, %v528_v5   ;;  %591 = vperm.xlu0 %9566, %v527_v6   ;;  %v549_v30 = vld [vmem:[%s10111_s12 + $0xd0] sm:$0xff]  ;;  %v552_v31 = vld [vmem:[%s10111_s12 + $0xe8] sm:$0xff]  ;;  %v551_v32 = vld [vmem:[%s10111_s12 + $0xe0] sm:$0xff] }
  0xa7   : > { %v554_v33 = vld [vmem:[%s10111_s12 + $0xf8] sm:$0xff]  ;;  %v553_v34 = vld [vmem:[%s10111_s12 + $0xf0] sm:$0xff]  ;;  %v556_v35 = vld [vmem:[%s10111_s12 + $0x108] sm:$0xff] }
  0xa8   : > { %v555_v36 = vld [vmem:[%s10111_s12 + $0x100] sm:$0xff]  ;;  %v558_v37 = vld [vmem:[%s10111_s12 + $0x118] sm:$0xff]  ;;  %v557_v38 = vld [vmem:[%s10111_s12 + $0x110] sm:$0xff] }
  0xa9   : > { %v563_v39 = vld [vmem:[%s10111_s12 + $0x140] sm:$0xff]  ;;  %v565_v41 = vld [vmem:[%s10111_s12 + $0x150] sm:$0xff]  ;;  %v564_v42 = vld [vmem:[%s10111_s12 + $0x148] sm:$0xff] }
  0xaa   : > { %606 = vperm.xlu1 %9567, %v530_v7   ;;  %601 = vperm.xlu0 %9566, %v529_v8   ;;  %v559_v40 = vld [vmem:[%s10111_s12 + $0x120] sm:$0xff]  ;;  %v566_v43 = vld [vmem:[%s10111_s12 + $0x158] sm:$0xff]  ;;  %v560_v44 = vld [vmem:[%s10111_s12 + $0x128] sm:$0xff] }
  0xab   : > { %v567_v45 = vld [vmem:[%s10111_s12 + $0x160] sm:$0xff]  ;;  %v561_v46 = vld [vmem:[%s10111_s12 + $0x130] sm:$0xff]  ;;  %v562_v47 = vld [vmem:[%s10111_s12 + $0x138] sm:$0xff] }
  0xae   : > { %616 = vperm.xlu1 %9567, %v532_v9   ;;  %611 = vperm.xlu0 %9566, %v531_v10  }
  0xb2   : > { %626 = vperm.xlu1 %9567, %v534_v11   ;;  %621 = vperm.xlu0 %9566, %v533_v12  }
  0xb6   : > { %636 = vperm.xlu1 %9567, %v536_v13   ;;  %631 = vperm.xlu0 %9566, %v535_v14  }
  0xba   : > { %646 = vperm.xlu1 %9567, %v538_v17   ;;  %641 = vperm.xlu0 %9566, %v537_v18  }
  0xbe   : > { %656 = vperm.xlu1 %9567, %v540_v19   ;;  %651 = vperm.xlu0 %9566, %v539_v20  }
  0xc2   : > { %666 = vperm.xlu1 %9567, %v542_v21   ;;  %661 = vperm.xlu0 %9566, %v541_v22  }
  0xc6   : > { %676 = vperm.xlu1 %9567, %v544_v23   ;;  %671 = vperm.xlu0 %9566, %v543_v24  }
  0xca   : > { %686 = vperm.xlu1 %9567, %v546_v25   ;;  %681 = vperm.xlu0 %9566, %v545_v26  }
  0xce   : > { %696 = vperm.xlu1 %9567, %v548_v27   ;;  %691 = vperm.xlu0 %9566, %v547_v28   ;;  %v10199_v27 = vld [vmem:[#allocation6] ss:$0 sm:$0xff] }
  0xd2   : > { %706 = vperm.xlu1 %9567, %v550_v29   ;;  %701 = vperm.xlu0 %9566, %v549_v30  }
  0xd6   : > { %716 = vperm.xlu1 %9567, %v552_v31   ;;  %711 = vperm.xlu0 %9566, %v551_v32  }
  0xda   : > { %726 = vperm.xlu1 %9567, %v554_v33   ;;  %721 = vperm.xlu0 %9566, %v553_v34  }
  0xde   : > { %736 = vperm.xlu1 %9567, %v556_v35   ;;  %731 = vperm.xlu0 %9566, %v555_v36  }
  0xe2   : > { %746 = vperm.xlu1 %9567, %v558_v37   ;;  %741 = vperm.xlu0 %9566, %v557_v38  }
  0xe6   : > { %771 = vperm.xlu1 %9567, %v563_v39   ;;  %751 = vperm.xlu0 %9566, %v559_v40  }
  0xea   : > { %781 = vperm.xlu1 %9567, %v565_v41   ;;  %776 = vperm.xlu0 %9566, %v564_v42  }
  0xee   : > { %786 = vperm.xlu1 %9567, %v566_v43   ;;  %756 = vperm.xlu0 %9566, %v560_v44  }
  0xf2   : > { %791 = vperm.xlu1 %9567, %v567_v45   ;;  %761 = vperm.xlu0 %9566, %v561_v46  }
  0xf6   : > { %766 = vperm.xlu0 %9566, %v562_v47  }
 0x119   : > { %v582_v48 = vpop.permute.xlu1 %581  ;;  %v572_v49 = vpop.permute.xlu0 %571 }
 0x11a   : > { %v855_v51 = vmul.f32 %v10166_v50, %v582_v48  ;;  %v853_v54 = vmul.f32 %v10166_v50, %v572_v49  ;;  %v1133_v62 = vmul.f32 %v10173_v60, %v582_v48  ;;  %v1131_v2 = vmul.f32 %v10173_v60, %v572_v49 }
 0x11b   : > { %v800_v6 = vmul.f32 %v10175_v61, %v572_v49  ;;  %v802_v22 = vmul.f32 %v10175_v61, %v582_v48 }
 0x11c   : > { %v947_v56 = vrot.slane %v855_v51, 1  ;;  %v944_v63 = vrot.slane %v853_v54, 1  ;;  %v1225_v9 = vrot.slane %v1133_v62, 2  ;;  %v1222_v16 = vrot.slane %v1131_v2, 2 }
 0x11d   : > { %v587_v52 = vpop.permute.xlu1 %586  ;;  %v577_v53 = vpop.permute.xlu0 %576 }
 0x11e   : > { %v854_v55 = vmul.f32 %v10166_v50, %v577_v53  ;;  %v856_v0 = vmul.f32 %v10166_v50, %v587_v52  ;;  %v1132_v1 = vmul.f32 %v10173_v60, %v577_v53  ;;  %v801_v7 = vmul.f32 %v10175_v61, %v577_v53 }
 0x11f   : > { %v1134_v17 = vmul.f32 %v10173_v60, %v587_v52  ;;  %v803_v36 = vmul.f32 %v10175_v61, %v587_v52 }
 0x120   : > { %v945_v57 = vrot.slane %v854_v55, 1  ;;  %v949_v10 = vrot.slane %v856_v0, 1  ;;  %v1223_v11 = vrot.slane %v1132_v1, 2 }
 0x121   : > { %v10171_v58 = vpop.permute.xlu1 %596  ;;  %v592_v59 = vpop.permute.xlu0 %591  ;;  %v1227_v28 = vrot.slane %v1134_v17, 2 }
 0x122   : > { %v946_v3 = vsel %vm943_vm1, %v944_v63, %v945_v57  ;;  %v948_v4 = vsel %vm943_vm1, %v945_v57, %v947_v56  ;;  %v857_v14 = vmul.f32 %v10166_v50, %v592_v59  ;;  %v950_v19 = vsel %vm943_vm1, %v947_v56, %v949_v10 }
 0x123   : > { %v1078_v12 = vadd.f32 %v946_v3, %v800_v6  ;;  %v1079_v13 = vadd.f32 %v948_v4, %v801_v7  ;;  %v1224_v20 = vsel %vm1221_vm2, %v1222_v16, %v1223_v11  ;;  %v1226_v21 = vsel %vm1221_vm2, %v1223_v11, %v1225_v9  ;;  %v2397_v4 = vld [vmem:[#allocation8 + $0x10] sm:$0xff] }
 0x124   : > { %v951_v25 = vrot.slane %v857_v14, 1  ;;  %v1080_v29 = vadd.f32 %v950_v19, %v802_v22  ;;  %v858_v30 = vmul.f32 %v10166_v50, %v10171_v58  ;;  %v1135_v31 = vmul.f32 %v10173_v60, %v592_v59 }
 0x125   : > { %v10183_v5 = vpop.permute.xlu1 %606  ;;  %v10187_v8 = vpop.permute.xlu0 %601  ;;  %v1356_v23 = vadd.f32 %v1224_v20, %v1078_v12  ;;  %v1357_v24 = vadd.f32 %v1226_v21, %v1079_v13  ;;  %v1228_v37 = vsel %vm1221_vm2, %v1225_v9, %v1227_v28  ;;  %v1136_v45 = vmul.f32 %v10173_v60, %v10171_v58 }
 0x126   : > { %v952_v35 = vsel %vm943_vm1, %v949_v10, %v951_v25  ;;  %v1358_v38 = vadd.f32 %v1228_v37, %v1080_v29  ;;  %v953_v39 = vrot.slane %v858_v30, 1  ;;  %v1229_v40 = vrot.slane %v1135_v31, 2 }
 0x127   : > { %v1408_v33 = vadd.f32 %v10199_v27, %v1356_v23  ;;  %v1409_v34 = vadd.f32 %v10199_v27, %v1357_v24  ;;  %v1081_v42 = vadd.f32 %v952_v35, %v803_v36  ;;  %v859_v46 = vmul.f32 %v10166_v50, %v10187_v8 }
 0x128   : > { %v1410_v48 = vadd.f32 %v10199_v27, %v1358_v38  ;;  %v954_v49 = vsel %vm943_vm1, %v951_v25, %v953_v39  ;;  %v1230_v51 = vsel %vm1221_vm2, %v1227_v28, %v1229_v40  ;;  %v804_v52 = vmul.f32 %v10175_v61, %v592_v59 }
 0x129   : > { %v10191_v18 = vpop.permute.xlu1 %616  ;;  %v10197_v26 = vpop.permute.xlu0 %611  ;;  %v10213_v43 = vmax.f32 %v1408_v33, 0.0  ;;  %v10215_v44 = vmax.f32 %v1409_v34, 0.0  ;;  %v1359_v53 = vadd.f32 %v1230_v51, %v1081_v42  ;;  %v1231_v54 = vrot.slane %v1136_v45, 2 }
 0x12a   : > { %v955_v55 = vrot.slane %v859_v46, 1  ;;  %v1082_v63 = vadd.f32 %v954_v49, %v804_v52  ;;  %v10231_v0 = vmax.f32 %v1410_v48, 0.0  ;;  %v860_v1 = vmul.f32 %v10166_v50, %v10183_v5 }
 0x12b   : > { %v1546_v56 = vrot.slane %v10213_v43, 1  ;;  %v1547_v57 = vrot.slane %v10215_v44, 1  ;;  %v1137_v2 = vmul.f32 %v10173_v60, %v10187_v8  ;;  %v1411_v3 = vadd.f32 %v10199_v27, %v1359_v53 }
 0x12c   : > { %v1232_v6 = vsel %vm1221_vm2, %v1229_v40, %v1231_v54  ;;  %v956_v7 = vsel %vm943_vm1, %v953_v39, %v955_v55  ;;  %v805_v10 = vmul.f32 %v10175_v61, %v10171_v58  ;;  %v957_v12 = vrot.slane %v860_v1, 1 }
 0x12d   : > { %v10204_v32 = vpop.permute.xlu1 %626  ;;  %v10211_v41 = vpop.permute.xlu0 %621  ;;  %v1548_v9 = vsel %vm943_vm1, %v1546_v56, %v1547_v57  ;;  %v1360_v11 = vadd.f32 %v1232_v6, %v1082_v63  ;;  %v1233_v13 = vrot.slane %v1137_v2, 2  ;;  %v1549_v14 = vrot.slane %v10231_v0, 1 }
 0x12e   : > { %8276 = vmatmul.mubr.msk.f32.vlgmr.msra.gmra.mxu0 %vm1635_vm3, %v1548_v9  ;;  %v10251_v17 = vmax.f32 %v1411_v3, 0.0  ;;  %v1083_v19 = vadd.f32 %v956_v7, %v805_v10  ;;  %v861_v20 = vmul.f32 %v10166_v50, %v10197_v26  ;;  %v1138_v58 = vmul.f32 %v10173_v60, %v10183_v5 }
 0x12f   : > { %8548 = vmatpush3.msra.mxu0 %v2397_v4  ;;  %8278 = vmatprep.mubr.msk.f32.mxu0 %vm9881_vm0, %v13664_v15  ;;  %v862_v21 = vmul.f32 %v10166_v50, %v10191_v18  ;;  %v1550_v22 = vsel %vm943_vm1, %v1547_v57, %v1549_v14  ;;  %v1412_v24 = vadd.f32 %v10199_v27, %v1360_v11 }
 0x130   : > { %8823 = vmatprep.subr.mxu0 %v13664_v15  ;;  %v958_v25 = vsel %vm943_vm1, %v955_v55, %v957_v12  ;;  %v1234_v28 = vsel %vm1221_vm2, %v1231_v54, %v1233_v13  ;;  %v806_v29 = vmul.f32 %v10175_v61, %v10187_v8  ;;  %v959_v31 = vrot.slane %v861_v20, 1 }
 0x131   : > { %v10221_v47 = vpop.permute.xlu1 %636  ;;  %v10229_v62 = vpop.permute.xlu0 %631  ;;  %v1361_v30 = vadd.f32 %v1234_v28, %v1083_v19  ;;  %v1551_v33 = vrot.slane %v10251_v17, 1  ;;  %v1235_v34 = vrot.slane %v1138_v58, 2  ;;  %v961_v35 = vrot.slane %v862_v21, 1 }
 0x132   : > { %8279 = vmatmul.mubr.msk.f32.gmra.mxu0 %vm1635_vm3, %v1550_v22  ;;  %v10274_v37 = vmax.f32 %v1412_v24, 0.0  ;;  %v1084_v38 = vadd.f32 %v958_v25, %v806_v29  ;;  %v1139_v39 = vmul.f32 %v10173_v60, %v10197_v26  ;;  %v1140_v45 = vmul.f32 %v10173_v60, %v10191_v18 }
 0x133   : > { %8281 = vmatprep.mubr.msk.f32.mxu0 %vm9881_vm0, %v13664_v15  ;;  %v1552_v40 = vsel %vm943_vm1, %v1549_v14, %v1551_v33  ;;  %v1413_v8 = vadd.f32 %v10199_v27, %v1361_v30  ;;  %v960_v46 = vsel %vm943_vm1, %v957_v12, %v959_v31  ;;  %v807_v48 = vmul.f32 %v10175_v61, %v10183_v5 }
 0x134   : > { %v1236_v49 = vsel %vm1221_vm2, %v1233_v13, %v1235_v34  ;;  %v863_v51 = vmul.f32 %v10166_v50, %v10211_v41  ;;  %v962_v53 = vsel %vm943_vm1, %v959_v31, %v961_v35  ;;  %v1237_v54 = vrot.slane %v1139_v39, 2 }
 0x135   : > { %v10237_v59 = vpop.permute.xlu1 %646  ;;  %v10249_v16 = vpop.permute.xlu0 %641  ;;  %v1362_v52 = vadd.f32 %v1236_v49, %v1084_v38  ;;  %v1553_v55 = vrot.slane %v10274_v37, 1  ;;  %v808_v56 = vmul.f32 %v10175_v61, %v10197_v26  ;;  %v1085_v57 = vadd.f32 %v960_v46, %v807_v48 }
 0x136   : > { %8282 = vmatmul.mubr.msk.f32.gmra.mxu0 %vm1635_vm3, %v1552_v40  ;;  %v10299_v1 = vmax.f32 %v1413_v8, 0.0  ;;  %v1239_v5 = vrot.slane %v1140_v45, 2  ;;  %v864_v2 = vmul.f32 %v10166_v50, %v10204_v32  ;;  %v10306_v6 = vmul.f32 %v10173_v60, %v10204_v32 }
 0x137   : > { %8284 = vmatprep.mubr.msk.f32.mxu0 %vm9881_vm0, %v13664_v15  ;;  %v1554_v3 = vsel %vm943_vm1, %v1551_v33, %v1553_v55  ;;  %v1086_v4 = vadd.f32 %v962_v53, %v808_v56  ;;  %v963_v7 = vrot.slane %v863_v51, 1  ;;  %v1141_v26 = vmul.f32 %v10173_v60, %v10211_v41 }
 0x138   : > { %13697 = vst [vmem:[#allocation26_spill] sm:$0xff] %v10299_v1  ;;  %v1414_v10 = vadd.f32 %v10199_v27, %v1362_v52  ;;  %v1238_v11 = vsel %vm1221_vm2, %v1235_v34, %v1237_v54  ;;  %v809_v13 = vmul.f32 %v10175_v61, %v10191_v18  ;;  %v1240_v14 = vsel %vm1221_vm2, %v1237_v54, %v1239_v5 }
 0x139   : > { %v10261_v23 = vpop.permute.xlu1 %656  ;;  %v10272_v36 = vpop.permute.xlu0 %651  ;;  %v1363_v12 = vadd.f32 %v1238_v11, %v1085_v57  ;;  %v965_v19 = vrot.slane %v864_v2, 1  ;;  %v1555_v20 = vrot.slane %v10299_v1, 1  ;;  %v1364_v58 = vadd.f32 %v1240_v14, %v1086_v4 }
 0x13a   : > { %8285 = vmatmul.mubr.msk.f32.gmra.mxu0 %vm1635_vm3, %v1554_v3  ;;  %v1243_v21 = vrot.slane %v10306_v6, 2  ;;  %v964_v22 = vsel %vm943_vm1, %v961_v35, %v963_v7  ;;  %v1241_v24 = vrot.slane %v1141_v26, 2  ;;  %v10325_v28 = vmax.f32 %v1414_v10, 0.0 }
 0x13b   : > { %8287 = vmatprep.mubr.msk.f32.mxu0 %vm9881_vm0, %v13664_v15  ;;  %v866_v29 = vmul.f32 %v10166_v50, %v10221_v47  ;;  %v865_v18 = vmul.f32 %v10166_v50, %v10229_v62  ;;  %v1556_v30 = vsel %vm943_vm1, %v1553_v55, %v1555_v20  ;;  %v1415_v31 = vadd.f32 %v10199_v27, %v1363_v12 }
 0x13c   : > { %13698 = vst [vmem:[#allocation27_spill] sm:$0xff] %v10325_v28  ;;  %v811_v33 = vmul.f32 %v10175_v61, %v10204_v32  ;;  %v966_v35 = vsel %vm943_vm1, %v963_v7, %v965_v19  ;;  %v1087_v38 = vadd.f32 %v964_v22, %v809_v13  ;;  %v10341_v39 = vmul.f32 %v10166_v50, %v10237_v59 }
 0x13d   : > { %v10280_v42 = vpop.permute.xlu1 %666  ;;  %v10297_v63 = vpop.permute.xlu0 %661  ;;  %v867_v40 = vmul.f32 %v10166_v50, %v10249_v16  ;;  %v1416_v8 = vadd.f32 %v10199_v27, %v1364_v58  ;;  %v810_v32 = vmul.f32 %v10175_v61, %v10211_v41  ;;  %v1242_v45 = vsel %vm1221_vm2, %v1239_v5, %v1241_v24 }
 0x13e   : > { %8288 = vmatmul.mubr.msk.f32.gmra.mxu0 %vm1635_vm3, %v1556_v30  ;;  %v813_v46 = vmul.f32 %v10175_v61, %v10221_v47  ;;  %v1244_v48 = vsel %vm1221_vm2, %v1241_v24, %v1243_v21  ;;  %v969_v49 = vrot.slane %v866_v29, 1  ;;  %v967_v51 = vrot.slane %v865_v18, 1 }
 0x13f   : > { %8290 = vmatprep.mubr.msk.f32.mxu0 %vm9881_vm0, %v13664_v15  ;;  %v1557_v52 = vrot.slane %v10325_v28, 1  ;;  %v10357_v53 = vmax.f32 %v1415_v31, 0.0  ;;  %v1088_v54 = vadd.f32 %v966_v35, %v810_v32  ;;  %v1144_v55 = vmul.f32 %v10173_v60, %v10221_v47 }
 0x140   : > { %v1143_v41 = vmul.f32 %v10173_v60, %v10229_v62  ;;  %v1365_v57 = vadd.f32 %v1242_v45, %v1087_v38  ;;  %v973_v5 = vrot.slane %v10341_v39, 1  ;;  %v971_v2 = vrot.slane %v867_v40, 1 }
 0x141   : > { %v10311_v9 = vpop.permute.xlu1 %676  ;;  %v10323_v25 = vpop.permute.xlu0 %671  ;;  %13699 = vst [vmem:[#allocation28_spill] sm:$0xff] %v10357_v53  ;;  %v1558_v3 = vsel %vm943_vm1, %v1555_v20, %v1557_v52  ;;  %v10367_v4 = vmax.f32 %v1416_v8, 0.0  ;;  %v812_v7 = vmul.f32 %v10175_v61, %v10229_v62  ;;  %v10373_v26 = vmul.f32 %v10173_v60, %v10237_v59 }
 0x142   : > { %v1145_v47 = vmul.f32 %v10173_v60, %v10249_v16  ;;  %8291 = vmatmul.mubr.msk.f32.gmra.mxu0 %vm1635_vm3, %v1558_v3  ;;  %v968_v11 = vsel %vm943_vm1, %v965_v19, %v967_v51  ;;  %v970_v12 = vsel %vm943_vm1, %v967_v51, %v969_v49  ;;  %v10384_v13 = vmul.f32 %v10166_v50, %v10261_v23 }
 0x143   : > { %13700 = vst [vmem:[#allocation29_spill] sm:$0xff] %v10367_v4  ;;  %v869_v62 = vmul.f32 %v10166_v50, %v10272_v36  ;;  %8293 = vmatprep.mubr.msk.f32.mxu0 %vm9881_vm0, %v13664_v15  ;;  %v1366_v14 = vadd.f32 %v1244_v48, %v1088_v54  ;;  %v1247_v20 = vrot.slane %v1144_v55, 2  ;;  %v1245_v58 = vrot.slane %v1143_v41, 2 }
 0x144   : > { %v815_v22 = vmul.f32 %v10175_v61, %v10237_v59  ;;  %v1417_v19 = vadd.f32 %v10199_v27, %v1365_v57  ;;  %v972_v24 = vsel %vm943_vm1, %v969_v49, %v971_v2  ;;  %v974_v29 = vsel %vm943_vm1, %v971_v2, %v973_v5 }
 0x145   : > { %v10336_v34 = vpop.permute.xlu1 %686  ;;  %v10363_v56 = vpop.permute.xlu0 %681  ;;  %v1559_v18 = vrot.slane %v10357_v53, 1  ;;  %v1089_v30 = vadd.f32 %v968_v11, %v811_v33  ;;  %v1090_v31 = vadd.f32 %v970_v12, %v812_v7  ;;  %v814_v35 = vmul.f32 %v10175_v61, %v10249_v16 }
 0x146   : > { %v1249_v38 = vrot.slane %v1145_v47, 2  ;;  %v1251_v40 = vrot.slane %v10373_v26, 2  ;;  %v977_v59 = vrot.slane %v10384_v13, 1  ;;  %v975_v8 = vrot.slane %v869_v62, 1 }
 0x147   : > { %v1560_v32 = vsel %vm943_vm1, %v1557_v52, %v1559_v18  ;;  %v1246_v45 = vsel %vm1221_vm2, %v1243_v21, %v1245_v58  ;;  %v1091_v48 = vadd.f32 %v972_v24, %v813_v46  ;;  %v1092_v33 = vadd.f32 %v974_v29, %v814_v35 }
 0x148   : > { %v871_v49 = vmul.f32 %v10166_v50, %v10297_v63  ;;  %8294 = vmatmul.mubr.msk.f32.gmra.mxu0 %vm1635_vm3, %v1560_v32  ;;  %v1248_v51 = vsel %vm1221_vm2, %v1245_v58, %v1247_v20  ;;  %v10414_v54 = vmul.f32 %v10173_v60, %v10261_v23  ;;  %v1147_v6 = vmul.f32 %v10173_v60, %v10272_v36 }
 0x149   : > { %v10378_v10 = vpop.permute.xlu1 %696  ;;  %v10398_v39 = vpop.permute.xlu0 %691  ;;  %v10420_v21 = vmul.f32 %v10166_v50, %v10280_v42  ;;  %8296 = vmatprep.mubr.msk.f32.mxu0 %vm9881_vm0, %v13664_v15  ;;  %v10424_v46 = vmax.f32 %v1417_v19, 0.0  ;;  %v1367_v52 = vadd.f32 %v1246_v45, %v1089_v30  ;;  %v1368_v55 = vadd.f32 %v1248_v51, %v1090_v31 }
 0x14a   : > { %v1250_v41 = vsel %vm1221_vm2, %v1247_v20, %v1249_v38  ;;  %v1252_v57 = vsel %vm1221_vm2, %v1249_v38, %v1251_v40  ;;  %v976_v2 = vsel %vm943_vm1, %v973_v5, %v975_v8  ;;  %v978_v3 = vsel %vm943_vm1, %v975_v8, %v977_v59 }
 0x14b   : > { %13701 = vst [vmem:[#allocation30_spill] sm:$0xff] %v10424_v46  ;;  %v1561_v7 = vrot.slane %v10367_v4, 1  ;;  %v1369_v26 = vadd.f32 %v1250_v41, %v1091_v48  ;;  %v1370_v47 = vadd.f32 %v1252_v57, %v1092_v33  ;;  %v816_v11 = vmul.f32 %v10175_v61, %v10272_v36 }
 0x14c   : > { %v979_v12 = vrot.slane %v871_v49, 1  ;;  %v1255_v62 = vrot.slane %v10414_v54, 2  ;;  %v1253_v58 = vrot.slane %v1147_v6, 2  ;;  %v981_v20 = vrot.slane %v10420_v21, 1 }
 0x14d   : > { %v10409_v16 = vpop.permute.xlu1 %706  ;;  %v10433_v13 = vpop.permute.xlu0 %701  ;;  %v1562_v19 = vsel %vm943_vm1, %v1559_v18, %v1561_v7  ;;  %v1093_v5 = vadd.f32 %v976_v2, %v815_v22  ;;  %v1094_v24 = vadd.f32 %v978_v3, %v816_v11  ;;  %v1149_v29 = vmul.f32 %v10173_v60, %v10297_v63 }
 0x14e   : > { %8297 = vmatmul.mubr.msk.f32.gmra.mxu0 %vm1635_vm3, %v1562_v19  ;;  %v1418_v36 = vadd.f32 %v10199_v27, %v1366_v14  ;;  %v1419_v31 = vadd.f32 %v10199_v27, %v1367_v52  ;;  %v817_v35 = vmul.f32 %v10175_v61, %v10261_v23  ;;  %v10449_v38 = vmul.f32 %v10173_v60, %v10280_v42 }
 0x14f   : > { %8299 = vmatprep.mubr.msk.f32.mxu0 %vm9881_vm0, %v13664_v15  ;;  %v1420_v22 = vadd.f32 %v10199_v27, %v1368_v55  ;;  %v1421_v18 = vadd.f32 %v10199_v27, %v1369_v26  ;;  %v1422_v8 = vadd.f32 %v10199_v27, %v1370_v47  ;;  %v980_v14 = vsel %vm943_vm1, %v977_v59, %v979_v12 }
 0x150   : > { %v1254_v32 = vsel %vm1221_vm2, %v1251_v40, %v1253_v58  ;;  %v1256_v45 = vsel %vm1221_vm2, %v1253_v58, %v1255_v62  ;;  %v982_v23 = vsel %vm943_vm1, %v979_v12, %v981_v20  ;;  %v1563_v48 = vrot.slane %v10424_v46, 1 }
 0x151   : > { %v10441_v30 = vpop.permute.xlu1 %716  ;;  %v1371_v33 = vadd.f32 %v1254_v32, %v1093_v5  ;;  %v1372_v49 = vadd.f32 %v1256_v45, %v1094_v24  ;;  %v818_v51 = vmul.f32 %v10175_v61, %v10297_v63  ;;  %v1257_v54 = vrot.slane %v1149_v29, 2  ;;  %v10465_v6 = vpop.permute.xlu0 %711 }
 0x152   : > { %v10467_v52 = vmax.f32 %v1418_v36, 0.0  ;;  %v1259_v40 = vrot.slane %v10449_v38, 2  ;;  %v1095_v59 = vadd.f32 %v980_v14, %v817_v35  ;;  %v1564_v55 = vsel %vm943_vm1, %v1561_v7, %v1563_v48 }
 0x153   : > { %v10471_v41 = vmax.f32 %v1419_v31, 0.0  ;;  %v10473_v57 = vmax.f32 %v1420_v22, 0.0  ;;  %v1096_v2 = vadd.f32 %v982_v23, %v818_v51  ;;  %v873_v3 = vmul.f32 %v10166_v50, %v10323_v25  ;;  %8300 = vmatmul.mubr.msk.f32.gmra.mxu0 %vm1635_vm3, %v1564_v55 }
 0x154   : > { %13702 = vst [vmem:[#allocation31_spill] sm:$0xff] %v10467_v52  ;;  %v10480_v26 = vmax.f32 %v1421_v18, 0.0  ;;  %v10482_v47 = vmax.f32 %v1422_v8, 0.0  ;;  %v819_v11 = vmul.f32 %v10175_v61, %v10280_v42  ;;  %v10488_v7 = vmul.f32 %v10166_v50, %v10311_v9  ;;  %8302 = vmatprep.mubr.msk.f32.mxu0 %vm9881_vm0, %v13664_v15 }
 0x155   : > { %13703 = vst [vmem:[#allocation32_spill] sm:$0xff] %v10471_v41  ;;  %13704 = vst [vmem:[#allocation33_spill] sm:$0xff] %v10473_v57  ;;  %v10478_v63 = vpop.permute.xlu1 %726  ;;  %v1423_v12 = vadd.f32 %v10199_v27, %v1371_v33  ;;  %v1424_v58 = vadd.f32 %v10199_v27, %v1372_v49  ;;  %v1258_v19 = vsel %vm1221_vm2, %v1255_v62, %v1257_v54  ;;  %v1565_v36 = vrot.slane %v10467_v52, 1  ;;  %v722_v22 = vpop.permute.xlu0 %721 }
 0x156   : > { %13705 = vst [vmem:[#allocation34_spill] sm:$0xff] %v10480_v26  ;;  %13706 = vst [vmem:[#allocation35_spill] sm:$0xff] %v10482_v47  ;;  %v1151_v5 = vmul.f32 %v10173_v60, %v10323_v25  ;;  %v1260_v24 = vsel %vm1221_vm2, %v1257_v54, %v1259_v40  ;;  %v1373_v29 = vadd.f32 %v1258_v19, %v1095_v59  ;;  %v983_v38 = vrot.slane %v873_v3, 1 }
 0x157   : > { %v10500_v42 = vmul.f32 %v10173_v60, %v10311_v9  ;;  %v1374_v31 = vadd.f32 %v1260_v24, %v1096_v2  ;;  %v10505_v35 = vmul.f32 %v10175_v61, %v10311_v9  ;;  %v10509_v62 = vmul.f32 %v10166_v50, %v10336_v34 }
 0x158   : > { %v13666_v18 = vrot.slane %v10488_v7, 1  ;;  %v820_v8 = vmul.f32 %v10175_v61, %v10323_v25  ;;  %v1566_v14 = vsel %vm943_vm1, %v1563_v48, %v1565_v36  ;;  %v10517_v32 = vmul.f32 %v10166_v50, %v10478_v63 }
 0x159   : > { %v10519_v45 = vmax.f32 %v1423_v12, 0.0  ;;  %v10521_v9 = vmax.f32 %v1424_v58, 0.0  ;;  %v1261_v23 = vrot.slane %v1151_v5, 2  ;;  %8303 = vmatmul.mubr.msk.f32.gmra.mxu0 %vm1635_vm3, %v1566_v14  ;;  %v1162_v33 = vmul.f32 %v10173_v60, %v10478_v63  ;;  %v10526_v49 = vpop.permute.xlu1 %736 }
 0x15a   : > { %v1425_v25 = vadd.f32 %v10199_v27, %v1373_v29  ;;  %v13669_v48 = vrot.slane %v10500_v42, 2  ;;  %v10532_v51 = vmul.f32 %v10175_v61, %v10336_v34  ;;  %v10536_v54 = vmul.f32 %v10173_v60, %v10336_v34  ;;  %8305 = vmatprep.mubr.msk.f32.mxu0 %vm9881_vm0, %v13664_v15  ;;  %v732_v29 = vpop.permute.xlu0 %731 }
 0x15b   : > { %13707 = vst [vmem:[#allocation36_spill] sm:$0xff] %v10519_v45  ;;  %v1426_v59 = vadd.f32 %v10199_v27, %v1374_v31  ;;  %v984_v55 = vsel %vm943_vm1, %v981_v20, %v983_v38  ;;  %v10547_v3 = vmul.f32 %v10175_v61, %v10363_v56  ;;  %v1005_v12 = vrot.slane %v10517_v32, 1 }
 0x15c   : > { %v10551_v34 = vmul.f32 %v10166_v50, %v722_v22  ;;  %v10554_v58 = vmul.f32 %v10173_v60, %v722_v22  ;;  %v1567_v19 = vrot.slane %v10471_v41, 1  ;;  %v986_v21 = vsel %vm943_vm1, %v983_v38, %v13666_v18 }
 0x15d   : > { %v1262_v20 = vsel %vm1221_vm2, %v1259_v40, %v1261_v23  ;;  %v1283_v5 = vrot.slane %v1162_v33, 2  ;;  %v10563_v24 = vmul.f32 %v10166_v50, %v10526_v49  ;;  %v10570_v2 = vmul.f32 %v10173_v60, %v10526_v49  ;;  %v10579_v18 = vpop.permute.xlu1 %746 }
 0x15e   : > { %v1568_v32 = vsel %vm943_vm1, %v1565_v36, %v1567_v19  ;;  %v10572_v15 = vmax.f32 %v1425_v25, 0.0  ;;  %v1097_v38 = vadd.f32 %v984_v55, %v819_v11  ;;  %v1264_v40 = vsel %vm1221_vm2, %v1261_v23, %v13669_v48 }
 0x15f   : > { %v830_v33 = vmul.f32 %v10175_v61, %v722_v22  ;;  %8306 = vmatmul.mubr.msk.f32.gmra.mxu0 %vm1635_vm3, %v1568_v32  ;;  %v10581_v14 = vmax.f32 %v1426_v59, 0.0  ;;  %v1098_v36 = vadd.f32 %v986_v21, %v820_v8  ;;  %v13708_v41 = vrot.slane %v10551_v34, 1 }
 0x160   : > { %v13709_v11 = vmov 0.0   ;;  %v10591_v23 = vmul.f32 %v10166_v50, %v10363_v56  ;;  %v13710_v55 = vrot.slane %v10554_v58, 2  ;;  %v1009_v8 = vrot.slane %v10563_v24, 1  ;;  %v742_v24 = vpop.permute.xlu0 %741 }
 0x161   : > { %v1006_v25 = vsel %vm943_vm1, %v13708_v41, %v1005_v12  ;;  %8308 = vmatprep.mubr.msk.f32.mxu0 %vm9881_vm0, %v13709_v11  ;;  %v1287_v21 = vrot.slane %v10570_v2, 2  ;;  %v885_v32 = vmul.f32 %v10166_v50, %v732_v29  ;;  %v1163_v41 = vmul.f32 %v10173_v60, %v732_v29 }
 0x162   : > { %v1108_v22 = vadd.f32 %v1006_v25, %v830_v33  ;;  %v1284_v59 = vsel %vm1221_vm2, %v13710_v55, %v1283_v5  ;;  %v1569_v31 = vrot.slane %v10473_v57, 1  ;;  %v1375_v48 = vadd.f32 %v1262_v20, %v1097_v38 }
 0x163   : > { %v10603_v52 = vmul.f32 %v10173_v60, %v10363_v56  ;;  %v10609_v25 = vmul.f32 %v10166_v50, %v10579_v18  ;;  %v1007_v55 = vrot.slane %v885_v32, 1  ;;  %v1285_v2 = vrot.slane %v1163_v41, 2 }
 0x164   : > { %v10605_v33 = vadd.f32 %v1284_v59, %v1108_v22  ;;  %v1570_v46 = vsel %vm943_vm1, %v1567_v19, %v1569_v31  ;;  %v10614_v4 = vmul.f32 %v10173_v60, %v10579_v18  ;;  %v1376_v20 = vadd.f32 %v1264_v40, %v1098_v36  ;;  %v772_v59 = vpop.permute.xlu1 %771 }
 0x165   : > { %v10618_v56 = vmul.f32 %v10175_v61, %v10378_v10  ;;  %v831_v38 = vmul.f32 %v10175_v61, %v10478_v63  ;;  %v832_v22 = vmul.f32 %v10175_v61, %v732_v29  ;;  %8309 = vmatmul.mubr.msk.f32.gmra.mxu0 %vm1635_vm3, %v1570_v46  ;;  %v1008_v32 = vsel %vm943_vm1, %v1005_v12, %v1007_v55 }
 0x166   : > { %v1010_v19 = vsel %vm943_vm1, %v1007_v55, %v1009_v8  ;;  %v1286_v41 = vsel %vm1221_vm2, %v1283_v5, %v1285_v2  ;;  %v1288_v40 = vsel %vm1221_vm2, %v1285_v2, %v1287_v21  ;;  %8311 = vmatprep.mubr.msk.f32.mxu0 %vm9881_vm0, %v13709_v11  ;;  %v10632_v36 = vmul.f32 %v10166_v50, %v10378_v10 }
 0x167   : > { %v1109_v63 = vadd.f32 %v1008_v32, %v831_v38  ;;  %v1110_v29 = vadd.f32 %v1010_v19, %v832_v22  ;;  %v1013_v46 = vrot.slane %v10609_v25, 1  ;;  %v1291_v57 = vrot.slane %v10614_v4, 2  ;;  %v10645_v38 = vpop.permute.xlu0 %751 }
 0x168   : > { %v887_v12 = vmul.f32 %v10166_v50, %v742_v24  ;;  %v1165_v55 = vmul.f32 %v10173_v60, %v742_v24  ;;  %v1571_v5 = vrot.slane %v10480_v26, 1  ;;  %v987_v2 = vrot.slane %v10591_v23, 1  ;;  %13712 = vst [vmem:[#allocation38_spill] sm:$0xff] %v10645_v38 }
 0x169   : > { %v10641_v28 = vadd.f32 %v1286_v41, %v1109_v63  ;;  %v10643_v1 = vadd.f32 %v1288_v40, %v1110_v29  ;;  %v10649_v25 = vmul.f32 %v10173_v60, %v10378_v10  ;;  %v10653_v19 = vadd.f32 %v10199_v27, %v1375_v48  ;;  %v782_v63 = vpop.permute.xlu1 %781 }
 0x16a   : > { %v1011_v4 = vrot.slane %v887_v12, 1  ;;  %v1289_v22 = vrot.slane %v1165_v55, 2  ;;  %v1572_v32 = vsel %vm943_vm1, %v1569_v31, %v1571_v5  ;;  %v10656_v23 = vadd.f32 %v10199_v27, %v1376_v20 }
 0x16b   : > { %13711 = vst [vmem:[#allocation37_spill] sm:$0xff] %v10643_v1  ;;  %v833_v41 = vmul.f32 %v10175_v61, %v10526_v49  ;;  %v834_v40 = vmul.f32 %v10175_v61, %v742_v24  ;;  %8312 = vmatmul.mubr.msk.f32.gmra.mxu0 %vm1635_vm3, %v1572_v32  ;;  %v10671_v49 = vmul.f32 %v10175_v61, %v10398_v39 }
 0x16c   : > { %v1012_v10 = vsel %vm943_vm1, %v1009_v8, %v1011_v4  ;;  %v1014_v29 = vsel %vm943_vm1, %v1011_v4, %v1013_v46  ;;  %v1290_v31 = vsel %vm1221_vm2, %v1287_v21, %v1289_v22  ;;  %v1292_v48 = vsel %vm1221_vm2, %v1289_v22, %v1291_v57  ;;  %8314 = vmatprep.mubr.msk.f32.mxu0 %vm9881_vm0, %v13709_v11 }
 0x16d   : > { %v1111_v24 = vadd.f32 %v1012_v10, %v833_v41  ;;  %v1112_v12 = vadd.f32 %v1014_v29, %v834_v40  ;;  %v10674_v55 = vmul.f32 %v10166_v50, %v772_v59  ;;  %v10678_v8 = vmul.f32 %v10166_v50, %v10645_v38  ;;  %v777_v10 = vpop.permute.xlu0 %776 }
 0x16e   : > { %v10682_v21 = vmul.f32 %v10173_v60, %v10645_v38  ;;  %v1573_v4 = vrot.slane %v10482_v47, 1  ;;  %v10690_v41 = vmul.f32 %v10173_v60, %v772_v59  ;;  %v895_v40 = vmul.f32 %v10166_v50, %v782_v63 }
 0x16f   : > { %13713 = vst [vmem:[#allocation39_spill] sm:$0xff] %v10678_v8  ;;  %v10685_v22 = vadd.f32 %v1290_v31, %v1111_v24  ;;  %v10687_v32 = vadd.f32 %v1292_v48, %v1112_v12  ;;  %v13717_v29 = vrot.slane %v10488_v7, 1  ;;  %v13690_v53 = vrot.slane %v10678_v8, 1 }
 0x170   : > { %13714 = vst [vmem:[#allocation40_spill] sm:$0xff] %v10682_v21  ;;  %v1574_v47 = vsel %vm943_vm1, %v1571_v5, %v1573_v4  ;;  %v13718_v31 = vrot.slane %v10509_v62, 1  ;;  %v835_v24 = vmul.f32 %v10175_v61, %v10579_v18  ;;  %v840_v12 = vmul.f32 %v10175_v61, %v772_v59 }
 0x171   : > { %13715 = vst [vmem:[#allocation41_spill] sm:$0xff] %v10685_v22  ;;  %13716 = vst [vmem:[#allocation42_spill] sm:$0xff] %v10687_v32  ;;  %v988_v20 = vsel %vm943_vm1, %v13717_v29, %v987_v2  ;;  %8315 = vmatmul.mubr.msk.f32.gmra.mxu0 %vm1635_vm3, %v1574_v47  ;;  %v1173_v7 = vmul.f32 %v10173_v60, %v782_v63  ;;  %v10707_v29 = vpop.permute.xlu1 %786  ;;  %v1016_v26 = vsel %vm943_vm1, %v1013_v46, %v13690_v53  ;;  %v10729_v22 = vpop.permute.xlu0 %756 }
 0x172   : > { %v990_v48 = vsel %vm943_vm1, %v987_v2, %v13718_v31  ;;  %v13719_v5 = vrot.slane %v10682_v21, 2  ;;  %v1027_v2 = vrot.slane %v895_v40, 1  ;;  %8317 = vmatprep.mubr.msk.f32.mxu0 %vm9881_vm0, %v13709_v11  ;;  %v894_v18 = vmul.f32 %v10166_v50, %v777_v10 }
 0x173   : > { %v1113_v31 = vadd.f32 %v1016_v26, %v835_v24  ;;  %v1172_v38 = vmul.f32 %v10173_v60, %v777_v10  ;;  %v841_v8 = vmul.f32 %v10175_v61, %v777_v10  ;;  %v1575_v53 = vrot.slane %v10519_v45, 1 }
 0x174   : > { %v1294_v32 = vsel %vm1221_vm2, %v1291_v57, %v13719_v5  ;;  %v1025_v46 = vrot.slane %v894_v18, 1  ;;  %v896_v57 = vmul.f32 %v10166_v50, %v10707_v29  ;;  %v1305_v5 = vrot.slane %v1173_v7, 2 }
 0x175   : > { %v10725_v40 = vadd.f32 %v1294_v32, %v1113_v31  ;;  %v1303_v21 = vrot.slane %v1172_v38, 2  ;;  %v1174_v47 = vmul.f32 %v10173_v60, %v10707_v29  ;;  %v13721_v26 = vrot.slane %v10674_v55, 1 }
 0x176   : > { %v1028_v10 = vsel %vm943_vm1, %v1025_v46, %v1027_v2  ;;  %v1576_v18 = vsel %vm943_vm1, %v1573_v4, %v1575_v53  ;;  %v1029_v59 = vrot.slane %v896_v57, 1  ;;  %v1099_v45 = vadd.f32 %v988_v20, %v10505_v35 }
 0x177   : > { %13720 = vst [vmem:[#allocation43_spill] sm:$0xff] %v10725_v40  ;;  %v1026_v24 = vsel %vm943_vm1, %v13721_v26, %v1025_v46  ;;  %v13722_v32 = vrot.slane %v10603_v52, 2  ;;  %v13723_v38 = vrot.slane %v10500_v42, 2  ;;  %v1119_v40 = vadd.f32 %v1028_v10, %v841_v8  ;;  %8318 = vmatmul.mubr.msk.f32.gmra.mxu0 %vm1635_vm3, %v1576_v18 }
 0x178   : > { %v1118_v31 = vadd.f32 %v1026_v24, %v840_v12  ;;  %v1100_v1 = vadd.f32 %v990_v48, %v10547_v3  ;;  %v842_v26 = vmul.f32 %v10175_v61, %v782_v63  ;;  %v13724_v46 = vrot.slane %v10690_v41, 2  ;;  %8320 = vmatprep.mubr.msk.f32.mxu0 %vm9881_vm0, %v13709_v11  ;;  %v792_v12 = vpop.permute.xlu1 %791 }
 0x179   : > { %v1266_v7 = vsel %vm1221_vm2, %v13723_v38, %v13722_v32  ;;  %v1030_v35 = vsel %vm943_vm1, %v1027_v2, %v1029_v59  ;;  %v13725_v42 = vrot.slane %v10536_v54, 2  ;;  %v13726_v20 = vmov %v13722_v32 }
 0x17a   : > { %v1304_v4 = vsel %vm1221_vm2, %v13724_v46, %v1303_v21  ;;  %v877_v3 = vmul.f32 %v10166_v50, %v10398_v39  ;;  %v1307_v63 = vrot.slane %v1174_v47, 2  ;;  %v10760_v57 = vmul.f32 %v10173_v60, %v10398_v39 }
 0x17b   : > { %v1268_v8 = vsel %vm1221_vm2, %v13726_v20, %v13725_v42  ;;  %v1396_v48 = vadd.f32 %v1304_v4, %v1118_v31  ;;  %v1306_v2 = vsel %vm1221_vm2, %v1303_v21, %v1305_v5  ;;  %v1120_v24 = vadd.f32 %v1030_v35, %v842_v26  ;;  %v10770_v31 = vpop.permute.xlu0 %761 }
 0x17c   : > { %v1577_v10 = vrot.slane %v10521_v9, 1  ;;  %v10765_v18 = vmax.f32 %v10653_v19, 0.0  ;;  %v10768_v52 = vmax.f32 %v10656_v23, 0.0  ;;  %v1377_v32 = vadd.f32 %v1266_v7, %v1099_v45 }
 0x17d   : > { %v1397_v38 = vadd.f32 %v1306_v2, %v1119_v40  ;;  %v1378_v47 = vadd.f32 %v1268_v8, %v1100_v1  ;;  %v897_v21 = vmul.f32 %v10166_v50, %v792_v12  ;;  %v991_v26 = vrot.slane %v877_v3, 1 }
 0x17e   : > { %v1578_v39 = vsel %vm943_vm1, %v1575_v53, %v1577_v10  ;;  %v10777_v4 = vmul.f32 %v10166_v50, %v10409_v16  ;;  %v1448_v19 = vadd.f32 %v10199_v27, %v1396_v48  ;;  %v1308_v23 = vsel %vm1221_vm2, %v1305_v5, %v1307_v63 }
 0x17f   : > { %8321 = vmatmul.mubr.msk.f32.gmra.mxu0 %vm1635_vm3, %v1578_v39  ;;  %v1269_v45 = vrot.slane %v10760_v57, 2  ;;  %v1398_v1 = vadd.f32 %v1308_v23, %v1120_v24  ;;  %v1031_v40 = vrot.slane %v897_v21, 1  ;;  %v1175_v7 = vmul.f32 %v10173_v60, %v792_v12 }
 0x180   : > { %8323 = vmatprep.mubr.msk.f32.mxu0 %vm9881_vm0, %v13709_v11  ;;  %v1429_v53 = vadd.f32 %v10199_v27, %v1377_v32  ;;  %v1449_v35 = vadd.f32 %v10199_v27, %v1397_v38  ;;  %v843_v42 = vmul.f32 %v10175_v61, %v10707_v29  ;;  %v844_v5 = vmul.f32 %v10175_v61, %v792_v12  ;;  %v767_v29 = vpop.permute.xlu0 %766 }
 0x181   : > { %v10793_v20 = vmul.f32 %v10166_v50, %v10433_v13  ;;  %v1032_v8 = vsel %vm943_vm1, %v1029_v59, %v1031_v40  ;;  %v1309_v3 = vrot.slane %v1175_v7, 2  ;;  %v1579_v48 = vrot.slane %v10572_v15, 1 }
 0x182   : > { %v13727_v2 = vrot.slane %v10509_v62, 1  ;;  %v10800_v32 = vmax.f32 %v1448_v19, 0.0  ;;  %v1121_v38 = vadd.f32 %v1032_v8, %v843_v42  ;;  %v1122_v39 = vadd.f32 %v1031_v40, %v844_v5 }
 0x183   : > { %v1430_v12 = vadd.f32 %v10199_v27, %v1378_v47  ;;  %v1450_v21 = vadd.f32 %v10199_v27, %v1398_v1  ;;  %v1310_v23 = vsel %vm1221_vm2, %v1307_v63, %v1309_v3  ;;  %v1580_v59 = vsel %vm943_vm1, %v1577_v10, %v1579_v48 }
 0x184   : > { %v992_v24 = vsel %vm943_vm1, %v13727_v2, %v991_v26  ;;  %v13728_v7 = vrot.slane %v10632_v36, 1  ;;  %v997_v62 = vrot.slane %v10777_v4, 1  ;;  %v10810_v2 = vmax.f32 %v1449_v35, 0.0  ;;  %8324 = vmatmul.mubr.msk.f32.gmra.mxu0 %vm1635_vm3, %v1580_v59  ;;  %v1498_v59 = vld [vmem:[#allocation8] sm:$0xff] }
 0x185   : > { %v1399_v19 = vadd.f32 %v1310_v23, %v1121_v38  ;;  %v1101_v40 = vadd.f32 %v992_v24, %v10532_v51  ;;  %v995_v47 = vrot.slane %v10793_v20, 1  ;;  %8326 = vmatprep.mubr.msk.f32.mxu0 %vm9881_vm0, %v13709_v11  ;;  %v10818_v63 = vmul.f32 %v10166_v50, %v767_v29 }
 0x186   : > { %v994_v46 = vsel %vm943_vm1, %v991_v26, %v13728_v7  ;;  %v10821_v10 = vmul.f32 %v10173_v60, %v767_v29  ;;  %v1400_v26 = vadd.f32 %v1309_v3, %v1122_v39  ;;  %v1581_v35 = vrot.slane %v10581_v14, 1 }
 0x187   : > { %v1451_v1 = vadd.f32 %v10199_v27, %v1399_v19  ;;  %v1625_v42 = vrot.slane %v10800_v32, 1  ;;  %v10826_v5 = vmax.f32 %v1450_v21, 0.0  ;;  %v839_v51 = vmul.f32 %v10175_v61, %v767_v29 }
 0x188   : > { %v1021_v20 = vrot.slane %v10818_v63, 1  ;;  %v1299_v8 = vrot.slane %v10821_v10, 2  ;;  %v1582_v24 = vsel %vm943_vm1, %v1579_v48, %v1581_v35  ;;  %v1583_v3 = vrot.slane %v10765_v18, 1  ;;  %v13751_v10 = vld [vmem:[#allocation32_spill] sm:$0xff] }
 0x189   : > { %v10831_v50 = vmax.f32 %v1451_v1, 0.0  ;;  %v1627_v38 = vrot.slane %v10810_v2, 1  ;;  %v10836_v39 = vmax.f32 %v1429_v53, 0.0  ;;  %v1102_v23 = vadd.f32 %v994_v46, %v10671_v49  ;;  %8327 = vmatmul.mubr.msk.f32.gmra.mxu0 %vm1635_vm3, %v1582_v24 }
 0x18a   : > { %v13729_v61 = vrot.slane %v10536_v54, 2  ;;  %v13730_v21 = vrot.slane %v10674_v55, 1  ;;  %v1157_v53 = vmul.f32 %v10173_v60, %v10433_v13  ;;  %v1452_v49 = vadd.f32 %v10199_v27, %v1400_v26  ;;  %8329 = vmatprep.mubr.msk.f32.mxu0 %vm9881_vm0, %v13709_v11 }
 0x18b   : > { %v1628_v54 = vsel %vm943_vm1, %v1625_v42, %v1627_v38  ;;  %v996_v19 = vsel %vm943_vm1, %v13728_v7, %v995_v47  ;;  %v13731_v1 = vrot.slane %v10690_v41, 2  ;;  %v1629_v26 = vrot.slane %v10826_v5, 1  ;;  %v10875_v41 = vld [vmem:[#allocation4 + $0x2] ss:$0 sm:$0xff] }
 0x18c   : > { %v1270_v29 = vsel %vm1221_vm2, %v13729_v61, %v1269_v45  ;;  %v1024_v48 = vsel %vm943_vm1, %v1021_v20, %v13730_v21  ;;  %8396 = vmatmul.mubr.msk.f32.vlgmr.msra.gmra.mxu1 %vm1635_vm3, %v1628_v54  ;;  %v1584_v24 = vsel %vm943_vm1, %v1581_v35, %v1583_v3  ;;  %v1585_v36 = vrot.slane %v10768_v52, 1 }
 0x18d   : > { %v1117_v46 = vadd.f32 %v1024_v48, %v839_v51  ;;  %v1379_v55 = vadd.f32 %v1270_v29, %v1101_v40  ;;  %v1302_v60 = vsel %vm1221_vm2, %v1299_v8, %v13731_v1  ;;  %8398 = vmatprep.mubr.msk.f32.mxu1 %vm9881_vm0, %v13709_v11  ;;  %v1631_v40 = vrot.slane %v10831_v50, 1  ;;  %8411 = vmatpush3.msra.mxu1 %v1498_v59  ;;  %v10881_v29 = vld [vmem:[#allocation4 + $0x1] ss:$0 sm:$0xff] }
 0x18e   : > { %v10879_v61 = vmul.f32 %v10875_v41, %v10409_v16  ;;  %v881_v21 = vmul.f32 %v10881_v29, %v10465_v6  ;;  %8330 = vmatmul.mubr.msk.f32.gmra.mxu0 %vm1635_vm3, %v1584_v24  ;;  %v1630_v35 = vsel %vm943_vm1, %v1627_v38, %v1629_v26  ;;  %8684 = vmatprep.subr.mxu1 %v13709_v11  ;;  %v10888_v48 = vmax.f32 %v1430_v12, 0.0 }
 0x18f   : > { %v10868_v51 = vadd.f32 %v1302_v60, %v1117_v46  ;;  %v13732_v59 = vrot.slane %v10649_v25, 2  ;;  %v1273_v54 = vrot.slane %v1157_v53, 2  ;;  %v10895_v7 = vmax.f32 %v1452_v49, 0.0  ;;  %8332 = vmatprep.mubr.msk.f32.mxu0 %vm9881_vm0, %v13709_v11  ;;  %v10912_v53 = vld [vmem:[#allocation4] ss:$0 sm:$0xff] }
 0x190   : > { %v1431_v60 = vadd.f32 %v10199_v27, %v1379_v55  ;;  %v1103_v38 = vadd.f32 %v996_v19, %v10618_v56  ;;  %v882_v12 = vmul.f32 %v10881_v29, %v10441_v30  ;;  %8399 = vmatmul.mubr.msk.f32.gmra.mxu1 %vm1635_vm3, %v1630_v35  ;;  %v998_v57 = vsel %vm943_vm1, %v995_v47, %v997_v62 }
 0x191   : > { %v1272_v46 = vsel %vm1221_vm2, %v1269_v45, %v13732_v59  ;;  %v1586_v45 = vsel %vm943_vm1, %v1583_v3, %v1585_v36  ;;  %8401 = vmatprep.mubr.msk.f32.mxu1 %vm9881_vm0, %v13709_v11  ;;  %v1632_v27 = vsel %vm943_vm1, %v1629_v26, %v1631_v40  ;;  %v826_v56 = vmul.f32 %v10912_v53, %v10433_v13  ;;  %v10924_v26 = vld [vmem:[#allocation6] ss:$0 sm:$0xff] }
 0x192   : > { %v1380_v1 = vadd.f32 %v1272_v46, %v1102_v23  ;;  %v1587_v23 = vrot.slane %v10836_v39, 1  ;;  %v999_v49 = vrot.slane %v881_v21, 1  ;;  %8333 = vmatmul.mubr.msk.f32.gmra.mxu0 %vm1635_vm3, %v1586_v45  ;;  %v1275_v55 = vrot.slane %v10879_v61, 2 }
 0x193   : > { %v13733_v47 = vmov %v13732_v59  ;;  %8335 = vmatprep.mubr.msk.f32.mxu0 %vm9881_vm0, %v13709_v11  ;;  %v1633_v19 = vrot.slane %v10895_v7, 1  ;;  %v1104_v35 = vadd.f32 %v998_v57, %v826_v56  ;;  %v1159_v21 = vmul.f32 %v10875_v41, %v10465_v6 }
 0x194   : > { %v1274_v3 = vsel %vm1221_vm2, %v13733_v47, %v1273_v54  ;;  %v1432_v24 = vadd.f32 %v10924_v26, %v1380_v1  ;;  %8402 = vmatmul.mubr.msk.f32.gmra.mxu1 %vm1635_vm3, %v1632_v27  ;;  %v10930_v61 = vmax.f32 %v1431_v60, 0.0  ;;  %v1001_v25 = vrot.slane %v882_v12, 1 }
 0x195   : > { %v1381_v13 = vadd.f32 %v1274_v3, %v1103_v38  ;;  %v1588_v59 = vsel %vm943_vm1, %v1585_v36, %v1587_v23  ;;  %8404 = vmatprep.mubr.msk.f32.mxu1 %vm9881_vm0, %v13709_v11  ;;  %v1589_v46 = vrot.slane %v10888_v48, 1  ;;  %v1000_v1 = vsel %vm943_vm1, %v997_v62, %v999_v49 }
 0x196   : > { %8336 = vmatmul.mubr.msk.f32.gmra.mxu0 %vm1635_vm3, %v1588_v59  ;;  %v827_v38 = vmul.f32 %v10912_v53, %v10409_v16  ;;  %v1276_v60 = vsel %vm1221_vm2, %v1273_v54, %v1275_v55  ;;  %v1160_v12 = vmul.f32 %v10875_v41, %v10441_v30  ;;  %v1634_v36 = vsel %vm943_vm1, %v1631_v40, %v1633_v19 }
 0x197   : > { %8338 = vmatprep.mubr.msk.f32.mxu0 %vm9881_vm0, %v13709_v11  ;;  %v10948_v57 = vmax.f32 %v1432_v24, 0.0  ;;  %v1382_v4 = vadd.f32 %v1276_v60, %v1104_v35  ;;  %v1433_v62 = vadd.f32 %v10924_v26, %v1381_v13  ;;  %v1277_v45 = vrot.slane %v1159_v21, 2 }
 0x198   : > { %8405 = vmatmul.mubr.msk.f32.gmra.mxu1 %vm1635_vm3, %v1634_v36  ;;  %v1002_v16 = vsel %vm943_vm1, %v999_v49, %v1001_v25  ;;  %v1105_v27 = vadd.f32 %v1000_v1, %v827_v38  ;;  %v1590_v54 = vsel %vm943_vm1, %v1587_v23, %v1589_v46  ;;  %v1591_v56 = vrot.slane %v10930_v61, 1  ;;  %v3013_v1 = vld [vmem:[#allocation11 + $0x18] sm:$0xff] }
 0x199   : > { %8407 = vmatprep.mubr.msk.f32.mxu1 %vm9881_vm0, %v13709_v11  ;;  %v828_v40 = vmul.f32 %v10912_v53, %v10465_v6  ;;  %v1279_v47 = vrot.slane %v1160_v12, 2  ;;  %v1434_v3 = vadd.f32 %v10924_v26, %v1382_v4  ;;  %v1278_v24 = vsel %vm1221_vm2, %v1275_v55, %v1277_v45 }
 0x19a   : > { %8339 = vmatmul.mubr.msk.f32.gmra.mxu0 %vm1635_vm3, %v1590_v54  ;;  %v10965_v23 = vmax.f32 %v1433_v62, 0.0  ;;  %v1383_v35 = vadd.f32 %v1278_v24, %v1105_v27  ;;  %v1592_v13 = vsel %vm943_vm1, %v1589_v46, %v1591_v56  ;;  %v1593_v6 = vrot.slane %v10948_v57, 1 }
 0x19b   : > { %8341 = vmatprep.mubr.msk.f32.mxu0 %vm9881_vm0, %v13709_v11  ;;  %v1106_v49 = vadd.f32 %v1002_v16, %v828_v40  ;;  %v13734_v21 = vrot.slane %v10551_v34, 1  ;;  %v829_v55 = vmul.f32 %v10912_v53, %v10441_v30  ;;  %v10980_v46 = vmax.f32 %v1434_v3, 0.0 }
 0x19c   : > { %8408 = vmatmul.mubr.msk.f32.gmra.mxu1 %vm1635_vm3, %v1633_v19  ;;  %v1280_v19 = vsel %vm1221_vm2, %v1277_v45, %v1279_v47  ;;  %v1435_v34 = vadd.f32 %v10924_v26, %v1383_v35  ;;  %v1594_v60 = vsel %vm943_vm1, %v1591_v56, %v1593_v6  ;;  %v1595_v30 = vrot.slane %v10965_v23, 1 }
 0x19d   : > { %8412 = vmatprep.mubr.msk.f32.mxu1 %vm9881_vm0, %v13709_v11  ;;  %v1004_v59 = vsel %vm943_vm1, %v1001_v25, %v13734_v21  ;;  %v1384_v38 = vadd.f32 %v1280_v19, %v1106_v49  ;;  %v13735_v36 = vrot.slane %v10554_v58, 2  ;;  %v1597_v27 = vrot.slane %v10980_v46, 1 }
 0x19e   : > { %8342 = vmatmul.mubr.msk.f32.gmra.mxu0 %vm1635_vm3, %v1592_v13  ;;  %v1107_v25 = vadd.f32 %v1004_v59, %v829_v55  ;;  %v10999_v62 = vmax.f32 %v1435_v34, 0.0  ;;  %v1596_v16 = vsel %vm943_vm1, %v1593_v6, %v1595_v30  ;;  %v890_v13 = vmul.f32 %v10881_v29, %v10729_v22  ;;  %v13736_v59 = vld [vmem:[#allocation37_spill] sm:$0xff]  ;;  %v13737_v55 = vld [vmem:[#allocation26_spill] sm:$0xff] }
 0x19f   : > { %8344 = vmatprep.mubr.msk.f32.mxu0 %vm9881_vm0, %v13709_v11  ;;  %v1436_v12 = vadd.f32 %v10924_v26, %v1384_v38  ;;  %v1282_v4 = vsel %vm1221_vm2, %v1279_v47, %v13735_v36  ;;  %v1598_v56 = vsel %vm943_vm1, %v1595_v30, %v1597_v27  ;;  %v1438_v47 = vadd.f32 %v10924_v26, %v10605_v33  ;;  %v13739_v36 = vld [vmem:[#allocation41_spill] sm:$0xff] }
 0x1a0   : > { %8413 = vmatmul.mubr.msk.f32.vlgmr.msra.gmra.mxu1 %vm1635_vm3, %v10213_v43  ;;  %v1385_v45 = vadd.f32 %v1282_v4, %v1107_v25  ;;  %v1599_v40 = vrot.slane %v10999_v62, 1  ;;  %v1439_v33 = vadd.f32 %v10924_v26, %v10641_v28  ;;  %v1017_v19 = vrot.slane %v890_v13, 1  ;;  %v13743_v13 = vld [vmem:[#allocation28_spill] sm:$0xff] }
 0x1a1   : > { %8415 = vmatprep.mubr.msk.f32.mxu1 %vm9881_vm0, %v13709_v11  ;;  %8685 = vmatpush3.msra.mxu1 %v3013_v1  ;;  %v11010_v58 = vmax.f32 %v1436_v12, 0.0  ;;  %v11033_v35 = vmax.f32 %v1438_v47, 0.0  ;;  %v1440_v1 = vadd.f32 %v10924_v26, %v13736_v59  ;;  %v891_v25 = vmul.f32 %v10881_v29, %v10770_v31  ;;  %v13738_v12 = vld [vmem:[#allocation27_spill] sm:$0xff] }
 0x1a2   : > { %8345 = vmatmul.mubr.msk.f32.gmra.mxu0 %vm1635_vm3, %v1594_v60  ;;  %8686 = vmatprep.subr.mxu1 %v13709_v11  ;;  %v1437_v54 = vadd.f32 %v10924_v26, %v1385_v45  ;;  %v1600_v49 = vsel %vm943_vm1, %v1597_v27, %v1599_v40  ;;  %v11052_v28 = vmax.f32 %v1439_v33, 0.0  ;;  %v1168_v60 = vmul.f32 %v10875_v41, %v10729_v22  ;;  %v13740_v45 = vld [vmem:[#allocation39_spill] sm:$0xff] }
 0x1a3   : > { %8347 = vmatprep.mubr.msk.f32.mxu0 %vm9881_vm0, %v13709_v11  ;;  %v1601_v24 = vrot.slane %v11010_v58, 1  ;;  %v1605_v34 = vrot.slane %v11033_v35, 1  ;;  %v11065_v30 = vmax.f32 %v1440_v1, 0.0  ;;  %v1441_v4 = vadd.f32 %v10924_v26, %v13739_v36 }
 0x1a4   : > { %8416 = vmatmul.mubr.msk.f32.gmra.mxu1 %vm1635_vm3, %v10215_v44  ;;  %v11024_v3 = vmax.f32 %v1437_v54, 0.0  ;;  %v1607_v54 = vrot.slane %v11052_v28, 1  ;;  %v1019_v47 = vrot.slane %v891_v25, 1  ;;  %v1169_v33 = vmul.f32 %v10875_v41, %v10770_v31 }
 0x1a5   : > { %8418 = vmatprep.mubr.msk.f32.mxu1 %vm9881_vm0, %v13709_v11  ;;  %v1602_v6 = vsel %vm943_vm1, %v1599_v40, %v1601_v24  ;;  %v11089_v59 = vmax.f32 %v1441_v4, 0.0  ;;  %v837_v41 = vmul.f32 %v10912_v53, %v10729_v22 }
 0x1a6   : > { %8348 = vmatmul.mubr.msk.f32.gmra.mxu0 %vm1635_vm3, %v1596_v16  ;;  %v1603_v21 = vrot.slane %v11024_v3, 1  ;;  %v13741_v16 = vrot.slane %v13740_v45, 1  ;;  %v1608_v1 = vsel %vm943_vm1, %v1605_v34, %v1607_v54  ;;  %v1020_v25 = vsel %vm943_vm1, %v1017_v19, %v1019_v47 }
 0x1a7   : > { %8350 = vmatprep.mubr.msk.f32.mxu0 %vm9881_vm0, %v13709_v11 }
 0x1a8   : > { %8419 = vmatmul.mubr.msk.f32.gmra.mxu1 %vm1635_vm3, %v10231_v0  ;;  %v1604_v38 = vsel %vm943_vm1, %v1601_v24, %v1603_v21  ;;  %v1018_v29 = vsel %vm943_vm1, %v13741_v16, %v1017_v19  ;;  %v1606_v27 = vsel %vm943_vm1, %v1603_v21, %v1605_v34  ;;  %v13747_v34 = vld [vmem:[#allocation43_spill] sm:$0xff] }
 0x1a9   : > { %8421 = vmatprep.mubr.msk.f32.mxu1 %vm9881_vm0, %v13709_v11  ;;  %v1443_v4 = vadd.f32 %v10924_v26, %v13747_v34 }
 0x1aa   : > { %8351 = vmatmul.mubr.msk.f32.gmra.mxu0 %vm1635_vm3, %v1598_v56  ;;  %v13742_v56 = vld [vmem:[#allocation38_spill] sm:$0xff] }
 0x1ab   : > { %8353 = vmatprep.mubr.msk.f32.mxu0 %vm9881_vm0, %v13709_v11  ;;  %v836_v40 = vmul.f32 %v10912_v53, %v13742_v56  ;;  %v1115_v56 = vadd.f32 %v1020_v25, %v837_v41 }
 0x1ac   : > { %8422 = vmatmul.mubr.msk.f32.gmra.mxu1 %vm1635_vm3, %v10251_v17 }
 0x1ad   : > { %8424 = vmatprep.mubr.msk.f32.mxu1 %vm9881_vm0, %v13709_v11  ;;  %v1114_v24 = vadd.f32 %v1018_v29, %v836_v40  ;;  %v1297_v29 = vrot.slane %v1169_v33, 2  ;;  %v1611_v40 = vrot.slane %v11089_v59, 1  ;;  %v11122_v33 = vmax.f32 %v1443_v4, 0.0 }
 0x1ae   : > { %8354 = vmatmul.mubr.msk.f32.gmra.mxu0 %vm1635_vm3, %v1600_v49  ;;  %v1295_v49 = vrot.slane %v1168_v60, 2  ;;  %v13745_v60 = vld [vmem:[#allocation40_spill] sm:$0xff] }
 0x1af   : > { %8356 = vmatprep.mubr.msk.f32.mxu0 %vm9881_vm0, %v13709_v11  ;;  %v13746_v36 = vrot.slane %v13745_v60, 2 }
 0x1b0   : > { %8425 = vmatmul.mubr.msk.f32.gmra.mxu1 %vm1635_vm3, %v10274_v37 }
 0x1b1   : > { %8427 = vmatprep.mubr.msk.f32.mxu1 %vm9881_vm0, %v13709_v11  ;;  %v1296_v45 = vsel %vm1221_vm2, %v13746_v36, %v1295_v49  ;;  %v1615_v36 = vrot.slane %v11122_v33, 1 }
 0x1b2   : > { %8357 = vmatmul.mubr.msk.f32.gmra.mxu0 %vm1635_vm3, %v1602_v6  ;;  %v13744_v6 = vld [vmem:[#allocation42_spill] sm:$0xff]  ;;  %v1392_v16 = vadd.f32 %v1296_v45, %v1114_v24  ;;  %v838_v24 = vmul.f32 %v10912_v53, %v10770_v31 }
 0x1b3   : > { %8359 = vmatprep.mubr.msk.f32.mxu0 %vm9881_vm0, %v13709_v11  ;;  %v1442_v21 = vadd.f32 %v10924_v26, %v13744_v6  ;;  %v1022_v6 = vsel %vm943_vm1, %v1019_v47, %v1021_v20  ;;  %v1300_v47 = vsel %vm1221_vm2, %v1297_v29, %v1299_v8 }
 0x1b4   : > { %8428 = vmatmul.mubr.msk.f32.gmra.mxu1 %vm1635_vm3, %v13737_v55  ;;  %v1116_v25 = vadd.f32 %v1022_v6, %v838_v24  ;;  %v13753_v6 = vld [vmem:[#allocation34_spill] sm:$0xff] }
 0x1b5   : > { %8430 = vmatprep.mubr.msk.f32.mxu1 %vm9881_vm0, %v13709_v11  ;;  %v11108_v19 = vmax.f32 %v1442_v21, 0.0  ;;  %v1298_v21 = vsel %vm1221_vm2, %v1295_v49, %v1297_v29  ;;  %v13750_v49 = vld [vmem:[#allocation31_spill] sm:$0xff]  ;;  %v1447_v29 = vadd.f32 %v10924_v26, %v10868_v51 }
 0x1b6   : > { %8360 = vmatmul.mubr.msk.f32.gmra.mxu0 %vm1635_vm3, %v1604_v38  ;;  %v1609_v38 = vrot.slane %v11065_v30, 1  ;;  %v1393_v63 = vadd.f32 %v1298_v21, %v1115_v56  ;;  %v1394_v41 = vadd.f32 %v1300_v47, %v1116_v25  ;;  %v3012_v25 = vld [vmem:[#allocation11 + $0x10] sm:$0xff] }
 0x1b7   : > { %8362 = vmatprep.mubr.msk.f32.mxu0 %vm9881_vm0, %v13709_v11  ;;  %v1613_v31 = vrot.slane %v11108_v19, 1  ;;  %v11177_v24 = vmax.f32 %v1447_v29, 0.0  ;;  %8687 = vmatpush3.msra.mxu1 %v3012_v25 }
 0x1b8   : > { %8431 = vmatmul.mubr.msk.f32.gmra.mxu1 %vm1635_vm3, %v13738_v12  ;;  %v1610_v22 = vsel %vm943_vm1, %v1607_v54, %v1609_v38  ;;  %v1444_v54 = vadd.f32 %v10924_v26, %v1392_v16  ;;  %v1612_v20 = vsel %vm943_vm1, %v1609_v38, %v1611_v40  ;;  %v1445_v38 = vadd.f32 %v10924_v26, %v1393_v63  ;;  %v13752_v16 = vld [vmem:[#allocation33_spill] sm:$0xff] }
 0x1b9   : > { %8433 = vmatprep.mubr.msk.f32.mxu1 %vm9881_vm0, %v13709_v11  ;;  %v1614_v60 = vsel %vm943_vm1, %v1611_v40, %v1613_v31  ;;  %v1446_v45 = vadd.f32 %v10924_v26, %v1394_v41  ;;  %v1616_v34 = vsel %vm943_vm1, %v1613_v31, %v1615_v36  ;;  %v1623_v63 = vrot.slane %v11177_v24, 1  ;;  %8962 = vmatprep.subr.mxu1 %v13709_v11 }
 0x1ba   : > { %8363 = vmatmul.mubr.msk.f32.gmra.mxu0 %vm1635_vm3, %v1606_v27  ;;  %v13748_v27 = vld [vmem:[#allocation29_spill] sm:$0xff]  ;;  %v11135_v53 = vmax.f32 %v1444_v54, 0.0  ;;  %v11152_v8 = vmax.f32 %v1445_v38, 0.0  ;;  %v13754_v54 = vld [vmem:[#allocation35_spill] sm:$0xff]  ;;  %v2398_v38 = vrot.slane %v10213_v43, 2  ;;  %v2399_v41 = vrot.slane %v10215_v44, 2 }
 0x1bb   : > { %8365 = vmatprep.mubr.msk.f32.mxu0 %vm9881_vm0, %v13709_v11  ;;  %v11166_v56 = vmax.f32 %v1446_v45, 0.0  ;;  %v1626_v47 = vsel %vm943_vm1, %v1623_v63, %v1625_v42  ;;  %v2401_v42 = vrot.slane %v10231_v0, 2 }
 0x1bc   : > { %8434 = vmatmul.mubr.msk.f32.gmra.mxu1 %vm1635_vm3, %v13743_v13  ;;  %v1617_v4 = vrot.slane %v11135_v53, 1  ;;  %v1619_v40 = vrot.slane %v11152_v8, 1 }
 0x1bd   : > { %8436 = vmatprep.mubr.msk.f32.mxu1 %vm9881_vm0, %v13709_v11  ;;  %v1621_v26 = vrot.slane %v11166_v56, 1  ;;  %v2402_v44 = vsel %vm1221_vm2, %v2399_v41, %v2401_v42 }
 0x1be   : > { %8366 = vmatmul.mubr.msk.f32.gmra.mxu0 %vm1635_vm3, %v1608_v1  ;;  %v13749_v1 = vld [vmem:[#allocation30_spill] sm:$0xff]  ;;  %v1620_v51 = vsel %vm943_vm1, %v1617_v4, %v1619_v40 }
 0x1bf   : > { %8368 = vmatprep.mubr.msk.f32.mxu0 %vm9881_vm0, %v13709_v11  ;;  %v1622_v21 = vsel %vm943_vm1, %v1619_v40, %v1621_v26  ;;  %v1624_v31 = vsel %vm943_vm1, %v1621_v26, %v1623_v63  ;;  %v2409_v26 = vrot.slane %v13738_v12, 2  ;;  %v2411_v63 = vrot.slane %v13743_v13, 2 }
 0x1c0   : > { %8437 = vmatmul.mubr.msk.f32.gmra.mxu1 %vm1635_vm3, %v13748_v27 }
 0x1c1   : > { %8439 = vmatprep.mubr.msk.f32.mxu1 %vm9881_vm0, %v13709_v11  ;;  %v2412_v12 = vsel %vm1221_vm2, %v2409_v26, %v2411_v63 }
 0x1c2   : > { %8369 = vmatmul.mubr.msk.f32.gmra.mxu0 %vm1635_vm3, %v1610_v22  ;;  %v1618_v22 = vsel %vm943_vm1, %v1615_v36, %v1617_v4  ;;  %v2403_v36 = vrot.slane %v10251_v17, 2  ;;  %v2405_v4 = vrot.slane %v10274_v37, 2 }
 0x1c3   : > { %8371 = vmatprep.mubr.msk.f32.mxu0 %vm9881_vm0, %v13709_v11 }
 0x1c4   : > { %8440 = vmatmul.mubr.msk.f32.gmra.mxu1 %vm1635_vm3, %v13749_v1  ;;  %v2406_v29 = vsel %vm1221_vm2, %v2403_v36, %v2405_v4 }
 0x1c5   : > { %8442 = vmatprep.mubr.msk.f32.mxu1 %vm9881_vm0, %v13709_v11 }
 0x1c6   : > { %8372 = vmatmul.mubr.msk.f32.gmra.mxu0 %vm1635_vm3, %v1612_v20  ;;  %v13755_v20 = vld [vmem:[#allocation36_spill] sm:$0xff] }
 0x1c7   : > { %8374 = vmatprep.mubr.msk.f32.mxu0 %vm9881_vm0, %v13709_v11 }
 0x1c8   : > { %8443 = vmatmul.mubr.msk.f32.gmra.mxu1 %vm1635_vm3, %v13750_v49 }
 0x1c9   : > { %8445 = vmatprep.mubr.msk.f32.mxu1 %vm9881_vm0, %v13709_v11 }
 0x1ca   : > { %8375 = vmatmul.mubr.msk.f32.gmra.mxu0 %vm1635_vm3, %v1614_v60  ;;  %v2400_v60 = vsel %vm1221_vm2, %v2398_v38, %v2399_v41  ;;  %v2415_v41 = vrot.slane %v13749_v1, 2 }
 0x1cb   : > { %8377 = vmatprep.mubr.msk.f32.mxu0 %vm9881_vm0, %v13709_v11 }
 0x1cc   : > { %8446 = vmatmul.mubr.msk.f32.gmra.mxu1 %vm1635_vm3, %v13751_v10 }
 0x1cd   : > { %8448 = vmatprep.mubr.msk.f32.mxu1 %vm9881_vm0, %v13709_v11 }
 0x1ce   : > { %8378 = vmatmul.mubr.msk.f32.gmra.mxu0 %vm1635_vm3, %v1616_v34  ;;  %v2404_v34 = vsel %vm1221_vm2, %v2401_v42, %v2403_v36  ;;  %v2417_v42 = vrot.slane %v13750_v49, 2  ;;  %v2419_v36 = vrot.slane %v13751_v10, 2 }
 0x1cf   : > { %8380 = vmatprep.mubr.msk.f32.mxu0 %vm9881_vm0, %v13709_v11 }
 0x1d0   : > { %8449 = vmatmul.mubr.msk.f32.gmra.mxu1 %vm1635_vm3, %v13752_v16  ;;  %v2418_v1 = vsel %vm1221_vm2, %v2415_v41, %v2417_v42 }
 0x1d1   : > { %8451 = vmatprep.mubr.msk.f32.mxu1 %vm9881_vm0, %v13709_v11 }
 0x1d2   : > { %8381 = vmatmul.mubr.msk.f32.gmra.mxu0 %vm1635_vm3, %v1618_v22  ;;  %v2407_v22 = vrot.slane %v13737_v55, 2 }
 0x1d3   : > { %8383 = vmatprep.mubr.msk.f32.mxu0 %vm9881_vm0, %v13709_v11 }
 0x1d4   : > { %8452 = vmatmul.mubr.msk.f32.gmra.mxu1 %vm1635_vm3, %v13753_v6 }
 0x1d5   : > { %8454 = vmatprep.mubr.msk.f32.mxu1 %vm9881_vm0, %v13709_v11 }
 0x1d6   : > { %8384 = vmatmul.mubr.msk.f32.gmra.mxu0 %vm1635_vm3, %v1620_v51  ;;  %v2408_v51 = vsel %vm1221_vm2, %v2405_v4, %v2407_v22  ;;  %v2421_v4 = vrot.slane %v13752_v16, 2 }
 0x1d7   : > { %8386 = vmatprep.mubr.msk.f32.mxu0 %vm9881_vm0, %v13709_v11 }
 0x1d8   : > { %8455 = vmatmul.mubr.msk.f32.gmra.mxu1 %vm1635_vm3, %v13754_v54 }
 0x1d9   : > { %8457 = vmatprep.mubr.msk.f32.mxu1 %vm9881_vm0, %v13709_v11 }
 0x1da   : > { %8387 = vmatmul.mubr.msk.f32.gmra.mxu0 %vm1635_vm3, %v1622_v21  ;;  %v2410_v21 = vsel %vm1221_vm2, %v2407_v22, %v2409_v26 }
 0x1db   : > { %8389 = vmatprep.mubr.msk.f32.mxu0 %vm9881_vm0, %v13709_v11 }
 0x1dc   : > { %8458 = vmatmul.mubr.msk.f32.gmra.mxu1 %vm1635_vm3, %v13755_v20 }
 0x1dd   : > { %8460 = vmatprep.mubr.msk.f32.mxu1 %vm9881_vm0, %v13709_v11 }
 0x1de   : > { %8390 = vmatmul.mubr.msk.f32.gmra.mxu0 %vm1635_vm3, %v1624_v31  ;;  %v2413_v31 = vrot.slane %v13748_v27, 2 }
 0x1df   : > { %8392 = vmatprep.mubr.msk.f32.mxu0 %vm9881_vm0, %v13709_v11 }
 0x1e0   : > { %8461 = vmatmul.mubr.msk.f32.gmra.mxu1 %vm1635_vm3, %v10521_v9  ;;  %v2414_v38 = vsel %vm1221_vm2, %v2411_v63, %v2413_v31 }
 0x1e1   : > { %8463 = vmatprep.mubr.msk.f32.mxu1 %vm9881_vm0, %v13709_v11 }
 0x1e2   : > { %8393 = vmatmul.mubr.msk.f32.gmra.mxu0 %vm1635_vm3, %v1626_v47 }
 0x1e3   : > { %8549 = vmatprep.mubr.msk.f32.mxu0 %vm9881_vm0, %v13709_v11 }
 0x1e4   : > { %8464 = vmatmul.mubr.msk.f32.gmra.mxu1 %vm1635_vm3, %v10572_v15 }
 0x1e5   : > { %8466 = vmatprep.mubr.msk.f32.mxu1 %vm9881_vm0, %v13709_v11 }
 0x1e6   : > { %8550 = vmatmul.mubr.msk.f32.vlgmr.msra.gmra.mxu0 %vm1635_vm3, %v2400_v60  ;;  %v2416_v60 = vsel %vm1221_vm2, %v2413_v31, %v2415_v41  ;;  %v2431_v31 = vrot.slane %v10572_v15, 2  ;;  %v2433_v41 = vrot.slane %v10581_v14, 2 }
 0x1e7   : > { %8552 = vmatprep.mubr.msk.f32.mxu0 %vm9881_vm0, %v13709_v11 }
 0x1e8   : > { %8467 = vmatmul.mubr.msk.f32.gmra.mxu1 %vm1635_vm3, %v10581_v14 }
 0x1e9   : > { %8469 = vmatprep.mubr.msk.f32.mxu1 %vm9881_vm0, %v13709_v11 }
 0x1ea   : > { %8553 = vmatmul.mubr.msk.f32.gmra.mxu0 %vm1635_vm3, %v2402_v44 }
 0x1eb   : > { %8555 = vmatprep.mubr.msk.f32.mxu0 %vm9881_vm0, %v13709_v11 }
 0x1ec   : > { %8470 = vmatmul.mubr.msk.f32.gmra.mxu1 %vm1635_vm3, %v10765_v18 }
 0x1ed   : > { %8472 = vmatprep.mubr.msk.f32.mxu1 %vm9881_vm0, %v13709_v11 }
 0x1ee   : > { %v11227_v43 = vpop.f32.mrf.mxu0  ;;  %8556 = vmatmul.mubr.msk.f32.gmra.mxu0 %vm1635_vm3, %v2404_v34  ;;  %v2420_v34 = vsel %vm1221_vm2, %v2417_v42, %v2419_v36  ;;  %v2435_v42 = vrot.slane %v10765_v18, 2 }
 0x1ef   : > { %8558 = vmatprep.mubr.msk.f32.mxu0 %vm9881_vm0, %v13709_v11 }
 0x1f0   : > { %v8277_v0 = vpop.f32.mrf.mxu0  ;;  %8473 = vmatmul.mubr.msk.f32.gmra.mxu1 %vm1635_vm3, %v10768_v52  ;;  %v2436_v14 = vsel %vm1221_vm2, %v2433_v41, %v2435_v42 }
 0x1f1   : > { %8475 = vmatprep.mubr.msk.f32.mxu1 %vm9881_vm0, %v13709_v11 }
 0x1f2   : > { %v11238_v45 = vpop.f32.mrf.mxu0  ;;  %8559 = vmatmul.mubr.msk.f32.gmra.mxu0 %vm1635_vm3, %v2406_v29  ;;  %v2423_v29 = vrot.slane %v13753_v6, 2 }
 0x1f3   : > { %8561 = vmatprep.mubr.msk.f32.mxu0 %vm9881_vm0, %v13709_v11 }
 0x1f4   : > { %v8280_v17 = vpop.f32.mrf.mxu0  ;;  %8476 = vmatmul.mubr.msk.f32.gmra.mxu1 %vm1635_vm3, %v10836_v39  ;;  %v2424_v16 = vsel %vm1221_vm2, %v2421_v4, %v2423_v29 }
 0x1f5   : > { %8478 = vmatprep.mubr.msk.f32.mxu1 %vm9881_vm0, %v13709_v11  ;;  %v2422_v17 = vsel %vm1221_vm2, %v2419_v36, %v2421_v4  ;;  %v3010_v4 = vld [vmem:[#allocation11 + $0x8] sm:$0xff] }
 0x1f6   : > { %v11253_v40 = vpop.f32.mrf.mxu0  ;;  %8562 = vmatmul.mubr.msk.f32.gmra.mxu0 %vm1635_vm3, %v2408_v51 }
 0x1f7   : > { %8564 = vmatprep.mubr.msk.f32.mxu0 %vm9881_vm0, %v13709_v11  ;;  %8824 = vmatpush3.msra.mxu0 %v3010_v4 }
 0x1f8   : > { %v8283_v37 = vpop.f32.mrf.mxu0  ;;  %8479 = vmatmul.mubr.msk.f32.gmra.mxu1 %vm1635_vm3, %v10888_v48  ;;  %8825 = vmatprep.subr.mxu0 %v13709_v11 }
 0x1f9   : > { %8481 = vmatprep.mubr.msk.f32.mxu1 %vm9881_vm0, %v13709_v11  ;;  %v2425_v37 = vrot.slane %v13754_v54, 2 }
 0x1fa   : > { %v11267_v55 = vpop.f32.mrf.mxu0  ;;  %8565 = vmatmul.mubr.msk.f32.gmra.mxu0 %vm1635_vm3, %v2410_v21  ;;  %v2427_v21 = vrot.slane %v13755_v20, 2 }
 0x1fb   : > { %8567 = vmatprep.mubr.msk.f32.mxu0 %vm9881_vm0, %v13709_v11  ;;  %v2426_v26 = vsel %vm1221_vm2, %v2423_v29, %v2425_v37 }
 0x1fc   : > { %v8286_v25 = vpop.f32.mrf.mxu0  ;;  %8482 = vmatmul.mubr.msk.f32.gmra.mxu1 %vm1635_vm3, %v10930_v61  ;;  %v2428_v63 = vsel %vm1221_vm2, %v2425_v37, %v2427_v21 }
 0x1fd   : > { %8484 = vmatprep.mubr.msk.f32.mxu1 %vm9881_vm0, %v13709_v11  ;;  %v2429_v25 = vrot.slane %v10521_v9, 2 }
 0x1fe   : > { %v11284_v47 = vpop.f32.mrf.mxu0  ;;  %8568 = vmatmul.mubr.msk.f32.gmra.mxu0 %vm1635_vm3, %v2412_v12 }
 0x1ff   : > { %8570 = vmatprep.mubr.msk.f32.mxu0 %vm9881_vm0, %v13709_v11  ;;  %v2430_v20 = vsel %vm1221_vm2, %v2427_v21, %v2429_v25  ;;  %v2445_v21 = vrot.slane %v10948_v57, 2 }
 0x200   : > { %v8289_v13 = vpop.f32.mrf.mxu0  ;;  %8485 = vmatmul.mubr.msk.f32.gmra.mxu1 %vm1635_vm3, %v10948_v57 }
 0x201   : > { %8487 = vmatprep.mubr.msk.f32.mxu1 %vm9881_vm0, %v13709_v11 }
 0x202   : > { %8571 = vmatmul.mubr.msk.f32.gmra.mxu0 %vm1635_vm3, %v2414_v38  ;;  %v11298_v27 = vpop.f32.mrf.mxu0  ;;  %v2432_v38 = vsel %vm1221_vm2, %v2429_v25, %v2431_v31 }
 0x203   : > { %8573 = vmatprep.mubr.msk.f32.mxu0 %vm9881_vm0, %v13709_v11 }
 0x204   : > { %8488 = vmatmul.mubr.msk.f32.gmra.mxu1 %vm1635_vm3, %v10965_v23  ;;  %v8292_v44 = vpop.f32.mrf.mxu0 }
 0x205   : > { %8490 = vmatprep.mubr.msk.f32.mxu1 %vm9881_vm0, %v13709_v11 }
 0x206   : > { %8574 = vmatmul.mubr.msk.f32.gmra.mxu0 %vm1635_vm3, %v2416_v60  ;;  %v2434_v60 = vsel %vm1221_vm2, %v2431_v31, %v2433_v41  ;;  %v2449_v31 = vrot.slane %v10980_v46, 2 }
 0x207   : > { %8576 = vmatprep.mubr.msk.f32.mxu0 %vm9881_vm0, %v13709_v11 }
 0x208   : > { %8491 = vmatmul.mubr.msk.f32.gmra.mxu1 %vm1635_vm3, %v10980_v46  ;;  %v11315_v0 = vpop.f32.mrf.mxu0 }
 0x209   : > { %8493 = vmatprep.mubr.msk.f32.mxu1 %vm9881_vm0, %v13709_v11 }
 0x20a   : > { %8577 = vmatmul.mubr.msk.f32.gmra.mxu0 %vm1635_vm3, %v2418_v1  ;;  %v8295_v49 = vpop.f32.mrf.mxu0  ;;  %v2437_v1 = vrot.slane %v10768_v52, 2  ;;  %v3009_v52 = vld [vmem:[#allocation11] sm:$0xff] }
 0x20b   : > { %8579 = vmatprep.mubr.msk.f32.mxu0 %vm9881_vm0, %v13709_v11  ;;  %8826 = vmatpush3.msra.mxu0 %v3009_v52 }
 0x20c   : > { %8494 = vmatmul.mubr.msk.f32.gmra.mxu1 %vm1635_vm3, %v10999_v62  ;;  %v2438_v49 = vsel %vm1221_vm2, %v2435_v42, %v2437_v1 }
 0x20d   : > { %8496 = vmatprep.mubr.msk.f32.mxu1 %vm9881_vm0, %v13709_v11 }
 0x20e   : > { %8580 = vmatmul.mubr.msk.f32.gmra.mxu0 %vm1635_vm3, %v2420_v34  ;;  %v11329_v10 = vpop.f32.mrf.mxu0  ;;  %v2439_v34 = vrot.slane %v10836_v39, 2  ;;  %v2441_v39 = vrot.slane %v10888_v48, 2 }
 0x20f   : > { %8582 = vmatprep.mubr.msk.f32.mxu0 %vm9881_vm0, %v13709_v11 }
 0x210   : > { %8497 = vmatmul.mubr.msk.f32.gmra.mxu1 %vm1635_vm3, %v11010_v58  ;;  %v8298_v22 = vpop.f32.mrf.mxu0  ;;  %v2440_v29 = vsel %vm1221_vm2, %v2437_v1, %v2439_v34 }
 0x211   : > { %8499 = vmatprep.mubr.msk.f32.mxu1 %vm9881_vm0, %v13709_v11 }
 0x212   : > { %8583 = vmatmul.mubr.msk.f32.gmra.mxu0 %vm1635_vm3, %v2422_v17 }
 0x213   : > { %8585 = vmatprep.mubr.msk.f32.mxu0 %vm9881_vm0, %v13709_v11  ;;  %v11346_v51 = vpop.f32.mrf.mxu0 }
 0x214   : > { %8500 = vmatmul.mubr.msk.f32.gmra.mxu1 %vm1635_vm3, %v11024_v3 }
 0x215   : > { %8502 = vmatprep.mubr.msk.f32.mxu1 %vm9881_vm0, %v13709_v11  ;;  %v8301_v6 = vpop.f32.mrf.mxu0 }
 0x216   : > { %8586 = vmatmul.mubr.msk.f32.gmra.mxu0 %vm1635_vm3, %v2424_v16  ;;  %v2442_v16 = vsel %vm1221_vm2, %v2439_v34, %v2441_v39  ;;  %v2443_v6 = vrot.slane %v10930_v61, 2  ;;  %v2455_v34 = vrot.slane %v11024_v3, 2 }
 0x217   : > { %8588 = vmatprep.mubr.msk.f32.mxu0 %vm9881_vm0, %v13709_v11 }
 0x218   : > { %8503 = vmatmul.mubr.msk.f32.gmra.mxu1 %vm1635_vm3, %v11033_v35 }
 0x219   : > { %8505 = vmatprep.mubr.msk.f32.mxu1 %vm9881_vm0, %v13709_v11  ;;  %v11360_v54 = vpop.f32.mrf.mxu0 }
 0x21a   : > { %8589 = vmatmul.mubr.msk.f32.gmra.mxu0 %vm1635_vm3, %v2426_v26  ;;  %v2444_v26 = vsel %vm1221_vm2, %v2441_v39, %v2443_v6 }
 0x21b   : > { %8591 = vmatprep.mubr.msk.f32.mxu0 %vm9881_vm0, %v13709_v11  ;;  %v8304_v12 = vpop.f32.mrf.mxu0 }
 0x21c   : > { %8506 = vmatmul.mubr.msk.f32.gmra.mxu1 %vm1635_vm3, %v11052_v28  ;;  %v2447_v12 = vrot.slane %v10965_v23, 2 }
 0x21d   : > { %8508 = vmatprep.mubr.msk.f32.mxu1 %vm9881_vm0, %v13709_v11 }
 0x21e   : > { %8592 = vmatmul.mubr.msk.f32.gmra.mxu0 %vm1635_vm3, %v2428_v63  ;;  %v2446_v63 = vsel %vm1221_vm2, %v2443_v6, %v2445_v21 }
 0x21f   : > { %8594 = vmatprep.mubr.msk.f32.mxu0 %vm9881_vm0, %v13709_v11  ;;  %v11377_v13 = vpop.f32.mrf.mxu0 }
 0x220   : > { %8509 = vmatmul.mubr.msk.f32.gmra.mxu1 %vm1635_vm3, %v11065_v30 }
 0x221   : > { %8511 = vmatprep.mubr.msk.f32.mxu1 %vm9881_vm0, %v13709_v11  ;;  %v8307_v9 = vpop.f32.mrf.mxu0 }
 0x222   : > { %8595 = vmatmul.mubr.msk.f32.gmra.mxu0 %vm1635_vm3, %v2430_v20  ;;  %v2448_v20 = vsel %vm1221_vm2, %v2445_v21, %v2447_v12  ;;  %v2450_v9 = vsel %vm1221_vm2, %v2447_v12, %v2449_v31  ;;  %v2459_v21 = vrot.slane %v11052_v28, 2 }
 0x223   : > { %8597 = vmatprep.mubr.msk.f32.mxu0 %vm9881_vm0, %v13709_v11 }
 0x224   : > { %8512 = vmatmul.mubr.msk.f32.gmra.mxu1 %vm1635_vm3, %v11089_v59 }
 0x225   : > { %8514 = vmatprep.mubr.msk.f32.mxu1 %vm9881_vm0, %v13709_v11  ;;  %v11391_v15 = vpop.f32.mrf.mxu0 }
 0x226   : > { %8598 = vmatmul.mubr.msk.f32.gmra.mxu0 %vm1635_vm3, %v2432_v38  ;;  %v2451_v38 = vrot.slane %v10999_v62, 2  ;;  %v2453_v62 = vrot.slane %v11010_v58, 2 }
 0x227   : > { %8600 = vmatprep.mubr.msk.f32.mxu0 %vm9881_vm0, %v13709_v11  ;;  %v8310_v44 = vpop.f32.mrf.mxu0 }
 0x228   : > { %8515 = vmatmul.mubr.msk.f32.gmra.mxu1 %vm1635_vm3, %v11108_v19  ;;  %v2452_v42 = vsel %vm1221_vm2, %v2449_v31, %v2451_v38  ;;  %v2456_v39 = vsel %vm1221_vm2, %v2453_v62, %v2455_v34  ;;  %v2461_v31 = vrot.slane %v11065_v30, 2 }
 0x229   : > { %8517 = vmatprep.mubr.msk.f32.mxu1 %vm9881_vm0, %v13709_v11 }
 0x22a   : > { %8601 = vmatmul.mubr.msk.f32.gmra.mxu0 %vm1635_vm3, %v2434_v60 }
 0x22b   : > { %8603 = vmatprep.mubr.msk.f32.mxu0 %vm9881_vm0, %v13709_v11  ;;  %v11408_v36 = vpop.f32.mrf.mxu0 }
 0x22c   : > { %8518 = vmatmul.mubr.msk.f32.gmra.mxu1 %vm1635_vm3, %v11122_v33 }
 0x22d   : > { %8520 = vmatprep.mubr.msk.f32.mxu1 %vm9881_vm0, %v13709_v11  ;;  %v8313_v18 = vpop.f32.mrf.mxu0 }
 0x22e   : > { %8604 = vmatmul.mubr.msk.f32.gmra.mxu0 %vm1635_vm3, %v2436_v14 }
 0x22f   : > { %8606 = vmatprep.mubr.msk.f32.mxu0 %vm9881_vm0, %v13709_v11 }
 0x230   : > { %8521 = vmatmul.mubr.msk.f32.gmra.mxu1 %vm1635_vm3, %v11135_v53 }
 0x231   : > { %8523 = vmatprep.mubr.msk.f32.mxu1 %vm9881_vm0, %v13709_v11  ;;  %v11422_v17 = vpop.f32.mrf.mxu0 }
 0x232   : > { %8607 = vmatmul.mubr.msk.f32.gmra.mxu0 %vm1635_vm3, %v2438_v49  ;;  %v2454_v49 = vsel %vm1221_vm2, %v2451_v38, %v2453_v62 }
 0x233   : > { %8609 = vmatprep.mubr.msk.f32.mxu0 %vm9881_vm0, %v13709_v11  ;;  %v8316_v22 = vpop.f32.mrf.mxu0 }
 0x234   : > { %8524 = vmatmul.mubr.msk.f32.gmra.mxu1 %vm1635_vm3, %v11152_v8  ;;  %v2457_v22 = vrot.slane %v11033_v35, 2 }
 0x235   : > { %8526 = vmatprep.mubr.msk.f32.mxu1 %vm9881_vm0, %v13709_v11 }
 0x236   : > { %8610 = vmatmul.mubr.msk.f32.gmra.mxu0 %vm1635_vm3, %v2440_v29 }
 0x237   : > { %8612 = vmatprep.mubr.msk.f32.mxu0 %vm9881_vm0, %v13709_v11  ;;  %v11439_v37 = vpop.f32.mrf.mxu0 }
 0x238   : > { %8527 = vmatmul.mubr.msk.f32.gmra.mxu1 %vm1635_vm3, %v11166_v56 }
 0x239   : > { %8529 = vmatprep.mubr.msk.f32.mxu1 %vm9881_vm0, %v13709_v11  ;;  %v8319_v48 = vpop.f32.mrf.mxu0 }
 0x23a   : > { %8613 = vmatmul.mubr.msk.f32.gmra.mxu0 %vm1635_vm3, %v2442_v16 }
 0x23b   : > { %8615 = vmatprep.mubr.msk.f32.mxu0 %vm9881_vm0, %v13709_v11 }
 0x23c   : > { %8530 = vmatmul.mubr.msk.f32.gmra.mxu1 %vm1635_vm3, %v11177_v24 }
 0x23d   : > { %8532 = vmatprep.mubr.msk.f32.mxu1 %vm9881_vm0, %v13709_v11 }
 0x23e   : > { %8616 = vmatmul.mubr.msk.f32.gmra.mxu0 %vm1635_vm3, %v2444_v26  ;;  %v2458_v26 = vsel %vm1221_vm2, %v2455_v34, %v2457_v22  ;;  %v2465_v34 = vrot.slane %v11108_v19, 2 }
 0x23f   : > { %8618 = vmatprep.mubr.msk.f32.mxu0 %vm9881_vm0, %v13709_v11  ;;  %v11454_v61 = vpop.f32.mrf.mxu0 }
 0x240   : > { %8533 = vmatmul.mubr.msk.f32.gmra.mxu1 %vm1635_vm3, %v10800_v32 }
 0x241   : > { %v8322_v25 = vpop.f32.mrf.mxu0  ;;  %8535 = vmatprep.mubr.msk.f32.mxu1 %vm9881_vm0, %v13709_v11 }
 0x242   : > { %8619 = vmatmul.mubr.msk.f32.gmra.mxu0 %vm1635_vm3, %v2446_v63 }
 0x243   : > { %8621 = vmatprep.mubr.msk.f32.mxu0 %vm9881_vm0, %v13709_v11 }
 0x244   : > { %8536 = vmatmul.mubr.msk.f32.gmra.mxu1 %vm1635_vm3, %v10810_v2  ;;  %v11467_v57 = vpop.f32.mrf.mxu0 }
 0x245   : > { %8538 = vmatprep.mubr.msk.f32.mxu1 %vm9881_vm0, %v13709_v11 }
 0x246   : > { %8622 = vmatmul.mubr.msk.f32.gmra.mxu0 %vm1635_vm3, %v2448_v20  ;;  %v8325_v23 = vpop.f32.mrf.mxu0  ;;  %v2460_v20 = vsel %vm1221_vm2, %v2457_v22, %v2459_v21 }
 0x247   : > { %8624 = vmatprep.mubr.msk.f32.mxu0 %vm9881_vm0, %v13709_v11 }
 0x248   : > { %8539 = vmatmul.mubr.msk.f32.gmra.mxu1 %vm1635_vm3, %v10826_v5 }
 0x249   : > { %8541 = vmatprep.mubr.msk.f32.mxu1 %vm9881_vm0, %v13709_v11  ;;  %v11482_v41 = vpop.f32.mrf.mxu0 }
 0x24a   : > { %8625 = vmatmul.mubr.msk.f32.gmra.mxu0 %vm1635_vm3, %v2450_v9 }
 0x24b   : > { %8627 = vmatprep.mubr.msk.f32.mxu0 %vm9881_vm0, %v13709_v11  ;;  %v8328_v46 = vpop.f32.mrf.mxu0 }
 0x24c   : > { %v11487_v60 = vpop.f32.mrf.mxu1  ;;  %8542 = vmatmul.mubr.msk.f32.gmra.mxu1 %vm1635_vm3, %v10831_v50  ;;  %v2462_v46 = vsel %vm1221_vm2, %v2459_v21, %v2461_v31 }
 0x24d   : > { %13756 = vst [vmem:[#allocation37_spill] sm:$0xff] %v11487_v60  ;;  %8544 = vmatprep.mubr.msk.f32.mxu1 %vm9881_vm0, %v13709_v11 }
 0x24e   : > { %v11495_v44 = vpop.f32.mrf.mxu0  ;;  %8628 = vmatmul.mubr.msk.f32.gmra.mxu0 %vm1635_vm3, %v2452_v42  ;;  %v8397_v14 = vpop.f32.mrf.mxu1  ;;  %v2463_v42 = vrot.slane %v11089_v59, 2 }
 0x24f   : > { %8630 = vmatprep.mubr.msk.f32.mxu0 %vm9881_vm0, %v13709_v11 }
 0x250   : > { %v8331_v1 = vpop.f32.mrf.mxu0  ;;  %v11500_v18 = vpop.f32.mrf.mxu1  ;;  %8545 = vmatmul.mubr.msk.f32.gmra.mxu1 %vm1635_vm3, %v10895_v7  ;;  %v2466_v22 = vsel %vm1221_vm2, %v2463_v42, %v2465_v34 }
 0x251   : > { %13757 = vst [vmem:[#allocation26_spill] sm:$0xff] %v11500_v18  ;;  %8688 = vmatprep.mubr.msk.f32.mxu1 %vm9881_vm0, %v13709_v11 }
 0x252   : > { %v11508_v58 = vpop.f32.mrf.mxu0  ;;  %8631 = vmatmul.mubr.msk.f32.gmra.mxu0 %vm1635_vm3, %v2454_v49  ;;  %v8400_v4 = vpop.f32.mrf.mxu1  ;;  %v2464_v49 = vsel %vm1221_vm2, %v2461_v31, %v2463_v42 }
 0x253   : > { %8633 = vmatprep.mubr.msk.f32.mxu0 %vm9881_vm0, %v13709_v11 }
 0x254   : > { %v8334_v52 = vpop.f32.mrf.mxu0  ;;  %v11513_v29 = vpop.f32.mrf.mxu1 }
 0x255   : > { %13758 = vst [vmem:[#allocation27_spill] sm:$0xff] %v11513_v29 }
 0x256   : > { %v11517_v16 = vpop.f32.mrf.mxu0  ;;  %8634 = vmatmul.mubr.msk.f32.gmra.mxu0 %vm1635_vm3, %v2456_v39  ;;  %v8403_v3 = vpop.f32.mrf.mxu1 }
 0x257   : > { %8636 = vmatprep.mubr.msk.f32.mxu0 %vm9881_vm0, %v13709_v11  ;;  %v2467_v3 = vrot.slane %v11122_v33, 2 }
 0x258   : > { %v8337_v6 = vpop.f32.mrf.mxu0  ;;  %v11522_v48 = vpop.f32.mrf.mxu1 }
 0x259   : > { %13759 = vst [vmem:[#allocation41_spill] sm:$0xff] %v11522_v48 }
 0x25a   : > { %v11526_v63 = vpop.f32.mrf.mxu0  ;;  %8637 = vmatmul.mubr.msk.f32.gmra.mxu0 %vm1635_vm3, %v2458_v26  ;;  %v8406_v35 = vpop.f32.mrf.mxu1 }
 0x25b   : > { %8639 = vmatprep.mubr.msk.f32.mxu0 %vm9881_vm0, %v13709_v11  ;;  %v2468_v35 = vsel %vm1221_vm2, %v2465_v34, %v2467_v3  ;;  %v2473_v34 = vrot.slane %v11166_v56, 2 }
 0x25c   : > { %v8340_v25 = vpop.f32.mrf.mxu0  ;;  %v11531_v12 = vpop.f32.mrf.mxu1 }
 0x25d   : > { %13760 = vst [vmem:[#allocation39_spill] sm:$0xff] %v11531_v12  ;;  %v2469_v25 = vrot.slane %v11135_v53, 2 }
 0x25e   : > { %v11535_v23 = vpop.f32.mrf.mxu0  ;;  %8640 = vmatmul.mubr.msk.f32.gmra.mxu0 %vm1635_vm3, %v2460_v20  ;;  %v8409_v28 = vpop.f32.mrf.mxu1 }
 0x25f   : > { %8642 = vmatprep.mubr.msk.f32.mxu0 %vm9881_vm0, %v13709_v11 }
 0x260   : > { %v8343_v9 = vpop.f32.mrf.mxu0  ;;  %v11540_v38 = vpop.f32.mrf.mxu1 }
 0x261   : > { %v2470_v9 = vsel %vm1221_vm2, %v2467_v3, %v2469_v25 }
 0x262   : > { %v11544_v62 = vpop.f32.mrf.mxu0  ;;  %8643 = vmatmul.mubr.msk.f32.gmra.mxu0 %vm1635_vm3, %v2462_v46  ;;  %v8414_v30 = vpop.f32.mrf.mxu1  ;;  %v2471_v46 = vrot.slane %v11152_v8, 2 }
 0x263   : > { %8645 = vmatprep.mubr.msk.f32.mxu0 %vm9881_vm0, %v13709_v11 }
 0x264   : > { %v8346_v14 = vpop.f32.mrf.mxu0  ;;  %v11549_v1 = vpop.f32.mrf.mxu1  ;;  %v2474_v3 = vsel %vm1221_vm2, %v2471_v46, %v2473_v34 }
 0x266   : > { %v11553_v4 = vpop.f32.mrf.mxu0  ;;  %8646 = vmatmul.mubr.msk.f32.gmra.mxu0 %vm1635_vm3, %v2464_v49  ;;  %v8417_v59 = vpop.f32.mrf.mxu1  ;;  %v2472_v49 = vsel %vm1221_vm2, %v2469_v25, %v2471_v46 }
 0x267   : > { %8648 = vmatprep.mubr.msk.f32.mxu0 %vm9881_vm0, %v13709_v11 }
 0x268   : > { %v8349_v52 = vpop.f32.mrf.mxu0  ;;  %v11558_v39 = vpop.f32.mrf.mxu1 }
 0x26a   : > { %v11562_v6 = vpop.f32.mrf.mxu0  ;;  %8649 = vmatmul.mubr.msk.f32.gmra.mxu0 %vm1635_vm3, %v2466_v22  ;;  %v8420_v19 = vpop.f32.mrf.mxu1 }
 0x26b   : > { %8651 = vmatprep.mubr.msk.f32.mxu0 %vm9881_vm0, %v13709_v11  ;;  %v2475_v19 = vrot.slane %v11177_v24, 2  ;;  %v2477_v24 = vrot.slane %v10800_v32, 2 }
 0x26c   : > { %v8352_v26 = vpop.f32.mrf.mxu0  ;;  %v11567_v21 = vpop.f32.mrf.mxu1 }
 0x26e   : > { %v11571_v20 = vpop.f32.mrf.mxu0  ;;  %8652 = vmatmul.mubr.msk.f32.gmra.mxu0 %vm1635_vm3, %v2468_v35  ;;  %v8423_v33 = vpop.f32.mrf.mxu1 }
 0x26f   : > { %8654 = vmatprep.mubr.msk.f32.mxu0 %vm9881_vm0, %v13709_v11  ;;  %v2476_v33 = vsel %vm1221_vm2, %v2473_v34, %v2475_v19 }
 0x270   : > { %v8355_v31 = vpop.f32.mrf.mxu0  ;;  %v11576_v28 = vpop.f32.mrf.mxu1 }
 0x272   : > { %v11580_v42 = vpop.f32.mrf.mxu0  ;;  %8655 = vmatmul.mubr.msk.f32.gmra.mxu0 %vm1635_vm3, %v2470_v9  ;;  %v8426_v53 = vpop.f32.mrf.mxu1 }
 0x273   : > { %8657 = vmatprep.mubr.msk.f32.mxu0 %vm9881_vm0, %v13709_v11 }
 0x274   : > { %v8358_v30 = vpop.f32.mrf.mxu0  ;;  %v11585_v14 = vpop.f32.mrf.mxu1 }
 0x275   : > { %v2478_v30 = vsel %vm1221_vm2, %v2475_v19, %v2477_v24 }
 0x276   : > { %v11589_v59 = vpop.f32.mrf.mxu0  ;;  %8658 = vmatmul.mubr.msk.f32.gmra.mxu0 %vm1635_vm3, %v2472_v49  ;;  %v8429_v8 = vpop.f32.mrf.mxu1  ;;  %v2479_v49 = vrot.slane %v10810_v2, 2 }
 0x277   : > { %8660 = vmatprep.mubr.msk.f32.mxu0 %vm9881_vm0, %v13709_v11 }
 0x278   : > { %v8361_v52 = vpop.f32.mrf.mxu0  ;;  %v11594_v22 = vpop.f32.mrf.mxu1  ;;  %v2480_v32 = vsel %vm1221_vm2, %v2477_v24, %v2479_v49 }
 0x27a   : > { %v11598_v26 = vpop.f32.mrf.mxu0  ;;  %8661 = vmatmul.mubr.msk.f32.gmra.mxu0 %vm1635_vm3, %v2474_v3  ;;  %v8432_v56 = vpop.f32.mrf.mxu1 }
 0x27b   : > { %8663 = vmatprep.mubr.msk.f32.mxu0 %vm9881_vm0, %v13709_v11  ;;  %v2481_v56 = vrot.slane %v10826_v5, 2 }
 0x27c   : > { %v8364_v35 = vpop.f32.mrf.mxu0  ;;  %v11603_v25 = vpop.f32.mrf.mxu1 }
 0x27e   : > { %v11606_v31 = vpop.f32.mrf.mxu0  ;;  %8664 = vmatmul.mubr.msk.f32.gmra.mxu0 %vm1635_vm3, %v2476_v33  ;;  %v8435_v9 = vpop.f32.mrf.mxu1 }
 0x27f   : > { %8666 = vmatprep.mubr.msk.f32.mxu0 %vm9881_vm0, %v13709_v11  ;;  %v2482_v9 = vsel %vm1221_vm2, %v2479_v49, %v2481_v56 }
 0x280   : > { %v8367_v46 = vpop.f32.mrf.mxu0  ;;  %v11612_v53 = vpop.f32.mrf.mxu1 }
 0x281   : > { %v2483_v46 = vrot.slane %v10831_v50, 2 }
 0x282   : > { %v11616_v8 = vpop.f32.mrf.mxu0  ;;  %8667 = vmatmul.mubr.msk.f32.gmra.mxu0 %vm1635_vm3, %v2478_v30  ;;  %v8438_v34 = vpop.f32.mrf.mxu1 }
 0x283   : > { %13761 = vst [vmem:[#allocation38_spill] sm:$0xff] %v11616_v8  ;;  %8669 = vmatprep.mubr.msk.f32.mxu0 %vm9881_vm0, %v13709_v11 }
 0x284   : > { %v8370_v52 = vpop.f32.mrf.mxu0  ;;  %v11621_v3 = vpop.f32.mrf.mxu1 }
 0x285   : > { %v2484_v52 = vsel %vm1221_vm2, %v2481_v56, %v2483_v46 }
 0x286   : > { %v11625_v35 = vpop.f32.mrf.mxu0  ;;  %8670 = vmatmul.mubr.msk.f32.gmra.mxu0 %vm1635_vm3, %v2480_v32  ;;  %v8441_v2 = vpop.f32.mrf.mxu1  ;;  %v2485_v32 = vrot.slane %v10895_v7, 2 }
 0x287   : > { %13762 = vst [vmem:[#allocation28_spill] sm:$0xff] %v11625_v35  ;;  %8672 = vmatprep.mubr.msk.f32.mxu0 %vm9881_vm0, %v13709_v11 }
 0x288   : > { %v8373_v19 = vpop.f32.mrf.mxu0  ;;  %v11630_v33 = vpop.f32.mrf.mxu1 }
 0x28a   : > { %v11634_v30 = vpop.f32.mrf.mxu0  ;;  %8673 = vmatmul.mubr.msk.f32.gmra.mxu0 %vm1635_vm3, %v2482_v9  ;;  %v8444_v5 = vpop.f32.mrf.mxu1  ;;  %v2486_v9 = vsel %vm1221_vm2, %v2483_v46, %v2485_v32 }
 0x28b   : > { %13763 = vst [vmem:[#allocation42_spill] sm:$0xff] %v11634_v30  ;;  %8675 = vmatprep.mubr.msk.f32.mxu0 %vm9881_vm0, %v13709_v11 }
 0x28c   : > { %v8376_v24 = vpop.f32.mrf.mxu0  ;;  %v11639_v34 = vpop.f32.mrf.mxu1 }
 0x28e   : > { %v11643_v2 = vpop.f32.mrf.mxu0  ;;  %8676 = vmatmul.mubr.msk.f32.gmra.mxu0 %vm1635_vm3, %v2484_v52  ;;  %v8447_v50 = vpop.f32.mrf.mxu1 }
 0x28f   : > { %13764 = vst [vmem:[#allocation40_spill] sm:$0xff] %v11643_v2  ;;  %8678 = vmatprep.mubr.msk.f32.mxu0 %vm9881_vm0, %v13709_v11 }
 0x290   : > { %v8379_v49 = vpop.f32.mrf.mxu0  ;;  %v11648_v19 = vpop.f32.mrf.mxu1 }
 0x292   : > { %v11651_v5 = vpop.f32.mrf.mxu0  ;;  %8679 = vmatmul.mubr.msk.f32.gmra.mxu0 %vm1635_vm3, %v2486_v9  ;;  %v8450_v56 = vpop.f32.mrf.mxu1 }
 0x293   : > { %13765 = vst [vmem:[#allocation43_spill] sm:$0xff] %v11651_v5  ;;  %8681 = vmatprep.mubr.msk.f32.mxu0 %vm9881_vm0, %v13709_v11 }
 0x294   : > { %v8382_v7 = vpop.f32.mrf.mxu0  ;;  %v11656_v24 = vpop.f32.mrf.mxu1 }
 0x296   : > { %v11658_v52 = vpop.f32.mrf.mxu0  ;;  %8682 = vmatmul.mubr.msk.f32.gmra.mxu0 %vm1635_vm3, %v2485_v32  ;;  %v8453_v50 = vpop.f32.mrf.mxu1 }
 0x297   : > { %13766 = vst [vmem:[#allocation29_spill] sm:$0xff] %v11658_v52  ;;  %8827 = vmatprep.mubr.msk.f32.mxu0 %vm9881_vm0, %v13709_v11 }
 0x298   : > { %v8385_v46 = vpop.f32.mrf.mxu0  ;;  %v11663_v49 = vpop.f32.mrf.mxu1 }
 0x299   : > { %v2173_v46 = vadd.f32 %v11540_v38, %v11227_v43  ;;  %v2183_v38 = vadd.f32 %v11558_v39, %v11253_v40 }
 0x29a   : > { %v11665_v12 = vpop.f32.mrf.mxu0  ;;  %v8456_v9 = vpop.f32.mrf.mxu1 }
 0x29b   : > { %13767 = vst [vmem:[#allocation30_spill] sm:$0xff] %v11665_v12  ;;  %v11679_v9 = vld [vmem:[#allocation9] ss:$0 sm:$0xff] }
 0x29c   : > { %v8388_v56 = vpop.f32.mrf.mxu0  ;;  %v11667_v48 = vpop.f32.mrf.mxu1 }
 0x29e   : > { %v11669_v7 = vpop.f32.mrf.mxu0  ;;  %v8459_v29 = vpop.f32.mrf.mxu1 }
 0x29f   : > { %13768 = vst [vmem:[#allocation31_spill] sm:$0xff] %v11669_v7 }
 0x2a0   : > { %v8391_v18 = vpop.f32.mrf.mxu0  ;;  %v11671_v60 = vpop.f32.mrf.mxu1 }
 0x2a1   : > { %v2178_v18 = vadd.f32 %v11549_v1, %v11238_v45 }
 0x2a2   : > { %v11673_v32 = vpop.f32.mrf.mxu0  ;;  %v8462_v50 = vpop.f32.mrf.mxu1 }
 0x2a3   : > { %13769 = vst [vmem:[#allocation32_spill] sm:$0xff] %v11673_v32 }
 0x2a4   : > { %v8394_v52 = vpop.f32.mrf.mxu0  ;;  %v11675_v5 = vpop.f32.mrf.mxu1 }
 0x2a6   : > { %v2643_v12 = vpop.f32.mrf.mxu0  ;;  %v8465_v56 = vpop.f32.mrf.mxu1 }
 0x2a7   : > { %v2867_v2 = vadd.f32 %v2643_v12, %v2173_v46 }
 0x2a8   : > { %v8551_v30 = vpop.f32.mrf.mxu0  ;;  %v11681_v7 = vpop.f32.mrf.mxu1 }
 0x2a9   : > { %v2919_v29 = vadd.f32 %v11679_v9, %v2867_v2  ;;  %v2188_v2 = vadd.f32 %v11567_v21, %v11267_v55 }
 0x2aa   : > { %v2648_v50 = vpop.f32.mrf.mxu0  ;;  %v8468_v52 = vpop.f32.mrf.mxu1 }
 0x2ab   : > { %v2964_v32 = vmax.f32 %v2919_v29, 0.0  ;;  %v2868_v35 = vadd.f32 %v2648_v50, %v2178_v18 }
 0x2ac   : > { %v8554_v8 = vpop.f32.mrf.mxu0  ;;  %v11686_v43 = vpop.f32.mrf.mxu1 }
 0x2ad   : > { %v2920_v12 = vadd.f32 %v11679_v9, %v2868_v35  ;;  %8828 = vmatmul.mubr.msk.f32.vlgmr.msra.gmra.mxu0 %vm3148_vm4, %v2964_v32  ;;  %v3059_v8 = vrot.slane %v2964_v32, 1  ;;  %v3912_v29 = vrot.slane %v2964_v32, 2 }
 0x2ae   : > { %v2653_v30 = vpop.f32.mrf.mxu0  ;;  %v8471_v46 = vpop.f32.mrf.mxu1  ;;  %8830 = vmatprep.mubr.msk.f32.mxu0 %vm9881_vm0, %v13709_v11 }
 0x2af   : > { %v2965_v45 = vmax.f32 %v2920_v12, 0.0  ;;  %v2869_v1 = vadd.f32 %v2653_v30, %v2183_v38  ;;  %v3911_v38 = vld [vmem:[#allocation11 + $0x28] sm:$0xff] }
 0x2b0   : > { %v8557_v56 = vpop.f32.mrf.mxu0  ;;  %v11696_v18 = vpop.f32.mrf.mxu1 }
 0x2b1   : > { %v3060_v40 = vrot.slane %v2965_v45, 1  ;;  %v3913_v39 = vrot.slane %v2965_v45, 2  ;;  %v2921_v35 = vadd.f32 %v11679_v9, %v2869_v1  ;;  %8831 = vmatmul.mubr.msk.f32.gmra.mxu0 %vm3148_vm4, %v2965_v45  ;;  %v2193_v45 = vadd.f32 %v11576_v28, %v11284_v47  ;;  %v3910_v47 = vld [vmem:[#allocation11 + $0x20] sm:$0xff] }
 0x2b2   : > { %v2658_v50 = vpop.f32.mrf.mxu0  ;;  %v8474_v52 = vpop.f32.mrf.mxu1  ;;  %8833 = vmatprep.mubr.msk.f32.mxu0 %vm9881_vm0, %v13709_v11 }
 0x2b3   : > { %v2966_v12 = vmax.f32 %v2921_v35, 0.0  ;;  %v2870_v30 = vadd.f32 %v2658_v50, %v2188_v2  ;;  %v3061_v55 = vsel %vm943_vm1, %v3059_v8, %v3060_v40  ;;  %v11704_v21 = vsel %vm1221_vm2, %v3912_v29, %v3913_v39 }
 0x2b4   : > { %v8560_v32 = vpop.f32.mrf.mxu0  ;;  %8689 = vmatmul.mubr.msk.f32.vlgmr.msra.gmra.mxu1 %vm3148_vm4, %v3061_v55  ;;  %v11707_v46 = vpop.f32.mrf.mxu1 }
 0x2b5   : > { %v3062_v1 = vrot.slane %v2966_v12, 1  ;;  %v3915_v56 = vrot.slane %v2966_v12, 2  ;;  %v2922_v52 = vadd.f32 %v11679_v9, %v2870_v30  ;;  %8963 = vmatpush3.msra.mxu1 %v3911_v38  ;;  %8834 = vmatmul.mubr.msk.f32.gmra.mxu0 %vm3148_vm4, %v2966_v12  ;;  %v2198_v30 = vadd.f32 %v11585_v14, %v11298_v27 }
 0x2b6   : > { %v2663_v2 = vpop.f32.mrf.mxu0  ;;  %8691 = vmatprep.mubr.msk.f32.mxu1 %vm9881_vm0, %v13709_v11  ;;  %v8477_v8 = vpop.f32.mrf.mxu1  ;;  %8836 = vmatprep.mubr.msk.f32.mxu0 %vm9881_vm0, %v13709_v11 }
 0x2b7   : > { %v2967_v29 = vmax.f32 %v2922_v52, 0.0  ;;  %v2871_v35 = vadd.f32 %v2663_v2, %v2193_v45  ;;  %v3063_v50 = vsel %vm943_vm1, %v3060_v40, %v3062_v1  ;;  %8964 = vmatprep.subr.mxu1 %v13709_v11  ;;  %v11720_v28 = vsel %vm1221_vm2, %v3913_v39, %v3915_v56 }
 0x2b8   : > { %v8563_v38 = vpop.f32.mrf.mxu0  ;;  %8692 = vmatmul.mubr.msk.f32.gmra.mxu1 %vm3148_vm4, %v3063_v50  ;;  %v11723_v12 = vpop.f32.mrf.mxu1 }
 0x2b9   : > { %v3064_v55 = vrot.slane %v2967_v29, 1  ;;  %v3917_v32 = vrot.slane %v2967_v29, 2  ;;  %v2923_v45 = vadd.f32 %v11679_v9, %v2871_v35  ;;  %8837 = vmatmul.mubr.msk.f32.gmra.mxu0 %vm3148_vm4, %v2967_v29  ;;  %8694 = vmatprep.mubr.msk.f32.mxu1 %vm9881_vm0, %v13709_v11  ;;  %v2203_v35 = vadd.f32 %v11594_v22, %v11315_v0 }
 0x2ba   : > { %v2668_v40 = vpop.f32.mrf.mxu0  ;;  %v8480_v39 = vpop.f32.mrf.mxu1  ;;  %8839 = vmatprep.mubr.msk.f32.mxu0 %vm9881_vm0, %v13709_v11  ;;  %8965 = vmatpush3.msra.mxu1 %v3910_v47 }
 0x2bb   : > { %v2968_v52 = vmax.f32 %v2923_v45, 0.0  ;;  %v2872_v2 = vadd.f32 %v2668_v40, %v2198_v30  ;;  %v3065_v8 = vsel %vm943_vm1, %v3062_v1, %v3064_v55  ;;  %v11735_v27 = vsel %vm1221_vm2, %v3915_v56, %v3917_v32 }
 0x2bc   : > { %v8566_v14 = vpop.f32.mrf.mxu0  ;;  %8695 = vmatmul.mubr.msk.f32.gmra.mxu1 %vm3148_vm4, %v3065_v8  ;;  %v11738_v29 = vpop.f32.mrf.mxu1 }
 0x2bd   : > { %v3066_v50 = vrot.slane %v2968_v52, 1  ;;  %v3919_v38 = vrot.slane %v2968_v52, 2  ;;  %v2924_v39 = vadd.f32 %v11679_v9, %v2872_v2  ;;  %8840 = vmatmul.mubr.msk.f32.gmra.mxu0 %vm3148_vm4, %v2968_v52  ;;  %8697 = vmatprep.mubr.msk.f32.mxu1 %vm9881_vm0, %v13709_v11  ;;  %v2208_v52 = vadd.f32 %v11603_v25, %v11329_v10 }
 0x2be   : > { %v2673_v1 = vpop.f32.mrf.mxu0  ;;  %v8483_v56 = vpop.f32.mrf.mxu1  ;;  %8842 = vmatprep.mubr.msk.f32.mxu0 %vm9881_vm0, %v13709_v11 }
 0x2bf   : > { %v2969_v47 = vmax.f32 %v2924_v39, 0.0  ;;  %v2873_v30 = vadd.f32 %v2673_v1, %v2203_v35  ;;  %v3067_v45 = vsel %vm943_vm1, %v3064_v55, %v3066_v50  ;;  %v11750_v0 = vsel %vm1221_vm2, %v3917_v32, %v3919_v38 }
 0x2c0   : > { %v8569_v22 = vpop.f32.mrf.mxu0  ;;  %8698 = vmatmul.mubr.msk.f32.gmra.mxu1 %vm3148_vm4, %v3067_v45  ;;  %v11753_v40 = vpop.f32.mrf.mxu1 }
 0x2c1   : > { %v3068_v2 = vrot.slane %v2969_v47, 1  ;;  %v3921_v8 = vrot.slane %v2969_v47, 2  ;;  %v2925_v14 = vadd.f32 %v11679_v9, %v2873_v30  ;;  %8843 = vmatmul.mubr.msk.f32.gmra.mxu0 %vm3148_vm4, %v2969_v47  ;;  %8700 = vmatprep.mubr.msk.f32.mxu1 %vm9881_vm0, %v13709_v11  ;;  %v2213_v47 = vadd.f32 %v11612_v53, %v11346_v51 }
 0x2c2   : > { %v2678_v55 = vpop.f32.mrf.mxu0  ;;  %v8486_v32 = vpop.f32.mrf.mxu1  ;;  %8845 = vmatprep.mubr.msk.f32.mxu0 %vm9881_vm0, %v13709_v11 }
 0x2c3   : > { %v2970_v35 = vmax.f32 %v2925_v14, 0.0  ;;  %v2874_v39 = vadd.f32 %v2678_v55, %v2208_v52  ;;  %v3069_v1 = vsel %vm943_vm1, %v3066_v50, %v3068_v2  ;;  %v11765_v10 = vsel %vm1221_vm2, %v3919_v38, %v3921_v8 }
 0x2c4   : > { %v8572_v25 = vpop.f32.mrf.mxu0  ;;  %8701 = vmatmul.mubr.msk.f32.gmra.mxu1 %vm3148_vm4, %v3069_v1  ;;  %v11768_v56 = vpop.f32.mrf.mxu1 }
 0x2c5   : > { %v3070_v30 = vrot.slane %v2970_v35, 1  ;;  %v3923_v45 = vrot.slane %v2970_v35, 2  ;;  %v2926_v22 = vadd.f32 %v11679_v9, %v2874_v39  ;;  %8846 = vmatmul.mubr.msk.f32.gmra.mxu0 %vm3148_vm4, %v2970_v35  ;;  %8703 = vmatprep.mubr.msk.f32.mxu1 %vm9881_vm0, %v13709_v11  ;;  %v2218_v35 = vadd.f32 %v11621_v3, %v11360_v54 }
 0x2c6   : > { %v2683_v50 = vpop.f32.mrf.mxu0  ;;  %v8489_v38 = vpop.f32.mrf.mxu1  ;;  %8848 = vmatprep.mubr.msk.f32.mxu0 %vm9881_vm0, %v13709_v11 }
 0x2c7   : > { %v2971_v52 = vmax.f32 %v2926_v22, 0.0  ;;  %v2875_v14 = vadd.f32 %v2683_v50, %v2213_v47  ;;  %v3071_v55 = vsel %vm943_vm1, %v3068_v2, %v3070_v30  ;;  %v11780_v51 = vsel %vm1221_vm2, %v3921_v8, %v3923_v45 }
 0x2c8   : > { %v8575_v53 = vpop.f32.mrf.mxu0  ;;  %8704 = vmatmul.mubr.msk.f32.gmra.mxu1 %vm3148_vm4, %v3071_v55  ;;  %v11783_v32 = vpop.f32.mrf.mxu1 }
 0x2c9   : > { %v3072_v39 = vrot.slane %v2971_v52, 1  ;;  %v3925_v1 = vrot.slane %v2971_v52, 2  ;;  %v2927_v25 = vadd.f32 %v11679_v9, %v2875_v14  ;;  %8849 = vmatmul.mubr.msk.f32.gmra.mxu0 %vm3148_vm4, %v2971_v52  ;;  %8706 = vmatprep.mubr.msk.f32.mxu1 %vm9881_vm0, %v13709_v11  ;;  %v2223_v52 = vadd.f32 %v11630_v33, %v11377_v13 }
 0x2ca   : > { %v2688_v2 = vpop.f32.mrf.mxu0  ;;  %v8492_v8 = vpop.f32.mrf.mxu1  ;;  %8851 = vmatprep.mubr.msk.f32.mxu0 %vm9881_vm0, %v13709_v11 }
 0x2cb   : > { %v2972_v47 = vmax.f32 %v2927_v25, 0.0  ;;  %v2876_v22 = vadd.f32 %v2688_v2, %v2218_v35  ;;  %v3073_v50 = vsel %vm943_vm1, %v3070_v30, %v3072_v39  ;;  %v11795_v54 = vsel %vm1221_vm2, %v3923_v45, %v3925_v1 }
 0x2cc   : > { %v8578_v3 = vpop.f32.mrf.mxu0  ;;  %8707 = vmatmul.mubr.msk.f32.gmra.mxu1 %vm3148_vm4, %v3073_v50  ;;  %v11798_v38 = vpop.f32.mrf.mxu1 }
 0x2cd   : > { %v3074_v14 = vrot.slane %v2972_v47, 1  ;;  %v3927_v55 = vrot.slane %v2972_v47, 2  ;;  %v2928_v53 = vadd.f32 %v11679_v9, %v2876_v22  ;;  %8852 = vmatmul.mubr.msk.f32.gmra.mxu0 %vm3148_vm4, %v2972_v47  ;;  %8709 = vmatprep.mubr.msk.f32.mxu1 %vm9881_vm0, %v13709_v11  ;;  %v2228_v47 = vadd.f32 %v11639_v34, %v11391_v15 }
 0x2ce   : > { %v2693_v30 = vpop.f32.mrf.mxu0  ;;  %v8495_v45 = vpop.f32.mrf.mxu1  ;;  %8854 = vmatprep.mubr.msk.f32.mxu0 %vm9881_vm0, %v13709_v11 }
 0x2cf   : > { %v2973_v35 = vmax.f32 %v2928_v53, 0.0  ;;  %v2877_v25 = vadd.f32 %v2693_v30, %v2223_v52  ;;  %v3075_v2 = vsel %vm943_vm1, %v3072_v39, %v3074_v14  ;;  %v11810_v13 = vsel %vm1221_vm2, %v3925_v1, %v3927_v55 }
 0x2d0   : > { %v8581_v33 = vpop.f32.mrf.mxu0  ;;  %8710 = vmatmul.mubr.msk.f32.gmra.mxu1 %vm3148_vm4, %v3075_v2  ;;  %v11813_v8 = vpop.f32.mrf.mxu1 }
 0x2d1   : > { %v3076_v22 = vrot.slane %v2973_v35, 1  ;;  %v3929_v50 = vrot.slane %v2973_v35, 2  ;;  %v2929_v3 = vadd.f32 %v11679_v9, %v2877_v25  ;;  %8855 = vmatmul.mubr.msk.f32.gmra.mxu0 %vm3148_vm4, %v2973_v35  ;;  %8712 = vmatprep.mubr.msk.f32.mxu1 %vm9881_vm0, %v13709_v11  ;;  %v2233_v35 = vadd.f32 %v11648_v19, %v11408_v36 }
 0x2d2   : > { %v2698_v39 = vpop.f32.mrf.mxu0  ;;  %v8498_v1 = vpop.f32.mrf.mxu1  ;;  %8857 = vmatprep.mubr.msk.f32.mxu0 %vm9881_vm0, %v13709_v11 }
 0x2d3   : > { %v2974_v52 = vmax.f32 %v2929_v3, 0.0  ;;  %v2878_v53 = vadd.f32 %v2698_v39, %v2228_v47  ;;  %v3077_v30 = vsel %vm943_vm1, %v3074_v14, %v3076_v22  ;;  %v11825_v15 = vsel %vm1221_vm2, %v3927_v55, %v3929_v50 }
 0x2d4   : > { %v8584_v34 = vpop.f32.mrf.mxu0  ;;  %8713 = vmatmul.mubr.msk.f32.gmra.mxu1 %vm3148_vm4, %v3077_v30  ;;  %v11828_v45 = vpop.f32.mrf.mxu1 }
 0x2d5   : > { %v3078_v25 = vrot.slane %v2974_v52, 1  ;;  %v3931_v2 = vrot.slane %v2974_v52, 2  ;;  %v2930_v33 = vadd.f32 %v11679_v9, %v2878_v53  ;;  %8858 = vmatmul.mubr.msk.f32.gmra.mxu0 %vm3148_vm4, %v2974_v52  ;;  %8715 = vmatprep.mubr.msk.f32.mxu1 %vm9881_vm0, %v13709_v11  ;;  %v2238_v52 = vadd.f32 %v11656_v24, %v11422_v17 }
 0x2d6   : > { %v2703_v14 = vpop.f32.mrf.mxu0  ;;  %v8501_v55 = vpop.f32.mrf.mxu1  ;;  %8860 = vmatprep.mubr.msk.f32.mxu0 %vm9881_vm0, %v13709_v11 }
 0x2d7   : > { %v2975_v47 = vmax.f32 %v2930_v33, 0.0  ;;  %v2879_v3 = vadd.f32 %v2703_v14, %v2233_v35  ;;  %v3079_v39 = vsel %vm943_vm1, %v3076_v22, %v3078_v25  ;;  %v11840_v36 = vsel %vm1221_vm2, %v3929_v50, %v3931_v2 }
 0x2d8   : > { %v8587_v19 = vpop.f32.mrf.mxu0  ;;  %8716 = vmatmul.mubr.msk.f32.gmra.mxu1 %vm3148_vm4, %v3079_v39  ;;  %v11843_v1 = vpop.f32.mrf.mxu1 }
 0x2d9   : > { %v3080_v53 = vrot.slane %v2975_v47, 1  ;;  %v3933_v30 = vrot.slane %v2975_v47, 2  ;;  %v2931_v34 = vadd.f32 %v11679_v9, %v2879_v3  ;;  %8861 = vmatmul.mubr.msk.f32.gmra.mxu0 %vm3148_vm4, %v2975_v47  ;;  %8718 = vmatprep.mubr.msk.f32.mxu1 %vm9881_vm0, %v13709_v11  ;;  %v2243_v47 = vadd.f32 %v11663_v49, %v11439_v37 }
 0x2da   : > { %v2708_v22 = vpop.f32.mrf.mxu0  ;;  %v8504_v50 = vpop.f32.mrf.mxu1  ;;  %8863 = vmatprep.mubr.msk.f32.mxu0 %vm9881_vm0, %v13709_v11 }
 0x2db   : > { %v2976_v35 = vmax.f32 %v2931_v34, 0.0  ;;  %v2880_v33 = vadd.f32 %v2708_v22, %v2238_v52  ;;  %v3081_v14 = vsel %vm943_vm1, %v3078_v25, %v3080_v53  ;;  %v11855_v17 = vsel %vm1221_vm2, %v3931_v2, %v3933_v30 }
 0x2dc   : > { %v8590_v24 = vpop.f32.mrf.mxu0  ;;  %8719 = vmatmul.mubr.msk.f32.gmra.mxu1 %vm3148_vm4, %v3081_v14  ;;  %v11858_v55 = vpop.f32.mrf.mxu1 }
 0x2dd   : > { %v3082_v3 = vrot.slane %v2976_v35, 1  ;;  %v3935_v39 = vrot.slane %v2976_v35, 2  ;;  %v2932_v19 = vadd.f32 %v11679_v9, %v2880_v33  ;;  %8864 = vmatmul.mubr.msk.f32.gmra.mxu0 %vm3148_vm4, %v2976_v35  ;;  %8721 = vmatprep.mubr.msk.f32.mxu1 %vm9881_vm0, %v13709_v11  ;;  %v2248_v35 = vadd.f32 %v11667_v48, %v11454_v61 }
 0x2de   : > { %v2713_v25 = vpop.f32.mrf.mxu0  ;;  %v8507_v2 = vpop.f32.mrf.mxu1  ;;  %8866 = vmatprep.mubr.msk.f32.mxu0 %vm9881_vm0, %v13709_v11 }
 0x2df   : > { %v2977_v52 = vmax.f32 %v2932_v19, 0.0  ;;  %v2881_v34 = vadd.f32 %v2713_v25, %v2243_v47  ;;  %v3083_v22 = vsel %vm943_vm1, %v3080_v53, %v3082_v3  ;;  %v11870_v37 = vsel %vm1221_vm2, %v3933_v30, %v3935_v39 }
 0x2e0   : > { %v8593_v49 = vpop.f32.mrf.mxu0  ;;  %8722 = vmatmul.mubr.msk.f32.gmra.mxu1 %vm3148_vm4, %v3083_v22  ;;  %v11873_v50 = vpop.f32.mrf.mxu1 }
 0x2e1   : > { %v3084_v33 = vrot.slane %v2977_v52, 1  ;;  %v3937_v14 = vrot.slane %v2977_v52, 2  ;;  %v2933_v24 = vadd.f32 %v11679_v9, %v2881_v34  ;;  %8867 = vmatmul.mubr.msk.f32.gmra.mxu0 %vm3148_vm4, %v2977_v52  ;;  %8724 = vmatprep.mubr.msk.f32.mxu1 %vm9881_vm0, %v13709_v11  ;;  %v2253_v52 = vadd.f32 %v11671_v60, %v11467_v57 }
 0x2e2   : > { %v2718_v53 = vpop.f32.mrf.mxu0  ;;  %v8510_v30 = vpop.f32.mrf.mxu1  ;;  %8869 = vmatprep.mubr.msk.f32.mxu0 %vm9881_vm0, %v13709_v11 }
 0x2e3   : > { %v2978_v47 = vmax.f32 %v2933_v24, 0.0  ;;  %v2882_v19 = vadd.f32 %v2718_v53, %v2248_v35  ;;  %v3085_v25 = vsel %vm943_vm1, %v3082_v3, %v3084_v33  ;;  %v11885_v61 = vsel %vm1221_vm2, %v3935_v39, %v3937_v14 }
 0x2e4   : > { %v8596_v48 = vpop.f32.mrf.mxu0  ;;  %8725 = vmatmul.mubr.msk.f32.gmra.mxu1 %vm3148_vm4, %v3085_v25  ;;  %v11888_v2 = vpop.f32.mrf.mxu1 }
 0x2e5   : > { %v3086_v34 = vrot.slane %v2978_v47, 1  ;;  %v3939_v22 = vrot.slane %v2978_v47, 2  ;;  %v2934_v49 = vadd.f32 %v11679_v9, %v2882_v19  ;;  %8870 = vmatmul.mubr.msk.f32.gmra.mxu0 %vm3148_vm4, %v2978_v47  ;;  %8727 = vmatprep.mubr.msk.f32.mxu1 %vm9881_vm0, %v13709_v11  ;;  %v2258_v47 = vadd.f32 %v11675_v5, %v11482_v41 }
 0x2e6   : > { %v2723_v3 = vpop.f32.mrf.mxu0  ;;  %v8513_v39 = vpop.f32.mrf.mxu1  ;;  %8872 = vmatprep.mubr.msk.f32.mxu0 %vm9881_vm0, %v13709_v11 }
 0x2e7   : > { %v2979_v35 = vmax.f32 %v2934_v49, 0.0  ;;  %v2883_v24 = vadd.f32 %v2723_v3, %v2253_v52  ;;  %v3087_v53 = vsel %vm943_vm1, %v3084_v33, %v3086_v34  ;;  %v11900_v57 = vsel %vm1221_vm2, %v3937_v14, %v3939_v22 }
 0x2e8   : > { %v8599_v60 = vpop.f32.mrf.mxu0  ;;  %8728 = vmatmul.mubr.msk.f32.gmra.mxu1 %vm3148_vm4, %v3087_v53  ;;  %v11903_v30 = vpop.f32.mrf.mxu1 }
 0x2e9   : > { %v3088_v19 = vrot.slane %v2979_v35, 1  ;;  %v3941_v25 = vrot.slane %v2979_v35, 2  ;;  %v2935_v48 = vadd.f32 %v11679_v9, %v2883_v24  ;;  %8873 = vmatmul.mubr.msk.f32.gmra.mxu0 %vm3148_vm4, %v2979_v35  ;;  %8730 = vmatprep.mubr.msk.f32.mxu1 %vm9881_vm0, %v13709_v11  ;;  %v2263_v35 = vadd.f32 %v11681_v7, %v11495_v44 }
 0x2ea   : > { %v2728_v33 = vpop.f32.mrf.mxu0  ;;  %v8516_v14 = vpop.f32.mrf.mxu1  ;;  %8875 = vmatprep.mubr.msk.f32.mxu0 %vm9881_vm0, %v13709_v11 }
 0x2eb   : > { %v2980_v52 = vmax.f32 %v2935_v48, 0.0  ;;  %v2884_v49 = vadd.f32 %v2728_v33, %v2258_v47  ;;  %v3089_v3 = vsel %vm943_vm1, %v3086_v34, %v3088_v19  ;;  %v11915_v41 = vsel %vm1221_vm2, %v3939_v22, %v3941_v25 }
 0x2ec   : > { %v8602_v5 = vpop.f32.mrf.mxu0  ;;  %8731 = vmatmul.mubr.msk.f32.gmra.mxu1 %vm3148_vm4, %v3089_v3  ;;  %v11918_v39 = vpop.f32.mrf.mxu1 }
 0x2ed   : > { %v3090_v24 = vrot.slane %v2980_v52, 1  ;;  %v3943_v53 = vrot.slane %v2980_v52, 2  ;;  %v2936_v60 = vadd.f32 %v11679_v9, %v2884_v49  ;;  %8876 = vmatmul.mubr.msk.f32.gmra.mxu0 %vm3148_vm4, %v2980_v52  ;;  %8733 = vmatprep.mubr.msk.f32.mxu1 %vm9881_vm0, %v13709_v11  ;;  %v2268_v52 = vadd.f32 %v11686_v43, %v11508_v58 }
 0x2ee   : > { %v2733_v34 = vpop.f32.mrf.mxu0  ;;  %v8519_v22 = vpop.f32.mrf.mxu1  ;;  %8878 = vmatprep.mubr.msk.f32.mxu0 %vm9881_vm0, %v13709_v11 }
 0x2ef   : > { %v2981_v47 = vmax.f32 %v2936_v60, 0.0  ;;  %v2885_v48 = vadd.f32 %v2733_v34, %v2263_v35  ;;  %v3091_v33 = vsel %vm943_vm1, %v3088_v19, %v3090_v24  ;;  %v11930_v44 = vsel %vm1221_vm2, %v3941_v25, %v3943_v53 }
 0x2f0   : > { %v8605_v7 = vpop.f32.mrf.mxu0  ;;  %8734 = vmatmul.mubr.msk.f32.gmra.mxu1 %vm3148_vm4, %v3091_v33  ;;  %v11933_v14 = vpop.f32.mrf.mxu1 }
 0x2f1   : > { %v3092_v49 = vrot.slane %v2981_v47, 1  ;;  %v3945_v3 = vrot.slane %v2981_v47, 2  ;;  %v2937_v5 = vadd.f32 %v11679_v9, %v2885_v48  ;;  %8879 = vmatmul.mubr.msk.f32.gmra.mxu0 %vm3148_vm4, %v2981_v47  ;;  %8736 = vmatprep.mubr.msk.f32.mxu1 %vm9881_vm0, %v13709_v11  ;;  %v2273_v47 = vadd.f32 %v11696_v18, %v11517_v16 }
 0x2f2   : > { %v2738_v19 = vpop.f32.mrf.mxu0  ;;  %v8522_v25 = vpop.f32.mrf.mxu1  ;;  %8881 = vmatprep.mubr.msk.f32.mxu0 %vm9881_vm0, %v13709_v11 }
 0x2f3   : > { %v2982_v35 = vmax.f32 %v2937_v5, 0.0  ;;  %v2886_v60 = vadd.f32 %v2738_v19, %v2268_v52  ;;  %v3093_v34 = vsel %vm943_vm1, %v3090_v24, %v3092_v49  ;;  %v11945_v58 = vsel %vm1221_vm2, %v3943_v53, %v3945_v3 }
 0x2f4   : > { %v8608_v43 = vpop.f32.mrf.mxu0  ;;  %8737 = vmatmul.mubr.msk.f32.gmra.mxu1 %vm3148_vm4, %v3093_v34  ;;  %v11948_v22 = vpop.f32.mrf.mxu1 }
 0x2f5   : > { %v3094_v48 = vrot.slane %v2982_v35, 1  ;;  %v3947_v33 = vrot.slane %v2982_v35, 2  ;;  %v2938_v7 = vadd.f32 %v11679_v9, %v2886_v60  ;;  %8882 = vmatmul.mubr.msk.f32.gmra.mxu0 %vm3148_vm4, %v2982_v35  ;;  %8739 = vmatprep.mubr.msk.f32.mxu1 %vm9881_vm0, %v13709_v11  ;;  %v2278_v35 = vadd.f32 %v11707_v46, %v11526_v63 }
 0x2f6   : > { %v2743_v24 = vpop.f32.mrf.mxu0  ;;  %v8525_v53 = vpop.f32.mrf.mxu1  ;;  %8884 = vmatprep.mubr.msk.f32.mxu0 %vm9881_vm0, %v13709_v11 }
 0x2f7   : > { %v2983_v52 = vmax.f32 %v2938_v7, 0.0  ;;  %v2887_v5 = vadd.f32 %v2743_v24, %v2273_v47  ;;  %v3095_v19 = vsel %vm943_vm1, %v3092_v49, %v3094_v48  ;;  %v11960_v16 = vsel %vm1221_vm2, %v3945_v3, %v3947_v33 }
 0x2f8   : > { %v8611_v18 = vpop.f32.mrf.mxu0  ;;  %8740 = vmatmul.mubr.msk.f32.gmra.mxu1 %vm3148_vm4, %v3095_v19  ;;  %v11963_v25 = vpop.f32.mrf.mxu1 }
 0x2f9   : > { %v3096_v60 = vrot.slane %v2983_v52, 1  ;;  %v3949_v34 = vrot.slane %v2983_v52, 2  ;;  %v2939_v43 = vadd.f32 %v11679_v9, %v2887_v5  ;;  %8885 = vmatmul.mubr.msk.f32.gmra.mxu0 %vm3148_vm4, %v2983_v52  ;;  %8742 = vmatprep.mubr.msk.f32.mxu1 %vm9881_vm0, %v13709_v11  ;;  %v2283_v52 = vadd.f32 %v11723_v12, %v11535_v23 }
 0x2fa   : > { %v2748_v49 = vpop.f32.mrf.mxu0  ;;  %v8528_v3 = vpop.f32.mrf.mxu1  ;;  %8887 = vmatprep.mubr.msk.f32.mxu0 %vm9881_vm0, %v13709_v11 }
 0x2fb   : > { %v2984_v47 = vmax.f32 %v2939_v43, 0.0  ;;  %v2888_v7 = vadd.f32 %v2748_v49, %v2278_v35  ;;  %v3097_v24 = vsel %vm943_vm1, %v3094_v48, %v3096_v60  ;;  %v11975_v63 = vsel %vm1221_vm2, %v3947_v33, %v3949_v34 }
 0x2fc   : > { %v8614_v46 = vpop.f32.mrf.mxu0  ;;  %8743 = vmatmul.mubr.msk.f32.gmra.mxu1 %vm3148_vm4, %v3097_v24  ;;  %v11978_v53 = vpop.f32.mrf.mxu1 }
 0x2fd   : > { %v3098_v5 = vrot.slane %v2984_v47, 1  ;;  %v3951_v19 = vrot.slane %v2984_v47, 2  ;;  %v2940_v18 = vadd.f32 %v11679_v9, %v2888_v7  ;;  %8888 = vmatmul.mubr.msk.f32.gmra.mxu0 %vm3148_vm4, %v2984_v47  ;;  %8745 = vmatprep.mubr.msk.f32.mxu1 %vm9881_vm0, %v13709_v11  ;;  %v2288_v47 = vadd.f32 %v11738_v29, %v11544_v62 }
 0x2fe   : > { %v2753_v48 = vpop.f32.mrf.mxu0  ;;  %v8531_v33 = vpop.f32.mrf.mxu1  ;;  %8890 = vmatprep.mubr.msk.f32.mxu0 %vm9881_vm0, %v13709_v11 }
 0x2ff   : > { %v2985_v35 = vmax.f32 %v2940_v18, 0.0  ;;  %v2889_v43 = vadd.f32 %v2753_v48, %v2283_v52  ;;  %v3099_v49 = vsel %vm943_vm1, %v3096_v60, %v3098_v5  ;;  %v11990_v23 = vsel %vm1221_vm2, %v3949_v34, %v3951_v19 }
 0x300   : > { %v8617_v12 = vpop.f32.mrf.mxu0  ;;  %8746 = vmatmul.mubr.msk.f32.gmra.mxu1 %vm3148_vm4, %v3099_v49  ;;  %v11993_v3 = vpop.f32.mrf.mxu1 }
 0x301   : > { %v3100_v7 = vrot.slane %v2985_v35, 1  ;;  %v3953_v24 = vrot.slane %v2985_v35, 2  ;;  %v2941_v46 = vadd.f32 %v11679_v9, %v2889_v43  ;;  %8891 = vmatmul.mubr.msk.f32.gmra.mxu0 %vm3148_vm4, %v2985_v35  ;;  %8748 = vmatprep.mubr.msk.f32.mxu1 %vm9881_vm0, %v13709_v11  ;;  %v2293_v35 = vadd.f32 %v11753_v40, %v11553_v4 }
 0x302   : > { %v2758_v60 = vpop.f32.mrf.mxu0  ;;  %v8534_v34 = vpop.f32.mrf.mxu1  ;;  %8893 = vmatprep.mubr.msk.f32.mxu0 %vm9881_vm0, %v13709_v11 }
 0x303   : > { %v2986_v52 = vmax.f32 %v2941_v46, 0.0  ;;  %v2890_v18 = vadd.f32 %v2758_v60, %v2288_v47  ;;  %v3101_v48 = vsel %vm943_vm1, %v3098_v5, %v3100_v7  ;;  %v12005_v62 = vsel %vm1221_vm2, %v3951_v19, %v3953_v24 }
 0x304   : > { %v8620_v29 = vpop.f32.mrf.mxu0  ;;  %8749 = vmatmul.mubr.msk.f32.gmra.mxu1 %vm3148_vm4, %v3101_v48  ;;  %v12008_v33 = vpop.f32.mrf.mxu1 }
 0x305   : > { %v3102_v43 = vrot.slane %v2986_v52, 1  ;;  %v3955_v49 = vrot.slane %v2986_v52, 2  ;;  %v2942_v12 = vadd.f32 %v11679_v9, %v2890_v18  ;;  %8894 = vmatmul.mubr.msk.f32.gmra.mxu0 %vm3148_vm4, %v2986_v52  ;;  %8751 = vmatprep.mubr.msk.f32.mxu1 %vm9881_vm0, %v13709_v11  ;;  %v2298_v52 = vadd.f32 %v11768_v56, %v11562_v6 }
 0x306   : > { %v2763_v5 = vpop.f32.mrf.mxu0  ;;  %v8537_v19 = vpop.f32.mrf.mxu1  ;;  %8896 = vmatprep.mubr.msk.f32.mxu0 %vm9881_vm0, %v13709_v11 }
 0x307   : > { %v2987_v47 = vmax.f32 %v2942_v12, 0.0  ;;  %v2891_v46 = vadd.f32 %v2763_v5, %v2293_v35  ;;  %v3103_v60 = vsel %vm943_vm1, %v3100_v7, %v3102_v43  ;;  %v12020_v4 = vsel %vm1221_vm2, %v3953_v24, %v3955_v49 }
 0x308   : > { %v8623_v40 = vpop.f32.mrf.mxu0  ;;  %8752 = vmatmul.mubr.msk.f32.gmra.mxu1 %vm3148_vm4, %v3103_v60  ;;  %v12023_v34 = vpop.f32.mrf.mxu1 }
 0x309   : > { %v3104_v18 = vrot.slane %v2987_v47, 1  ;;  %v3957_v48 = vrot.slane %v2987_v47, 2  ;;  %v2943_v29 = vadd.f32 %v11679_v9, %v2891_v46  ;;  %8897 = vmatmul.mubr.msk.f32.gmra.mxu0 %vm3148_vm4, %v2987_v47  ;;  %8754 = vmatprep.mubr.msk.f32.mxu1 %vm9881_vm0, %v13709_v11  ;;  %v2303_v47 = vadd.f32 %v11783_v32, %v11571_v20 }
 0x30a   : > { %v2768_v7 = vpop.f32.mrf.mxu0  ;;  %v8540_v24 = vpop.f32.mrf.mxu1  ;;  %8899 = vmatprep.mubr.msk.f32.mxu0 %vm9881_vm0, %v13709_v11 }
 0x30b   : > { %v2988_v35 = vmax.f32 %v2943_v29, 0.0  ;;  %v2892_v12 = vadd.f32 %v2768_v7, %v2298_v52  ;;  %v3105_v5 = vsel %vm943_vm1, %v3102_v43, %v3104_v18  ;;  %v12035_v6 = vsel %vm1221_vm2, %v3955_v49, %v3957_v48 }
 0x30c   : > { %v8626_v56 = vpop.f32.mrf.mxu0  ;;  %8755 = vmatmul.mubr.msk.f32.gmra.mxu1 %vm3148_vm4, %v3105_v5  ;;  %v12038_v19 = vpop.f32.mrf.mxu1 }
 0x30d   : > { %v3106_v46 = vrot.slane %v2988_v35, 1  ;;  %v3959_v60 = vrot.slane %v2988_v35, 2  ;;  %v2944_v40 = vadd.f32 %v11679_v9, %v2892_v12  ;;  %8900 = vmatmul.mubr.msk.f32.gmra.mxu0 %vm3148_vm4, %v2988_v35  ;;  %8757 = vmatprep.mubr.msk.f32.mxu1 %vm9881_vm0, %v13709_v11  ;;  %v2308_v35 = vadd.f32 %v11798_v38, %v11580_v42 }
 0x30e   : > { %v2773_v43 = vpop.f32.mrf.mxu0  ;;  %v8543_v49 = vpop.f32.mrf.mxu1  ;;  %8902 = vmatprep.mubr.msk.f32.mxu0 %vm9881_vm0, %v13709_v11 }
 0x30f   : > { %v2989_v52 = vmax.f32 %v2944_v40, 0.0  ;;  %v2893_v29 = vadd.f32 %v2773_v43, %v2303_v47  ;;  %v3107_v7 = vsel %vm943_vm1, %v3104_v18, %v3106_v46  ;;  %v12050_v20 = vsel %vm1221_vm2, %v3957_v48, %v3959_v60 }
 0x310   : > { %v8629_v32 = vpop.f32.mrf.mxu0  ;;  %8758 = vmatmul.mubr.msk.f32.gmra.mxu1 %vm3148_vm4, %v3107_v7  ;;  %v12053_v24 = vpop.f32.mrf.mxu1  ;;  %v2313_v49 = vadd.f32 %v11813_v8, %v11589_v59  ;;  %v2318_v8 = vadd.f32 %v11828_v45, %v11598_v26  ;;  %v2323_v45 = vadd.f32 %v11843_v1, %v11606_v31  ;;  %v13770_v1 = vld [vmem:[#allocation38_spill] sm:$0xff] }
 0x311   : > { %v3108_v12 = vrot.slane %v2989_v52, 1  ;;  %v3961_v5 = vrot.slane %v2989_v52, 2  ;;  %v2945_v56 = vadd.f32 %v11679_v9, %v2893_v29  ;;  %8903 = vmatmul.mubr.msk.f32.gmra.mxu0 %vm3148_vm4, %v2989_v52  ;;  %8760 = vmatprep.mubr.msk.f32.mxu1 %vm9881_vm0, %v13709_v11 }
 0x312   : > { %v2778_v18 = vpop.f32.mrf.mxu0  ;;  %v8546_v48 = vpop.f32.mrf.mxu1  ;;  %8905 = vmatprep.mubr.msk.f32.mxu0 %vm9881_vm0, %v13709_v11 }
 0x313   : > { %v2990_v47 = vmax.f32 %v2945_v56, 0.0  ;;  %v2894_v40 = vadd.f32 %v2778_v18, %v2308_v35  ;;  %v3109_v43 = vsel %vm943_vm1, %v3106_v46, %v3108_v12  ;;  %v12065_v42 = vsel %vm1221_vm2, %v3959_v60, %v3961_v5 }
 0x314   : > { %v8632_v38 = vpop.f32.mrf.mxu0  ;;  %8761 = vmatmul.mubr.msk.f32.gmra.mxu1 %vm3148_vm4, %v3109_v43 }
 0x315   : > { %v3110_v52 = vrot.slane %v2990_v47, 1  ;;  %v3963_v29 = vrot.slane %v2990_v47, 2  ;;  %v2946_v7 = vadd.f32 %v11679_v9, %v2894_v40  ;;  %8906 = vmatmul.mubr.msk.f32.gmra.mxu0 %vm3148_vm4, %v2990_v47  ;;  %8763 = vmatprep.mubr.msk.f32.mxu1 %vm9881_vm0, %v13709_v11 }
 0x316   : > { %v2783_v32 = vpop.f32.mrf.mxu0  ;;  %8908 = vmatprep.mubr.msk.f32.mxu0 %vm9881_vm0, %v13709_v11 }
 0x317   : > { %v2991_v46 = vmax.f32 %v2946_v7, 0.0  ;;  %v2895_v60 = vadd.f32 %v2783_v32, %v2313_v49  ;;  %v3111_v35 = vsel %vm943_vm1, %v3108_v12, %v3110_v52  ;;  %v12078_v56 = vsel %vm1221_vm2, %v3961_v5, %v3963_v29 }
 0x318   : > { %v8635_v59 = vpop.f32.mrf.mxu0  ;;  %8764 = vmatmul.mubr.msk.f32.gmra.mxu1 %vm3148_vm4, %v3111_v35 }
 0x319   : > { %v3112_v18 = vrot.slane %v2991_v46, 1  ;;  %v3965_v48 = vrot.slane %v2991_v46, 2  ;;  %v2947_v47 = vadd.f32 %v11679_v9, %v2895_v60  ;;  %8909 = vmatmul.mubr.msk.f32.gmra.mxu0 %vm3148_vm4, %v2991_v46  ;;  %8766 = vmatprep.mubr.msk.f32.mxu1 %vm9881_vm0, %v13709_v11  ;;  %v2328_v59 = vadd.f32 %v11858_v55, %v13770_v1  ;;  %v13772_v1 = vld [vmem:[#allocation42_spill] sm:$0xff] }
 0x31a   : > { %v2788_v40 = vpop.f32.mrf.mxu0  ;;  %8911 = vmatprep.mubr.msk.f32.mxu0 %vm9881_vm0, %v13709_v11 }
 0x31b   : > { %v2992_v12 = vmax.f32 %v2947_v47, 0.0  ;;  %v2896_v5 = vadd.f32 %v2788_v40, %v2318_v8  ;;  %v3113_v43 = vsel %vm943_vm1, %v3110_v52, %v3112_v18  ;;  %v12091_v38 = vsel %vm1221_vm2, %v3963_v29, %v3965_v48 }
 0x31c   : > { %v8638_v26 = vpop.f32.mrf.mxu0  ;;  %8767 = vmatmul.mubr.msk.f32.gmra.mxu1 %vm3148_vm4, %v3113_v43 }
 0x31d   : > { %v3114_v49 = vrot.slane %v2992_v12, 1  ;;  %v3967_v7 = vrot.slane %v2992_v12, 2  ;;  %v2948_v32 = vadd.f32 %v11679_v9, %v2896_v5  ;;  %8912 = vmatmul.mubr.msk.f32.gmra.mxu0 %vm3148_vm4, %v2992_v12  ;;  %8769 = vmatprep.mubr.msk.f32.mxu1 %vm9881_vm0, %v13709_v11  ;;  %v13771_v26 = vld [vmem:[#allocation28_spill] sm:$0xff] }
 0x31e   : > { %v2793_v46 = vpop.f32.mrf.mxu0  ;;  %8914 = vmatprep.mubr.msk.f32.mxu0 %vm9881_vm0, %v13709_v11 }
 0x31f   : > { %v2993_v52 = vmax.f32 %v2948_v32, 0.0  ;;  %v2897_v29 = vadd.f32 %v2793_v46, %v2323_v45  ;;  %v3115_v60 = vsel %vm943_vm1, %v3112_v18, %v3114_v49  ;;  %v12104_v35 = vsel %vm1221_vm2, %v3965_v48, %v3967_v7 }
 0x320   : > { %v8641_v31 = vpop.f32.mrf.mxu0  ;;  %8770 = vmatmul.mubr.msk.f32.gmra.mxu1 %vm3148_vm4, %v3115_v60  ;;  %v2333_v45 = vadd.f32 %v11873_v50, %v13771_v26 }
 0x321   : > { %v3116_v8 = vrot.slane %v2993_v52, 1  ;;  %v3969_v47 = vrot.slane %v2993_v52, 2  ;;  %v2949_v40 = vadd.f32 %v11679_v9, %v2897_v29  ;;  %8915 = vmatmul.mubr.msk.f32.gmra.mxu0 %vm3148_vm4, %v2993_v52  ;;  %8772 = vmatprep.mubr.msk.f32.mxu1 %vm9881_vm0, %v13709_v11 }
 0x322   : > { %v2798_v12 = vpop.f32.mrf.mxu0  ;;  %8917 = vmatprep.mubr.msk.f32.mxu0 %vm9881_vm0, %v13709_v11 }
 0x323   : > { %v2994_v18 = vmax.f32 %v2949_v40, 0.0  ;;  %v2898_v48 = vadd.f32 %v2798_v12, %v2328_v59  ;;  %v3117_v5 = vsel %vm943_vm1, %v3114_v49, %v3116_v8  ;;  %v12117_v43 = vsel %vm1221_vm2, %v3967_v7, %v3969_v47 }
 0x324   : > { %v8644_v55 = vpop.f32.mrf.mxu0  ;;  %8773 = vmatmul.mubr.msk.f32.gmra.mxu1 %vm3148_vm4, %v3117_v5  ;;  %v2338_v59 = vadd.f32 %v11888_v2, %v13772_v1  ;;  %v13774_v1 = vld [vmem:[#allocation43_spill] sm:$0xff] }
 0x325   : > { %v3118_v32 = vrot.slane %v2994_v18, 1  ;;  %v3971_v46 = vrot.slane %v2994_v18, 2  ;;  %v2950_v52 = vadd.f32 %v11679_v9, %v2898_v48  ;;  %8918 = vmatmul.mubr.msk.f32.gmra.mxu0 %vm3148_vm4, %v2994_v18  ;;  %8775 = vmatprep.mubr.msk.f32.mxu1 %vm9881_vm0, %v13709_v11 }
 0x326   : > { %v2803_v29 = vpop.f32.mrf.mxu0  ;;  %8920 = vmatprep.mubr.msk.f32.mxu0 %vm9881_vm0, %v13709_v11 }
 0x327   : > { %v2995_v49 = vmax.f32 %v2950_v52, 0.0  ;;  %v2899_v7 = vadd.f32 %v2803_v29, %v2333_v45  ;;  %v3119_v60 = vsel %vm943_vm1, %v3116_v8, %v3118_v32  ;;  %v12130_v31 = vsel %vm1221_vm2, %v3969_v47, %v3971_v46  ;;  %v12148_v29 = vld [vmem:[#allocation9] ss:$0 sm:$0xff] }
 0x328   : > { %v8647_v50 = vpop.f32.mrf.mxu0  ;;  %8776 = vmatmul.mubr.msk.f32.gmra.mxu1 %vm3148_vm4, %v3119_v60 }
 0x329   : > { %v3120_v40 = vrot.slane %v2995_v49, 1  ;;  %v3973_v12 = vrot.slane %v2995_v49, 2  ;;  %v2951_v18 = vadd.f32 %v11679_v9, %v2899_v7  ;;  %8921 = vmatmul.mubr.msk.f32.gmra.mxu0 %vm3148_vm4, %v2995_v49  ;;  %8778 = vmatprep.mubr.msk.f32.mxu1 %vm9881_vm0, %v13709_v11  ;;  %v13773_v9 = vld [vmem:[#allocation40_spill] sm:$0xff] }
 0x32a   : > { %v2808_v48 = vpop.f32.mrf.mxu0  ;;  %8923 = vmatprep.mubr.msk.f32.mxu0 %vm9881_vm0, %v13709_v11  ;;  %v2343_v26 = vadd.f32 %v11903_v30, %v13773_v9  ;;  %v13775_v9 = vld [vmem:[#allocation29_spill] sm:$0xff] }
 0x32b   : > { %v2996_v8 = vmax.f32 %v2951_v18, 0.0  ;;  %v2900_v47 = vadd.f32 %v2808_v48, %v2338_v59  ;;  %v3121_v5 = vsel %vm943_vm1, %v3118_v32, %v3120_v40  ;;  %v12143_v55 = vsel %vm1221_vm2, %v3971_v46, %v3973_v12 }
 0x32c   : > { %v8650_v2 = vpop.f32.mrf.mxu0  ;;  %8779 = vmatmul.mubr.msk.f32.gmra.mxu1 %vm3148_vm4, %v3121_v5  ;;  %v2348_v59 = vadd.f32 %v11918_v39, %v13774_v1  ;;  %v13776_v1 = vld [vmem:[#allocation30_spill] sm:$0xff] }
 0x32d   : > { %v3122_v45 = vrot.slane %v2996_v8, 1  ;;  %v3975_v52 = vrot.slane %v2996_v8, 2  ;;  %v2952_v49 = vadd.f32 %v12148_v29, %v2900_v47  ;;  %8924 = vmatmul.mubr.msk.f32.gmra.mxu0 %vm3148_vm4, %v2996_v8  ;;  %8781 = vmatprep.mubr.msk.f32.mxu1 %vm9881_vm0, %v13709_v11 }
 0x32e   : > { %v2813_v32 = vpop.f32.mrf.mxu0  ;;  %8926 = vmatprep.mubr.msk.f32.mxu0 %vm9881_vm0, %v13709_v11 }
 0x32f   : > { %v2997_v46 = vmax.f32 %v2952_v49, 0.0  ;;  %v2901_v7 = vadd.f32 %v2813_v32, %v2343_v26  ;;  %v3123_v60 = vsel %vm943_vm1, %v3120_v40, %v3122_v45  ;;  %v12158_v30 = vsel %vm1221_vm2, %v3973_v12, %v3975_v52 }
 0x330   : > { %v8653_v50 = vpop.f32.mrf.mxu0  ;;  %8782 = vmatmul.mubr.msk.f32.gmra.mxu1 %vm3148_vm4, %v3123_v60  ;;  %v2353_v26 = vadd.f32 %v11933_v14, %v13775_v9  ;;  %v13777_v9 = vld [vmem:[#allocation31_spill] sm:$0xff] }
 0x331   : > { %v3124_v18 = vrot.slane %v2997_v46, 1  ;;  %v3977_v48 = vrot.slane %v2997_v46, 2  ;;  %v2953_v8 = vadd.f32 %v12148_v29, %v2901_v7  ;;  %8927 = vmatmul.mubr.msk.f32.gmra.mxu0 %vm3148_vm4, %v2997_v46  ;;  %8784 = vmatprep.mubr.msk.f32.mxu1 %vm9881_vm0, %v13709_v11 }
 0x332   : > { %v2818_v47 = vpop.f32.mrf.mxu0  ;;  %8929 = vmatprep.mubr.msk.f32.mxu0 %vm9881_vm0, %v13709_v11 }
 0x333   : > { %v2998_v40 = vmax.f32 %v2953_v8, 0.0  ;;  %v2902_v12 = vadd.f32 %v2818_v47, %v2348_v59  ;;  %v3125_v5 = vsel %vm943_vm1, %v3122_v45, %v3124_v18  ;;  %v12171_v2 = vsel %vm1221_vm2, %v3975_v52, %v3977_v48 }
 0x334   : > { %v8656_v39 = vpop.f32.mrf.mxu0  ;;  %8785 = vmatmul.mubr.msk.f32.gmra.mxu1 %vm3148_vm4, %v3125_v5  ;;  %v2358_v59 = vadd.f32 %v11948_v22, %v13776_v1  ;;  %v13778_v1 = vld [vmem:[#allocation32_spill] sm:$0xff] }
 0x335   : > { %v3126_v49 = vrot.slane %v2998_v40, 1  ;;  %v3979_v32 = vrot.slane %v2998_v40, 2  ;;  %v2954_v46 = vadd.f32 %v12148_v29, %v2902_v12  ;;  %8930 = vmatmul.mubr.msk.f32.gmra.mxu0 %vm3148_vm4, %v2998_v40  ;;  %8787 = vmatprep.mubr.msk.f32.mxu1 %vm9881_vm0, %v13709_v11 }
 0x336   : > { %v2823_v7 = vpop.f32.mrf.mxu0  ;;  %8932 = vmatprep.mubr.msk.f32.mxu0 %vm9881_vm0, %v13709_v11 }
 0x337   : > { %v2999_v45 = vmax.f32 %v2954_v46, 0.0  ;;  %v2903_v52 = vadd.f32 %v2823_v7, %v2353_v26  ;;  %v3127_v60 = vsel %vm943_vm1, %v3124_v18, %v3126_v49  ;;  %v12184_v50 = vsel %vm1221_vm2, %v3977_v48, %v3979_v32 }
 0x338   : > { %v8659_v14 = vpop.f32.mrf.mxu0  ;;  %8788 = vmatmul.mubr.msk.f32.gmra.mxu1 %vm3148_vm4, %v3127_v60  ;;  %v2363_v26 = vadd.f32 %v11963_v25, %v13777_v9  ;;  %v13779_v9 = vld [vmem:[#allocation37_spill] sm:$0xff] }
 0x339   : > { %v3128_v8 = vrot.slane %v2999_v45, 1  ;;  %v3981_v47 = vrot.slane %v2999_v45, 2  ;;  %v2955_v40 = vadd.f32 %v12148_v29, %v2903_v52  ;;  %8933 = vmatmul.mubr.msk.f32.gmra.mxu0 %vm3148_vm4, %v2999_v45  ;;  %8790 = vmatprep.mubr.msk.f32.mxu1 %vm9881_vm0, %v13709_v11 }
 0x33a   : > { %v2828_v12 = vpop.f32.mrf.mxu0  ;;  %8935 = vmatprep.mubr.msk.f32.mxu0 %vm9881_vm0, %v13709_v11 }
 0x33b   : > { %v3000_v18 = vmax.f32 %v2955_v40, 0.0  ;;  %v2904_v48 = vadd.f32 %v2828_v12, %v2358_v59  ;;  %v3129_v5 = vsel %vm943_vm1, %v3126_v49, %v3128_v8  ;;  %v12197_v39 = vsel %vm1221_vm2, %v3979_v32, %v3981_v47 }
 0x33c   : > { %v8662_v22 = vpop.f32.mrf.mxu0  ;;  %8791 = vmatmul.mubr.msk.f32.gmra.mxu1 %vm3148_vm4, %v3129_v5  ;;  %v2368_v59 = vadd.f32 %v11978_v53, %v13778_v1  ;;  %v13780_v1 = vld [vmem:[#allocation26_spill] sm:$0xff] }
 0x33d   : > { %v3130_v46 = vrot.slane %v3000_v18, 1  ;;  %v3983_v7 = vrot.slane %v3000_v18, 2  ;;  %v2956_v45 = vadd.f32 %v12148_v29, %v2904_v48  ;;  %8936 = vmatmul.mubr.msk.f32.gmra.mxu0 %vm3148_vm4, %v3000_v18  ;;  %8793 = vmatprep.mubr.msk.f32.mxu1 %vm9881_vm0, %v13709_v11 }
 0x33e   : > { %v2833_v52 = vpop.f32.mrf.mxu0  ;;  %8938 = vmatprep.mubr.msk.f32.mxu0 %vm9881_vm0, %v13709_v11 }
 0x33f   : > { %v3001_v49 = vmax.f32 %v2956_v45, 0.0  ;;  %v2905_v32 = vadd.f32 %v2833_v52, %v2363_v26  ;;  %v3131_v60 = vsel %vm943_vm1, %v3128_v8, %v3130_v46  ;;  %v12210_v14 = vsel %vm1221_vm2, %v3981_v47, %v3983_v7 }
 0x340   : > { %v8665_v25 = vpop.f32.mrf.mxu0  ;;  %8794 = vmatmul.mubr.msk.f32.gmra.mxu1 %vm3148_vm4, %v3131_v60  ;;  %v2373_v26 = vadd.f32 %v11993_v3, %v13779_v9  ;;  %v13781_v9 = vld [vmem:[#allocation27_spill] sm:$0xff] }
 0x341   : > { %v3132_v40 = vrot.slane %v3001_v49, 1  ;;  %v3985_v12 = vrot.slane %v3001_v49, 2  ;;  %v2957_v18 = vadd.f32 %v12148_v29, %v2905_v32  ;;  %8939 = vmatmul.mubr.msk.f32.gmra.mxu0 %vm3148_vm4, %v3001_v49  ;;  %8796 = vmatprep.mubr.msk.f32.mxu1 %vm9881_vm0, %v13709_v11 }
 0x342   : > { %v2838_v48 = vpop.f32.mrf.mxu0  ;;  %8941 = vmatprep.mubr.msk.f32.mxu0 %vm9881_vm0, %v13709_v11 }
 0x343   : > { %v3002_v8 = vmax.f32 %v2957_v18, 0.0  ;;  %v2906_v47 = vadd.f32 %v2838_v48, %v2368_v59  ;;  %v3133_v5 = vsel %vm943_vm1, %v3130_v46, %v3132_v40  ;;  %v12223_v22 = vsel %vm1221_vm2, %v3983_v7, %v3985_v12 }
 0x344   : > { %v8668_v53 = vpop.f32.mrf.mxu0  ;;  %8797 = vmatmul.mubr.msk.f32.gmra.mxu1 %vm3148_vm4, %v3133_v5  ;;  %v2378_v59 = vadd.f32 %v12008_v33, %v13780_v1  ;;  %v13782_v1 = vld [vmem:[#allocation41_spill] sm:$0xff] }
 0x345   : > { %v3134_v45 = vrot.slane %v3002_v8, 1  ;;  %v3987_v52 = vrot.slane %v3002_v8, 2  ;;  %v2958_v49 = vadd.f32 %v12148_v29, %v2906_v47  ;;  %8942 = vmatmul.mubr.msk.f32.gmra.mxu0 %vm3148_vm4, %v3002_v8  ;;  %8799 = vmatprep.mubr.msk.f32.mxu1 %vm9881_vm0, %v13709_v11 }
 0x346   : > { %v2843_v32 = vpop.f32.mrf.mxu0  ;;  %8944 = vmatprep.mubr.msk.f32.mxu0 %vm9881_vm0, %v13709_v11 }
 0x347   : > { %v3003_v46 = vmax.f32 %v2958_v49, 0.0  ;;  %v2907_v7 = vadd.f32 %v2843_v32, %v2373_v26  ;;  %v3135_v60 = vsel %vm943_vm1, %v3132_v40, %v3134_v45  ;;  %v12236_v25 = vsel %vm1221_vm2, %v3985_v12, %v3987_v52 }
 0x348   : > { %v8671_v3 = vpop.f32.mrf.mxu0  ;;  %8800 = vmatmul.mubr.msk.f32.gmra.mxu1 %vm3148_vm4, %v3135_v60  ;;  %v2383_v26 = vadd.f32 %v12023_v34, %v13781_v9  ;;  %v13783_v9 = vld [vmem:[#allocation39_spill] sm:$0xff] }
 0x349   : > { %v3136_v18 = vrot.slane %v3003_v46, 1  ;;  %v3989_v48 = vrot.slane %v3003_v46, 2  ;;  %v2959_v8 = vadd.f32 %v12148_v29, %v2907_v7  ;;  %8945 = vmatmul.mubr.msk.f32.gmra.mxu0 %vm3148_vm4, %v3003_v46  ;;  %8802 = vmatprep.mubr.msk.f32.mxu1 %vm9881_vm0, %v13709_v11 }
 0x34a   : > { %v2848_v47 = vpop.f32.mrf.mxu0  ;;  %8947 = vmatprep.mubr.msk.f32.mxu0 %vm9881_vm0, %v13709_v11 }
 0x34b   : > { %v3004_v40 = vmax.f32 %v2959_v8, 0.0  ;;  %v2908_v12 = vadd.f32 %v2848_v47, %v2378_v59  ;;  %v3137_v5 = vsel %vm943_vm1, %v3134_v45, %v3136_v18  ;;  %v12249_v53 = vsel %vm1221_vm2, %v3987_v52, %v3989_v48 }
 0x34c   : > { %v8674_v33 = vpop.f32.mrf.mxu0  ;;  %8803 = vmatmul.mubr.msk.f32.gmra.mxu1 %vm3148_vm4, %v3137_v5  ;;  %v2388_v59 = vadd.f32 %v12038_v19, %v13782_v1 }
 0x34d   : > { %v3138_v49 = vrot.slane %v3004_v40, 1  ;;  %v3991_v32 = vrot.slane %v3004_v40, 2  ;;  %v2960_v46 = vadd.f32 %v12148_v29, %v2908_v12  ;;  %8948 = vmatmul.mubr.msk.f32.gmra.mxu0 %vm3148_vm4, %v3004_v40  ;;  %8805 = vmatprep.mubr.msk.f32.mxu1 %vm9881_vm0, %v13709_v11 }
 0x34e   : > { %v2853_v7 = vpop.f32.mrf.mxu0  ;;  %8950 = vmatprep.mubr.msk.f32.mxu0 %vm9881_vm0, %v13709_v11 }
 0x34f   : > { %v3005_v45 = vmax.f32 %v2960_v46, 0.0  ;;  %v2909_v52 = vadd.f32 %v2853_v7, %v2383_v26  ;;  %v3139_v60 = vsel %vm943_vm1, %v3136_v18, %v3138_v49  ;;  %v12262_v3 = vsel %vm1221_vm2, %v3989_v48, %v3991_v32 }
 0x350   : > { %v8677_v34 = vpop.f32.mrf.mxu0  ;;  %8806 = vmatmul.mubr.msk.f32.gmra.mxu1 %vm3148_vm4, %v3139_v60  ;;  %v2393_v26 = vadd.f32 %v12053_v24, %v13783_v9 }
 0x351   : > { %v3140_v8 = vrot.slane %v3005_v45, 1  ;;  %v3993_v47 = vrot.slane %v3005_v45, 2  ;;  %v2961_v40 = vadd.f32 %v12148_v29, %v2909_v52  ;;  %8951 = vmatmul.mubr.msk.f32.gmra.mxu0 %vm3148_vm4, %v3005_v45  ;;  %8808 = vmatprep.mubr.msk.f32.mxu1 %vm9881_vm0, %v13709_v11 }
 0x352   : > { %v2858_v12 = vpop.f32.mrf.mxu0  ;;  %8953 = vmatprep.mubr.msk.f32.mxu0 %vm9881_vm0, %v13709_v11 }
 0x353   : > { %v3006_v18 = vmax.f32 %v2961_v40, 0.0  ;;  %v2910_v48 = vadd.f32 %v2858_v12, %v2388_v59  ;;  %v3141_v5 = vsel %vm943_vm1, %v3138_v49, %v3140_v8  ;;  %v12275_v33 = vsel %vm1221_vm2, %v3991_v32, %v3993_v47  ;;  %v4531_v12 = vld [vmem:[#allocation14 + $0x38] sm:$0xff] }
 0x354   : > { %v8680_v19 = vpop.f32.mrf.mxu0  ;;  %8809 = vmatmul.mubr.msk.f32.gmra.mxu1 %vm3148_vm4, %v3141_v5  ;;  %9101 = vmatprep.subr.mxu0 %v4531_v12 }
 0x355   : > { %v3142_v46 = vrot.slane %v3006_v18, 1  ;;  %v3995_v7 = vrot.slane %v3006_v18, 2  ;;  %v2962_v45 = vadd.f32 %v12148_v29, %v2910_v48  ;;  %8954 = vmatmul.mubr.msk.f32.gmra.mxu0 %vm3148_vm4, %v3006_v18  ;;  %8811 = vmatprep.mubr.msk.f32.mxu1 %vm9881_vm0, %v13709_v11 }
 0x356   : > { %v2863_v52 = vpop.f32.mrf.mxu0  ;;  %8956 = vmatprep.mubr.msk.f32.mxu0 %vm9881_vm0, %v13709_v11  ;;  %9102 = vmatpush3.msra.mxu0 %v4531_v12 }
 0x357   : > { %v3007_v49 = vmax.f32 %v2962_v45, 0.0  ;;  %v2911_v32 = vadd.f32 %v2863_v52, %v2393_v26  ;;  %v3143_v60 = vsel %vm943_vm1, %v3140_v8, %v3142_v46  ;;  %v12288_v34 = vsel %vm1221_vm2, %v3993_v47, %v3995_v7 }
 0x358   : > { %v8683_v24 = vpop.f32.mrf.mxu0  ;;  %8812 = vmatmul.mubr.msk.f32.gmra.mxu1 %vm3148_vm4, %v3143_v60 }
 0x359   : > { %v3144_v1 = vrot.slane %v3007_v49, 1  ;;  %v3997_v59 = vrot.slane %v3007_v49, 2  ;;  %v2963_v40 = vadd.f32 %v12148_v29, %v2911_v32  ;;  %8957 = vmatmul.mubr.msk.f32.gmra.mxu0 %vm3148_vm4, %v3007_v49  ;;  %8814 = vmatprep.mubr.msk.f32.mxu1 %vm9881_vm0, %v13709_v11 }
 0x35a   : > { %8959 = vmatprep.mubr.msk.f32.mxu0 %vm9881_vm0, %v13709_v11 }
 0x35b   : > { %v12297_v8 = vmax.f32 %v2963_v40, 0.0  ;;  %v3145_v47 = vsel %vm943_vm1, %v3142_v46, %v3144_v1  ;;  %v12301_v18 = vsel %vm1221_vm2, %v3995_v7, %v3997_v59 }
 0x35c   : > { %8815 = vmatmul.mubr.msk.f32.gmra.mxu1 %vm3148_vm4, %v3145_v47 }
 0x35d   : > { %v3146_v29 = vrot.slane %v12297_v8, 1  ;;  %v3999_v48 = vrot.slane %v12297_v8, 2  ;;  %8960 = vmatmul.mubr.msk.f32.gmra.mxu0 %vm3148_vm4, %v12297_v8  ;;  %8817 = vmatprep.mubr.msk.f32.mxu1 %vm9881_vm0, %v13709_v11 }
 0x35f   : > { %v3147_v5 = vsel %vm943_vm1, %v3144_v1, %v3146_v29  ;;  %v12314_v19 = vsel %vm1221_vm2, %v3997_v59, %v3999_v48 }
 0x360   : > { %8818 = vmatmul.mubr.msk.f32.gmra.mxu1 %vm3148_vm4, %v3147_v5 }
 0x361   : > { %8820 = vmatprep.mubr.msk.f32.mxu1 %vm9881_vm0, %v13709_v11 }
 0x364   : > { %8821 = vmatmul.mubr.msk.f32.gmra.mxu1 %vm3148_vm4, %v3146_v29 }
 0x365   : > { %8966 = vmatprep.mubr.msk.f32.mxu1 %vm9881_vm0, %v13709_v11 }
 0x368   : > { %8967 = vmatmul.mubr.msk.f32.vlgmr.msra.gmra.mxu1 %vm3148_vm4, %v11704_v21 }
 0x369   : > { %8969 = vmatprep.mubr.msk.f32.mxu1 %vm9881_vm0, %v13709_v11 }
 0x36c   : > { %8970 = vmatmul.mubr.msk.f32.gmra.mxu1 %vm3148_vm4, %v11720_v28 }
 0x36d   : > { %v3685_v9 = vpop.f32.mrf.mxu0  ;;  %8972 = vmatprep.mubr.msk.f32.mxu1 %vm9881_vm0, %v13709_v11 }
 0x36f   : > { %v8829_v26 = vpop.f32.mrf.mxu0 }
 0x370   : > { %8973 = vmatmul.mubr.msk.f32.gmra.mxu1 %vm3148_vm4, %v11735_v27 }
 0x371   : > { %v3690_v46 = vpop.f32.mrf.mxu0  ;;  %8975 = vmatprep.mubr.msk.f32.mxu1 %vm9881_vm0, %v13709_v11 }
 0x373   : > { %v8832_v7 = vpop.f32.mrf.mxu0 }
 0x374   : > { %v3305_v21 = vpop.f32.mrf.mxu1  ;;  %8976 = vmatmul.mubr.msk.f32.gmra.mxu1 %vm3148_vm4, %v11750_v0 }
 0x375   : > { %v12336_v45 = vadd.f32 %v3685_v9, %v3305_v21  ;;  %v3695_v28 = vpop.f32.mrf.mxu0  ;;  %8978 = vmatprep.mubr.msk.f32.mxu1 %vm9881_vm0, %v13709_v11 }
 0x376   : > { %v8690_v52 = vpop.f32.mrf.mxu1 }
 0x377   : > { %v8835_v49 = vpop.f32.mrf.mxu0 }
 0x378   : > { %v3310_v32 = vpop.f32.mrf.mxu1  ;;  %8979 = vmatmul.mubr.msk.f32.gmra.mxu1 %vm3148_vm4, %v11765_v10 }
 0x379   : > { %v12342_v27 = vadd.f32 %v3690_v46, %v3310_v32  ;;  %v3700_v60 = vpop.f32.mrf.mxu0  ;;  %8981 = vmatprep.mubr.msk.f32.mxu1 %vm9881_vm0, %v13709_v11 }
 0x37a   : > { %v8693_v24 = vpop.f32.mrf.mxu1 }
 0x37b   : > { %v8838_v0 = vpop.f32.mrf.mxu0 }
 0x37c   : > { %v3315_v1 = vpop.f32.mrf.mxu1  ;;  %8982 = vmatmul.mubr.msk.f32.gmra.mxu1 %vm3148_vm4, %v11780_v51 }
 0x37d   : > { %v12348_v59 = vadd.f32 %v3695_v28, %v3315_v1  ;;  %v3705_v40 = vpop.f32.mrf.mxu0  ;;  %8984 = vmatprep.mubr.msk.f32.mxu1 %vm9881_vm0, %v13709_v11 }
 0x37e   : > { %v8696_v12 = vpop.f32.mrf.mxu1 }
 0x37f   : > { %v8841_v10 = vpop.f32.mrf.mxu0 }
 0x380   : > { %v3320_v47 = vpop.f32.mrf.mxu1  ;;  %8985 = vmatmul.mubr.msk.f32.gmra.mxu1 %vm3148_vm4, %v11795_v54  ;;  %v4530_v54 = vld [vmem:[#allocation14 + $0x30] sm:$0xff] }
 0x381   : > { %v12354_v29 = vadd.f32 %v3700_v60, %v3320_v47  ;;  %v3710_v5 = vpop.f32.mrf.mxu0  ;;  %8987 = vmatprep.mubr.msk.f32.mxu1 %vm9881_vm0, %v13709_v11  ;;  %9103 = vmatprep.subr.mxu0 %v4530_v54 }
 0x382   : > { %v8699_v9 = vpop.f32.mrf.mxu1  ;;  %9104 = vmatpush3.msra.mxu0 %v4530_v54 }
 0x383   : > { %v8844_v51 = vpop.f32.mrf.mxu0 }
 0x384   : > { %v3325_v26 = vpop.f32.mrf.mxu1  ;;  %8988 = vmatmul.mubr.msk.f32.gmra.mxu1 %vm3148_vm4, %v11810_v13 }
 0x385   : > { %v12360_v46 = vadd.f32 %v3705_v40, %v3325_v26  ;;  %v3715_v7 = vpop.f32.mrf.mxu0  ;;  %8990 = vmatprep.mubr.msk.f32.mxu1 %vm9881_vm0, %v13709_v11 }
 0x386   : > { %v8702_v21 = vpop.f32.mrf.mxu1 }
 0x387   : > { %v8847_v28 = vpop.f32.mrf.mxu0 }
 0x388   : > { %v3330_v52 = vpop.f32.mrf.mxu1  ;;  %8991 = vmatmul.mubr.msk.f32.gmra.mxu1 %vm3148_vm4, %v11825_v15 }
 0x389   : > { %v12366_v49 = vadd.f32 %v3710_v5, %v3330_v52  ;;  %v3720_v32 = vpop.f32.mrf.mxu0  ;;  %8993 = vmatprep.mubr.msk.f32.mxu1 %vm9881_vm0, %v13709_v11 }
 0x38a   : > { %v8705_v13 = vpop.f32.mrf.mxu1 }
 0x38b   : > { %v8850_v60 = vpop.f32.mrf.mxu0 }
 0x38c   : > { %v3335_v24 = vpop.f32.mrf.mxu1  ;;  %8994 = vmatmul.mubr.msk.f32.gmra.mxu1 %vm3148_vm4, %v11840_v36 }
 0x38d   : > { %v12372_v0 = vadd.f32 %v3715_v7, %v3335_v24  ;;  %v3725_v1 = vpop.f32.mrf.mxu0  ;;  %8996 = vmatprep.mubr.msk.f32.mxu1 %vm9881_vm0, %v13709_v11 }
 0x38e   : > { %v8708_v15 = vpop.f32.mrf.mxu1 }
 0x38f   : > { %v8853_v40 = vpop.f32.mrf.mxu0 }
 0x390   : > { %v3340_v12 = vpop.f32.mrf.mxu1  ;;  %8997 = vmatmul.mubr.msk.f32.gmra.mxu1 %vm3148_vm4, %v11855_v17 }
 0x391   : > { %v12378_v10 = vadd.f32 %v3720_v32, %v3340_v12  ;;  %v3730_v47 = vpop.f32.mrf.mxu0  ;;  %8999 = vmatprep.mubr.msk.f32.mxu1 %vm9881_vm0, %v13709_v11 }
 0x392   : > { %v8711_v5 = vpop.f32.mrf.mxu1 }
 0x393   : > { %v8856_v36 = vpop.f32.mrf.mxu0 }
 0x394   : > { %v3345_v9 = vpop.f32.mrf.mxu1  ;;  %9000 = vmatmul.mubr.msk.f32.gmra.mxu1 %vm3148_vm4, %v11870_v37 }
 0x395   : > { %v12384_v51 = vadd.f32 %v3725_v1, %v3345_v9  ;;  %v3735_v26 = vpop.f32.mrf.mxu0  ;;  %9002 = vmatprep.mubr.msk.f32.mxu1 %vm9881_vm0, %v13709_v11 }
 0x396   : > { %v8714_v7 = vpop.f32.mrf.mxu1 }
 0x397   : > { %v8859_v17 = vpop.f32.mrf.mxu0 }
 0x398   : > { %v3350_v21 = vpop.f32.mrf.mxu1  ;;  %9003 = vmatmul.mubr.msk.f32.gmra.mxu1 %vm3148_vm4, %v11885_v61 }
 0x399   : > { %v12390_v54 = vadd.f32 %v3730_v47, %v3350_v21  ;;  %v3740_v28 = vpop.f32.mrf.mxu0  ;;  %9005 = vmatprep.mubr.msk.f32.mxu1 %vm9881_vm0, %v13709_v11 }
 0x39a   : > { %v8717_v52 = vpop.f32.mrf.mxu1 }
 0x39b   : > { %v8862_v37 = vpop.f32.mrf.mxu0 }
 0x39c   : > { %v3355_v32 = vpop.f32.mrf.mxu1  ;;  %9006 = vmatmul.mubr.msk.f32.gmra.mxu1 %vm3148_vm4, %v11900_v57 }
 0x39d   : > { %v12396_v13 = vadd.f32 %v3735_v26, %v3355_v32  ;;  %v3745_v60 = vpop.f32.mrf.mxu0  ;;  %9008 = vmatprep.mubr.msk.f32.mxu1 %vm9881_vm0, %v13709_v11 }
 0x39e   : > { %v8720_v24 = vpop.f32.mrf.mxu1 }
 0x39f   : > { %v8865_v61 = vpop.f32.mrf.mxu0 }
 0x3a0   : > { %v3360_v1 = vpop.f32.mrf.mxu1  ;;  %9009 = vmatmul.mubr.msk.f32.gmra.mxu1 %vm3148_vm4, %v11915_v41 }
 0x3a1   : > { %v12402_v15 = vadd.f32 %v3740_v28, %v3360_v1  ;;  %v3750_v40 = vpop.f32.mrf.mxu0  ;;  %9011 = vmatprep.mubr.msk.f32.mxu1 %vm9881_vm0, %v13709_v11 }
 0x3a2   : > { %v8723_v12 = vpop.f32.mrf.mxu1 }
 0x3a3   : > { %v8868_v57 = vpop.f32.mrf.mxu0  ;;  %v4525_v12 = vld [vmem:[#allocation14 + $0x10] sm:$0xff] }
 0x3a4   : > { %v3365_v47 = vpop.f32.mrf.mxu1  ;;  %9012 = vmatmul.mubr.msk.f32.gmra.mxu1 %vm3148_vm4, %v11930_v44  ;;  %v4524_v57 = vld [vmem:[#allocation14 + $0x8] sm:$0xff] }
 0x3a5   : > { %v12408_v5 = vadd.f32 %v3745_v60, %v3365_v47  ;;  %v3755_v36 = vpop.f32.mrf.mxu0  ;;  %9014 = vmatprep.mubr.msk.f32.mxu1 %vm9881_vm0, %v13709_v11  ;;  %v4526_v60 = vld [vmem:[#allocation14 + $0x18] sm:$0xff] }
 0x3a6   : > { %v8726_v9 = vpop.f32.mrf.mxu1  ;;  %9175 = vmatprep.subr.mxu1 %v4526_v60 }
 0x3a7   : > { %v8871_v41 = vpop.f32.mrf.mxu0  ;;  %9176 = vmatpush3.msra.mxu1 %v4526_v60 }
 0x3a8   : > { %v3370_v26 = vpop.f32.mrf.mxu1  ;;  %9015 = vmatmul.mubr.msk.f32.gmra.mxu1 %vm3148_vm4, %v11945_v58  ;;  %9177 = vmatprep.subr.mxu1 %v4525_v12 }
 0x3a9   : > { %v12414_v7 = vadd.f32 %v3750_v40, %v3370_v26  ;;  %v3760_v17 = vpop.f32.mrf.mxu0  ;;  %9017 = vmatprep.mubr.msk.f32.mxu1 %vm9881_vm0, %v13709_v11  ;;  %9178 = vmatpush3.msra.mxu1 %v4525_v12  ;;  %v4523_v26 = vld [vmem:[#allocation14] sm:$0xff] }
 0x3aa   : > { %v8729_v21 = vpop.f32.mrf.mxu1  ;;  %9179 = vmatprep.subr.mxu1 %v4524_v57 }
 0x3ab   : > { %v8874_v44 = vpop.f32.mrf.mxu0  ;;  %9180 = vmatpush3.msra.mxu1 %v4524_v57 }
 0x3ac   : > { %v3375_v28 = vpop.f32.mrf.mxu1  ;;  %9018 = vmatmul.mubr.msk.f32.gmra.mxu1 %vm3148_vm4, %v11960_v16  ;;  %9181 = vmatprep.subr.mxu1 %v4523_v26 }
 0x3ad   : > { %v12420_v52 = vadd.f32 %v3755_v36, %v3375_v28  ;;  %v3765_v37 = vpop.f32.mrf.mxu0  ;;  %9020 = vmatprep.mubr.msk.f32.mxu1 %vm9881_vm0, %v13709_v11  ;;  %9182 = vmatpush3.msra.mxu1 %v4523_v26 }
 0x3ae   : > { %v8732_v32 = vpop.f32.mrf.mxu1 }
 0x3af   : > { %v8877_v58 = vpop.f32.mrf.mxu0 }
 0x3b0   : > { %v3380_v24 = vpop.f32.mrf.mxu1  ;;  %9021 = vmatmul.mubr.msk.f32.gmra.mxu1 %vm3148_vm4, %v11975_v63 }
 0x3b1   : > { %v12426_v61 = vadd.f32 %v3760_v17, %v3380_v24  ;;  %v3770_v1 = vpop.f32.mrf.mxu0  ;;  %9023 = vmatprep.mubr.msk.f32.mxu1 %vm9881_vm0, %v13709_v11  ;;  %v4529_v17 = vld [vmem:[#allocation14 + $0x28] sm:$0xff] }
 0x3b2   : > { %v8735_v16 = vpop.f32.mrf.mxu1  ;;  %9105 = vmatprep.subr.mxu0 %v4529_v17 }
 0x3b3   : > { %v8880_v40 = vpop.f32.mrf.mxu0  ;;  %9106 = vmatpush3.msra.mxu0 %v4529_v17 }
 0x3b4   : > { %v3385_v47 = vpop.f32.mrf.mxu1  ;;  %9024 = vmatmul.mubr.msk.f32.gmra.mxu1 %vm3148_vm4, %v11990_v23 }
 0x3b5   : > { %v12432_v36 = vadd.f32 %v3765_v37, %v3385_v47  ;;  %v3775_v63 = vpop.f32.mrf.mxu0  ;;  %9026 = vmatprep.mubr.msk.f32.mxu1 %vm9881_vm0, %v13709_v11 }
 0x3b6   : > { %v8738_v9 = vpop.f32.mrf.mxu1 }
 0x3b7   : > { %v8883_v41 = vpop.f32.mrf.mxu0 }
 0x3b8   : > { %v3390_v21 = vpop.f32.mrf.mxu1  ;;  %9027 = vmatmul.mubr.msk.f32.gmra.mxu1 %vm3148_vm4, %v12005_v62 }
 0x3b9   : > { %v12438_v23 = vadd.f32 %v3770_v1, %v3390_v21  ;;  %v3780_v44 = vpop.f32.mrf.mxu0  ;;  %9029 = vmatprep.mubr.msk.f32.mxu1 %vm9881_vm0, %v13709_v11  ;;  %v4528_v1 = vld [vmem:[#allocation14 + $0x20] sm:$0xff] }
 0x3ba   : > { %v8741_v28 = vpop.f32.mrf.mxu1  ;;  %9107 = vmatprep.subr.mxu0 %v4528_v1 }
 0x3bb   : > { %v8886_v37 = vpop.f32.mrf.mxu0  ;;  %9108 = vmatpush3.msra.mxu0 %v4528_v1 }
 0x3bc   : > { %v3395_v32 = vpop.f32.mrf.mxu1  ;;  %9030 = vmatmul.mubr.msk.f32.gmra.mxu1 %vm3148_vm4, %v12020_v4 }
 0x3bd   : > { %v12444_v58 = vadd.f32 %v3775_v63, %v3395_v32  ;;  %v3785_v60 = vpop.f32.mrf.mxu0  ;;  %9032 = vmatprep.mubr.msk.f32.mxu1 %vm9881_vm0, %v13709_v11 }
 0x3be   : > { %v8744_v62 = vpop.f32.mrf.mxu1 }
 0x3bf   : > { %v8889_v24 = vpop.f32.mrf.mxu0 }
 0x3c0   : > { %v3400_v16 = vpop.f32.mrf.mxu1  ;;  %9033 = vmatmul.mubr.msk.f32.gmra.mxu1 %vm3148_vm4, %v12035_v6 }
 0x3c1   : > { %v12450_v40 = vadd.f32 %v3780_v44, %v3400_v16  ;;  %v3790_v12 = vpop.f32.mrf.mxu0  ;;  %9035 = vmatprep.mubr.msk.f32.mxu1 %vm9881_vm0, %v13709_v11 }
 0x3c2   : > { %v8747_v4 = vpop.f32.mrf.mxu1 }
 0x3c3   : > { %v8892_v57 = vpop.f32.mrf.mxu0 }
 0x3c4   : > { %v3405_v47 = vpop.f32.mrf.mxu1  ;;  %9036 = vmatmul.mubr.msk.f32.gmra.mxu1 %vm3148_vm4, %v12050_v20 }
 0x3c5   : > { %v12456_v63 = vadd.f32 %v3785_v60, %v3405_v47  ;;  %v3795_v9 = vpop.f32.mrf.mxu0  ;;  %9038 = vmatprep.mubr.msk.f32.mxu1 %vm9881_vm0, %v13709_v11 }
 0x3c6   : > { %v8750_v6 = vpop.f32.mrf.mxu1 }
 0x3c7   : > { %v8895_v41 = vpop.f32.mrf.mxu0 }
 0x3c8   : > { %v3410_v26 = vpop.f32.mrf.mxu1  ;;  %9039 = vmatmul.mubr.msk.f32.gmra.mxu1 %vm3148_vm4, %v12065_v42 }
 0x3c9   : > { %v12462_v17 = vadd.f32 %v3790_v12, %v3410_v26  ;;  %v3800_v21 = vpop.f32.mrf.mxu0  ;;  %9041 = vmatprep.mubr.msk.f32.mxu1 %vm9881_vm0, %v13709_v11 }
 0x3ca   : > { %v8753_v44 = vpop.f32.mrf.mxu1 }
 0x3cb   : > { %v8898_v20 = vpop.f32.mrf.mxu0 }
 0x3cc   : > { %v3415_v28 = vpop.f32.mrf.mxu1  ;;  %9042 = vmatmul.mubr.msk.f32.gmra.mxu1 %vm3148_vm4, %v12078_v56 }
 0x3cd   : > { %v12468_v37 = vadd.f32 %v3795_v9, %v3415_v28  ;;  %v3805_v32 = vpop.f32.mrf.mxu0  ;;  %9044 = vmatprep.mubr.msk.f32.mxu1 %vm9881_vm0, %v13709_v11 }
 0x3ce   : > { %v8756_v60 = vpop.f32.mrf.mxu1 }
 0x3cf   : > { %v8901_v42 = vpop.f32.mrf.mxu0 }
 0x3d0   : > { %v3420_v62 = vpop.f32.mrf.mxu1  ;;  %9045 = vmatmul.mubr.msk.f32.gmra.mxu1 %vm3148_vm4, %v12091_v38 }
 0x3d1   : > { %v12474_v24 = vadd.f32 %v3800_v21, %v3420_v62  ;;  %v3810_v1 = vpop.f32.mrf.mxu0  ;;  %9047 = vmatprep.mubr.msk.f32.mxu1 %vm9881_vm0, %v13709_v11 }
 0x3d2   : > { %v8759_v16 = vpop.f32.mrf.mxu1 }
 0x3d3   : > { %v8904_v56 = vpop.f32.mrf.mxu0 }
 0x3d4   : > { %v3425_v12 = vpop.f32.mrf.mxu1  ;;  %9048 = vmatmul.mubr.msk.f32.gmra.mxu1 %vm3148_vm4, %v12104_v35 }
 0x3d5   : > { %v12480_v4 = vadd.f32 %v3805_v32, %v3425_v12  ;;  %v3815_v57 = vpop.f32.mrf.mxu0  ;;  %9050 = vmatprep.mubr.msk.f32.mxu1 %vm9881_vm0, %v13709_v11 }
 0x3d6   : > { %v8762_v47 = vpop.f32.mrf.mxu1 }
 0x3d7   : > { %v8907_v38 = vpop.f32.mrf.mxu0 }
 0x3d8   : > { %v3430_v9 = vpop.f32.mrf.mxu1  ;;  %9051 = vmatmul.mubr.msk.f32.gmra.mxu1 %vm3148_vm4, %v12117_v43 }
 0x3d9   : > { %v12486_v6 = vadd.f32 %v3810_v1, %v3430_v9  ;;  %v3820_v41 = vpop.f32.mrf.mxu0  ;;  %9053 = vmatprep.mubr.msk.f32.mxu1 %vm9881_vm0, %v13709_v11 }
 0x3da   : > { %v8765_v26 = vpop.f32.mrf.mxu1 }
 0x3db   : > { %v8910_v35 = vpop.f32.mrf.mxu0 }
 0x3dc   : > { %v3435_v21 = vpop.f32.mrf.mxu1  ;;  %9054 = vmatmul.mubr.msk.f32.gmra.mxu1 %vm3148_vm4, %v12130_v31 }
 0x3dd   : > { %v12492_v44 = vadd.f32 %v3815_v57, %v3435_v21  ;;  %v3825_v20 = vpop.f32.mrf.mxu0  ;;  %9056 = vmatprep.mubr.msk.f32.mxu1 %vm9881_vm0, %v13709_v11 }
 0x3de   : > { %v8768_v28 = vpop.f32.mrf.mxu1 }
 0x3df   : > { %v8913_v43 = vpop.f32.mrf.mxu0 }
 0x3e0   : > { %v3440_v32 = vpop.f32.mrf.mxu1  ;;  %9057 = vmatmul.mubr.msk.f32.gmra.mxu1 %vm3148_vm4, %v12143_v55 }
 0x3e1   : > { %v12498_v60 = vadd.f32 %v3820_v41, %v3440_v32  ;;  %v3830_v42 = vpop.f32.mrf.mxu0  ;;  %9059 = vmatprep.mubr.msk.f32.mxu1 %vm9881_vm0, %v13709_v11 }
 0x3e2   : > { %v8771_v62 = vpop.f32.mrf.mxu1 }
 0x3e3   : > { %v8916_v31 = vpop.f32.mrf.mxu0 }
 0x3e4   : > { %v3445_v1 = vpop.f32.mrf.mxu1  ;;  %9060 = vmatmul.mubr.msk.f32.gmra.mxu1 %vm3148_vm4, %v12158_v30 }
 0x3e5   : > { %v12504_v16 = vadd.f32 %v3825_v20, %v3445_v1  ;;  %v3835_v56 = vpop.f32.mrf.mxu0  ;;  %9062 = vmatprep.mubr.msk.f32.mxu1 %vm9881_vm0, %v13709_v11 }
 0x3e6   : > { %v8774_v12 = vpop.f32.mrf.mxu1 }
 0x3e7   : > { %v8919_v55 = vpop.f32.mrf.mxu0 }
 0x3e8   : > { %v3450_v57 = vpop.f32.mrf.mxu1  ;;  %9063 = vmatmul.mubr.msk.f32.gmra.mxu1 %vm3148_vm4, %v12171_v2 }
 0x3e9   : > { %v12510_v47 = vadd.f32 %v3830_v42, %v3450_v57  ;;  %v3840_v38 = vpop.f32.mrf.mxu0  ;;  %9065 = vmatprep.mubr.msk.f32.mxu1 %vm9881_vm0, %v13709_v11 }
 0x3ea   : > { %v8777_v9 = vpop.f32.mrf.mxu1 }
 0x3eb   : > { %v8922_v30 = vpop.f32.mrf.mxu0 }
 0x3ec   : > { %v3455_v41 = vpop.f32.mrf.mxu1  ;;  %9066 = vmatmul.mubr.msk.f32.gmra.mxu1 %vm3148_vm4, %v12184_v50 }
 0x3ed   : > { %v12516_v26 = vadd.f32 %v3835_v56, %v3455_v41  ;;  %v3845_v35 = vpop.f32.mrf.mxu0  ;;  %9068 = vmatprep.mubr.msk.f32.mxu1 %vm9881_vm0, %v13709_v11 }
 0x3ee   : > { %v8780_v21 = vpop.f32.mrf.mxu1 }
 0x3ef   : > { %v8925_v2 = vpop.f32.mrf.mxu0 }
 0x3f0   : > { %v3460_v20 = vpop.f32.mrf.mxu1  ;;  %9069 = vmatmul.mubr.msk.f32.gmra.mxu1 %vm3148_vm4, %v12197_v39 }
 0x3f1   : > { %v12522_v28 = vadd.f32 %v3840_v38, %v3460_v20  ;;  %v3850_v43 = vpop.f32.mrf.mxu0  ;;  %9071 = vmatprep.mubr.msk.f32.mxu1 %vm9881_vm0, %v13709_v11 }
 0x3f2   : > { %v8783_v32 = vpop.f32.mrf.mxu1 }
 0x3f3   : > { %v8928_v50 = vpop.f32.mrf.mxu0 }
 0x3f4   : > { %v3465_v42 = vpop.f32.mrf.mxu1  ;;  %9072 = vmatmul.mubr.msk.f32.gmra.mxu1 %vm3148_vm4, %v12210_v14 }
 0x3f5   : > { %v12528_v62 = vadd.f32 %v3845_v35, %v3465_v42  ;;  %v3855_v31 = vpop.f32.mrf.mxu0  ;;  %9074 = vmatprep.mubr.msk.f32.mxu1 %vm9881_vm0, %v13709_v11 }
 0x3f6   : > { %v8786_v1 = vpop.f32.mrf.mxu1 }
 0x3f7   : > { %v8931_v39 = vpop.f32.mrf.mxu0 }
 0x3f8   : > { %v3470_v56 = vpop.f32.mrf.mxu1  ;;  %9075 = vmatmul.mubr.msk.f32.gmra.mxu1 %vm3148_vm4, %v12223_v22 }
 0x3f9   : > { %v12534_v12 = vadd.f32 %v3850_v43, %v3470_v56  ;;  %v3860_v55 = vpop.f32.mrf.mxu0  ;;  %9077 = vmatprep.mubr.msk.f32.mxu1 %vm9881_vm0, %v13709_v11 }
 0x3fa   : > { %v8789_v57 = vpop.f32.mrf.mxu1 }
 0x3fb   : > { %v8934_v14 = vpop.f32.mrf.mxu0 }
 0x3fc   : > { %v3475_v38 = vpop.f32.mrf.mxu1  ;;  %9078 = vmatmul.mubr.msk.f32.gmra.mxu1 %vm3148_vm4, %v12236_v25 }
 0x3fd   : > { %v12540_v9 = vadd.f32 %v3855_v31, %v3475_v38  ;;  %v3865_v30 = vpop.f32.mrf.mxu0  ;;  %9080 = vmatprep.mubr.msk.f32.mxu1 %vm9881_vm0, %v13709_v11 }
 0x3fe   : > { %v8792_v41 = vpop.f32.mrf.mxu1 }
 0x3ff   : > { %v8937_v22 = vpop.f32.mrf.mxu0 }
 0x400   : > { %v3480_v35 = vpop.f32.mrf.mxu1  ;;  %9081 = vmatmul.mubr.msk.f32.gmra.mxu1 %vm3148_vm4, %v12249_v53 }
 0x401   : > { %v12546_v21 = vadd.f32 %v3860_v55, %v3480_v35  ;;  %v3870_v2 = vpop.f32.mrf.mxu0  ;;  %9083 = vmatprep.mubr.msk.f32.mxu1 %vm9881_vm0, %v13709_v11 }
 0x402   : > { %v8795_v20 = vpop.f32.mrf.mxu1 }
 0x403   : > { %v8940_v25 = vpop.f32.mrf.mxu0 }
 0x404   : > { %v3485_v43 = vpop.f32.mrf.mxu1  ;;  %9084 = vmatmul.mubr.msk.f32.gmra.mxu1 %vm3148_vm4, %v12262_v3 }
 0x405   : > { %v12552_v32 = vadd.f32 %v3865_v30, %v3485_v43  ;;  %v3875_v50 = vpop.f32.mrf.mxu0  ;;  %9086 = vmatprep.mubr.msk.f32.mxu1 %vm9881_vm0, %v13709_v11 }
 0x406   : > { %v8798_v42 = vpop.f32.mrf.mxu1 }
 0x407   : > { %v8943_v53 = vpop.f32.mrf.mxu0 }
 0x408   : > { %v3490_v31 = vpop.f32.mrf.mxu1  ;;  %9087 = vmatmul.mubr.msk.f32.gmra.mxu1 %vm3148_vm4, %v12275_v33 }
 0x409   : > { %v12558_v1 = vadd.f32 %v3870_v2, %v3490_v31  ;;  %v3880_v39 = vpop.f32.mrf.mxu0  ;;  %9089 = vmatprep.mubr.msk.f32.mxu1 %vm9881_vm0, %v13709_v11  ;;  %v12574_v2 = vld [vmem:[#allocation14 + $0x58] sm:$0xff] }
 0x40a   : > { %v8801_v56 = vpop.f32.mrf.mxu1  ;;  %9249 = vmatprep.subr.mxu0 %v12574_v2 }
 0x40b   : > { %v8946_v3 = vpop.f32.mrf.mxu0 }
 0x40c   : > { %v3495_v55 = vpop.f32.mrf.mxu1  ;;  %9090 = vmatmul.mubr.msk.f32.gmra.mxu1 %vm3148_vm4, %v12288_v34 }
 0x40d   : > { %v12564_v57 = vadd.f32 %v3875_v50, %v3495_v55  ;;  %v3885_v14 = vpop.f32.mrf.mxu0  ;;  %9092 = vmatprep.mubr.msk.f32.mxu1 %vm9881_vm0, %v13709_v11 }
 0x40e   : > { %v8804_v38 = vpop.f32.mrf.mxu1 }
 0x40f   : > { %v8949_v33 = vpop.f32.mrf.mxu0 }
 0x410   : > { %v3500_v30 = vpop.f32.mrf.mxu1  ;;  %9093 = vmatmul.mubr.msk.f32.gmra.mxu1 %vm3148_vm4, %v12301_v18 }
 0x411   : > { %v12570_v41 = vadd.f32 %v3880_v39, %v3500_v30  ;;  %v3890_v22 = vpop.f32.mrf.mxu0  ;;  %9095 = vmatprep.mubr.msk.f32.mxu1 %vm9881_vm0, %v13709_v11 }
 0x412   : > { %v8807_v35 = vpop.f32.mrf.mxu1 }
 0x413   : > { %v8952_v34 = vpop.f32.mrf.mxu0 }
 0x414   : > { %v3505_v20 = vpop.f32.mrf.mxu1  ;;  %9096 = vmatmul.mubr.msk.f32.gmra.mxu1 %vm3148_vm4, %v12314_v19 }
 0x415   : > { %v12579_v25 = vadd.f32 %v3885_v14, %v3505_v20  ;;  %v3895_v43 = vpop.f32.mrf.mxu0  ;;  %9098 = vmatprep.mubr.msk.f32.mxu1 %vm9881_vm0, %v13709_v11 }
 0x416   : > { %v8810_v18 = vpop.f32.mrf.mxu1 }
 0x417   : > { %v8955_v50 = vpop.f32.mrf.mxu0 }
 0x418   : > { %v3510_v42 = vpop.f32.mrf.mxu1  ;;  %9099 = vmatmul.mubr.msk.f32.gmra.mxu1 %vm3148_vm4, %v3999_v48 }
 0x419   : > { %v12586_v53 = vadd.f32 %v3890_v22, %v3510_v42  ;;  %v3900_v31 = vpop.f32.mrf.mxu0  ;;  %v12594_v22 = vld [vmem:[#allocation12] ss:$0 sm:$0xff] }
 0x41a   : > { %v8813_v39 = vpop.f32.mrf.mxu1 }
 0x41b   : > { %v8958_v19 = vpop.f32.mrf.mxu0 }
 0x41c   : > { %v3515_v56 = vpop.f32.mrf.mxu1 }
 0x41d   : > { %v12588_v3 = vadd.f32 %v3895_v43, %v3515_v56  ;;  %v3905_v55 = vpop.f32.mrf.mxu0 }
 0x41e   : > { %v8816_v14 = vpop.f32.mrf.mxu1 }
 0x41f   : > { %v8961_v38 = vpop.f32.mrf.mxu0 }
 0x420   : > { %v3520_v33 = vpop.f32.mrf.mxu1 }
 0x421   : > { %v12590_v11 = vadd.f32 %v3900_v31, %v3520_v33 }
 0x422   : > { %v8819_v30 = vpop.f32.mrf.mxu1 }
 0x424   : > { %v3525_v35 = vpop.f32.mrf.mxu1 }
 0x425   : > { %v12592_v34 = vadd.f32 %v3905_v55, %v3525_v35 }
 0x426   : > { %v8822_v8 = vpop.f32.mrf.mxu1 }
 0x428   : > { %v4157_v48 = vpop.f32.mrf.mxu1 }
 0x429   : > { %v4381_v20 = vadd.f32 %v4157_v48, %v12336_v45 }
 0x42a   : > { %v8968_v18 = vpop.f32.mrf.mxu1 }
 0x42b   : > { %v4433_v43 = vadd.f32 %v12594_v22, %v4381_v20 }
 0x42c   : > { %v4162_v50 = vpop.f32.mrf.mxu1 }
 0x42d   : > { %v4478_v42 = vmax.f32 %v4433_v43, 0.0  ;;  %v4382_v39 = vadd.f32 %v4162_v50, %v12342_v27 }
 0x42e   : > { %v8971_v31 = vpop.f32.mrf.mxu1 }
 0x42f   : > { %v4434_v19 = vadd.f32 %v12594_v22, %v4382_v39  ;;  %9183 = vmatprep.mubr.msk.f32.mxu1 %vm4666_vm5, %v4478_v42  ;;  %v4577_v38 = vrot.slane %v4478_v42, 1  ;;  %v5418_v45 = vrot.slane %v4478_v42, 2 }
 0x430   : > { %v4167_v56 = vpop.f32.mrf.mxu1 }
 0x431   : > { %v4479_v55 = vmax.f32 %v4434_v19, 0.0  ;;  %v4383_v14 = vadd.f32 %v4167_v56, %v12348_v59 }
 0x432   : > { %v8974_v33 = vpop.f32.mrf.mxu1 }
 0x433   : > { %v4578_v30 = vrot.slane %v4479_v55, 1  ;;  %v5419_v35 = vrot.slane %v4479_v55, 2  ;;  %v4435_v8 = vadd.f32 %v12594_v22, %v4383_v14  ;;  %9184 = vmatmul.mubr.msk.f32.vlgmr.msra.gmra.mxu1 %vm4666_vm5, %v4479_v55  ;;  %v5416_v55 = vld [vmem:[#allocation14 + $0x50] sm:$0xff] }
 0x434   : > { %v4172_v48 = vpop.f32.mrf.mxu1 }
 0x435   : > { %v4480_v27 = vmax.f32 %v4435_v8, 0.0  ;;  %v4384_v20 = vadd.f32 %v4172_v48, %v12354_v29  ;;  %v4579_v18 = vsel %vm943_vm1, %v4577_v38, %v4578_v30  ;;  %v12607_v43 = vsel %vm1221_vm2, %v5418_v45, %v5419_v35 }
 0x436   : > { %v8977_v50 = vpop.f32.mrf.mxu1  ;;  %9109 = vmatprep.mubr.msk.f32.mxu0 %vm4666_vm5, %v4579_v18 }
 0x437   : > { %v4580_v59 = vrot.slane %v4480_v27, 1  ;;  %v5421_v42 = vrot.slane %v4480_v27, 2  ;;  %v4436_v39 = vadd.f32 %v12594_v22, %v4384_v20  ;;  %9186 = vmatprep.mubr.msk.f32.mxu1 %vm4666_vm5, %v4480_v27 }
 0x438   : > { %v4177_v31 = vpop.f32.mrf.mxu1 }
 0x439   : > { %v4481_v19 = vmax.f32 %v4436_v39, 0.0  ;;  %v4385_v56 = vadd.f32 %v4177_v31, %v12360_v46  ;;  %v4581_v29 = vsel %vm943_vm1, %v4578_v30, %v4580_v59  ;;  %v12615_v14 = vsel %vm1221_vm2, %v5419_v35, %v5421_v42 }
 0x43a   : > { %v8980_v38 = vpop.f32.mrf.mxu1  ;;  %9110 = vmatmul.mubr.msk.f32.vlgmr.msra.gmra.mxu0 %vm4666_vm5, %v4581_v29 }
 0x43b   : > { %v4582_v33 = vrot.slane %v4481_v19, 1  ;;  %v5423_v45 = vrot.slane %v4481_v19, 2  ;;  %v4437_v8 = vadd.f32 %v12594_v22, %v4385_v56  ;;  %9187 = vmatmul.mubr.msk.f32.gmra.mxu1 %vm4666_vm5, %v4481_v19  ;;  %9250 = vmatpush3.msra.mxu0 %v12574_v2  ;;  %v5415_v2 = vld [vmem:[#allocation14 + $0x48] sm:$0xff] }
 0x43c   : > { %v4182_v48 = vpop.f32.mrf.mxu1  ;;  %9251 = vmatprep.subr.mxu0 %v5416_v55 }
 0x43d   : > { %v4482_v46 = vmax.f32 %v4437_v8, 0.0  ;;  %v4386_v30 = vadd.f32 %v4182_v48, %v12366_v49  ;;  %v4583_v27 = vsel %vm943_vm1, %v4580_v59, %v4582_v33  ;;  %9252 = vmatpush3.msra.mxu0 %v5416_v55  ;;  %v12624_v35 = vsel %vm1221_vm2, %v5421_v42, %v5423_v45 }
 0x43e   : > { %v8983_v20 = vpop.f32.mrf.mxu1  ;;  %9112 = vmatprep.mubr.msk.f32.mxu0 %vm4666_vm5, %v4583_v27  ;;  %9253 = vmatprep.subr.mxu0 %v5415_v2 }
 0x43f   : > { %v4584_v18 = vrot.slane %v4482_v46, 1  ;;  %v5425_v50 = vrot.slane %v4482_v46, 2  ;;  %v4438_v39 = vadd.f32 %v12594_v22, %v4386_v30  ;;  %9189 = vmatprep.mubr.msk.f32.mxu1 %vm4666_vm5, %v4482_v46  ;;  %9254 = vmatpush3.msra.mxu0 %v5415_v2 }
 0x440   : > { %v4187_v31 = vpop.f32.mrf.mxu1 }
 0x441   : > { %v4483_v19 = vmax.f32 %v4438_v39, 0.0  ;;  %v4387_v49 = vadd.f32 %v4187_v31, %v12372_v0  ;;  %v4585_v59 = vsel %vm943_vm1, %v4582_v33, %v4584_v18  ;;  %v12632_v42 = vsel %vm1221_vm2, %v5423_v45, %v5425_v50 }
 0x442   : > { %v8986_v56 = vpop.f32.mrf.mxu1  ;;  %9113 = vmatmul.mubr.msk.f32.gmra.mxu0 %vm4666_vm5, %v4585_v59 }
 0x443   : > { %v4586_v29 = vrot.slane %v4483_v19, 1  ;;  %v5427_v55 = vrot.slane %v4483_v19, 2  ;;  %v4439_v38 = vadd.f32 %v12594_v22, %v4387_v49  ;;  %9190 = vmatmul.mubr.msk.f32.gmra.mxu1 %vm4666_vm5, %v4483_v19 }
 0x444   : > { %v4192_v8 = vpop.f32.mrf.mxu1 }
 0x445   : > { %v4484_v48 = vmax.f32 %v4439_v38, 0.0  ;;  %v4388_v46 = vadd.f32 %v4192_v8, %v12378_v10  ;;  %v4587_v0 = vsel %vm943_vm1, %v4584_v18, %v4586_v29  ;;  %v12640_v33 = vsel %vm1221_vm2, %v5425_v50, %v5427_v55 }
 0x446   : > { %v8989_v45 = vpop.f32.mrf.mxu1  ;;  %9115 = vmatprep.mubr.msk.f32.mxu0 %vm4666_vm5, %v4587_v0 }
 0x447   : > { %v4588_v30 = vrot.slane %v4484_v48, 1  ;;  %v5429_v27 = vrot.slane %v4484_v48, 2  ;;  %v4440_v20 = vadd.f32 %v12594_v22, %v4388_v46  ;;  %9192 = vmatprep.mubr.msk.f32.mxu1 %vm4666_vm5, %v4484_v48 }
 0x448   : > { %v4197_v39 = vpop.f32.mrf.mxu1 }
 0x449   : > { %v4485_v2 = vmax.f32 %v4440_v20, 0.0  ;;  %v4389_v31 = vadd.f32 %v4197_v39, %v12384_v51  ;;  %v4589_v10 = vsel %vm943_vm1, %v4586_v29, %v4588_v30  ;;  %v12648_v18 = vsel %vm1221_vm2, %v5427_v55, %v5429_v27 }
 0x44a   : > { %v8992_v50 = vpop.f32.mrf.mxu1  ;;  %9116 = vmatmul.mubr.msk.f32.gmra.mxu0 %vm4666_vm5, %v4589_v10 }
 0x44b   : > { %v4590_v19 = vrot.slane %v4485_v2, 1  ;;  %v5431_v49 = vrot.slane %v4485_v2, 2  ;;  %v4441_v59 = vadd.f32 %v12594_v22, %v4389_v31  ;;  %9193 = vmatmul.mubr.msk.f32.gmra.mxu1 %vm4666_vm5, %v4485_v2  ;;  %v5414_v50 = vld [vmem:[#allocation14 + $0x40] sm:$0xff] }
 0x44c   : > { %v4202_v56 = vpop.f32.mrf.mxu1  ;;  %9255 = vmatprep.subr.mxu0 %v5414_v50 }
 0x44d   : > { %v4486_v38 = vmax.f32 %v4441_v59, 0.0  ;;  %v4390_v8 = vadd.f32 %v4202_v56, %v12390_v54  ;;  %v4591_v51 = vsel %vm943_vm1, %v4588_v30, %v4590_v19  ;;  %v12656_v29 = vsel %vm1221_vm2, %v5429_v27, %v5431_v49  ;;  %9256 = vmatpush3.msra.mxu0 %v5414_v50 }
 0x44e   : > { %v8995_v55 = vpop.f32.mrf.mxu1  ;;  %9118 = vmatprep.mubr.msk.f32.mxu0 %vm4666_vm5, %v4591_v51 }
 0x44f   : > { %v4592_v48 = vrot.slane %v4486_v38, 1  ;;  %v5433_v46 = vrot.slane %v4486_v38, 2  ;;  %v4442_v0 = vadd.f32 %v12594_v22, %v4390_v8  ;;  %9195 = vmatprep.mubr.msk.f32.mxu1 %vm4666_vm5, %v4486_v38 }
 0x450   : > { %v4207_v45 = vpop.f32.mrf.mxu1 }
 0x451   : > { %v4487_v20 = vmax.f32 %v4442_v0, 0.0  ;;  %v4391_v39 = vadd.f32 %v4207_v45, %v12396_v13  ;;  %v4593_v54 = vsel %vm943_vm1, %v4590_v19, %v4592_v48  ;;  %v12664_v30 = vsel %vm1221_vm2, %v5431_v49, %v5433_v46 }
 0x452   : > { %v8998_v27 = vpop.f32.mrf.mxu1  ;;  %9119 = vmatmul.mubr.msk.f32.gmra.mxu0 %vm4666_vm5, %v4593_v54 }
 0x453   : > { %v4594_v2 = vrot.slane %v4487_v20, 1  ;;  %v5435_v31 = vrot.slane %v4487_v20, 2  ;;  %v4443_v10 = vadd.f32 %v12594_v22, %v4391_v39  ;;  %9196 = vmatmul.mubr.msk.f32.gmra.mxu1 %vm4666_vm5, %v4487_v20 }
 0x454   : > { %v4212_v59 = vpop.f32.mrf.mxu1 }
 0x455   : > { %v4488_v56 = vmax.f32 %v4443_v10, 0.0  ;;  %v4392_v13 = vadd.f32 %v4212_v59, %v12402_v15  ;;  %v4595_v19 = vsel %vm943_vm1, %v4592_v48, %v4594_v2  ;;  %v12672_v49 = vsel %vm1221_vm2, %v5433_v46, %v5435_v31 }
 0x456   : > { %v9001_v38 = vpop.f32.mrf.mxu1  ;;  %9121 = vmatprep.mubr.msk.f32.mxu0 %vm4666_vm5, %v4595_v19 }
 0x457   : > { %v4596_v8 = vrot.slane %v4488_v56, 1  ;;  %v5437_v51 = vrot.slane %v4488_v56, 2  ;;  %v4444_v55 = vadd.f32 %v12594_v22, %v4392_v13  ;;  %9198 = vmatprep.mubr.msk.f32.mxu1 %vm4666_vm5, %v4488_v56 }
 0x458   : > { %v4217_v0 = vpop.f32.mrf.mxu1 }
 0x459   : > { %v4489_v45 = vmax.f32 %v4444_v55, 0.0  ;;  %v4393_v20 = vadd.f32 %v4217_v0, %v12408_v5  ;;  %v4597_v15 = vsel %vm943_vm1, %v4594_v2, %v4596_v8  ;;  %v12680_v48 = vsel %vm1221_vm2, %v5435_v31, %v5437_v51 }
 0x45a   : > { %v9004_v46 = vpop.f32.mrf.mxu1  ;;  %9122 = vmatmul.mubr.msk.f32.gmra.mxu0 %vm4666_vm5, %v4597_v15 }
 0x45b   : > { %v4598_v39 = vrot.slane %v4489_v45, 1  ;;  %v5439_v54 = vrot.slane %v4489_v45, 2  ;;  %v4445_v27 = vadd.f32 %v12594_v22, %v4393_v20  ;;  %9199 = vmatmul.mubr.msk.f32.gmra.mxu1 %vm4666_vm5, %v4489_v45 }
 0x45c   : > { %v4222_v10 = vpop.f32.mrf.mxu1 }
 0x45d   : > { %v4490_v50 = vmax.f32 %v4445_v27, 0.0  ;;  %v4394_v59 = vadd.f32 %v4222_v10, %v12414_v7  ;;  %v4599_v5 = vsel %vm943_vm1, %v4596_v8, %v4598_v39  ;;  %v12688_v2 = vsel %vm1221_vm2, %v5437_v51, %v5439_v54 }
 0x45e   : > { %v9007_v31 = vpop.f32.mrf.mxu1  ;;  %9124 = vmatprep.mubr.msk.f32.mxu0 %vm4666_vm5, %v4599_v5 }
 0x45f   : > { %v4600_v56 = vrot.slane %v4490_v50, 1  ;;  %v5441_v13 = vrot.slane %v4490_v50, 2  ;;  %v4446_v19 = vadd.f32 %v12594_v22, %v4394_v59  ;;  %9201 = vmatprep.mubr.msk.f32.mxu1 %vm4666_vm5, %v4490_v50 }
 0x460   : > { %v4227_v38 = vpop.f32.mrf.mxu1 }
 0x461   : > { %v4491_v55 = vmax.f32 %v4446_v19, 0.0  ;;  %v4395_v0 = vadd.f32 %v4227_v38, %v12420_v52  ;;  %v4601_v7 = vsel %vm943_vm1, %v4598_v39, %v4600_v56  ;;  %v12696_v8 = vsel %vm1221_vm2, %v5439_v54, %v5441_v13 }
 0x462   : > { %v9010_v51 = vpop.f32.mrf.mxu1  ;;  %9125 = vmatmul.mubr.msk.f32.gmra.mxu0 %vm4666_vm5, %v4601_v7 }
 0x463   : > { %v4602_v45 = vrot.slane %v4491_v55, 1  ;;  %v5443_v20 = vrot.slane %v4491_v55, 2  ;;  %v4447_v15 = vadd.f32 %v12594_v22, %v4395_v0  ;;  %9202 = vmatmul.mubr.msk.f32.gmra.mxu1 %vm4666_vm5, %v4491_v55 }
 0x464   : > { %v4232_v46 = vpop.f32.mrf.mxu1 }
 0x465   : > { %v4492_v27 = vmax.f32 %v4447_v15, 0.0  ;;  %v4396_v10 = vadd.f32 %v4232_v46, %v12426_v61  ;;  %v4603_v52 = vsel %vm943_vm1, %v4600_v56, %v4602_v45  ;;  %v12704_v39 = vsel %vm1221_vm2, %v5441_v13, %v5443_v20 }
 0x466   : > { %v9013_v54 = vpop.f32.mrf.mxu1  ;;  %9127 = vmatprep.mubr.msk.f32.mxu0 %vm4666_vm5, %v4603_v52 }
 0x467   : > { %v4604_v50 = vrot.slane %v4492_v27, 1  ;;  %v5445_v59 = vrot.slane %v4492_v27, 2  ;;  %v4448_v5 = vadd.f32 %v12594_v22, %v4396_v10  ;;  %9204 = vmatprep.mubr.msk.f32.mxu1 %vm4666_vm5, %v4492_v27 }
 0x468   : > { %v4237_v31 = vpop.f32.mrf.mxu1 }
 0x469   : > { %v4493_v19 = vmax.f32 %v4448_v5, 0.0  ;;  %v4397_v38 = vadd.f32 %v4237_v31, %v12432_v36  ;;  %v4605_v61 = vsel %vm943_vm1, %v4602_v45, %v4604_v50  ;;  %v12712_v56 = vsel %vm1221_vm2, %v5443_v20, %v5445_v59 }
 0x46a   : > { %v9016_v13 = vpop.f32.mrf.mxu1  ;;  %9128 = vmatmul.mubr.msk.f32.gmra.mxu0 %vm4666_vm5, %v4605_v61 }
 0x46b   : > { %v4606_v55 = vrot.slane %v4493_v19, 1  ;;  %v5447_v0 = vrot.slane %v4493_v19, 2  ;;  %v4449_v7 = vadd.f32 %v12594_v22, %v4397_v38  ;;  %9205 = vmatmul.mubr.msk.f32.gmra.mxu1 %vm4666_vm5, %v4493_v19 }
 0x46c   : > { %v4242_v51 = vpop.f32.mrf.mxu1 }
 0x46d   : > { %v4494_v15 = vmax.f32 %v4449_v7, 0.0  ;;  %v4398_v46 = vadd.f32 %v4242_v51, %v12438_v23  ;;  %v4607_v36 = vsel %vm943_vm1, %v4604_v50, %v4606_v55  ;;  %v12720_v45 = vsel %vm1221_vm2, %v5445_v59, %v5447_v0 }
 0x46e   : > { %v9019_v20 = vpop.f32.mrf.mxu1  ;;  %9130 = vmatprep.mubr.msk.f32.mxu0 %vm4666_vm5, %v4607_v36 }
 0x46f   : > { %v4608_v27 = vrot.slane %v4494_v15, 1  ;;  %v5449_v10 = vrot.slane %v4494_v15, 2  ;;  %v4450_v52 = vadd.f32 %v12594_v22, %v4398_v46  ;;  %9207 = vmatprep.mubr.msk.f32.mxu1 %vm4666_vm5, %v4494_v15 }
 0x470   : > { %v4247_v54 = vpop.f32.mrf.mxu1 }
 0x471   : > { %v4495_v5 = vmax.f32 %v4450_v52, 0.0  ;;  %v4399_v31 = vadd.f32 %v4247_v54, %v12444_v58  ;;  %v4609_v23 = vsel %vm943_vm1, %v4606_v55, %v4608_v27  ;;  %v12728_v50 = vsel %vm1221_vm2, %v5447_v0, %v5449_v10 }
 0x472   : > { %v9022_v59 = vpop.f32.mrf.mxu1  ;;  %9131 = vmatmul.mubr.msk.f32.gmra.mxu0 %vm4666_vm5, %v4609_v23 }
 0x473   : > { %v4610_v19 = vrot.slane %v4495_v5, 1  ;;  %v5451_v38 = vrot.slane %v4495_v5, 2  ;;  %v4451_v61 = vadd.f32 %v12594_v22, %v4399_v31  ;;  %9208 = vmatmul.mubr.msk.f32.gmra.mxu1 %vm4666_vm5, %v4495_v5 }
 0x474   : > { %v4252_v13 = vpop.f32.mrf.mxu1 }
 0x475   : > { %v4496_v7 = vmax.f32 %v4451_v61, 0.0  ;;  %v4400_v51 = vadd.f32 %v4252_v13, %v12450_v40  ;;  %v4611_v58 = vsel %vm943_vm1, %v4608_v27, %v4610_v19  ;;  %v12736_v55 = vsel %vm1221_vm2, %v5449_v10, %v5451_v38 }
 0x476   : > { %v9025_v0 = vpop.f32.mrf.mxu1  ;;  %9133 = vmatprep.mubr.msk.f32.mxu0 %vm4666_vm5, %v4611_v58 }
 0x477   : > { %v4612_v15 = vrot.slane %v4496_v7, 1  ;;  %v5453_v46 = vrot.slane %v4496_v7, 2  ;;  %v4452_v36 = vadd.f32 %v12594_v22, %v4400_v51  ;;  %9210 = vmatprep.mubr.msk.f32.mxu1 %vm4666_vm5, %v4496_v7 }
 0x478   : > { %v4257_v20 = vpop.f32.mrf.mxu1 }
 0x479   : > { %v4497_v52 = vmax.f32 %v4452_v36, 0.0  ;;  %v4401_v54 = vadd.f32 %v4257_v20, %v12456_v63  ;;  %v4613_v40 = vsel %vm943_vm1, %v4610_v19, %v4612_v15  ;;  %v12744_v27 = vsel %vm1221_vm2, %v5451_v38, %v5453_v46 }
 0x47a   : > { %v9028_v10 = vpop.f32.mrf.mxu1  ;;  %9134 = vmatmul.mubr.msk.f32.gmra.mxu0 %vm4666_vm5, %v4613_v40 }
 0x47b   : > { %v4614_v5 = vrot.slane %v4497_v52, 1  ;;  %v5455_v31 = vrot.slane %v4497_v52, 2  ;;  %v4453_v23 = vadd.f32 %v12594_v22, %v4401_v54  ;;  %9211 = vmatmul.mubr.msk.f32.gmra.mxu1 %vm4666_vm5, %v4497_v52 }
 0x47c   : > { %v4262_v59 = vpop.f32.mrf.mxu1 }
 0x47d   : > { %v4498_v61 = vmax.f32 %v4453_v23, 0.0  ;;  %v4402_v13 = vadd.f32 %v4262_v59, %v12462_v17  ;;  %v4615_v63 = vsel %vm943_vm1, %v4612_v15, %v4614_v5  ;;  %v12752_v19 = vsel %vm1221_vm2, %v5453_v46, %v5455_v31 }
 0x47e   : > { %v9031_v38 = vpop.f32.mrf.mxu1  ;;  %9136 = vmatprep.mubr.msk.f32.mxu0 %vm4666_vm5, %v4615_v63 }
 0x47f   : > { %v4616_v7 = vrot.slane %v4498_v61, 1  ;;  %v5457_v51 = vrot.slane %v4498_v61, 2  ;;  %v4454_v58 = vadd.f32 %v12594_v22, %v4402_v13  ;;  %9213 = vmatprep.mubr.msk.f32.mxu1 %vm4666_vm5, %v4498_v61 }
 0x480   : > { %v4267_v0 = vpop.f32.mrf.mxu1 }
 0x481   : > { %v4499_v36 = vmax.f32 %v4454_v58, 0.0  ;;  %v4403_v20 = vadd.f32 %v4267_v0, %v12468_v37  ;;  %v4617_v17 = vsel %vm943_vm1, %v4614_v5, %v4616_v7  ;;  %v12760_v15 = vsel %vm1221_vm2, %v5455_v31, %v5457_v51 }
 0x482   : > { %v9034_v46 = vpop.f32.mrf.mxu1  ;;  %9137 = vmatmul.mubr.msk.f32.gmra.mxu0 %vm4666_vm5, %v4617_v17 }
 0x483   : > { %v4618_v52 = vrot.slane %v4499_v36, 1  ;;  %v5459_v54 = vrot.slane %v4499_v36, 2  ;;  %v4455_v40 = vadd.f32 %v12594_v22, %v4403_v20  ;;  %9214 = vmatmul.mubr.msk.f32.gmra.mxu1 %vm4666_vm5, %v4499_v36 }
 0x484   : > { %v4272_v10 = vpop.f32.mrf.mxu1 }
 0x485   : > { %v4500_v23 = vmax.f32 %v4455_v40, 0.0  ;;  %v4404_v59 = vadd.f32 %v4272_v10, %v12474_v24  ;;  %v4619_v37 = vsel %vm943_vm1, %v4616_v7, %v4618_v52  ;;  %v12768_v5 = vsel %vm1221_vm2, %v5457_v51, %v5459_v54 }
 0x486   : > { %v9037_v31 = vpop.f32.mrf.mxu1  ;;  %9139 = vmatprep.mubr.msk.f32.mxu0 %vm4666_vm5, %v4619_v37 }
 0x487   : > { %v4620_v61 = vrot.slane %v4500_v23, 1  ;;  %v5461_v13 = vrot.slane %v4500_v23, 2  ;;  %v4456_v63 = vadd.f32 %v12594_v22, %v4404_v59  ;;  %9216 = vmatprep.mubr.msk.f32.mxu1 %vm4666_vm5, %v4500_v23 }
 0x488   : > { %v4277_v38 = vpop.f32.mrf.mxu1 }
 0x489   : > { %v4501_v58 = vmax.f32 %v4456_v63, 0.0  ;;  %v4405_v0 = vadd.f32 %v4277_v38, %v12480_v4  ;;  %v4621_v24 = vsel %vm943_vm1, %v4618_v52, %v4620_v61  ;;  %v12776_v7 = vsel %vm1221_vm2, %v5459_v54, %v5461_v13 }
 0x48a   : > { %v9040_v51 = vpop.f32.mrf.mxu1  ;;  %9140 = vmatmul.mubr.msk.f32.gmra.mxu0 %vm4666_vm5, %v4621_v24 }
 0x48b   : > { %v4622_v36 = vrot.slane %v4501_v58, 1  ;;  %v5463_v20 = vrot.slane %v4501_v58, 2  ;;  %v4457_v17 = vadd.f32 %v12594_v22, %v4405_v0  ;;  %9217 = vmatmul.mubr.msk.f32.gmra.mxu1 %vm4666_vm5, %v4501_v58 }
 0x48c   : > { %v4282_v46 = vpop.f32.mrf.mxu1 }
 0x48d   : > { %v4502_v40 = vmax.f32 %v4457_v17, 0.0  ;;  %v4406_v10 = vadd.f32 %v4282_v46, %v12486_v6  ;;  %v4623_v4 = vsel %vm943_vm1, %v4620_v61, %v4622_v36  ;;  %v12784_v52 = vsel %vm1221_vm2, %v5461_v13, %v5463_v20 }
 0x48e   : > { %v9043_v54 = vpop.f32.mrf.mxu1  ;;  %9142 = vmatprep.mubr.msk.f32.mxu0 %vm4666_vm5, %v4623_v4 }
 0x48f   : > { %v4624_v23 = vrot.slane %v4502_v40, 1  ;;  %v5465_v59 = vrot.slane %v4502_v40, 2  ;;  %v4458_v37 = vadd.f32 %v12594_v22, %v4406_v10  ;;  %9219 = vmatprep.mubr.msk.f32.mxu1 %vm4666_vm5, %v4502_v40 }
 0x490   : > { %v4287_v31 = vpop.f32.mrf.mxu1 }
 0x491   : > { %v4503_v63 = vmax.f32 %v4458_v37, 0.0  ;;  %v4407_v38 = vadd.f32 %v4287_v31, %v12492_v44  ;;  %v4625_v6 = vsel %vm943_vm1, %v4622_v36, %v4624_v23  ;;  %v12792_v61 = vsel %vm1221_vm2, %v5463_v20, %v5465_v59 }
 0x492   : > { %v9046_v13 = vpop.f32.mrf.mxu1  ;;  %9143 = vmatmul.mubr.msk.f32.gmra.mxu0 %vm4666_vm5, %v4625_v6 }
 0x493   : > { %v4626_v58 = vrot.slane %v4503_v63, 1  ;;  %v5467_v0 = vrot.slane %v4503_v63, 2  ;;  %v4459_v24 = vadd.f32 %v12594_v22, %v4407_v38  ;;  %9220 = vmatmul.mubr.msk.f32.gmra.mxu1 %vm4666_vm5, %v4503_v63 }
 0x494   : > { %v4292_v51 = vpop.f32.mrf.mxu1 }
 0x495   : > { %v4504_v17 = vmax.f32 %v4459_v24, 0.0  ;;  %v4408_v46 = vadd.f32 %v4292_v51, %v12498_v60  ;;  %v4627_v44 = vsel %vm943_vm1, %v4624_v23, %v4626_v58  ;;  %v12800_v36 = vsel %vm1221_vm2, %v5465_v59, %v5467_v0 }
 0x496   : > { %v9049_v20 = vpop.f32.mrf.mxu1  ;;  %9145 = vmatprep.mubr.msk.f32.mxu0 %vm4666_vm5, %v4627_v44 }
 0x497   : > { %v4628_v40 = vrot.slane %v4504_v17, 1  ;;  %v5469_v10 = vrot.slane %v4504_v17, 2  ;;  %v4460_v4 = vadd.f32 %v12594_v22, %v4408_v46  ;;  %9222 = vmatprep.mubr.msk.f32.mxu1 %vm4666_vm5, %v4504_v17 }
 0x498   : > { %v4297_v54 = vpop.f32.mrf.mxu1 }
 0x499   : > { %v4505_v37 = vmax.f32 %v4460_v4, 0.0  ;;  %v4409_v31 = vadd.f32 %v4297_v54, %v12504_v16  ;;  %v4629_v60 = vsel %vm943_vm1, %v4626_v58, %v4628_v40  ;;  %v12808_v23 = vsel %vm1221_vm2, %v5467_v0, %v5469_v10 }
 0x49a   : > { %v9052_v59 = vpop.f32.mrf.mxu1  ;;  %9146 = vmatmul.mubr.msk.f32.gmra.mxu0 %vm4666_vm5, %v4629_v60 }
 0x49b   : > { %v4630_v63 = vrot.slane %v4505_v37, 1  ;;  %v5471_v38 = vrot.slane %v4505_v37, 2  ;;  %v4461_v6 = vadd.f32 %v12594_v22, %v4409_v31  ;;  %9223 = vmatmul.mubr.msk.f32.gmra.mxu1 %vm4666_vm5, %v4505_v37 }
 0x49c   : > { %v4302_v13 = vpop.f32.mrf.mxu1 }
 0x49d   : > { %v4506_v24 = vmax.f32 %v4461_v6, 0.0  ;;  %v4410_v51 = vadd.f32 %v4302_v13, %v12510_v47  ;;  %v4631_v16 = vsel %vm943_vm1, %v4628_v40, %v4630_v63  ;;  %v12816_v58 = vsel %vm1221_vm2, %v5469_v10, %v5471_v38 }
 0x49e   : > { %v9055_v0 = vpop.f32.mrf.mxu1  ;;  %9148 = vmatprep.mubr.msk.f32.mxu0 %vm4666_vm5, %v4631_v16 }
 0x49f   : > { %v4632_v17 = vrot.slane %v4506_v24, 1  ;;  %v5473_v46 = vrot.slane %v4506_v24, 2  ;;  %v4462_v44 = vadd.f32 %v12594_v22, %v4410_v51  ;;  %9225 = vmatprep.mubr.msk.f32.mxu1 %vm4666_vm5, %v4506_v24 }
 0x4a0   : > { %v4307_v20 = vpop.f32.mrf.mxu1 }
 0x4a1   : > { %v4507_v4 = vmax.f32 %v4462_v44, 0.0  ;;  %v4411_v54 = vadd.f32 %v4307_v20, %v12516_v26  ;;  %v4633_v47 = vsel %vm943_vm1, %v4630_v63, %v4632_v17  ;;  %v12824_v40 = vsel %vm1221_vm2, %v5471_v38, %v5473_v46 }
 0x4a2   : > { %v9058_v10 = vpop.f32.mrf.mxu1  ;;  %9149 = vmatmul.mubr.msk.f32.gmra.mxu0 %vm4666_vm5, %v4633_v47 }
 0x4a3   : > { %v4634_v37 = vrot.slane %v4507_v4, 1  ;;  %v5475_v31 = vrot.slane %v4507_v4, 2  ;;  %v4463_v60 = vadd.f32 %v12594_v22, %v4411_v54  ;;  %9226 = vmatmul.mubr.msk.f32.gmra.mxu1 %vm4666_vm5, %v4507_v4 }
 0x4a4   : > { %v4312_v59 = vpop.f32.mrf.mxu1 }
 0x4a5   : > { %v4508_v6 = vmax.f32 %v4463_v60, 0.0  ;;  %v4412_v13 = vadd.f32 %v4312_v59, %v12522_v28  ;;  %v4635_v26 = vsel %vm943_vm1, %v4632_v17, %v4634_v37  ;;  %v12832_v63 = vsel %vm1221_vm2, %v5473_v46, %v5475_v31 }
 0x4a6   : > { %v9061_v38 = vpop.f32.mrf.mxu1  ;;  %9151 = vmatprep.mubr.msk.f32.mxu0 %vm4666_vm5, %v4635_v26 }
 0x4a7   : > { %v4636_v24 = vrot.slane %v4508_v6, 1  ;;  %v5477_v51 = vrot.slane %v4508_v6, 2  ;;  %v4464_v16 = vadd.f32 %v12594_v22, %v4412_v13  ;;  %9228 = vmatprep.mubr.msk.f32.mxu1 %vm4666_vm5, %v4508_v6 }
 0x4a8   : > { %v4317_v0 = vpop.f32.mrf.mxu1 }
 0x4a9   : > { %v4509_v44 = vmax.f32 %v4464_v16, 0.0  ;;  %v4413_v20 = vadd.f32 %v4317_v0, %v12528_v62  ;;  %v4637_v28 = vsel %vm943_vm1, %v4634_v37, %v4636_v24  ;;  %v12840_v17 = vsel %vm1221_vm2, %v5475_v31, %v5477_v51 }
 0x4aa   : > { %v9064_v46 = vpop.f32.mrf.mxu1  ;;  %9152 = vmatmul.mubr.msk.f32.gmra.mxu0 %vm4666_vm5, %v4637_v28 }
 0x4ab   : > { %v4638_v4 = vrot.slane %v4509_v44, 1  ;;  %v5479_v54 = vrot.slane %v4509_v44, 2  ;;  %v4465_v47 = vadd.f32 %v12594_v22, %v4413_v20  ;;  %9229 = vmatmul.mubr.msk.f32.gmra.mxu1 %vm4666_vm5, %v4509_v44 }
 0x4ac   : > { %v4322_v10 = vpop.f32.mrf.mxu1 }
 0x4ad   : > { %v4510_v60 = vmax.f32 %v4465_v47, 0.0  ;;  %v4414_v59 = vadd.f32 %v4322_v10, %v12534_v12  ;;  %v4639_v62 = vsel %vm943_vm1, %v4636_v24, %v4638_v4  ;;  %v12848_v37 = vsel %vm1221_vm2, %v5477_v51, %v5479_v54 }
 0x4ae   : > { %v9067_v31 = vpop.f32.mrf.mxu1  ;;  %9154 = vmatprep.mubr.msk.f32.mxu0 %vm4666_vm5, %v4639_v62 }
 0x4af   : > { %v4640_v6 = vrot.slane %v4510_v60, 1  ;;  %v5481_v13 = vrot.slane %v4510_v60, 2  ;;  %v4466_v26 = vadd.f32 %v12594_v22, %v4414_v59  ;;  %9231 = vmatprep.mubr.msk.f32.mxu1 %vm4666_vm5, %v4510_v60 }
 0x4b0   : > { %v4327_v38 = vpop.f32.mrf.mxu1 }
 0x4b1   : > { %v4511_v16 = vmax.f32 %v4466_v26, 0.0  ;;  %v4415_v0 = vadd.f32 %v4327_v38, %v12540_v9  ;;  %v4641_v12 = vsel %vm943_vm1, %v4638_v4, %v4640_v6  ;;  %v12856_v24 = vsel %vm1221_vm2, %v5479_v54, %v5481_v13 }
 0x4b2   : > { %v9070_v51 = vpop.f32.mrf.mxu1  ;;  %9155 = vmatmul.mubr.msk.f32.gmra.mxu0 %vm4666_vm5, %v4641_v12 }
 0x4b3   : > { %v4642_v44 = vrot.slane %v4511_v16, 1  ;;  %v5483_v20 = vrot.slane %v4511_v16, 2  ;;  %v4467_v28 = vadd.f32 %v12594_v22, %v4415_v0  ;;  %9232 = vmatmul.mubr.msk.f32.gmra.mxu1 %vm4666_vm5, %v4511_v16 }
 0x4b4   : > { %v4332_v46 = vpop.f32.mrf.mxu1 }
 0x4b5   : > { %v4512_v47 = vmax.f32 %v4467_v28, 0.0  ;;  %v4416_v10 = vadd.f32 %v4332_v46, %v12546_v21  ;;  %v4643_v9 = vsel %vm943_vm1, %v4640_v6, %v4642_v44  ;;  %v12864_v4 = vsel %vm1221_vm2, %v5481_v13, %v5483_v20 }
 0x4b6   : > { %v9073_v54 = vpop.f32.mrf.mxu1  ;;  %9157 = vmatprep.mubr.msk.f32.mxu0 %vm4666_vm5, %v4643_v9 }
 0x4b7   : > { %v4644_v60 = vrot.slane %v4512_v47, 1  ;;  %v5485_v59 = vrot.slane %v4512_v47, 2  ;;  %v4468_v62 = vadd.f32 %v12594_v22, %v4416_v10  ;;  %9234 = vmatprep.mubr.msk.f32.mxu1 %vm4666_vm5, %v4512_v47 }
 0x4b8   : > { %v4337_v31 = vpop.f32.mrf.mxu1 }
 0x4b9   : > { %v4513_v26 = vmax.f32 %v4468_v62, 0.0  ;;  %v4417_v38 = vadd.f32 %v4337_v31, %v12552_v32  ;;  %v4645_v21 = vsel %vm943_vm1, %v4642_v44, %v4644_v60  ;;  %v12872_v6 = vsel %vm1221_vm2, %v5483_v20, %v5485_v59 }
 0x4ba   : > { %v9076_v13 = vpop.f32.mrf.mxu1  ;;  %9158 = vmatmul.mubr.msk.f32.gmra.mxu0 %vm4666_vm5, %v4645_v21 }
 0x4bb   : > { %v4646_v16 = vrot.slane %v4513_v26, 1  ;;  %v5487_v0 = vrot.slane %v4513_v26, 2  ;;  %v4469_v12 = vadd.f32 %v12594_v22, %v4417_v38  ;;  %9235 = vmatmul.mubr.msk.f32.gmra.mxu1 %vm4666_vm5, %v4513_v26 }
 0x4bc   : > { %v4342_v51 = vpop.f32.mrf.mxu1 }
 0x4bd   : > { %v4514_v28 = vmax.f32 %v4469_v12, 0.0  ;;  %v4418_v46 = vadd.f32 %v4342_v51, %v12558_v1  ;;  %v4647_v32 = vsel %vm943_vm1, %v4644_v60, %v4646_v16  ;;  %v12880_v44 = vsel %vm1221_vm2, %v5485_v59, %v5487_v0 }
 0x4be   : > { %v9079_v20 = vpop.f32.mrf.mxu1  ;;  %9160 = vmatprep.mubr.msk.f32.mxu0 %vm4666_vm5, %v4647_v32 }
 0x4bf   : > { %v4648_v47 = vrot.slane %v4514_v28, 1  ;;  %v5489_v10 = vrot.slane %v4514_v28, 2  ;;  %v4470_v9 = vadd.f32 %v12594_v22, %v4418_v46  ;;  %9237 = vmatprep.mubr.msk.f32.mxu1 %vm4666_vm5, %v4514_v28 }
 0x4c0   : > { %v4347_v54 = vpop.f32.mrf.mxu1 }
 0x4c1   : > { %v4515_v62 = vmax.f32 %v4470_v9, 0.0  ;;  %v4419_v31 = vadd.f32 %v4347_v54, %v12564_v57  ;;  %v4649_v1 = vsel %vm943_vm1, %v4646_v16, %v4648_v47  ;;  %v12888_v60 = vsel %vm1221_vm2, %v5487_v0, %v5489_v10 }
 0x4c2   : > { %v9082_v59 = vpop.f32.mrf.mxu1  ;;  %9161 = vmatmul.mubr.msk.f32.gmra.mxu0 %vm4666_vm5, %v4649_v1 }
 0x4c3   : > { %v4650_v26 = vrot.slane %v4515_v62, 1  ;;  %v5491_v38 = vrot.slane %v4515_v62, 2  ;;  %v4471_v21 = vadd.f32 %v12594_v22, %v4419_v31  ;;  %9238 = vmatmul.mubr.msk.f32.gmra.mxu1 %vm4666_vm5, %v4515_v62 }
 0x4c4   : > { %v4352_v13 = vpop.f32.mrf.mxu1 }
 0x4c5   : > { %v4516_v12 = vmax.f32 %v4471_v21, 0.0  ;;  %v4420_v51 = vadd.f32 %v4352_v13, %v12570_v41  ;;  %v4651_v57 = vsel %vm943_vm1, %v4648_v47, %v4650_v26  ;;  %v12896_v16 = vsel %vm1221_vm2, %v5489_v10, %v5491_v38 }
 0x4c6   : > { %v9085_v0 = vpop.f32.mrf.mxu1  ;;  %9163 = vmatprep.mubr.msk.f32.mxu0 %vm4666_vm5, %v4651_v57 }
 0x4c7   : > { %v4652_v28 = vrot.slane %v4516_v12, 1  ;;  %v5493_v46 = vrot.slane %v4516_v12, 2  ;;  %v4472_v32 = vadd.f32 %v12594_v22, %v4420_v51  ;;  %9240 = vmatprep.mubr.msk.f32.mxu1 %vm4666_vm5, %v4516_v12 }
 0x4c8   : > { %v4357_v20 = vpop.f32.mrf.mxu1 }
 0x4c9   : > { %v4517_v9 = vmax.f32 %v4472_v32, 0.0  ;;  %v4421_v54 = vadd.f32 %v4357_v20, %v12579_v25  ;;  %v4653_v41 = vsel %vm943_vm1, %v4650_v26, %v4652_v28  ;;  %v12904_v47 = vsel %vm1221_vm2, %v5491_v38, %v5493_v46 }
 0x4ca   : > { %v9088_v10 = vpop.f32.mrf.mxu1  ;;  %9164 = vmatmul.mubr.msk.f32.gmra.mxu0 %vm4666_vm5, %v4653_v41 }
 0x4cb   : > { %v4654_v62 = vrot.slane %v4517_v9, 1  ;;  %v5495_v31 = vrot.slane %v4517_v9, 2  ;;  %v4473_v1 = vadd.f32 %v12594_v22, %v4421_v54  ;;  %9241 = vmatmul.mubr.msk.f32.gmra.mxu1 %vm4666_vm5, %v4517_v9 }
 0x4cc   : > { %v4362_v59 = vpop.f32.mrf.mxu1 }
 0x4cd   : > { %v4518_v21 = vmax.f32 %v4473_v1, 0.0  ;;  %v4422_v13 = vadd.f32 %v4362_v59, %v12586_v53  ;;  %v4655_v25 = vsel %vm943_vm1, %v4652_v28, %v4654_v62  ;;  %v12912_v26 = vsel %vm1221_vm2, %v5493_v46, %v5495_v31 }
 0x4ce   : > { %v9091_v38 = vpop.f32.mrf.mxu1  ;;  %9166 = vmatprep.mubr.msk.f32.mxu0 %vm4666_vm5, %v4655_v25 }
 0x4cf   : > { %v4656_v12 = vrot.slane %v4518_v21, 1  ;;  %v5497_v51 = vrot.slane %v4518_v21, 2  ;;  %v4474_v57 = vadd.f32 %v12594_v22, %v4422_v13  ;;  %9243 = vmatprep.mubr.msk.f32.mxu1 %vm4666_vm5, %v4518_v21 }
 0x4d0   : > { %v4367_v0 = vpop.f32.mrf.mxu1 }
 0x4d1   : > { %v4519_v32 = vmax.f32 %v4474_v57, 0.0  ;;  %v4423_v20 = vadd.f32 %v4367_v0, %v12588_v3  ;;  %v4657_v53 = vsel %vm943_vm1, %v4654_v62, %v4656_v12  ;;  %v12920_v28 = vsel %vm1221_vm2, %v5495_v31, %v5497_v51 }
 0x4d2   : > { %v9094_v46 = vpop.f32.mrf.mxu1  ;;  %9167 = vmatmul.mubr.msk.f32.gmra.mxu0 %vm4666_vm5, %v4657_v53 }
 0x4d3   : > { %v4658_v9 = vrot.slane %v4519_v32, 1  ;;  %v5499_v54 = vrot.slane %v4519_v32, 2  ;;  %v4475_v41 = vadd.f32 %v12594_v22, %v4423_v20  ;;  %9244 = vmatmul.mubr.msk.f32.gmra.mxu1 %vm4666_vm5, %v4519_v32 }
 0x4d4   : > { %v4372_v10 = vpop.f32.mrf.mxu1 }
 0x4d5   : > { %v4520_v1 = vmax.f32 %v4475_v41, 0.0  ;;  %v4424_v59 = vadd.f32 %v4372_v10, %v12590_v11  ;;  %v4659_v3 = vsel %vm943_vm1, %v4656_v12, %v4658_v9  ;;  %v12928_v62 = vsel %vm1221_vm2, %v5497_v51, %v5499_v54 }
 0x4d6   : > { %v9097_v31 = vpop.f32.mrf.mxu1  ;;  %9169 = vmatprep.mubr.msk.f32.mxu0 %vm4666_vm5, %v4659_v3 }
 0x4d7   : > { %v4660_v21 = vrot.slane %v4520_v1, 1  ;;  %v5501_v13 = vrot.slane %v4520_v1, 2  ;;  %v4476_v25 = vadd.f32 %v12594_v22, %v4424_v59  ;;  %9246 = vmatprep.mubr.msk.f32.mxu1 %vm4666_vm5, %v4520_v1 }
 0x4d8   : > { %v4377_v38 = vpop.f32.mrf.mxu1 }
 0x4d9   : > { %v4521_v57 = vmax.f32 %v4476_v25, 0.0  ;;  %v4425_v0 = vadd.f32 %v4377_v38, %v12592_v34  ;;  %v4661_v11 = vsel %vm943_vm1, %v4658_v9, %v4660_v21  ;;  %v12936_v12 = vsel %vm1221_vm2, %v5499_v54, %v5501_v13 }
 0x4da   : > { %v9100_v51 = vpop.f32.mrf.mxu1  ;;  %9170 = vmatmul.mubr.msk.f32.gmra.mxu0 %vm4666_vm5, %v4661_v11 }
 0x4db   : > { %v4662_v32 = vrot.slane %v4521_v57, 1  ;;  %v5503_v20 = vrot.slane %v4521_v57, 2  ;;  %v4477_v53 = vadd.f32 %v12594_v22, %v4425_v0  ;;  %9247 = vmatmul.mubr.msk.f32.gmra.mxu1 %vm4666_vm5, %v4521_v57  ;;  %v6180_v22 = vld [vmem:[#allocation17 + $0x38] sm:$0xff] }
 0x4dc   : > { %9323 = vmatprep.subr.mxu1 %v6180_v22 }
 0x4dd   : > { %v4522_v46 = vmax.f32 %v4477_v53, 0.0  ;;  %v4663_v41 = vsel %vm943_vm1, %v4660_v21, %v4662_v32  ;;  %v5504_v10 = vsel %vm1221_vm2, %v5501_v13, %v5503_v20  ;;  %9324 = vmatpush3.msra.mxu1 %v6180_v22 }
 0x4de   : > { %9172 = vmatprep.mubr.msk.f32.mxu0 %vm4666_vm5, %v4663_v41 }
 0x4df   : > { %v4664_v34 = vrot.slane %v4522_v46, 1  ;;  %v5505_v9 = vrot.slane %v4522_v46, 2 }
 0x4e1   : > { %v4665_v54 = vsel %vm943_vm1, %v4662_v32, %v4664_v34  ;;  %v5506_v1 = vsel %vm1221_vm2, %v5503_v20, %v5505_v9 }
 0x4e2   : > { %9173 = vmatmul.mubr.msk.f32.gmra.mxu0 %vm4666_vm5, %v4665_v54 }
 0x4e3   : > { %9257 = vmatprep.mubr.msk.f32.mxu0 %vm4666_vm5, %v12607_v43 }
 0x4e6   : > { %9258 = vmatmul.mubr.msk.f32.vlgmr.msra.gmra.mxu0 %vm4666_vm5, %v12615_v14 }
 0x4e7   : > { %9260 = vmatprep.mubr.msk.f32.mxu0 %vm4666_vm5, %v12624_v35 }
 0x4ea   : > { %9261 = vmatmul.mubr.msk.f32.gmra.mxu0 %vm4666_vm5, %v12632_v42  ;;  %v6179_v42 = vld [vmem:[#allocation17 + $0x30] sm:$0xff] }
 0x4eb   : > { %9263 = vmatprep.mubr.msk.f32.mxu0 %vm4666_vm5, %v12640_v33  ;;  %9325 = vmatprep.subr.mxu1 %v6179_v42 }
 0x4ec   : > { %9326 = vmatpush3.msra.mxu1 %v6179_v42 }
 0x4ee   : > { %9264 = vmatmul.mubr.msk.f32.gmra.mxu0 %vm4666_vm5, %v12648_v18 }
 0x4ef   : > { %9266 = vmatprep.mubr.msk.f32.mxu0 %vm4666_vm5, %v12656_v29 }
 0x4f2   : > { %9267 = vmatmul.mubr.msk.f32.gmra.mxu0 %vm4666_vm5, %v12664_v30 }
 0x4f3   : > { %9269 = vmatprep.mubr.msk.f32.mxu0 %vm4666_vm5, %v12672_v49 }
 0x4f6   : > { %9270 = vmatmul.mubr.msk.f32.gmra.mxu0 %vm4666_vm5, %v12680_v48 }
 0x4f7   : > { %9272 = vmatprep.mubr.msk.f32.mxu0 %vm4666_vm5, %v12688_v2 }
 0x4fa   : > { %9273 = vmatmul.mubr.msk.f32.gmra.mxu0 %vm4666_vm5, %v12696_v8  ;;  %v13013_v43 = vpop.f32.mrf.mxu0 }
 0x4fb   : > { %9275 = vmatprep.mubr.msk.f32.mxu0 %vm4666_vm5, %v12704_v39  ;;  %v6178_v39 = vld [vmem:[#allocation17 + $0x28] sm:$0xff] }
 0x4fc   : > { %v13019_v14 = vpop.f32.mrf.mxu0  ;;  %9327 = vmatprep.subr.mxu1 %v6178_v39 }
 0x4fd   : > { %9328 = vmatpush3.msra.mxu1 %v6178_v39 }
 0x4fe   : > { %9276 = vmatmul.mubr.msk.f32.gmra.mxu0 %vm4666_vm5, %v12712_v56  ;;  %v6688_v56 = vld [vmem:[#allocation17 + $0x58] sm:$0xff] }
 0x4ff   : > { %9278 = vmatprep.mubr.msk.f32.mxu0 %vm4666_vm5, %v12720_v45  ;;  %9405 = vmatprep.subr.mxu0 %v6688_v56  ;;  %v6687_v45 = vld [vmem:[#allocation17 + $0x50] sm:$0xff] }
 0x500   : > { %9406 = vmatpush3.msra.mxu0 %v6688_v56 }
 0x501   : > { %9407 = vmatprep.subr.mxu0 %v6687_v45 }
 0x502   : > { %9279 = vmatmul.mubr.msk.f32.gmra.mxu0 %vm4666_vm5, %v12728_v50  ;;  %v13021_v35 = vpop.f32.mrf.mxu0 }
 0x503   : > { %9281 = vmatprep.mubr.msk.f32.mxu0 %vm4666_vm5, %v12736_v55  ;;  %9408 = vmatpush3.msra.mxu0 %v6687_v45  ;;  %v6686_v55 = vld [vmem:[#allocation17 + $0x48] sm:$0xff] }
 0x504   : > { %v13027_v33 = vpop.f32.mrf.mxu0  ;;  %9409 = vmatprep.subr.mxu0 %v6686_v55 }
 0x505   : > { %9410 = vmatpush3.msra.mxu0 %v6686_v55 }
 0x506   : > { %9282 = vmatmul.mubr.msk.f32.gmra.mxu0 %vm4666_vm5, %v12744_v27 }
 0x507   : > { %9284 = vmatprep.mubr.msk.f32.mxu0 %vm4666_vm5, %v12752_v19  ;;  %v6177_v19 = vld [vmem:[#allocation17 + $0x20] sm:$0xff] }
 0x508   : > { %9329 = vmatprep.subr.mxu1 %v6177_v19 }
 0x509   : > { %9330 = vmatpush3.msra.mxu1 %v6177_v19 }
 0x50a   : > { %9285 = vmatmul.mubr.msk.f32.gmra.mxu0 %vm4666_vm5, %v12760_v15  ;;  %v13033_v18 = vpop.f32.mrf.mxu0  ;;  %v6685_v15 = vld [vmem:[#allocation17 + $0x40] sm:$0xff] }
 0x50b   : > { %9287 = vmatprep.mubr.msk.f32.mxu0 %vm4666_vm5, %v12768_v5  ;;  %9411 = vmatprep.subr.mxu0 %v6685_v15 }
 0x50c   : > { %v13039_v29 = vpop.f32.mrf.mxu0  ;;  %9412 = vmatpush3.msra.mxu0 %v6685_v15  ;;  %v13139_v15 = vld [vmem:[#allocation15] ss:$0 sm:$0xff] }
 0x50e   : > { %9288 = vmatmul.mubr.msk.f32.gmra.mxu0 %vm4666_vm5, %v12776_v7 }
 0x50f   : > { %9290 = vmatprep.mubr.msk.f32.mxu0 %vm4666_vm5, %v12784_v52 }
 0x512   : > { %9291 = vmatmul.mubr.msk.f32.gmra.mxu0 %vm4666_vm5, %v12792_v61  ;;  %v13041_v30 = vpop.f32.mrf.mxu0 }
 0x513   : > { %9293 = vmatprep.mubr.msk.f32.mxu0 %vm4666_vm5, %v12800_v36 }
 0x514   : > { %v13046_v49 = vpop.f32.mrf.mxu0 }
 0x516   : > { %9294 = vmatmul.mubr.msk.f32.gmra.mxu0 %vm4666_vm5, %v12808_v23 }
 0x517   : > { %9296 = vmatprep.mubr.msk.f32.mxu0 %vm4666_vm5, %v12816_v58 }
 0x51a   : > { %9297 = vmatmul.mubr.msk.f32.gmra.mxu0 %vm4666_vm5, %v12824_v40  ;;  %v13049_v48 = vpop.f32.mrf.mxu0 }
 0x51b   : > { %9299 = vmatprep.mubr.msk.f32.mxu0 %vm4666_vm5, %v12832_v63 }
 0x51c   : > { %v13051_v2 = vpop.f32.mrf.mxu0 }
 0x51e   : > { %9300 = vmatmul.mubr.msk.f32.gmra.mxu0 %vm4666_vm5, %v12840_v17 }
 0x51f   : > { %9302 = vmatprep.mubr.msk.f32.mxu0 %vm4666_vm5, %v12848_v37 }
 0x522   : > { %9303 = vmatmul.mubr.msk.f32.gmra.mxu0 %vm4666_vm5, %v12856_v24  ;;  %v13053_v8 = vpop.f32.mrf.mxu0 }
 0x523   : > { %9305 = vmatprep.mubr.msk.f32.mxu0 %vm4666_vm5, %v12864_v4  ;;  %v13083_v4 = vld [vmem:[#allocation17 + $0x18] sm:$0xff] }
 0x524   : > { %v13055_v50 = vpop.f32.mrf.mxu0  ;;  %9364 = vmatprep.subr.mxu1 %v13083_v4 }
 0x526   : > { %9306 = vmatmul.mubr.msk.f32.gmra.mxu0 %vm4666_vm5, %v12872_v6 }
 0x527   : > { %9308 = vmatprep.mubr.msk.f32.mxu0 %vm4666_vm5, %v12880_v44 }
 0x52a   : > { %9309 = vmatmul.mubr.msk.f32.gmra.mxu0 %vm4666_vm5, %v12888_v60  ;;  %v13057_v27 = vpop.f32.mrf.mxu0 }
 0x52b   : > { %9311 = vmatprep.mubr.msk.f32.mxu0 %vm4666_vm5, %v12896_v16  ;;  %v9185_v16 = vpop.f32.mrf.mxu1 }
 0x52c   : > { %v13059_v5 = vpop.f32.mrf.mxu0  ;;  %v5200_v45 = vadd.f32 %v9185_v16, %v13013_v43 }
 0x52e   : > { %9312 = vmatmul.mubr.msk.f32.gmra.mxu0 %vm4666_vm5, %v12904_v47 }
 0x52f   : > { %9314 = vmatprep.mubr.msk.f32.mxu0 %vm4666_vm5, %v12912_v26  ;;  %v5194_v26 = vpop.f32.mrf.mxu1 }
 0x531   : > { %v9188_v59 = vpop.f32.mrf.mxu1 }
 0x532   : > { %9315 = vmatmul.mubr.msk.f32.gmra.mxu0 %vm4666_vm5, %v12920_v28  ;;  %v13061_v7 = vpop.f32.mrf.mxu0 }
 0x533   : > { %9317 = vmatprep.mubr.msk.f32.mxu0 %vm4666_vm5, %v12928_v62  ;;  %v5204_v62 = vpop.f32.mrf.mxu1 }
 0x534   : > { %v13063_v52 = vpop.f32.mrf.mxu0 }
 0x535   : > { %v9191_v21 = vpop.f32.mrf.mxu1 }
 0x536   : > { %9318 = vmatmul.mubr.msk.f32.gmra.mxu0 %vm4666_vm5, %v12936_v12 }
 0x537   : > { %9320 = vmatprep.mubr.msk.f32.mxu0 %vm4666_vm5, %v5504_v10  ;;  %v5214_v25 = vpop.f32.mrf.mxu1 }
 0x539   : > { %v9194_v57 = vpop.f32.mrf.mxu1 }
 0x53a   : > { %9321 = vmatmul.mubr.msk.f32.gmra.mxu0 %vm4666_vm5, %v5506_v1  ;;  %v13065_v61 = vpop.f32.mrf.mxu0 }
 0x53b   : > { %v5224_v11 = vpop.f32.mrf.mxu1 }
 0x53c   : > { %v13067_v36 = vpop.f32.mrf.mxu0 }
 0x53d   : > { %v9197_v51 = vpop.f32.mrf.mxu1 }
 0x53f   : > { %v13110_v20 = vpop.f32.mrf.mxu1 }
 0x541   : > { %v13114_v46 = vpop.f32.mrf.mxu1 }
 0x542   : > { %v13069_v23 = vpop.f32.mrf.mxu0 }
 0x543   : > { %v13118_v10 = vpop.f32.mrf.mxu1 }
 0x544   : > { %v13071_v58 = vpop.f32.mrf.mxu0 }
 0x545   : > { %v13122_v9 = vpop.f32.mrf.mxu1 }
 0x547   : > { %v13126_v1 = vpop.f32.mrf.mxu1 }
 0x549   : > { %v13130_v42 = vpop.f32.mrf.mxu1 }
 0x54a   : > { %v13073_v40 = vpop.f32.mrf.mxu0 }
 0x54b   : > { %v13137_v55 = vpop.f32.mrf.mxu1 }
 0x54c   : > { %v13075_v63 = vpop.f32.mrf.mxu0 }
 0x552   : > { %v13077_v17 = vpop.f32.mrf.mxu0 }
 0x554   : > { %v13079_v37 = vpop.f32.mrf.mxu0 }
 0x55a   : > { %v13081_v24 = vpop.f32.mrf.mxu0 }
 0x55c   : > { %v13085_v6 = vpop.f32.mrf.mxu0 }
 0x562   : > { %v13088_v44 = vpop.f32.mrf.mxu0 }
 0x564   : > { %v13090_v60 = vpop.f32.mrf.mxu0 }
 0x56a   : > { %v13092_v47 = vpop.f32.mrf.mxu0 }
 0x56c   : > { %v13094_v28 = vpop.f32.mrf.mxu0 }
 0x572   : > { %v13096_v3 = vpop.f32.mrf.mxu0 }
 0x574   : > { %v13098_v31 = vpop.f32.mrf.mxu0 }
 0x57a   : > { %v13100_v13 = vpop.f32.mrf.mxu0 }
 0x57b   : > { %13784 = vst [vmem:[#allocation33_spill] sm:$0xff] %v13100_v13 }
 0x57c   : > { %v13102_v38 = vpop.f32.mrf.mxu0 }
 0x57d   : > { %13785 = vst [vmem:[#allocation34_spill] sm:$0xff] %v13102_v38 }
 0x582   : > { %v13104_v0 = vpop.f32.mrf.mxu0 }
 0x583   : > { %13786 = vst [vmem:[#allocation35_spill] sm:$0xff] %v13104_v0 }
 0x584   : > { %v13106_v12 = vpop.f32.mrf.mxu0 }
 0x585   : > { %13787 = vst [vmem:[#allocation36_spill] sm:$0xff] %v13106_v12 }
 0x58a   : > { %v13108_v32 = vpop.f32.mrf.mxu0 }
 0x58b   : > { %13788 = vst [vmem:[#allocation38_spill] sm:$0xff] %v13108_v32 }
 0x58c   : > { %v13112_v53 = vpop.f32.mrf.mxu0 }
 0x58d   : > { %13789 = vst [vmem:[#allocation28_spill] sm:$0xff] %v13112_v53 }
 0x592   : > { %v13116_v41 = vpop.f32.mrf.mxu0 }
 0x593   : > { %13790 = vst [vmem:[#allocation42_spill] sm:$0xff] %v13116_v41 }
 0x594   : > { %v13120_v34 = vpop.f32.mrf.mxu0 }
 0x595   : > { %13791 = vst [vmem:[#allocation40_spill] sm:$0xff] %v13120_v34  ;;  %v5195_v34 = vadd.f32 %v5194_v26, %v13019_v14  ;;  %v5220_v14 = vadd.f32 %v9191_v21, %v13033_v18  ;;  %v5230_v18 = vadd.f32 %v9194_v57, %v13041_v30  ;;  %v5240_v57 = vadd.f32 %v9197_v51, %v13049_v48 }
 0x59a   : > { %v13124_v54 = vpop.f32.mrf.mxu0 }
 0x59b   : > { %13792 = vst [vmem:[#allocation43_spill] sm:$0xff] %v13124_v54  ;;  %v13142_v54 = vpop.f32.mrf.mxu1 }
 0x59c   : > { %v13128_v22 = vpop.f32.mrf.mxu0 }
 0x59d   : > { %13793 = vst [vmem:[#allocation29_spill] sm:$0xff] %v13128_v22  ;;  %v5210_v22 = vadd.f32 %v9188_v59, %v13021_v35  ;;  %v13147_v43 = vpop.f32.mrf.mxu1 }
 0x59f   : > { %v13151_v26 = vpop.f32.mrf.mxu1 }
 0x5a1   : > { %v13159_v21 = vpop.f32.mrf.mxu1 }
 0x5a2   : > { %v13132_v39 = vpop.f32.mrf.mxu0 }
 0x5a3   : > { %13794 = vst [vmem:[#allocation30_spill] sm:$0xff] %v13132_v39 }
 0x5a4   : > { %v13134_v56 = vpop.f32.mrf.mxu0 }
 0x5a5   : > { %13795 = vst [vmem:[#allocation31_spill] sm:$0xff] %v13134_v56  ;;  %v5205_v56 = vadd.f32 %v5204_v62, %v13027_v33  ;;  %v5215_v33 = vadd.f32 %v5214_v25, %v13039_v29  ;;  %v5225_v29 = vadd.f32 %v5224_v11, %v13046_v49  ;;  %v13164_v25 = vpop.f32.mrf.mxu1  ;;  %v5235_v11 = vadd.f32 %v13110_v20, %v13051_v2 }
 0x5a6   : > { %v9259_v19 = vpop.f32.mrf.mxu0 }
 0x5a7   : > { %v5881_v41 = vadd.f32 %v9259_v19, %v5200_v45 }
 0x5a8   : > { %v5661_v53 = vpop.f32.mrf.mxu0 }
 0x5a9   : > { %v5932_v32 = vadd.f32 %v13139_v15, %v5881_v41  ;;  %v5880_v39 = vadd.f32 %v5661_v53, %v5195_v34 }
 0x5aa   : > { %v9262_v12 = vpop.f32.mrf.mxu0 }
 0x5ab   : > { %v5976_v16 = vmax.f32 %v5932_v32, 0.0  ;;  %v5931_v0 = vadd.f32 %v13139_v15, %v5880_v39  ;;  %v5883_v38 = vadd.f32 %v9262_v12, %v5210_v22 }
 0x5ac   : > { %v5671_v13 = vpop.f32.mrf.mxu0 }
 0x5ad   : > { %6020 = vst.msk [vmem:[#allocation2 + $0x8] sm:$0xff] %vm4666_vm5, %v5976_v16  ;;  %v5975_v35 = vmax.f32 %v5931_v0, 0.0  ;;  %v5934_v59 = vadd.f32 %v13139_v15, %v5883_v38  ;;  %v5882_v53 = vadd.f32 %v5671_v13, %v5205_v56 }
 0x5ae   : > { %v9265_v41 = vpop.f32.mrf.mxu0 }
 0x5af   : > { %6019 = vst.msk [vmem:[#allocation2] sm:$0xff] %vm4666_vm5, %v5975_v35  ;;  %v5978_v62 = vmax.f32 %v5934_v59, 0.0  ;;  %v5933_v32 = vadd.f32 %v13139_v15, %v5882_v53  ;;  %v5885_v12 = vadd.f32 %v9265_v41, %v5220_v14  ;;  %v13173_v53 = vpop.f32.mrf.mxu1 }
 0x5b0   : > { %v5681_v34 = vpop.f32.mrf.mxu0 }
 0x5b1   : > { %6022 = vst.msk [vmem:[#allocation2 + $0x18] sm:$0xff] %vm4666_vm5, %v5978_v62  ;;  %v5977_v0 = vmax.f32 %v5933_v32, 0.0  ;;  %v5936_v38 = vadd.f32 %v13139_v15, %v5885_v12  ;;  %v5884_v13 = vadd.f32 %v5681_v34, %v5215_v33  ;;  %v5250_v32 = vadd.f32 %v13114_v46, %v13053_v8  ;;  %v13181_v12 = vpop.f32.mrf.mxu1 }
 0x5b2   : > { %v9268_v22 = vpop.f32.mrf.mxu0 }
 0x5b3   : > { %6021 = vst.msk [vmem:[#allocation2 + $0x10] sm:$0xff] %vm4666_vm5, %v5977_v0  ;;  %v5980_v39 = vmax.f32 %v5936_v38, 0.0  ;;  %v5935_v56 = vadd.f32 %v13139_v15, %v5884_v13  ;;  %v5887_v45 = vadd.f32 %v9268_v22, %v5230_v18  ;;  %v5245_v18 = vadd.f32 %v13118_v10, %v13055_v50 }
 0x5b4   : > { %v5691_v30 = vpop.f32.mrf.mxu0 }
 0x5b5   : > { %6024 = vst.msk [vmem:[#allocation2 + $0x28] sm:$0xff] %vm4666_vm5, %v5980_v39  ;;  %v5979_v19 = vmax.f32 %v5935_v56, 0.0  ;;  %v5938_v16 = vadd.f32 %v13139_v15, %v5887_v45  ;;  %v5886_v14 = vadd.f32 %v5691_v30, %v5225_v29  ;;  %v5260_v39 = vadd.f32 %v13122_v9, %v13057_v27  ;;  %v13194_v30 = vpop.f32.mrf.mxu1 }
 0x5b6   : > { %v9271_v35 = vpop.f32.mrf.mxu0  ;;  %v6063_v59 = vld [vmem:[#allocation2] ss:$2 sm:$0xff]  ;;  %v6107_v49 = vld [vmem:[#allocation2 + $0x1] ss:$2 sm:$0xff] }
 0x5b7   : > { %6023 = vst.msk [vmem:[#allocation2 + $0x20] sm:$0xff] %vm4666_vm5, %v5979_v19  ;;  %v5982_v41 = vmax.f32 %v5938_v16, 0.0  ;;  %v5937_v33 = vadd.f32 %v13139_v15, %v5886_v14  ;;  %v5889_v48 = vadd.f32 %v9271_v35, %v5240_v57  ;;  %v13177_v62 = vmax.f32 %v6063_v59, %v6107_v49  ;;  %v13203_v49 = vpop.f32.mrf.mxu1 }
 0x5b8   : > { %v5701_v51 = vpop.f32.mrf.mxu0  ;;  %v5255_v16 = vadd.f32 %v13126_v1, %v13059_v5 }
 0x5b9   : > { %6026 = vst.msk [vmem:[#allocation2 + $0x38] sm:$0xff] %vm4666_vm5, %v5982_v41  ;;  %v5981_v34 = vmax.f32 %v5937_v33, 0.0  ;;  %v5940_v2 = vadd.f32 %v13139_v15, %v5889_v48  ;;  %v5888_v20 = vadd.f32 %v5701_v51, %v5235_v11  ;;  %v6203_v45 = vrot.slane %v13177_v62, 1 }
 0x5ba   : > { %v9274_v0 = vpop.f32.mrf.mxu0  ;;  %v6065_v38 = vld [vmem:[#allocation2 + $0x10] ss:$2 sm:$0xff]  ;;  %v6109_v13 = vld [vmem:[#allocation2 + $0x11] ss:$2 sm:$0xff]  ;;  %v6689_v35 = vrot.slane %v13177_v62, 2 }
 0x5bb   : > { %6025 = vst.msk [vmem:[#allocation2 + $0x30] sm:$0xff] %vm4666_vm5, %v5981_v34  ;;  %v5984_v22 = vmax.f32 %v5940_v2, 0.0  ;;  %v5939_v29 = vadd.f32 %v13139_v15, %v5888_v20  ;;  %v5891_v8 = vadd.f32 %v9274_v0, %v5250_v32  ;;  %v13189_v46 = vmax.f32 %v6065_v38, %v6109_v13 }
 0x5bc   : > { %v5711_v56 = vpop.f32.mrf.mxu0  ;;  %v5270_v32 = vadd.f32 %v13130_v42, %v13061_v7 }
 0x5bd   : > { %6028 = vst.msk [vmem:[#allocation2 + $0x48] sm:$0xff] %vm4666_vm5, %v5984_v22  ;;  %v5983_v50 = vmax.f32 %v5939_v29, 0.0  ;;  %v5942_v10 = vadd.f32 %v13139_v15, %v5891_v8  ;;  %v5890_v57 = vadd.f32 %v5711_v56, %v5245_v18  ;;  %v6204_v19 = vrot.slane %v13189_v46, 1  ;;  %v13221_v8 = vpop.f32.mrf.mxu1 }
 0x5be   : > { %v9277_v14 = vpop.f32.mrf.mxu0  ;;  %v6690_v27 = vrot.slane %v13189_v46, 2  ;;  %v6067_v9 = vld [vmem:[#allocation2 + $0x20] ss:$2 sm:$0xff]  ;;  %v6111_v59 = vld [vmem:[#allocation2 + $0x21] ss:$2 sm:$0xff]  ;;  %v5265_v18 = vadd.f32 %v13137_v55, %v13063_v52  ;;  %v5280_v52 = vadd.f32 %v13142_v54, %v13065_v61  ;;  %v5275_v54 = vadd.f32 %v13147_v43, %v13067_v36 }
 0x5bf   : > { %6027 = vst.msk [vmem:[#allocation2 + $0x40] sm:$0xff] %vm4666_vm5, %v5983_v50  ;;  %v5986_v11 = vmax.f32 %v5942_v10, 0.0  ;;  %v5941_v41 = vadd.f32 %v13139_v15, %v5890_v57  ;;  %v5893_v33 = vadd.f32 %v9277_v14, %v5260_v39  ;;  %v6205_v48 = vsel %vm943_vm1, %v6203_v45, %v6204_v19  ;;  %v6174_v10 = vld [vmem:[#allocation17 + $0x10] sm:$0xff]  ;;  %v13231_v57 = vpop.f32.mrf.mxu1 }
 0x5c0   : > { %v5721_v51 = vpop.f32.mrf.mxu0  ;;  %9331 = vmatprep.mubr.msk.f32.mxu1 %vm4666_vm5, %v6205_v48  ;;  %v6691_v5 = vsel %vm1221_vm2, %v6689_v35, %v6690_v27  ;;  %v13210_v1 = vmax.f32 %v6067_v9, %v6111_v59 }
 0x5c1   : > { %6030 = vst.msk [vmem:[#allocation2 + $0x58] sm:$0xff] %vm4666_vm5, %v5986_v11  ;;  %v5985_v34 = vmax.f32 %v5941_v41, 0.0  ;;  %v5944_v2 = vadd.f32 %v13139_v15, %v5893_v33  ;;  %v5892_v20 = vadd.f32 %v5721_v51, %v5255_v16  ;;  %9413 = vmatprep.mubr.msk.f32.mxu0 %vm4666_vm5, %v6691_v5  ;;  %v6173_v11 = vld [vmem:[#allocation17 + $0x8] sm:$0xff] }
 0x5c2   : > { %v9280_v0 = vpop.f32.mrf.mxu0  ;;  %v6206_v38 = vrot.slane %v13210_v1, 1  ;;  %v6692_v13 = vrot.slane %v13210_v1, 2  ;;  %v6069_v22 = vld [vmem:[#allocation2 + $0x30] ss:$2 sm:$0xff]  ;;  %v6113_v29 = vld [vmem:[#allocation2 + $0x31] ss:$2 sm:$0xff] }
 0x5c3   : > { %6029 = vst.msk [vmem:[#allocation2 + $0x50] sm:$0xff] %vm4666_vm5, %v5985_v34  ;;  %v5988_v7 = vmax.f32 %v5944_v2, 0.0  ;;  %v5943_v42 = vadd.f32 %v13139_v15, %v5892_v20  ;;  %v5895_v39 = vadd.f32 %v9280_v0, %v5270_v32  ;;  %v13225_v56 = vmax.f32 %v6069_v22, %v6113_v29  ;;  %v6172_v32 = vld [vmem:[#allocation17] sm:$0xff]  ;;  %v13251_v34 = vpop.f32.mrf.mxu1 }
 0x5c4   : > { %v5731_v55 = vpop.f32.mrf.mxu0  ;;  %v6207_v45 = vsel %vm943_vm1, %v6204_v19, %v6206_v38  ;;  %v6693_v50 = vsel %vm1221_vm2, %v6690_v27, %v6692_v13  ;;  %v5285_v0 = vadd.f32 %v13159_v21, %v13071_v58  ;;  %v5300_v58 = vadd.f32 %v13164_v25, %v13073_v40 }
 0x5c5   : > { %6032 = vst.msk [vmem:[#allocation2 + $0x68] sm:$0xff] %vm4666_vm5, %v5988_v7  ;;  %v5987_v16 = vmax.f32 %v5943_v42, 0.0  ;;  %v5946_v14 = vadd.f32 %v13139_v15, %v5895_v39  ;;  %v5894_v35 = vadd.f32 %v5731_v55, %v5265_v18  ;;  %9332 = vmatmul.mubr.msk.f32.vlgmr.msra.gmra.mxu1 %vm4666_vm5, %v6207_v45  ;;  %9414 = vmatmul.mubr.msk.f32.vlgmr.msra.gmra.mxu0 %vm4666_vm5, %v6693_v50  ;;  %v6208_v61 = vrot.slane %v13225_v56, 1  ;;  %v13260_v29 = vpop.f32.mrf.mxu1 }
 0x5c6   : > { %v9283_v19 = vpop.f32.mrf.mxu0  ;;  %v6694_v27 = vrot.slane %v13225_v56, 2  ;;  %v6071_v9 = vld [vmem:[#allocation2 + $0x40] ss:$2 sm:$0xff]  ;;  %v6115_v59 = vld [vmem:[#allocation2 + $0x41] ss:$2 sm:$0xff]  ;;  %9365 = vmatpush3.msra.mxu1 %v13083_v4  ;;  %v5290_v4 = vadd.f32 %v13151_v26, %v13069_v23  ;;  %v5295_v40 = vadd.f32 %v13173_v53, %v13075_v63 }
 0x5c7   : > { %6031 = vst.msk [vmem:[#allocation2 + $0x60] sm:$0xff] %vm4666_vm5, %v5987_v16  ;;  %v5990_v41 = vmax.f32 %v5946_v14, 0.0  ;;  %v5945_v33 = vadd.f32 %v13139_v15, %v5894_v35  ;;  %v5897_v48 = vadd.f32 %v9283_v19, %v5280_v52  ;;  %v6209_v51 = vsel %vm943_vm1, %v6206_v38, %v6208_v61  ;;  %9366 = vmatprep.subr.mxu1 %v6174_v10  ;;  %v13278_v19 = vpop.f32.mrf.mxu1 }
 0x5c8   : > { %v5741_v5 = vpop.f32.mrf.mxu0  ;;  %9334 = vmatprep.mubr.msk.f32.mxu1 %vm4666_vm5, %v6209_v51  ;;  %v6695_v36 = vsel %vm1221_vm2, %v6692_v13, %v6694_v27  ;;  %v13247_v43 = vmax.f32 %v6071_v9, %v6115_v59  ;;  %9367 = vmatpush3.msra.mxu1 %v6174_v10 }
 0x5c9   : > { %6034 = vst.msk [vmem:[#allocation2 + $0x78] sm:$0xff] %vm4666_vm5, %v5990_v41  ;;  %v5989_v2 = vmax.f32 %v5945_v33, 0.0  ;;  %v5948_v20 = vadd.f32 %v13139_v15, %v5897_v48  ;;  %v5896_v18 = vadd.f32 %v5741_v5, %v5275_v54  ;;  %9416 = vmatprep.mubr.msk.f32.mxu0 %vm4666_vm5, %v6695_v36  ;;  %9368 = vmatprep.subr.mxu1 %v6173_v11  ;;  %v13289_v48 = vpop.f32.mrf.mxu1 }
 0x5ca   : > { %v9286_v38 = vpop.f32.mrf.mxu0  ;;  %v6210_v13 = vrot.slane %v13247_v43, 1  ;;  %v6696_v22 = vrot.slane %v13247_v43, 2  ;;  %v6073_v23 = vld [vmem:[#allocation2 + $0x50] ss:$2 sm:$0xff]  ;;  %v6117_v26 = vld [vmem:[#allocation2 + $0x51] ss:$2 sm:$0xff]  ;;  %9369 = vmatpush3.msra.mxu1 %v6173_v11  ;;  %v5310_v33 = vadd.f32 %v13181_v12, %v13077_v17 }
 0x5cb   : > { %6033 = vst.msk [vmem:[#allocation2 + $0x70] sm:$0xff] %vm4666_vm5, %v5989_v2  ;;  %v5992_v7 = vmax.f32 %v5948_v20, 0.0  ;;  %v5947_v42 = vadd.f32 %v13139_v15, %v5896_v18  ;;  %v5899_v39 = vadd.f32 %v9286_v38, %v5290_v4  ;;  %v13264_v52 = vmax.f32 %v6073_v23, %v6117_v26  ;;  %9370 = vmatprep.subr.mxu1 %v6172_v32  ;;  %v13306_v26 = vpop.f32.mrf.mxu1 }
 0x5cc   : > { %v5751_v21 = vpop.f32.mrf.mxu0  ;;  %v6211_v55 = vsel %vm943_vm1, %v6208_v61, %v6210_v13  ;;  %v6697_v45 = vsel %vm1221_vm2, %v6694_v27, %v6696_v22  ;;  %9371 = vmatpush3.msra.mxu1 %v6172_v32  ;;  %v5305_v32 = vadd.f32 %v13194_v30, %v13079_v37 }
 0x5cd   : > { %6036 = vst.msk [vmem:[#allocation2 + $0x88] sm:$0xff] %vm4666_vm5, %v5992_v7  ;;  %v5991_v50 = vmax.f32 %v5947_v42, 0.0  ;;  %v5950_v10 = vadd.f32 %v13139_v15, %v5899_v39  ;;  %v5898_v16 = vadd.f32 %v5751_v21, %v5285_v0  ;;  %9335 = vmatmul.mubr.msk.f32.gmra.mxu1 %vm4666_vm5, %v6211_v55  ;;  %9417 = vmatmul.mubr.msk.f32.gmra.mxu0 %vm4666_vm5, %v6697_v45  ;;  %v6212_v14 = vrot.slane %v13264_v52, 1 }
 0x5ce   : > { %v9289_v25 = vpop.f32.mrf.mxu0  ;;  %v6698_v35 = vrot.slane %v13264_v52, 2  ;;  %v6075_v61 = vld [vmem:[#allocation2 + $0x60] ss:$2 sm:$0xff]  ;;  %v6119_v54 = vld [vmem:[#allocation2 + $0x61] ss:$2 sm:$0xff] }
 0x5cf   : > { %6035 = vst.msk [vmem:[#allocation2 + $0x80] sm:$0xff] %vm4666_vm5, %v5991_v50  ;;  %v5994_v27 = vmax.f32 %v5950_v10, 0.0  ;;  %v5949_v9 = vadd.f32 %v13139_v15, %v5898_v16  ;;  %v5901_v59 = vadd.f32 %v9289_v25, %v5300_v58  ;;  %v6213_v11 = vsel %vm943_vm1, %v6210_v13, %v6212_v14  ;;  %v13316_v50 = vpop.f32.mrf.mxu1 }
 0x5d0   : > { %v5761_v41 = vpop.f32.mrf.mxu0  ;;  %9337 = vmatprep.mubr.msk.f32.mxu1 %vm4666_vm5, %v6213_v11  ;;  %v6699_v63 = vsel %vm1221_vm2, %v6696_v22, %v6698_v35  ;;  %v13285_v53 = vmax.f32 %v6075_v61, %v6119_v54  ;;  %v5320_v22 = vadd.f32 %v13203_v49, %v13081_v24  ;;  %v5315_v24 = vadd.f32 %v13221_v8, %v13085_v6 }
 0x5d1   : > { %6038 = vst.msk [vmem:[#allocation2 + $0x98] sm:$0xff] %vm4666_vm5, %v5994_v27  ;;  %v5993_v51 = vmax.f32 %v5949_v9, 0.0  ;;  %v5952_v5 = vadd.f32 %v13139_v15, %v5901_v59  ;;  %v5900_v36 = vadd.f32 %v5761_v41, %v5295_v40  ;;  %9419 = vmatprep.mubr.msk.f32.mxu0 %vm4666_vm5, %v6699_v63  ;;  %v5325_v9 = vadd.f32 %v13251_v34, %v13090_v60 }
 0x5d2   : > { %v9292_v4 = vpop.f32.mrf.mxu0  ;;  %v6214_v2 = vrot.slane %v13285_v53, 1  ;;  %v6700_v20 = vrot.slane %v13285_v53, 2  ;;  %v6077_v18 = vld [vmem:[#allocation2 + $0x70] ss:$2 sm:$0xff]  ;;  %v6121_v17 = vld [vmem:[#allocation2 + $0x71] ss:$2 sm:$0xff] }
 0x5d3   : > { %6037 = vst.msk [vmem:[#allocation2 + $0x90] sm:$0xff] %vm4666_vm5, %v5993_v51  ;;  %v5996_v12 = vmax.f32 %v5952_v5, 0.0  ;;  %v5951_v0 = vadd.f32 %v13139_v15, %v5900_v36  ;;  %v5903_v38 = vadd.f32 %v9292_v4, %v5310_v33  ;;  %v13300_v13 = vmax.f32 %v6077_v18, %v6121_v17  ;;  %v5354_v51 = vpop.f32.mrf.mxu1 }
 0x5d4   : > { %v5771_v23 = vpop.f32.mrf.mxu0  ;;  %v6215_v37 = vsel %vm943_vm1, %v6212_v14, %v6214_v2  ;;  %v6701_v30 = vsel %vm1221_vm2, %v6698_v35, %v6700_v20  ;;  %v5330_v35 = vadd.f32 %v13231_v57, %v13088_v44 }
 0x5d5   : > { %6040 = vst.msk [vmem:[#allocation2 + $0xa8] sm:$0xff] %vm4666_vm5, %v5996_v12  ;;  %v5995_v7 = vmax.f32 %v5951_v0, 0.0  ;;  %v5954_v42 = vadd.f32 %v13139_v15, %v5903_v38  ;;  %v5902_v39 = vadd.f32 %v5771_v23, %v5305_v32  ;;  %9338 = vmatmul.mubr.msk.f32.gmra.mxu1 %vm4666_vm5, %v6215_v37  ;;  %9420 = vmatmul.mubr.msk.f32.gmra.mxu0 %vm4666_vm5, %v6701_v30  ;;  %v6216_v58 = vrot.slane %v13300_v13, 1 }
 0x5d6   : > { %v9295_v49 = vpop.f32.mrf.mxu0  ;;  %v6702_v21 = vrot.slane %v13300_v13, 2  ;;  %v6079_v55 = vld [vmem:[#allocation2 + $0x80] ss:$2 sm:$0xff]  ;;  %v6123_v45 = vld [vmem:[#allocation2 + $0x81] ss:$2 sm:$0xff]  ;;  %v5340_v32 = vadd.f32 %v13260_v29, %v13092_v47  ;;  %v5335_v47 = vadd.f32 %v13278_v19, %v13094_v28  ;;  %v5350_v28 = vadd.f32 %v13289_v48, %v13096_v3 }
 0x5d7   : > { %6039 = vst.msk [vmem:[#allocation2 + $0xa0] sm:$0xff] %vm4666_vm5, %v5995_v7  ;;  %v5998_v10 = vmax.f32 %v5954_v42, 0.0  ;;  %v5953_v16 = vadd.f32 %v13139_v15, %v5902_v39  ;;  %v5905_v14 = vadd.f32 %v9295_v49, %v5320_v22  ;;  %v6217_v40 = vsel %vm943_vm1, %v6214_v2, %v6216_v58  ;;  %v13342_v2 = vpop.f32.mrf.mxu1 }
 0x5d8   : > { %v5781_v25 = vpop.f32.mrf.mxu0  ;;  %9340 = vmatprep.mubr.msk.f32.mxu1 %vm4666_vm5, %v6217_v40  ;;  %v6703_v6 = vsel %vm1221_vm2, %v6700_v20, %v6702_v21  ;;  %v13323_v8 = vmax.f32 %v6079_v55, %v6123_v45  ;;  %v5345_v55 = vadd.f32 %v13306_v26, %v13098_v31 }
 0x5d9   : > { %6042 = vst.msk [vmem:[#allocation2 + $0xb8] sm:$0xff] %vm4666_vm5, %v5998_v10  ;;  %v5997_v61 = vmax.f32 %v5953_v16, 0.0  ;;  %v5956_v54 = vadd.f32 %v13139_v15, %v5905_v14  ;;  %v5904_v27 = vadd.f32 %v5781_v25, %v5315_v24  ;;  %9422 = vmatprep.mubr.msk.f32.mxu0 %vm4666_vm5, %v6703_v6  ;;  %v5364_v19 = vpop.f32.mrf.mxu1 }
 0x5da   : > { %v9298_v59 = vpop.f32.mrf.mxu0  ;;  %v6218_v11 = vrot.slane %v13323_v8, 1  ;;  %v6704_v41 = vrot.slane %v13323_v8, 2  ;;  %v6081_v63 = vld [vmem:[#allocation2 + $0x90] ss:$2 sm:$0xff]  ;;  %v6125_v33 = vld [vmem:[#allocation2 + $0x91] ss:$2 sm:$0xff] }
 0x5db   : > { %6041 = vst.msk [vmem:[#allocation2 + $0xb0] sm:$0xff] %vm4666_vm5, %v5997_v61  ;;  %v6000_v44 = vmax.f32 %v5956_v54, 0.0  ;;  %v5955_v57 = vadd.f32 %v13139_v15, %v5904_v27  ;;  %v5907_v5 = vadd.f32 %v9298_v59, %v5330_v35  ;;  %v13336_v36 = vmax.f32 %v6081_v63, %v6125_v33  ;;  %v9239_v3 = vpop.f32.mrf.mxu1  ;;  %v13796_v61 = vld [vmem:[#allocation33_spill] sm:$0xff]  ;;  %v13797_v63 = vld [vmem:[#allocation34_spill] sm:$0xff] }
 0x5dc   : > { %v5791_v60 = vpop.f32.mrf.mxu0  ;;  %v6219_v34 = vsel %vm943_vm1, %v6216_v58, %v6218_v11  ;;  %v6705_v4 = vsel %vm1221_vm2, %v6702_v21, %v6704_v41  ;;  %v5360_v54 = vadd.f32 %v13316_v50, %v13796_v61  ;;  %v5355_v33 = vadd.f32 %v5354_v51, %v13797_v63  ;;  %v13801_v61 = vld [vmem:[#allocation28_spill] sm:$0xff] }
 0x5dd   : > { %6044 = vst.msk [vmem:[#allocation2 + $0xc8] sm:$0xff] %vm4666_vm5, %v6000_v44  ;;  %v5999_v20 = vmax.f32 %v5955_v57, 0.0  ;;  %v5958_v18 = vadd.f32 %v13139_v15, %v5907_v5  ;;  %v5906_v17 = vadd.f32 %v5791_v60, %v5325_v9  ;;  %9341 = vmatmul.mubr.msk.f32.gmra.mxu1 %vm4666_vm5, %v6219_v34  ;;  %9423 = vmatmul.mubr.msk.f32.gmra.mxu0 %vm4666_vm5, %v6705_v4  ;;  %v6220_v12 = vrot.slane %v13336_v36, 1 }
 0x5de   : > { %v9301_v29 = vpop.f32.mrf.mxu0  ;;  %v6706_v0 = vrot.slane %v13336_v36, 2  ;;  %v6083_v38 = vld [vmem:[#allocation2 + $0xa0] ss:$2 sm:$0xff]  ;;  %v6127_v22 = vld [vmem:[#allocation2 + $0xa1] ss:$2 sm:$0xff] }
 0x5df   : > { %6043 = vst.msk [vmem:[#allocation2 + $0xc0] sm:$0xff] %vm4666_vm5, %v5999_v20  ;;  %v6002_v23 = vmax.f32 %v5958_v18, 0.0  ;;  %v5957_v37 = vadd.f32 %v13139_v15, %v5906_v17  ;;  %v5909_v30 = vadd.f32 %v9301_v29, %v5340_v32  ;;  %v6221_v7 = vsel %vm943_vm1, %v6218_v11, %v6220_v12  ;;  %v5374_v32 = vpop.f32.mrf.mxu1 }
 0x5e0   : > { %v5801_v42 = vpop.f32.mrf.mxu0  ;;  %9343 = vmatprep.mubr.msk.f32.mxu1 %vm4666_vm5, %v6221_v7  ;;  %v6707_v39 = vsel %vm1221_vm2, %v6704_v41, %v6706_v0  ;;  %v13357_v58 = vmax.f32 %v6083_v38, %v6127_v22 }
 0x5e1   : > { %6046 = vst.msk [vmem:[#allocation2 + $0xd8] sm:$0xff] %vm4666_vm5, %v6002_v23  ;;  %v6001_v24 = vmax.f32 %v5957_v37, 0.0  ;;  %v5960_v49 = vadd.f32 %v13139_v15, %v5909_v30  ;;  %v5908_v21 = vadd.f32 %v5801_v42, %v5335_v47  ;;  %9425 = vmatprep.mubr.msk.f32.mxu0 %vm4666_vm5, %v6707_v39  ;;  %v9242_v29 = vpop.f32.mrf.mxu1  ;;  %v13799_v23 = vld [vmem:[#allocation36_spill] sm:$0xff] }
 0x5e2   : > { %v9304_v45 = vpop.f32.mrf.mxu0  ;;  %v6222_v10 = vrot.slane %v13357_v58, 1  ;;  %v6708_v16 = vrot.slane %v13357_v58, 2  ;;  %v6085_v14 = vld [vmem:[#allocation2 + $0xb0] ss:$2 sm:$0xff]  ;;  %v6129_v40 = vld [vmem:[#allocation2 + $0xb1] ss:$2 sm:$0xff]  ;;  %v5365_v37 = vadd.f32 %v5364_v19, %v13799_v23 }
 0x5e3   : > { %6045 = vst.msk [vmem:[#allocation2 + $0xd0] sm:$0xff] %vm4666_vm5, %v6001_v24  ;;  %v6004_v48 = vmax.f32 %v5960_v49, 0.0  ;;  %v5959_v25 = vadd.f32 %v13139_v15, %v5908_v21  ;;  %v5911_v6 = vadd.f32 %v9304_v45, %v5350_v28  ;;  %v13370_v35 = vmax.f32 %v6085_v14, %v6129_v40  ;;  %v5384_v14 = vpop.f32.mrf.mxu1 }
 0x5e4   : > { %v5811_v31 = vpop.f32.mrf.mxu0  ;;  %v6223_v26 = vsel %vm943_vm1, %v6220_v12, %v6222_v10  ;;  %v6709_v27 = vsel %vm1221_vm2, %v6706_v0, %v6708_v16  ;;  %v13798_v12 = vld [vmem:[#allocation35_spill] sm:$0xff] }
 0x5e5   : > { %6048 = vst.msk [vmem:[#allocation2 + $0xe8] sm:$0xff] %vm4666_vm5, %v6004_v48  ;;  %v6003_v9 = vmax.f32 %v5959_v25, 0.0  ;;  %v5962_v59 = vadd.f32 %v13139_v15, %v5911_v6  ;;  %v5910_v11 = vadd.f32 %v5811_v31, %v5345_v55  ;;  %9344 = vmatmul.mubr.msk.f32.gmra.mxu1 %vm4666_vm5, %v6223_v26  ;;  %9426 = vmatmul.mubr.msk.f32.gmra.mxu0 %vm4666_vm5, %v6709_v27  ;;  %v6224_v41 = vrot.slane %v13370_v35, 1  ;;  %v13800_v55 = vld [vmem:[#allocation38_spill] sm:$0xff] }
 0x5e6   : > { %v9307_v50 = vpop.f32.mrf.mxu0  ;;  %v6710_v44 = vrot.slane %v13370_v35, 2  ;;  %v6087_v57 = vld [vmem:[#allocation2 + $0xc0] ss:$2 sm:$0xff]  ;;  %v6131_v5 = vld [vmem:[#allocation2 + $0xc1] ss:$2 sm:$0xff]  ;;  %v5370_v47 = vadd.f32 %v13342_v2, %v13798_v12  ;;  %v5380_v45 = vadd.f32 %v9239_v3, %v13800_v55  ;;  %v5375_v3 = vadd.f32 %v5374_v32, %v13801_v61 }
 0x5e7   : > { %6047 = vst.msk [vmem:[#allocation2 + $0xe0] sm:$0xff] %vm4666_vm5, %v6003_v9  ;;  %v6006_v60 = vmax.f32 %v5962_v59, 0.0  ;;  %v5961_v34 = vadd.f32 %v13139_v15, %v5910_v11  ;;  %v5913_v4 = vadd.f32 %v9307_v50, %v5360_v54  ;;  %v6225_v20 = vsel %vm943_vm1, %v6222_v10, %v6224_v41  ;;  %v9245_v9 = vpop.f32.mrf.mxu1 }
 0x5e8   : > { %v5821_v18 = vpop.f32.mrf.mxu0  ;;  %9346 = vmatprep.mubr.msk.f32.mxu1 %vm4666_vm5, %v6225_v20  ;;  %v6711_v17 = vsel %vm1221_vm2, %v6708_v16, %v6710_v44  ;;  %v13388_v51 = vmax.f32 %v6087_v57, %v6131_v5  ;;  %v13802_v57 = vld [vmem:[#allocation42_spill] sm:$0xff] }
 0x5e9   : > { %6050 = vst.msk [vmem:[#allocation2 + $0xf8] sm:$0xff] %vm4666_vm5, %v6006_v60  ;;  %v6005_v0 = vmax.f32 %v5961_v34, 0.0  ;;  %v5964_v38 = vadd.f32 %v13139_v15, %v5913_v4  ;;  %v5912_v22 = vadd.f32 %v5821_v18, %v5355_v33  ;;  %9428 = vmatprep.mubr.msk.f32.mxu0 %vm4666_vm5, %v6711_v17  ;;  %v5390_v5 = vadd.f32 %v9242_v29, %v13802_v57  ;;  %v13803_v4 = vld [vmem:[#allocation40_spill] sm:$0xff] }
 0x5ea   : > { %v9310_v30 = vpop.f32.mrf.mxu0  ;;  %v6226_v7 = vrot.slane %v13388_v51, 1  ;;  %v6712_v42 = vrot.slane %v13388_v51, 2  ;;  %v6089_v39 = vld [vmem:[#allocation2 + $0xd0] ss:$2 sm:$0xff]  ;;  %v6133_v28 = vld [vmem:[#allocation2 + $0xd1] ss:$2 sm:$0xff]  ;;  %v5385_v20 = vadd.f32 %v5384_v14, %v13803_v4 }
 0x5eb   : > { %6049 = vst.msk [vmem:[#allocation2 + $0xf0] sm:$0xff] %vm4666_vm5, %v6005_v0  ;;  %v6008_v2 = vmax.f32 %v5964_v38, 0.0  ;;  %v5963_v24 = vadd.f32 %v13139_v15, %v5912_v22  ;;  %v5915_v49 = vadd.f32 %v9310_v30, %v5370_v47  ;;  %v13400_v21 = vmax.f32 %v6089_v39, %v6133_v28  ;;  %v5394_v38 = vpop.f32.mrf.mxu1  ;;  %v13804_v30 = vld [vmem:[#allocation43_spill] sm:$0xff] }
 0x5ec   : > { %v5831_v10 = vpop.f32.mrf.mxu0  ;;  %v6227_v19 = vsel %vm943_vm1, %v6224_v41, %v6226_v7  ;;  %v6713_v16 = vsel %vm1221_vm2, %v6710_v44, %v6712_v42 }
 0x5ed   : > { %6052 = vst.msk [vmem:[#allocation2 + $0x108] sm:$0xff] %vm4666_vm5, %v6008_v2  ;;  %v6007_v40 = vmax.f32 %v5963_v24, 0.0  ;;  %v5966_v48 = vadd.f32 %v13139_v15, %v5915_v49  ;;  %v5914_v25 = vadd.f32 %v5831_v10, %v5365_v37  ;;  %9347 = vmatmul.mubr.msk.f32.gmra.mxu1 %vm4666_vm5, %v6227_v19  ;;  %9429 = vmatmul.mubr.msk.f32.gmra.mxu0 %vm4666_vm5, %v6713_v16  ;;  %v6228_v6 = vrot.slane %v13400_v21, 1  ;;  %v9248_v2 = vpop.f32.mrf.mxu1  ;;  %v13805_v10 = vld [vmem:[#allocation29_spill] sm:$0xff] }
 0x5ee   : > { %v9313_v54 = vpop.f32.mrf.mxu0  ;;  %v6714_v31 = vrot.slane %v13400_v21, 2  ;;  %v6091_v26 = vld [vmem:[#allocation2 + $0xe0] ss:$2 sm:$0xff]  ;;  %v6135_v27 = vld [vmem:[#allocation2 + $0xe1] ss:$2 sm:$0xff]  ;;  %v5395_v19 = vadd.f32 %v5394_v38, %v13805_v10 }
 0x5ef   : > { %6051 = vst.msk [vmem:[#allocation2 + $0x100] sm:$0xff] %vm4666_vm5, %v6007_v40  ;;  %v6010_v59 = vmax.f32 %v5966_v48, 0.0  ;;  %v5965_v11 = vadd.f32 %v13139_v15, %v5914_v25  ;;  %v5917_v41 = vadd.f32 %v9313_v54, %v5380_v45  ;;  %v6229_v63 = vsel %vm943_vm1, %v6226_v7, %v6228_v6 }
 0x5f0   : > { %v5841_v33 = vpop.f32.mrf.mxu0  ;;  %9349 = vmatprep.mubr.msk.f32.mxu1 %vm4666_vm5, %v6229_v63  ;;  %v6715_v50 = vsel %vm1221_vm2, %v6712_v42, %v6714_v31  ;;  %v13417_v44 = vmax.f32 %v6091_v26, %v6135_v27  ;;  %v5400_v7 = vadd.f32 %v9245_v9, %v13804_v30  ;;  %v5404_v27 = vpop.f32.mrf.mxu1  ;;  %v13806_v9 = vld [vmem:[#allocation30_spill] sm:$0xff] }
 0x5f1   : > { %6054 = vst.msk [vmem:[#allocation2 + $0x118] sm:$0xff] %vm4666_vm5, %v6010_v59  ;;  %v6009_v32 = vmax.f32 %v5965_v11, 0.0  ;;  %v5968_v60 = vadd.f32 %v13139_v15, %v5917_v41  ;;  %v5916_v34 = vadd.f32 %v5841_v33, %v5375_v3  ;;  %9431 = vmatprep.mubr.msk.f32.mxu0 %vm4666_vm5, %v6715_v50  ;;  %v5410_v59 = vadd.f32 %v9248_v2, %v13806_v9  ;;  %v13807_v33 = vld [vmem:[#allocation31_spill] sm:$0xff] }
 0x5f2   : > { %v9316_v18 = vpop.f32.mrf.mxu0  ;;  %v6230_v17 = vrot.slane %v13417_v44, 1  ;;  %v6716_v12 = vrot.slane %v13417_v44, 2  ;;  %v6093_v47 = vld [vmem:[#allocation2 + $0xf0] ss:$2 sm:$0xff]  ;;  %v6137_v0 = vld [vmem:[#allocation2 + $0xf1] ss:$2 sm:$0xff]  ;;  %v5405_v50 = vadd.f32 %v5404_v27, %v13807_v33 }
 0x5f3   : > { %6053 = vst.msk [vmem:[#allocation2 + $0x110] sm:$0xff] %vm4666_vm5, %v6009_v32  ;;  %v6012_v29 = vmax.f32 %v5968_v60, 0.0  ;;  %v5967_v22 = vadd.f32 %v13139_v15, %v5916_v34  ;;  %v5919_v23 = vadd.f32 %v9316_v18, %v5390_v5  ;;  %v13428_v37 = vmax.f32 %v6093_v47, %v6137_v0 }
 0x5f4   : > { %v5851_v42 = vpop.f32.mrf.mxu0  ;;  %v6231_v39 = vsel %vm943_vm1, %v6228_v6, %v6230_v17  ;;  %v6717_v28 = vsel %vm1221_vm2, %v6714_v31, %v6716_v12 }
 0x5f5   : > { %6056 = vst.msk [vmem:[#allocation2 + $0x128] sm:$0xff] %vm4666_vm5, %v6012_v29  ;;  %v6011_v24 = vmax.f32 %v5967_v22, 0.0  ;;  %v5970_v49 = vadd.f32 %v13139_v15, %v5919_v23  ;;  %v5918_v55 = vadd.f32 %v5851_v42, %v5385_v20  ;;  %9350 = vmatmul.mubr.msk.f32.gmra.mxu1 %vm4666_vm5, %v6231_v39  ;;  %9432 = vmatmul.mubr.msk.f32.gmra.mxu0 %vm4666_vm5, %v6717_v28  ;;  %v6232_v45 = vrot.slane %v13428_v37, 1 }
 0x5f6   : > { %v9319_v16 = vpop.f32.mrf.mxu0  ;;  %v6718_v14 = vrot.slane %v13428_v37, 2  ;;  %v6095_v40 = vld [vmem:[#allocation2 + $0x100] ss:$2 sm:$0xff]  ;;  %v6139_v48 = vld [vmem:[#allocation2 + $0x101] ss:$2 sm:$0xff] }
 0x5f7   : > { %6055 = vst.msk [vmem:[#allocation2 + $0x120] sm:$0xff] %vm4666_vm5, %v6011_v24  ;;  %v6014_v25 = vmax.f32 %v5970_v49, 0.0  ;;  %v5969_v6 = vadd.f32 %v13139_v15, %v5918_v55  ;;  %v5921_v61 = vadd.f32 %v9319_v16, %v5400_v7  ;;  %v6233_v3 = vsel %vm943_vm1, %v6230_v17, %v6232_v45 }
 0x5f8   : > { %v5861_v54 = vpop.f32.mrf.mxu0  ;;  %9352 = vmatprep.mubr.msk.f32.mxu1 %vm4666_vm5, %v6233_v3  ;;  %v6719_v31 = vsel %vm1221_vm2, %v6716_v12, %v6718_v14  ;;  %v13445_v26 = vmax.f32 %v6095_v40, %v6139_v48 }
 0x5f9   : > { %6058 = vst.msk [vmem:[#allocation2 + $0x138] sm:$0xff] %vm4666_vm5, %v6014_v25  ;;  %v6013_v11 = vmax.f32 %v5969_v6, 0.0  ;;  %v5972_v41 = vadd.f32 %v13139_v15, %v5921_v61  ;;  %v5920_v63 = vadd.f32 %v5861_v54, %v5395_v19  ;;  %9434 = vmatprep.mubr.msk.f32.mxu0 %vm4666_vm5, %v6719_v31 }
 0x5fa   : > { %v9322_v57 = vpop.f32.mrf.mxu0  ;;  %v6234_v5 = vrot.slane %v13445_v26, 1  ;;  %v6720_v32 = vrot.slane %v13445_v26, 2  ;;  %v6097_v60 = vld [vmem:[#allocation2 + $0x110] ss:$2 sm:$0xff]  ;;  %v6141_v34 = vld [vmem:[#allocation2 + $0x111] ss:$2 sm:$0xff] }
 0x5fb   : > { %6057 = vst.msk [vmem:[#allocation2 + $0x130] sm:$0xff] %vm4666_vm5, %v6013_v11  ;;  %v6016_v4 = vmax.f32 %v5972_v41, 0.0  ;;  %v5971_v20 = vadd.f32 %v13139_v15, %v5920_v63  ;;  %v5923_v18 = vadd.f32 %v9322_v57, %v5410_v59  ;;  %v13456_v17 = vmax.f32 %v6097_v60, %v6141_v34 }
 0x5fc   : > { %v5871_v12 = vpop.f32.mrf.mxu0  ;;  %v6235_v47 = vsel %vm943_vm1, %v6232_v45, %v6234_v5  ;;  %v6721_v0 = vsel %vm1221_vm2, %v6718_v14, %v6720_v32 }
 0x5fd   : > { %6060 = vst.msk [vmem:[#allocation2 + $0x148] sm:$0xff] %vm4666_vm5, %v6016_v4  ;;  %v6015_v38 = vmax.f32 %v5971_v20, 0.0  ;;  %v5974_v29 = vadd.f32 %v13139_v15, %v5923_v18  ;;  %v5922_v22 = vadd.f32 %v5871_v12, %v5405_v50  ;;  %9353 = vmatmul.mubr.msk.f32.gmra.mxu1 %vm4666_vm5, %v6235_v47  ;;  %9435 = vmatmul.mubr.msk.f32.gmra.mxu0 %vm4666_vm5, %v6721_v0  ;;  %v6236_v23 = vrot.slane %v13456_v17, 1 }
 0x5fe   : > { %v6722_v30 = vrot.slane %v13456_v17, 2  ;;  %v6099_v7 = vld [vmem:[#allocation2 + $0x120] ss:$2 sm:$0xff]  ;;  %v6143_v42 = vld [vmem:[#allocation2 + $0x121] ss:$2 sm:$0xff] }
 0x5ff   : > { %6059 = vst.msk [vmem:[#allocation2 + $0x140] sm:$0xff] %vm4666_vm5, %v6015_v38  ;;  %v6018_v39 = vmax.f32 %v5974_v29, 0.0  ;;  %v5973_v28 = vadd.f32 %v13139_v15, %v5922_v22  ;;  %v6237_v2 = vsel %vm943_vm1, %v6234_v5, %v6236_v23  ;;  %v6168_v24 = vmax.f32 %v6099_v7, %v6143_v42 }
 0x600   : > { %9355 = vmatprep.mubr.msk.f32.mxu1 %vm4666_vm5, %v6237_v2  ;;  %v6723_v49 = vsel %vm1221_vm2, %v6720_v32, %v6722_v30 }
 0x601   : > { %6062 = vst.msk [vmem:[#allocation2 + $0x158] sm:$0xff] %vm4666_vm5, %v6018_v39  ;;  %v6017_v55 = vmax.f32 %v5973_v28, 0.0  ;;  %9437 = vmatprep.mubr.msk.f32.mxu0 %vm4666_vm5, %v6723_v49  ;;  %v6238_v45 = vrot.slane %v6168_v24, 1  ;;  %v6724_v10 = vrot.slane %v6168_v24, 2  ;;  %v13562_v39 = vld [vmem:[#allocation18] ss:$0 sm:$0xff] }
 0x602   : > { %v6101_v19 = vld [vmem:[#allocation2 + $0x130] ss:$2 sm:$0xff]  ;;  %v6145_v16 = vld [vmem:[#allocation2 + $0x131] ss:$2 sm:$0xff] }
 0x603   : > { %6061 = vst.msk [vmem:[#allocation2 + $0x150] sm:$0xff] %vm4666_vm5, %v6017_v55  ;;  %v6239_v15 = vsel %vm943_vm1, %v6236_v23, %v6238_v45  ;;  %v6725_v14 = vsel %vm1221_vm2, %v6722_v30, %v6724_v10  ;;  %v6169_v40 = vmax.f32 %v6101_v19, %v6145_v16 }
 0x604   : > { %9356 = vmatmul.mubr.msk.f32.gmra.mxu1 %vm4666_vm5, %v6239_v15  ;;  %9438 = vmatmul.mubr.msk.f32.gmra.mxu0 %vm4666_vm5, %v6725_v14 }
 0x605   : > { %v6240_v48 = vrot.slane %v6169_v40, 1  ;;  %v6726_v25 = vrot.slane %v6169_v40, 2 }
 0x606   : > { %v6103_v6 = vld [vmem:[#allocation2 + $0x140] ss:$2 sm:$0xff]  ;;  %v6147_v61 = vld [vmem:[#allocation2 + $0x141] ss:$2 sm:$0xff] }
 0x607   : > { %v6241_v3 = vsel %vm943_vm1, %v6238_v45, %v6240_v48  ;;  %v6727_v54 = vsel %vm1221_vm2, %v6724_v10, %v6726_v25  ;;  %v6170_v31 = vmax.f32 %v6103_v6, %v6147_v61 }
 0x608   : > { %9358 = vmatprep.mubr.msk.f32.mxu1 %vm4666_vm5, %v6241_v3  ;;  %9440 = vmatprep.mubr.msk.f32.mxu0 %vm4666_vm5, %v6727_v54 }
 0x609   : > { %v6242_v27 = vrot.slane %v6170_v31, 1  ;;  %v6728_v9 = vrot.slane %v6170_v31, 2 }
 0x60a   : > { %v6105_v59 = vld [vmem:[#allocation2 + $0x150] ss:$2 sm:$0xff]  ;;  %v6149_v11 = vld [vmem:[#allocation2 + $0x151] ss:$2 sm:$0xff] }
 0x60b   : > { %v6243_v41 = vsel %vm943_vm1, %v6240_v48, %v6242_v27  ;;  %v6729_v63 = vsel %vm1221_vm2, %v6726_v25, %v6728_v9  ;;  %v6171_v33 = vmax.f32 %v6105_v59, %v6149_v11 }
 0x60c   : > { %9359 = vmatmul.mubr.msk.f32.gmra.mxu1 %vm4666_vm5, %v6243_v41  ;;  %9441 = vmatmul.mubr.msk.f32.gmra.mxu0 %vm4666_vm5, %v6729_v63 }
 0x60d   : > { %v6244_v50 = vrot.slane %v6171_v33, 1  ;;  %v6730_v57 = vrot.slane %v6171_v33, 2 }
 0x60f   : > { %v6245_v5 = vsel %vm943_vm1, %v6242_v27, %v6244_v50  ;;  %v6731_v32 = vsel %vm1221_vm2, %v6728_v9, %v6730_v57 }
 0x610   : > { %9361 = vmatprep.mubr.msk.f32.mxu1 %vm4666_vm5, %v6245_v5  ;;  %9443 = vmatprep.mubr.msk.f32.mxu0 %vm4666_vm5, %v6731_v32 }
 0x611   : > { %9362 = vmatmul.mubr.msk.f32.gmra.mxu1 %vm4666_vm5, %v6244_v50  ;;  %9444 = vmatmul.mubr.msk.f32.gmra.mxu0 %vm4666_vm5, %v6730_v57 }
 0x612   : > { %9372 = vmatprep.mubr.msk.f32.mxu1 %vm4666_vm5, %v13177_v62 }
 0x615   : > { %9373 = vmatmul.mubr.msk.f32.vlgmr.msra.gmra.mxu1 %vm4666_vm5, %v13189_v46 }
 0x616   : > { %9375 = vmatprep.mubr.msk.f32.mxu1 %vm4666_vm5, %v13210_v1 }
 0x619   : > { %9376 = vmatmul.mubr.msk.f32.gmra.mxu1 %vm4666_vm5, %v13225_v56 }
 0x61a   : > { %9378 = vmatprep.mubr.msk.f32.mxu1 %vm4666_vm5, %v13247_v43 }
 0x61d   : > { %9379 = vmatmul.mubr.msk.f32.gmra.mxu1 %vm4666_vm5, %v13264_v52 }
 0x61e   : > { %9381 = vmatprep.mubr.msk.f32.mxu1 %vm4666_vm5, %v13285_v53 }
 0x621   : > { %9382 = vmatmul.mubr.msk.f32.gmra.mxu1 %vm4666_vm5, %v13300_v13 }
 0x622   : > { %9384 = vmatprep.mubr.msk.f32.mxu1 %vm4666_vm5, %v13323_v8 }
 0x625   : > { %9385 = vmatmul.mubr.msk.f32.gmra.mxu1 %vm4666_vm5, %v13336_v36 }
 0x626   : > { %9387 = vmatprep.mubr.msk.f32.mxu1 %vm4666_vm5, %v13357_v58 }
 0x629   : > { %9388 = vmatmul.mubr.msk.f32.gmra.mxu1 %vm4666_vm5, %v13370_v35 }
 0x62a   : > { %9390 = vmatprep.mubr.msk.f32.mxu1 %vm4666_vm5, %v13388_v51 }
 0x62d   : > { %9391 = vmatmul.mubr.msk.f32.gmra.mxu1 %vm4666_vm5, %v13400_v21 }
 0x62e   : > { %9393 = vmatprep.mubr.msk.f32.mxu1 %vm4666_vm5, %v13417_v44 }
 0x631   : > { %9394 = vmatmul.mubr.msk.f32.gmra.mxu1 %vm4666_vm5, %v13428_v37 }
 0x632   : > { %9396 = vmatprep.mubr.msk.f32.mxu1 %vm4666_vm5, %v13445_v26 }
 0x635   : > { %9397 = vmatmul.mubr.msk.f32.gmra.mxu1 %vm4666_vm5, %v13456_v17 }
 0x636   : > { %9399 = vmatprep.mubr.msk.f32.mxu1 %vm4666_vm5, %v6168_v24 }
 0x639   : > { %9400 = vmatmul.mubr.msk.f32.gmra.mxu1 %vm4666_vm5, %v6169_v40 }
 0x63a   : > { %9402 = vmatprep.mubr.msk.f32.mxu1 %vm4666_vm5, %v6170_v31 }
 0x63d   : > { %9403 = vmatmul.mubr.msk.f32.gmra.mxu1 %vm4666_vm5, %v6171_v33 }
 0x685   : > { %v9333_v62 = vpop.f32.mrf.mxu1  ;;  %v9415_v44 = vpop.f32.mrf.mxu0 }
 0x687   : > { %v6356_v46 = vpop.f32.mrf.mxu1  ;;  %v6842_v26 = vpop.f32.mrf.mxu0 }
 0x68d   : > { %v9336_v1 = vpop.f32.mrf.mxu1  ;;  %v9418_v34 = vpop.f32.mrf.mxu0 }
 0x68f   : > { %v6366_v56 = vpop.f32.mrf.mxu1  ;;  %v6852_v20 = vpop.f32.mrf.mxu0 }
 0x695   : > { %v9339_v43 = vpop.f32.mrf.mxu1  ;;  %v9421_v17 = vpop.f32.mrf.mxu0 }
 0x697   : > { %v6376_v52 = vpop.f32.mrf.mxu1  ;;  %v6862_v0 = vpop.f32.mrf.mxu0 }
 0x69d   : > { %v9342_v53 = vpop.f32.mrf.mxu1  ;;  %v9424_v38 = vpop.f32.mrf.mxu0 }
 0x69f   : > { %v13532_v13 = vpop.f32.mrf.mxu1  ;;  %v6872_v23 = vpop.f32.mrf.mxu0 }
 0x6a5   : > { %v13534_v8 = vpop.f32.mrf.mxu1  ;;  %v9427_v42 = vpop.f32.mrf.mxu0 }
 0x6a7   : > { %v13536_v36 = vpop.f32.mrf.mxu1  ;;  %v6882_v19 = vpop.f32.mrf.mxu0 }
 0x6ad   : > { %v13538_v58 = vpop.f32.mrf.mxu1  ;;  %v9430_v25 = vpop.f32.mrf.mxu0 }
 0x6af   : > { %v13540_v35 = vpop.f32.mrf.mxu1  ;;  %v6892_v63 = vpop.f32.mrf.mxu0 }
 0x6b5   : > { %v13542_v51 = vpop.f32.mrf.mxu1 }
 0x6b7   : > { %v13544_v21 = vpop.f32.mrf.mxu1 }
 0x6bd   : > { %v13546_v37 = vpop.f32.mrf.mxu1 }
 0x6bf   : > { %v13548_v60 = vpop.f32.mrf.mxu1 }
 0x6c4   : > { %v13550_v4 = vpop.f32.mrf.mxu1 }
 0x6c6   : > { %v13552_v18 = vpop.f32.mrf.mxu1 }
 0x6cc   : > { %v13554_v12 = vpop.f32.mrf.mxu1 }
 0x6ce   : > { %v13556_v47 = vpop.f32.mrf.mxu1 }
 0x6d1   : > { %v13558_v29 = vpop.f32.mrf.mxu1 }
 0x6d3   : > { %v13560_v22 = vpop.f32.mrf.mxu1 }
 0x6d5   : > { %v9374_v30 = vpop.f32.mrf.mxu1 }
 0x6d6   : > { %v6581_v7 = vadd.f32 %v9374_v30, %v9333_v62  ;;  %v9433_v62 = vpop.f32.mrf.mxu0 }
 0x6d7   : > { %v6575_v28 = vpop.f32.mrf.mxu1 }
 0x6d8   : > { %v6952_v2 = vadd.f32 %v9415_v44, %v6581_v7  ;;  %v6576_v24 = vadd.f32 %v6575_v28, %v6356_v46 }
 0x6d9   : > { %v9377_v49 = vpop.f32.mrf.mxu1 }
 0x6da   : > { %v6981_v55 = vadd.f32 %v13562_v39, %v6952_v2  ;;  %v6951_v45 = vadd.f32 %v6842_v26, %v6576_v24  ;;  %v6591_v10 = vadd.f32 %v9377_v49, %v9336_v1 }
 0x6db   : > { %v6585_v16 = vpop.f32.mrf.mxu1 }
 0x6dc   : > { %v7003_v15 = vmax.f32 %v6981_v55, 0.0  ;;  %v6980_v14 = vadd.f32 %v13562_v39, %v6951_v45  ;;  %v6954_v40 = vadd.f32 %v9418_v34, %v6591_v10  ;;  %v6586_v48 = vadd.f32 %v6585_v16, %v6366_v56 }
 0x6dd   : > { %v9380_v6 = vpop.f32.mrf.mxu1 }
 0x6de   : > { %7026 = vst.msk [vmem:[#allocation3 + $0x8] sm:$0xff] %vm7024_vm6, %v7003_v15  ;;  %v7002_v61 = vmax.f32 %v6980_v14, 0.0  ;;  %v6983_v3 = vadd.f32 %v13562_v39, %v6954_v40  ;;  %v6953_v54 = vadd.f32 %v6852_v20, %v6586_v48  ;;  %v6601_v31 = vadd.f32 %v9380_v6, %v9339_v43 }
 0x6df   : > { %v6595_v27 = vpop.f32.mrf.mxu1 }
 0x6e0   : > { %7025 = vst.msk [vmem:[#allocation3] sm:$0xff] %vm7024_vm6, %v7002_v61  ;;  %v7005_v9 = vmax.f32 %v6983_v3, 0.0  ;;  %v6982_v59 = vadd.f32 %v13562_v39, %v6953_v54  ;;  %v6956_v11 = vadd.f32 %v9421_v17, %v6601_v31  ;;  %v6596_v41 = vadd.f32 %v6595_v27, %v6376_v52  ;;  %v6902_v17 = vpop.f32.mrf.mxu0 }
 0x6e1   : > { %v9383_v33 = vpop.f32.mrf.mxu1 }
 0x6e2   : > { %7028 = vst.msk [vmem:[#allocation3 + $0x18] sm:$0xff] %vm7024_vm6, %v7005_v9  ;;  %v7004_v50 = vmax.f32 %v6982_v59, 0.0  ;;  %v6985_v57 = vadd.f32 %v13562_v39, %v6956_v11  ;;  %v6955_v5 = vadd.f32 %v6862_v0, %v6596_v41  ;;  %v6611_v32 = vadd.f32 %v9383_v33, %v9342_v53 }
 0x6e3   : > { %v6605_v46 = vpop.f32.mrf.mxu1 }
 0x6e4   : > { %7027 = vst.msk [vmem:[#allocation3 + $0x10] sm:$0xff] %vm7024_vm6, %v7004_v50  ;;  %v7007_v1 = vmax.f32 %v6985_v57, 0.0  ;;  %v6984_v56 = vadd.f32 %v13562_v39, %v6955_v5  ;;  %v6958_v43 = vadd.f32 %v9424_v38, %v6611_v32  ;;  %v6606_v52 = vadd.f32 %v6605_v46, %v13532_v13 }
 0x6e5   : > { %v9386_v44 = vpop.f32.mrf.mxu1 }
 0x6e6   : > { %7030 = vst.msk [vmem:[#allocation3 + $0x28] sm:$0xff] %vm7024_vm6, %v7007_v1  ;;  %v7006_v26 = vmax.f32 %v6984_v56, 0.0  ;;  %v6987_v34 = vadd.f32 %v13562_v39, %v6958_v43  ;;  %v6957_v20 = vadd.f32 %v6872_v23, %v6606_v52  ;;  %v6621_v53 = vadd.f32 %v9386_v44, %v13534_v8  ;;  %v9436_v23 = vpop.f32.mrf.mxu0 }
 0x6e7   : > { %v7048_v0 = vld [vmem:[#allocation3] ss:$2 sm:$0xff]  ;;  %v7070_v38 = vld [vmem:[#allocation3 + $0x1] ss:$2 sm:$0xff]  ;;  %v6615_v30 = vpop.f32.mrf.mxu1 }
 0x6e8   : > { %v7091_v13 = vmax.f32 %v7048_v0, %v7070_v38  ;;  %7029 = vst.msk [vmem:[#allocation3 + $0x20] sm:$0xff] %vm7024_vm6, %v7006_v26  ;;  %v7009_v7 = vmax.f32 %v6987_v34, 0.0  ;;  %v6986_v28 = vadd.f32 %v13562_v39, %v6957_v20  ;;  %v6960_v2 = vadd.f32 %v9427_v42, %v6621_v53  ;;  %v6912_v6 = vpop.f32.mrf.mxu0 }
 0x6e9   : > { %v6616_v8 = vadd.f32 %v6615_v30, %v13536_v36  ;;  %v9389_v24 = vpop.f32.mrf.mxu1 }
 0x6ea   : > { %7102 = vst.msk [vmem:[%s13582_s14] sm:$0xff] %vm7024_vm6, %v7091_v13  ;;  %7032 = vst.msk [vmem:[#allocation3 + $0x38] sm:$0xff] %vm7024_vm6, %v7009_v7  ;;  %v7008_v49 = vmax.f32 %v6986_v28, 0.0  ;;  %v6989_v55 = vadd.f32 %v13562_v39, %v6960_v2  ;;  %v6631_v45 = vadd.f32 %v9389_v24, %v13538_v58  ;;  %v9439_v31 = vpop.f32.mrf.mxu0 }
 0x6eb   : > { %v7050_v10 = vld [vmem:[#allocation3 + $0x10] ss:$2 sm:$0xff]  ;;  %v7072_v16 = vld [vmem:[#allocation3 + $0x11] ss:$2 sm:$0xff]  ;;  %v6959_v15 = vadd.f32 %v6882_v19, %v6616_v8  ;;  %v6625_v14 = vpop.f32.mrf.mxu1 }
 0x6ec   : > { %v7092_v40 = vmax.f32 %v7050_v10, %v7072_v16  ;;  %7031 = vst.msk [vmem:[#allocation3 + $0x30] sm:$0xff] %vm7024_vm6, %v7008_v49  ;;  %v7011_v42 = vmax.f32 %v6989_v55, 0.0  ;;  %v6962_v36 = vadd.f32 %v9430_v25, %v6631_v45  ;;  %v6626_v48 = vadd.f32 %v6625_v14, %v13540_v35  ;;  %v6922_v32 = vpop.f32.mrf.mxu0 }
 0x6ed   : > { %v6988_v61 = vadd.f32 %v13562_v39, %v6959_v15  ;;  %v9392_v3 = vpop.f32.mrf.mxu1 }
 0x6ee   : > { %7103 = vst.msk [vmem:[%s13582_s14 + $0x8] sm:$0xff] %vm7024_vm6, %v7092_v40  ;;  %7034 = vst.msk [vmem:[#allocation3 + $0x48] sm:$0xff] %vm7024_vm6, %v7011_v42  ;;  %v6991_v58 = vadd.f32 %v13562_v39, %v6962_v36  ;;  %v6961_v19 = vadd.f32 %v6892_v63, %v6626_v48  ;;  %v6641_v54 = vadd.f32 %v9392_v3, %v13542_v51  ;;  %v9442_v26 = vpop.f32.mrf.mxu0 }
 0x6ef   : > { %v7052_v27 = vld [vmem:[#allocation3 + $0x20] ss:$2 sm:$0xff]  ;;  %v7074_v9 = vld [vmem:[#allocation3 + $0x21] ss:$2 sm:$0xff]  ;;  %v7010_v25 = vmax.f32 %v6988_v61, 0.0  ;;  %v6635_v59 = vpop.f32.mrf.mxu1 }
 0x6f0   : > { %v7093_v35 = vmax.f32 %v7052_v27, %v7074_v9  ;;  %v7013_v11 = vmax.f32 %v6991_v58, 0.0  ;;  %v6990_v41 = vadd.f32 %v13562_v39, %v6961_v19  ;;  %v6964_v33 = vadd.f32 %v9433_v62, %v6641_v54 }
 0x6f1   : > { %7033 = vst.msk [vmem:[#allocation3 + $0x40] sm:$0xff] %vm7024_vm6, %v7010_v25  ;;  %v6636_v50 = vadd.f32 %v6635_v59, %v13544_v21  ;;  %v9395_v57 = vpop.f32.mrf.mxu1 }
 0x6f2   : > { %7104 = vst.msk [vmem:[%s13582_s14 + $0x10] sm:$0xff] %vm7024_vm6, %v7093_v35  ;;  %7036 = vst.msk [vmem:[#allocation3 + $0x58] sm:$0xff] %vm7024_vm6, %v7013_v11  ;;  %v7012_v51 = vmax.f32 %v6990_v41, 0.0  ;;  %v6993_v63 = vadd.f32 %v13562_v39, %v6964_v33  ;;  %v6651_v5 = vadd.f32 %v9395_v57, %v13546_v37 }
 0x6f3   : > { %v7054_v46 = vld [vmem:[#allocation3 + $0x30] ss:$2 sm:$0xff]  ;;  %v7076_v1 = vld [vmem:[#allocation3 + $0x31] ss:$2 sm:$0xff]  ;;  %v6963_v56 = vadd.f32 %v6902_v17, %v6636_v50  ;;  %v6645_v62 = vpop.f32.mrf.mxu1 }
 0x6f4   : > { %v7094_v43 = vmax.f32 %v7054_v46, %v7076_v1  ;;  %7035 = vst.msk [vmem:[#allocation3 + $0x50] sm:$0xff] %vm7024_vm6, %v7012_v51  ;;  %v7015_v21 = vmax.f32 %v6993_v63, 0.0  ;;  %v6966_v52 = vadd.f32 %v9436_v23, %v6651_v5  ;;  %v6646_v44 = vadd.f32 %v6645_v62, %v13548_v60  ;;  %v6932_v23 = vpop.f32.mrf.mxu0 }
 0x6f5   : > { %v6992_v34 = vadd.f32 %v13562_v39, %v6963_v56  ;;  %v9398_v20 = vpop.f32.mrf.mxu1 }
 0x6f6   : > { %7105 = vst.msk [vmem:[%s13582_s14 + $0x18] sm:$0xff] %vm7024_vm6, %v7094_v43  ;;  %7038 = vst.msk [vmem:[#allocation3 + $0x68] sm:$0xff] %vm7024_vm6, %v7015_v21  ;;  %v6995_v37 = vadd.f32 %v13562_v39, %v6966_v52  ;;  %v6965_v53 = vadd.f32 %v6912_v6, %v6646_v44  ;;  %v6661_v17 = vadd.f32 %v9398_v20, %v13550_v4  ;;  %v9445_v36 = vpop.f32.mrf.mxu0 }
 0x6f7   : > { %v7014_v0 = vmax.f32 %v6992_v34, 0.0  ;;  %v6655_v38 = vpop.f32.mrf.mxu1 }
 0x6f8   : > { %v7056_v30 = vld [vmem:[#allocation3 + $0x40] ss:$2 sm:$0xff]  ;;  %v7078_v13 = vld [vmem:[#allocation3 + $0x41] ss:$2 sm:$0xff]  ;;  %v7017_v7 = vmax.f32 %v6995_v37, 0.0  ;;  %v6994_v60 = vadd.f32 %v13562_v39, %v6965_v53  ;;  %v6968_v28 = vadd.f32 %v9439_v31, %v6661_v17  ;;  %v6656_v2 = vadd.f32 %v6655_v38, %v13552_v18  ;;  %v6942_v25 = vpop.f32.mrf.mxu0 }
 0x6f9   : > { %v7095_v8 = vmax.f32 %v7056_v30, %v7078_v13  ;;  %7037 = vst.msk [vmem:[#allocation3 + $0x60] sm:$0xff] %vm7024_vm6, %v7014_v0  ;;  %v9401_v24 = vpop.f32.mrf.mxu1 }
 0x6fa   : > { %7040 = vst.msk [vmem:[#allocation3 + $0x78] sm:$0xff] %vm7024_vm6, %v7017_v7  ;;  %v7016_v49 = vmax.f32 %v6994_v60, 0.0  ;;  %v6997_v4 = vadd.f32 %v13562_v39, %v6968_v28  ;;  %v6967_v55 = vadd.f32 %v6922_v32, %v6656_v2  ;;  %v6671_v45 = vadd.f32 %v9401_v24, %v13554_v12 }
 0x6fb   : > { %7106 = vst.msk [vmem:[%s13582_s14 + $0x20] sm:$0xff] %vm7024_vm6, %v7095_v8  ;;  %v7058_v10 = vld [vmem:[#allocation3 + $0x50] ss:$2 sm:$0xff]  ;;  %v7080_v16 = vld [vmem:[#allocation3 + $0x51] ss:$2 sm:$0xff]  ;;  %v6665_v15 = vpop.f32.mrf.mxu1 }
 0x6fc   : > { %v7096_v18 = vmax.f32 %v7058_v10, %v7080_v16  ;;  %7039 = vst.msk [vmem:[#allocation3 + $0x70] sm:$0xff] %vm7024_vm6, %v7016_v49  ;;  %v7019_v14 = vmax.f32 %v6997_v4, 0.0  ;;  %v6996_v40 = vadd.f32 %v13562_v39, %v6967_v55  ;;  %v6970_v42 = vadd.f32 %v9442_v26, %v6671_v45 }
 0x6fd   : > { %v6666_v48 = vadd.f32 %v6665_v15, %v13556_v47  ;;  %v9404_v6 = vpop.f32.mrf.mxu1 }
 0x6fe   : > { %7107 = vst.msk [vmem:[%s13582_s14 + $0x28] sm:$0xff] %vm7024_vm6, %v7096_v18  ;;  %7042 = vst.msk [vmem:[#allocation3 + $0x88] sm:$0xff] %vm7024_vm6, %v7019_v14  ;;  %v7018_v12 = vmax.f32 %v6996_v40, 0.0  ;;  %v6999_v61 = vadd.f32 %v13562_v39, %v6970_v42  ;;  %v6681_v3 = vadd.f32 %v9404_v6, %v13558_v29 }
 0x6ff   : > { %v6969_v58 = vadd.f32 %v6932_v23, %v6666_v48  ;;  %v6675_v19 = vpop.f32.mrf.mxu1 }
 0x700   : > { %v7060_v54 = vld [vmem:[#allocation3 + $0x60] ss:$2 sm:$0xff]  ;;  %v7082_v31 = vld [vmem:[#allocation3 + $0x61] ss:$2 sm:$0xff]  ;;  %7041 = vst.msk [vmem:[#allocation3 + $0x80] sm:$0xff] %vm7024_vm6, %v7018_v12  ;;  %v7021_v27 = vmax.f32 %v6999_v61, 0.0  ;;  %v6972_v9 = vadd.f32 %v9445_v36, %v6681_v3  ;;  %v6676_v47 = vadd.f32 %v6675_v19, %v13560_v22 }
 0x701   : > { %v7097_v59 = vmax.f32 %v7060_v54, %v7082_v31  ;;  %v6998_v35 = vadd.f32 %v13562_v39, %v6969_v58 }
 0x702   : > { %7044 = vst.msk [vmem:[#allocation3 + $0x98] sm:$0xff] %vm7024_vm6, %v7021_v27  ;;  %v7001_v11 = vadd.f32 %v13562_v39, %v6972_v9  ;;  %v6971_v29 = vadd.f32 %v6942_v25, %v6676_v47 }
 0x703   : > { %7108 = vst.msk [vmem:[%s13582_s14 + $0x30] sm:$0xff] %vm7024_vm6, %v7097_v59  ;;  %v7062_v41 = vld [vmem:[#allocation3 + $0x70] ss:$2 sm:$0xff]  ;;  %v7084_v33 = vld [vmem:[#allocation3 + $0x71] ss:$2 sm:$0xff]  ;;  %v7020_v50 = vmax.f32 %v6998_v35, 0.0 }
 0x704   : > { %v7098_v57 = vmax.f32 %v7062_v41, %v7084_v33  ;;  %v7023_v22 = vmax.f32 %v7001_v11, 0.0  ;;  %v7000_v51 = vadd.f32 %v13562_v39, %v6971_v29 }
 0x705   : > { %7043 = vst.msk [vmem:[#allocation3 + $0x90] sm:$0xff] %vm7024_vm6, %v7020_v50 }
 0x706   : > { %7109 = vst.msk [vmem:[%s13582_s14 + $0x38] sm:$0xff] %vm7024_vm6, %v7098_v57  ;;  %v7022_v63 = vmax.f32 %v7000_v51, 0.0 }
 0x707   : > { %7047 = vst.msk [vmem:[#allocation3 + $0xa8] sm:$0x3f] %vm7046_vm7, %v7023_v22  ;;  %v7064_v5 = vld [vmem:[#allocation3 + $0x80] ss:$2 sm:$0xff]  ;;  %v7086_v32 = vld [vmem:[#allocation3 + $0x81] ss:$2 sm:$0xff] }
 0x708   : > { %v7099_v46 = vmax.f32 %v7064_v5, %v7086_v32  ;;  %7045 = vst.msk [vmem:[#allocation3 + $0xa0] sm:$0xff] %vm7024_vm6, %v7022_v63 }
 0x70a   : > { %7110 = vst.msk [vmem:[%s13582_s14 + $0x40] sm:$0xff] %vm7024_vm6, %v7099_v46 }
 0x70c   : > { %v7066_v1 = vld [vmem:[#allocation3 + $0x90] ss:$2 sm:$0xff]  ;;  %v7088_v56 = vld [vmem:[#allocation3 + $0x91] ss:$2 sm:$0xff] }
 0x70d   : > { %v7100_v62 = vmax.f32 %v7066_v1, %v7088_v56 }
 0x70f   : > { %7111 = vst.msk [vmem:[%s13582_s14 + $0x48] sm:$0xff] %vm7024_vm6, %v7100_v62  ;;  %v7068_v39 = vld [vmem:[#allocation3 + $0xa0] ss:$2 sm:$0x7f] }
 0x710   : > { %v7090_v43 = vld [vmem:[#allocation3 + $0xa1] ss:$2 sm:$0x7f] }
 0x711   : > { %v7101_v21 = vmax.f32 %v7068_v39, %v7090_v43 }
 0x713   : > { %7113 = vst.msk [vmem:[%s13582_s14 + $0x50] sm:$0x7f] %vm7112_vm8, %v7101_v21 }
 0x714 PF: > { %s27_s17 = sadd.s32 1, %s9863_s17  }
 0x715   : > { %p24_p2 = scmp.ge.s32.totalorder %s27_s17, 4  }
 0x717   :  { %26 = sbr.rel (!%p24_p2) target bundleno = 6 (0x6), region = 209 }
 0x71c   :  { %7135 = vsyncpa [#allocation5], 1 }
 0x71d   :  { %7137 = vsyncpa [#allocation5 + $0x1], 1 }
 0x71e   :  { %7138 = vsyncpa [#allocation7], 1 }
 0x71f   :  { %7139 = vsyncpa [#allocation10], 1 }
 0x720   :  { %7140 = vsyncpa [#allocation13], 1 }
 0x721   :  { %7141 = vsyncpa [#allocation16], 1 }
 0x722   :  { %7142 = vsyncpa [#allocation19], 1 }

</bundles_post_ra>
